<compile_context>
chip_gen: v5e
topology: v5e:2x2
jax: 0.10.0
libtpu: 0.0.40
codegen_flags: <defaults>
</compile_context>

<pallas_src>
import functools
import numpy as np
import jax
import jax.numpy as jnp
from jax.experimental import pallas as pl
from jax.experimental.pallas import tpu as pltpu

PARTS = 6
FEAT_DIM = 2048
BOTTLENECK = 256
BN_EPS = 1e-5
_BN_ID_SCALE = 1.0 / np.sqrt(1.0 + BN_EPS)  # eval BN with running_mean=0, running_var=1

LANE = 128
SUBLANE = 8
POOL_BLOCK_BYTES = 4 * 1024 * 1024   # per-block cap -> double-buffered fits v5e's 16 MiB default
HEAD_PARTS_PER_BLOCK = 3             # grid=(2,): one step per TensorCore on v7x megacore


def _round_up(x, m):
    return (x + m - 1) // m * m


def _pick_batch_tile(N, per_n_bytes, budget):
    """Largest batch tile that (a) fits the VMEM budget, (b) divides N, (c) is a
    multiple of 8 sublanes (N itself is always padded to a multiple of 8)."""
    if N * per_n_bytes <= budget or N <= SUBLANE:
        return N
    cap = max(SUBLANE, min(N, budget // max(per_n_bytes, 1)) // SUBLANE * SUBLANE)
    nb = cap
    while nb > SUBLANE and N % nb != 0:
        nb -= SUBLANE
    return nb if N % nb == 0 else N


# ----------------------------------------------------------------------------
# Pallas kernel 1: PCB adaptive average pooling  (AdaptiveAvgPool2d((6, 1)))
#   Output is produced directly in (PARTS, N, C) layout (what the head kernel
#   wants), cast to bf16 at the store; f32 accumulation in-kernel.
# ----------------------------------------------------------------------------
def _part_pool_tiled_kernel(x_ref, o_ref, *, inv_count):
    # x_ref: (nb, hpp, W, C) — exactly one part's spatial bin for a batch tile.
    x = x_ref[...].astype(jnp.float32)
    o_ref[0] = (jnp.sum(x, axis=(1, 2)) * inv_count).astype(o_ref.dtype)


def _part_pool_general_kernel(x_ref, o_ref):
    # Fallback when H is not divisible by PARTS (torch adaptive binning rule).
    x = x_ref[...].astype(jnp.float32)        # (nb, H, W, C)
    H = x.shape[1]
    for i in range(PARTS):                    # static loop
        hs = (i * H) // PARTS
        he = ((i + 1) * H + PARTS - 1) // PARTS
        region = x[:, hs:he]                  # (nb, r, W, C)
        o_ref[i] = jnp.mean(region, axis=(1, 2)).astype(o_ref.dtype)


def part_avg_pool(feat, out_dtype=jnp.bfloat16):
    N, H, W, C = feat.shape
    in_itemsize = jnp.dtype(feat.dtype).itemsize
    out_itemsize = jnp.dtype(out_dtype).itemsize
    cost = pl.CostEstimate(
        flops=int(N * H * W * C + PARTS * N * C),
        transcendentals=0,
        bytes_accessed=int(N * H * W * C * in_itemsize + PARTS * N * C * out_itemsize),
    )
    if H % PARTS == 0:
        hpp = H // PARTS
        nb = _pick_batch_tile(N, hpp * W * C * in_itemsize, POOL_BLOCK_BYTES)
        return pl.pallas_call(
            functools.partial(_part_pool_tiled_kernel, inv_count=1.0 / (hpp * W)),
            out_shape=jax.ShapeDtypeStruct((PARTS, N, C), out_dtype),
            grid=(PARTS, N // nb),
            in_specs=[pl.BlockSpec((nb, hpp, W, C), lambda p, n: (n, p, 0, 0))],
            out_specs=pl.BlockSpec((1, nb, C), lambda p, n: (p, n, 0)),
            compiler_params=pltpu.CompilerParams(
                dimension_semantics=("parallel", "parallel")),
            cost_estimate=cost,
        )(feat)
    # General (non-divisible H) path: tile over batch only, static per-part loop.
    nb = _pick_batch_tile(N, H * W * C * in_itemsize, POOL_BLOCK_BYTES)
    return pl.pallas_call(
        _part_pool_general_kernel,
        out_shape=jax.ShapeDtypeStruct((PARTS, N, C), out_dtype),
        grid=(N // nb,),
        in_specs=[pl.BlockSpec((nb, H, W, C), lambda n: (n, 0, 0, 0))],
        out_specs=pl.BlockSpec((PARTS, nb, C), lambda n: (0, n, 0)),
        compiler_params=pltpu.CompilerParams(dimension_semantics=("parallel",)),
        cost_estimate=cost,
    )(feat)


# ----------------------------------------------------------------------------
# Pallas kernel 2: fused ClassBlocks, 3 parts per grid step (batched einsums)
#   h = x @ W1f^T + b1f           (bf16 x bf16, f32 accumulate; BN folded in W1/b1)
#   f = h * rsqrt(||h||^2 + eps)  (single EUP rsqrt)
#   logits = h @ W2^T + b2        (bf16 MXU, f32 accumulate; C padded to 128-multiple)
# ----------------------------------------------------------------------------
def _classblock_kernel(x_ref, w1t_ref, b1_ref, w2t_ref, b2_ref, logits_ref, f_ref):
    x = x_ref[...]                                                 # (pb, N, 2048) bf16
    h = jnp.einsum("pnd,pdb->pnb", x, w1t_ref[...],
                   preferred_element_type=jnp.float32) + b1_ref[...]   # (pb, N, 256) f32
    # L2-normalized bottleneck feature branch: f = h / (||h|| + 1e-8)
    sumsq = jnp.sum(h * h, axis=-1, keepdims=True)
    f_ref[...] = h * jax.lax.rsqrt(sumsq + 1e-16)
    # classifier: Dropout is identity in eval mode, then Linear(256, class_num_padded)
    logits_ref[...] = (jnp.einsum("pnb,pbc->pnc", h.astype(jnp.bfloat16), w2t_ref[...],
                                  preferred_element_type=jnp.float32) + b2_ref[...])


def pcb_heads(x_parts, head):
    P, N, D = x_parts.shape
    B = head["w1t"].shape[-1]
    Cp = head["w2t"].shape[-1]
    pb = HEAD_PARTS_PER_BLOCK if P % HEAD_PARTS_PER_BLOCK == 0 else P
    cost = pl.CostEstimate(
        flops=int(2 * P * N * D * B + 2 * P * N * B * Cp + 6 * P * N * B),
        transcendentals=int(P * N),
        bytes_accessed=int(P * N * D * 2 + P * D * B * 2 + P * B * 4
                           + P * B * Cp * 2 + P * Cp * 4
                           + P * N * Cp * 4 + P * N * B * 4),
    )
    logits, f = pl.pallas_call(
        _classblock_kernel,
        out_shape=(jax.ShapeDtypeStruct((P, N, Cp), jnp.float32),
                   jax.ShapeDtypeStruct((P, N, B), jnp.float32)),
        grid=(P // pb,),
        in_specs=[
            pl.BlockSpec((pb, N, D), lambda g: (g, 0, 0)),   # pooled part features (bf16)
            pl.BlockSpec((pb, D, B), lambda g: (g, 0, 0)),   # W1^T with BN folded (bf16)
            pl.BlockSpec((pb, 1, B), lambda g: (g, 0, 0)),   # b1 with BN folded (f32)
            pl.BlockSpec((pb, B, Cp), lambda g: (g, 0, 0)),  # W2^T, lane-padded (bf16)
            pl.BlockSpec((pb, 1, Cp), lambda g: (g, 0, 0)),  # b2, lane-padded (f32)
        ],
        out_specs=(pl.BlockSpec((pb, N, Cp), lambda g: (g, 0, 0)),
                   pl.BlockSpec((pb, N, B), lambda g: (g, 0, 0))),
        compiler_params=pltpu.CompilerParams(dimension_semantics=("parallel",)),
        cost_estimate=cost,
    )(x_parts, head["w1t"], head["b1"], head["w2t"], head["b2"])
    return logits, f


# ----------------------------------------------------------------------------
# ResNet-50 backbone (plain JAX glue; deterministic random weights, eval-mode BN)
# ----------------------------------------------------------------------------
_LAYER_CFG = ((64, 3, 1), (128, 4, 2), (256, 6, 2), (512, 3, 1))  # layer4 stride forced to 1 (PCB)


def _conv2d(x, w, stride, pad):
    return jax.lax.conv_general_dilated(
        x, w, window_strides=(stride, stride), padding=pad,
        dimension_numbers=("NHWC", "HWIO", "NHWC"))


def _bn(x):
    # Backbone BatchNorm2d in eval mode with default running stats (mean=0, var=1,
    # gamma=1, beta=0) reduces to a constant scale.
    return x * _BN_ID_SCALE


def _relu(x):
    return jnp.maximum(x, 0.0)


def _maxpool3x3s2(x):
    return jax.lax.reduce_window(
        x, -jnp.inf, jax.lax.max,
        window_dimensions=(1, 3, 3, 1), window_strides=(1, 2, 2, 1),
        padding=((0, 0), (1, 1), (1, 1), (0, 0)))


def _bottleneck(x, p, stride):
    out = _relu(_bn(_conv2d(x, p["w1"], 1, [(0, 0), (0, 0)])))
    out = _relu(_bn(_conv2d(out, p["w2"], stride, [(1, 1), (1, 1)])))
    out = _bn(_conv2d(out, p["w3"], 1, [(0, 0), (0, 0)]))
    if "wd" in p:
        sc = _bn(_conv2d(x, p["wd"], stride, [(0, 0), (0, 0)]))
    else:
        sc = x
    return _relu(out + sc)


def _kaiming_conv(key, shape):  # HWIO
    fan_in = shape[0] * shape[1] * shape[2]
    return jax.random.normal(key, shape, jnp.float32) * np.sqrt(2.0 / fan_in)


def init_backbone(key):
    key, kc = jax.random.split(key)
    params = {"conv1": _kaiming_conv(kc, (7, 7, 3, 64))}
    layers = []
    inplanes = 64
    for planes, blocks, stride in _LAYER_CFG:
        layer = []
        for b in range(blocks):
            key, k1, k2, k3, k4 = jax.random.split(key, 5)
            inp = inplanes if b == 0 else planes * 4
            p = {"w1": _kaiming_conv(k1, (1, 1, inp, planes)),
                 "w2": _kaiming_conv(k2, (3, 3, planes, planes)),
                 "w3": _kaiming_conv(k3, (1, 1, planes, planes * 4))}
            if b == 0 and (stride != 1 or inplanes != planes * 4):
                p["wd"] = _kaiming_conv(k4, (1, 1, inp, planes * 4))
            layer.append(p)
        layers.append(layer)
        inplanes = planes * 4
    params["layers"] = layers
    return params


def backbone_forward(bp, x):
    x = _relu(_bn(_conv2d(x, bp["conv1"], 2, [(3, 3), (3, 3)])))
    x = _maxpool3x3s2(x)
    for (planes, blocks, stride), layer in zip(_LAYER_CFG, bp["layers"]):
        for b, p in enumerate(layer):
            x = _bottleneck(x, p, stride if b == 0 else 1)
    return x  # (N, H, W, 2048)


# ----------------------------------------------------------------------------
# PCB heads: 6 x ClassBlock(2048, class_num, True, False, 256)
#   BN (eval) folded into W1/b1 on the host; weights stored bf16; classifier
#   output dim padded to a multiple of 128 for lane-dense stores.
# ----------------------------------------------------------------------------
def init_heads(key, class_num):
    Cp = _round_up(class_num, LANE)
    w1t, b1, w2t, b2 = [], [], [], []
    for _ in range(PARTS):
        key, k1, kg, k2 = jax.random.split(key, 4)
        # Linear(2048, 256): kaiming_normal, mode='fan_out' -> std = sqrt(2 / 256)
        w1 = jax.random.normal(k1, (BOTTLENECK, FEAT_DIM), jnp.float32) * np.sqrt(2.0 / BOTTLENECK)
        bias1 = jnp.zeros((BOTTLENECK,), jnp.float32)
        # BatchNorm1d(256): weight ~ N(1, 0.02), bias = 0; eval stats mean=0, var=1.
        gamma = 1.0 + 0.02 * jax.random.normal(kg, (BOTTLENECK,), jnp.float32)
        beta = jnp.zeros((BOTTLENECK,), jnp.float32)
        col_scale = gamma * _BN_ID_SCALE                       # per-output-channel scale
        w1_folded = (w1.T * col_scale[None, :]).astype(jnp.bfloat16)   # (2048, 256)
        b1_folded = (bias1 * col_scale + beta)[None, :]                # (1, 256) f32
        # classifier Linear(256, class_num): weight ~ N(0, 0.001), bias = 0
        w2 = jax.random.normal(k2, (class_num, BOTTLENECK), jnp.float32) * 1e-3
        w2t_pad = jnp.zeros((BOTTLENECK, Cp), jnp.float32).at[:, :class_num].set(w2.T)
        w1t.append(w1_folded)
        b1.append(b1_folded)
        w2t.append(w2t_pad.astype(jnp.bfloat16))
        b2.append(jnp.zeros((1, Cp), jnp.float32))
    return {
        "w1t": jnp.stack(w1t),   # (6, 2048, 256)  bf16, BN folded
        "b1": jnp.stack(b1),     # (6, 1, 256)     f32,  BN folded
        "w2t": jnp.stack(w2t),   # (6, 256, Cp)    bf16, zero-padded classifier
        "b2": jnp.stack(b2),     # (6, 1, Cp)      f32
    }


def pcb_forward(params, x_nchw, class_num):
    # TODO(synk): train-mode Dropout / BatchNorm batch-statistics are stochastic; eval mode assumed.
    x = jnp.transpose(x_nchw, (0, 2, 3, 1))                 # NCHW -> NHWC
    feat = backbone_forward(params["backbone"], x)          # (N, H, W, 2048) f32
    N = feat.shape[0]
    # bf16 input halves the HBM read of the memory-bound pool; mean accumulates in f32.
    feat = feat.astype(jnp.bfloat16)
    # Pad batch to a multiple of 8 sublanes so pool stores / head matmul rows are full.
    Np = _round_up(max(N, 1), SUBLANE)
    if Np != N:
        feat = jnp.pad(feat, ((0, Np - N), (0, 0), (0, 0), (0, 0)))
    # avgpool((6,1)) + squeeze, emitted directly as (PARTS, Np, 2048) bf16 — no transpose.
    x_parts = part_avg_pool(feat)
    # self.dropout(x): identity in eval mode.
    logits_p, f = pcb_heads(x_parts, params["heads"])       # (6, Np, Cp), (6, Np, 256)
    logits = logits_p[:, :N, :class_num]                    # strip batch + lane padding
    f = f[:, :N, :]
    # y[i] == (classifier logits, L2-normalized 256-d feature) for part i
    return [(logits[i], f[i]) for i in range(PARTS)]


if __name__ == "__main__":
    class_num = 16
    key = jax.random.PRNGKey(0)
    key, kb, kh, kx = jax.random.split(key, 4)
    params = {"backbone": init_backbone(kb), "heads": init_heads(kh, class_num)}
    # PyTorch-style NCHW input (small PCB-style image: H > W).
    x = jax.random.normal(kx, (2, 3, 96, 32), jnp.float32)
    fwd = jax.jit(functools.partial(pcb_forward, class_num=class_num))
    y = fwd(params, x)
    y = jax.block_until_ready(y)
    assert len(y) == PARTS
    for logits_i, f_i in y:
        assert logits_i.shape == (2, class_num)
        assert f_i.shape == (2, BOTTLENECK)
        assert bool(jnp.all(jnp.isfinite(logits_i))) and bool(jnp.all(jnp.isfinite(f_i)))
    print("KERNEL_OK")
</pallas_src>

<mosaic_0001>
module attributes {stable_mosaic.version = 11 : i64} {
  func.func @_part_pool_tiled_kernel(%arg0: i32, %arg1: i32, %arg2: memref<8x1x2x2048xbf16, #tpu.memory_space<vmem>>, %arg3: memref<1x8x2048xbf16, #tpu.memory_space<vmem>>) attributes {dimension_semantics = [#tpu.dimension_semantics<parallel>, #tpu.dimension_semantics<parallel>], iteration_bounds = array<i64: 6, 1>, scalar_prefetch = 0 : i64, scratch_operands = 0 : i64, tpu.core_type = #tpu.core_type<tc>, window_params = [{transform_indices = @transform_0, window_bounds = array<i64: 8, 1, 2, 2048>}, {transform_indices = @transform_1, window_bounds = array<i64: 1, 8, 2048>}]} {
    %c0 = arith.constant 0 : index
    %c0_0 = arith.constant 0 : index
    %c0_1 = arith.constant 0 : index
    %c0_2 = arith.constant 0 : index
    %0 = vector.load %arg2[%c0, %c0_0, %c0_1, %c0_2] : memref<8x1x2x2048xbf16, #tpu.memory_space<vmem>>, vector<8x1x2x2048xbf16>
    %1 = arith.extf %0 : vector<8x1x2x2048xbf16> to vector<8x1x2x2048xf32>
    %cst = arith.constant dense<0.000000e+00> : vector<8x2048xf32>
    %2 = vector.multi_reduction <add>, %1, %cst [1, 2] : vector<8x1x2x2048xf32> to vector<8x2048xf32>
    %cst_3 = arith.constant 5.000000e-01 : f32
    %3 = vector.broadcast %cst_3 : f32 to vector<8x2048xf32>
    %4 = arith.mulf %2, %3 : vector<8x2048xf32>
    %5 = arith.truncf %4 : vector<8x2048xf32> to vector<8x2048xbf16>
    %c0_4 = arith.constant 0 : index
    %c0_5 = arith.constant 0 : index
    %c0_6 = arith.constant 0 : index
    %6 = vector.load %arg3[%c0_4, %c0_5, %c0_6] : memref<1x8x2048xbf16, #tpu.memory_space<vmem>>, vector<1x8x2048xbf16>
    %7 = vector.shape_cast %6 : vector<1x8x2048xbf16> to vector<8x2048xbf16>
    %8 = vector.shape_cast %5 : vector<8x2048xbf16> to vector<1x8x2048xbf16>
    tpu.vector_store %arg3[%c0_4, %c0_5, %c0_6], %8 {strides = array<i32>} : memref<1x8x2048xbf16, #tpu.memory_space<vmem>>, vector<1x8x2048xbf16>,
    return
  }
  func.func @transform_0(%arg0: i32, %arg1: i32) -> (i32, i32, i32, i32) {
    %c0_i32 = arith.constant 0 : i32
    %c0_i32_0 = arith.constant 0 : i32
    %c0_i32_1 = arith.constant 0 : i32
    return %arg1, %arg0, %c0_i32, %c0_i32_0 : i32, i32, i32, i32
  }
  func.func @transform_1(%arg0: i32, %arg1: i32) -> (i32, i32, i32) {
    %c0_i32 = arith.constant 0 : i32
    %c0_i32_0 = arith.constant 0 : i32
    return %arg0, %arg1, %c0_i32 : i32, i32, i32
  }
}

module attributes {stable_mosaic.version = 11 : i64} {
  func.func @_classblock_kernel(%arg0: i32, %arg1: memref<3x8x2048xbf16, #tpu.memory_space<vmem>>, %arg2: memref<3x2048x256xbf16, #tpu.memory_space<vmem>>, %arg3: memref<3x1x256xf32, #tpu.memory_space<vmem>>, %arg4: memref<3x256x128xbf16, #tpu.memory_space<vmem>>, %arg5: memref<3x1x128xf32, #tpu.memory_space<vmem>>, %arg6: memref<3x8x128xf32, #tpu.memory_space<vmem>>, %arg7: memref<3x8x256xf32, #tpu.memory_space<vmem>>) attributes {dimension_semantics = [#tpu.dimension_semantics<parallel>], iteration_bounds = array<i64: 2>, scalar_prefetch = 0 : i64, scratch_operands = 0 : i64, tpu.core_type = #tpu.core_type<tc>, window_params = [{transform_indices = @transform_0, window_bounds = array<i64: 3, 8, 2048>}, {transform_indices = @transform_1, window_bounds = array<i64: 3, 2048, 256>}, {transform_indices = @transform_2, window_bounds = array<i64: 3, 1, 256>}, {transform_indices = @transform_3, window_bounds = array<i64: 3, 256, 128>}, {transform_indices = @transform_4, window_bounds = array<i64: 3, 1, 128>}, {transform_indices = @transform_5, window_bounds = array<i64: 3, 8, 128>}, {transform_indices = @transform_6, window_bounds = array<i64: 3, 8, 256>}]} {
    %c0 = arith.constant 0 : index
    %c0_0 = arith.constant 0 : index
    %c0_1 = arith.constant 0 : index
    %0 = vector.load %arg1[%c0, %c0_0, %c0_1] : memref<3x8x2048xbf16, #tpu.memory_space<vmem>>, vector<3x8x2048xbf16>
    %c0_2 = arith.constant 0 : index
    %c0_3 = arith.constant 0 : index
    %c0_4 = arith.constant 0 : index
    %1 = vector.load %arg2[%c0_2, %c0_3, %c0_4] : memref<3x2048x256xbf16, #tpu.memory_space<vmem>>, vector<3x2048x256xbf16>
    "tpu.trace_start"() <{level = 10 : i32, message = "pnd,pdb->pnb"}> : () -> ()
    %cst = arith.constant dense<0.000000e+00> : vector<3x8x256xf32>
    %2 = tpu.matmul %0, %1, %cst {dimension_numbers = #tpu.dot_dimension_numbers<[2], [1], [1], [2], [0, 0, 0, 1, 1, 2], [0], [0]>} : vector<3x8x2048xbf16>, vector<3x2048x256xbf16>, vector<3x8x256xf32> -> vector<3x8x256xf32>
    "tpu.trace_stop"() : () -> ()
    %c0_5 = arith.constant 0 : index
    %c0_6 = arith.constant 0 : index
    %c0_7 = arith.constant 0 : index
    %3 = vector.load %arg3[%c0_5, %c0_6, %c0_7] : memref<3x1x256xf32, #tpu.memory_space<vmem>>, vector<3x1x256xf32>
    %4 = vector.broadcast %3 : vector<3x1x256xf32> to vector<3x8x256xf32>
    %5 = arith.addf %2, %4 : vector<3x8x256xf32>
    %6 = arith.mulf %5, %5 : vector<3x8x256xf32>
    %cst_8 = arith.constant dense<0.000000e+00> : vector<3x8xf32>
    %7 = vector.multi_reduction <add>, %6, %cst_8 [2] : vector<3x8x256xf32> to vector<3x8xf32>
    %8 = vector.shape_cast %7 : vector<3x8xf32> to vector<3x8x1xf32>
    %cst_9 = arith.constant 1.000000e-16 : f32
    %9 = vector.broadcast %cst_9 : f32 to vector<3x8x1xf32>
    %10 = arith.addf %8, %9 : vector<3x8x1xf32>
    %11 = math.rsqrt %10 : vector<3x8x1xf32>
    %12 = vector.broadcast %11 : vector<3x8x1xf32> to vector<3x8x256xf32>
    %13 = arith.mulf %5, %12 : vector<3x8x256xf32>
    %c0_10 = arith.constant 0 : index
    %c0_11 = arith.constant 0 : index
    %c0_12 = arith.constant 0 : index
    %14 = vector.load %arg7[%c0_10, %c0_11, %c0_12] : memref<3x8x256xf32, #tpu.memory_space<vmem>>, vector<3x8x256xf32>
    tpu.vector_store %arg7[%c0_10, %c0_11, %c0_12], %13 {strides = array<i32>} : memref<3x8x256xf32, #tpu.memory_space<vmem>>, vector<3x8x256xf32>,
    %15 = arith.truncf %5 : vector<3x8x256xf32> to vector<3x8x256xbf16>
    %c0_13 = arith.constant 0 : index
    %c0_14 = arith.constant 0 : index
    %c0_15 = arith.constant 0 : index
    %16 = vector.load %arg4[%c0_13, %c0_14, %c0_15] : memref<3x256x128xbf16, #tpu.memory_space<vmem>>, vector<3x256x128xbf16>
    "tpu.trace_start"() <{level = 10 : i32, message = "pnb,pbc->pnc"}> : () -> ()
    %cst_16 = arith.constant dense<0.000000e+00> : vector<3x8x128xf32>
    %17 = tpu.matmul %15, %16, %cst_16 {dimension_numbers = #tpu.dot_dimension_numbers<[2], [1], [1], [2], [0, 0, 0, 1, 1, 2], [0], [0]>} : vector<3x8x256xbf16>, vector<3x256x128xbf16>, vector<3x8x128xf32> -> vector<3x8x128xf32>
    "tpu.trace_stop"() : () -> ()
    %c0_17 = arith.constant 0 : index
    %c0_18 = arith.constant 0 : index
    %c0_19 = arith.constant 0 : index
    %18 = vector.load %arg5[%c0_17, %c0_18, %c0_19] : memref<3x1x128xf32, #tpu.memory_space<vmem>>, vector<3x1x128xf32>
    %19 = vector.broadcast %18 : vector<3x1x128xf32> to vector<3x8x128xf32>
    %20 = arith.addf %17, %19 : vector<3x8x128xf32>
    %c0_20 = arith.constant 0 : index
    %c0_21 = arith.constant 0 : index
    %c0_22 = arith.constant 0 : index
    %21 = vector.load %arg6[%c0_20, %c0_21, %c0_22] : memref<3x8x128xf32, #tpu.memory_space<vmem>>, vector<3x8x128xf32>
    tpu.vector_store %arg6[%c0_20, %c0_21, %c0_22], %20 {strides = array<i32>} : memref<3x8x128xf32, #tpu.memory_space<vmem>>, vector<3x8x128xf32>,
    return
  }
  func.func @transform_0(%arg0: i32) -> (i32, i32, i32) {
    %c0_i32 = arith.constant 0 : i32
    %c0_i32_0 = arith.constant 0 : i32
    %c0_i32_1 = arith.constant 0 : i32
    return %arg0, %c0_i32, %c0_i32_0 : i32, i32, i32
  }
  func.func @transform_1(%arg0: i32) -> (i32, i32, i32) {
    %c0_i32 = arith.constant 0 : i32
    %c0_i32_0 = arith.constant 0 : i32
    %c0_i32_1 = arith.constant 0 : i32
    return %arg0, %c0_i32, %c0_i32_0 : i32, i32, i32
  }
  func.func @transform_2(%arg0: i32) -> (i32, i32, i32) {
    %c0_i32 = arith.constant 0 : i32
    %c0_i32_0 = arith.constant 0 : i32
    %c0_i32_1 = arith.constant 0 : i32
    return %arg0, %c0_i32, %c0_i32_0 : i32, i32, i32
  }
  func.func @transform_3(%arg0: i32) -> (i32, i32, i32) {
    %c0_i32 = arith.constant 0 : i32
    %c0_i32_0 = arith.constant 0 : i32
    %c0_i32_1 = arith.constant 0 : i32
    return %arg0, %c0_i32, %c0_i32_0 : i32, i32, i32
  }
  func.func @transform_4(%arg0: i32) -> (i32, i32, i32) {
    %c0_i32 = arith.constant 0 : i32
    %c0_i32_0 = arith.constant 0 : i32
    %c0_i32_1 = arith.constant 0 : i32
    return %arg0, %c0_i32, %c0_i32_0 : i32, i32, i32
  }
  func.func @transform_5(%arg0: i32) -> (i32, i32, i32) {
    %c0_i32 = arith.constant 0 : i32
    %c0_i32_0 = arith.constant 0 : i32
    %c0_i32_1 = arith.constant 0 : i32
    return %arg0, %c0_i32, %c0_i32_0 : i32, i32, i32
  }
  func.func @transform_6(%arg0: i32) -> (i32, i32, i32) {
    %c0_i32 = arith.constant 0 : i32
    %c0_i32_0 = arith.constant 0 : i32
    %c0_i32_1 = arith.constant 0 : i32
    return %arg0, %c0_i32, %c0_i32_0 : i32, i32, i32
  }
}

</mosaic_0001>

<bundles_post_ra>
// kernel: pcb_forward.2
= control target key start
LH: loop header
LB: loop body
LE: loop exit
PB: predicated region body
PF: predicated region fallthrough
CT: control target
= control target key end

     0   :  { %s2181_s6 = smov 0   ;;  %s2183_s7 = smov 0   ;;  %s3104_s0 = inlined_call_operand.vmem [shape: bf16[8,6,2,2048], index: 0, kind: input, shape index: {}]   ;;  %s3105_s1 = inlined_call_operand.vmem [shape: bf16[6,8,2048], index: 1, kind: output, shape index: {}]  }
   0x1   :  { %s2185_s8 = smov 0   ;;  %s2187_s9 = smov 0  }
   0x2   :  { %s2189_s10 = smov 0  }
   0x3 LB: > { %s23_s11 = sadd.s32 1, %s2165_s9  ;;  %p39_p1 = scmp.ne.s32.totalorder %s2157_s7, %s2153_s6  ;;  %s2169_s10 = sphi %s2189_s10, %s11_s10   ;;  %s2165_s9 = sphi %s2187_s9, %s3245_s9   ;;  %s2161_s8 = sphi %s2185_s8, %s3244_s8   ;;  %s2157_s7 = sphi %s2183_s7, %s3243_s7   ;;  %s2153_s6 = sphi %s2181_s6, %s3242_s6  }
   0x4   : > { %p25_p0 = scmp.ge.s32.totalorder %s23_s11, 6  ;;  %p40_p2 = scmp.eq.s32.totalorder %s2169_s10, 0 }
   0x5   : > { %s32_s13 = sadd.s32 1, %s2157_s7  ;;  %p2081_p5 = scmp.ge.s32.totalorder %s2169_s10, 6 }
   0x6   : > { %s3247_s11 = smov (%p25_p0, %s23_s11), 0  ;;  %p41_p3 = por %p40_p2, %p39_p1 }
   0x7   : > { %s28_s12 = ssub.s32 %s2165_s9, %s3247_s11  ;;  %93 = sbr.rel (%p2081_p5) target bundleno = 32 (0x20), region = 16 }
   0x8   : > { %p30_p4 = scmp.eq.s32.totalorder %s28_s12, 0 }
   0xa   : > { %s2216_s14 = scalar_select %p30_p4, %s2157_s7, %s32_s13  }
   0xc   : > { %96 = sbr.rel (!%p41_p3) target bundleno = 32 (0x20), region = 20  ;;  %s98_s15 = sand.u32 (%p41_p3), 1, %s2157_s7  }
   0xd   : > { %s2083_s16 = sshll.u32 (%p41_p3), %s2165_s9, 4  ;;  %s2082_s17 = sshll.u32 (%p41_p3), %s98_s15, 7 }
   0xe   : > { %s2224_s20 = scalar_lea.vmem (%p41_p3), %s3104_s0, %s2083_s16  ;;  %s100_s21 = scalar_lea.vmem (%p41_p3), [#allocation2], %s2082_s17 }
   0xf   : > { %v118_v0 = vld [vmem:[%s2224_s20] sm:$0xff] (%p41_p3)  ;;  %v120_v1 = vld [vmem:[%s2224_s20 + $0x8] sm:$0xff] (%p41_p3) }
  0x10   : > { %v122_v2 = vld [vmem:[%s2224_s20 + $0x60] sm:$0xff] (%p41_p3)  ;;  %119 = vst [vmem:[%s100_s21] sm:$0xff] (%p41_p3), %v118_v0  ;;  %v124_v3 = vld [vmem:[%s2224_s20 + $0x68] sm:$0xff] (%p41_p3) }
  0x11   : > { %121 = vst [vmem:[%s100_s21 + $0x8] sm:$0xff] %v120_v1  ;;  %v126_v4 = vld [vmem:[%s2224_s20 + $0xc0] sm:$0xff]  ;;  %v128_v5 = vld [vmem:[%s2224_s20 + $0xc8] sm:$0xff] }
  0x12   : > { %123 = vst [vmem:[%s100_s21 + $0x10] sm:$0xff] %v122_v2  ;;  %v130_v6 = vld [vmem:[%s2224_s20 + $0x120] sm:$0xff]  ;;  %v132_v7 = vld [vmem:[%s2224_s20 + $0x128] sm:$0xff] }
  0x13   : > { %125 = vst [vmem:[%s100_s21 + $0x18] sm:$0xff] %v124_v3  ;;  %v134_v8 = vld [vmem:[%s2224_s20 + $0x180] sm:$0xff]  ;;  %v136_v9 = vld [vmem:[%s2224_s20 + $0x188] sm:$0xff] }
  0x14   : > { %127 = vst [vmem:[%s100_s21 + $0x20] sm:$0xff] %v126_v4  ;;  %v138_v10 = vld [vmem:[%s2224_s20 + $0x1e0] sm:$0xff]  ;;  %v140_v11 = vld [vmem:[%s2224_s20 + $0x1e8] sm:$0xff] }
  0x15   : > { %129 = vst [vmem:[%s100_s21 + $0x28] sm:$0xff] %v128_v5  ;;  %v142_v12 = vld [vmem:[%s2224_s20 + $0x240] sm:$0xff]  ;;  %v144_v13 = vld [vmem:[%s2224_s20 + $0x248] sm:$0xff] }
  0x16   : > { %131 = vst [vmem:[%s100_s21 + $0x30] sm:$0xff] %v130_v6  ;;  %v146_v14 = vld [vmem:[%s2224_s20 + $0x2a0] sm:$0xff]  ;;  %v148_v15 = vld [vmem:[%s2224_s20 + $0x2a8] sm:$0xff] }
  0x17   : > { %133 = vst [vmem:[%s100_s21 + $0x38] sm:$0xff] %v132_v7 }
  0x18   : > { %135 = vst [vmem:[%s100_s21 + $0x40] sm:$0xff] %v134_v8 }
  0x19   : > { %137 = vst [vmem:[%s100_s21 + $0x48] sm:$0xff] %v136_v9 }
  0x1a   : > { %139 = vst [vmem:[%s100_s21 + $0x50] sm:$0xff] %v138_v10 }
  0x1b   : > { %141 = vst [vmem:[%s100_s21 + $0x58] sm:$0xff] %v140_v11 }
  0x1c   : > { %143 = vst [vmem:[%s100_s21 + $0x60] sm:$0xff] %v142_v12 }
  0x1d   : > { %145 = vst [vmem:[%s100_s21 + $0x68] sm:$0xff] %v144_v13 }
  0x1e   : > { %147 = vst [vmem:[%s100_s21 + $0x70] sm:$0xff] %v146_v14 }
  0x1f   : > { %149 = vst [vmem:[%s100_s21 + $0x78] sm:$0xff] %v148_v15 }
  0x20 PF: > { %p2084_p6 = scmp.ge.s32.totalorder %s2169_s10, 1  ;;  %p154_p7 = scmp.lt.s32.totalorder %s2169_s10, 7 }
  0x22   : > { %p155_p8 = pnand %p2084_p6, %p154_p7 }
  0x24   : > { %158 = sbr.rel (%p155_p8) target bundleno = 461 (0x1cd), region = 43 }
  0x29   : > { %s161_s22 = sand.u32 1, %s2153_s6   ;;  %vm563_vm0 = vcmask 1041408   ;;  %vm1844_vm1 = vcmask 1041409   ;;  %vm1846_vm2 = vcmask 1042434   ;;  %vm1848_vm3 = vcmask 1043459   ;;  %p185_p9 = scmp.lt.s32.totalorder %s2161_s8, 5 }
  0x2a   : > { %s2085_s23 = sshll.u32 %s161_s22, 7  ;;  %vm1850_vm4 = vcmask 1044484   ;;  %vm1852_vm5 = vcmask 1045509   ;;  %vm1854_vm6 = vcmask 1046534   ;;  %vm1856_vm7 = vcmask 1047559  }
  0x2b   : > { %s2245_s24 = scalar_lea.vmem [#allocation2], %s2085_s23  ;;  %s3249_s8 = smov (!%p185_p9, %s2161_s8), 5 }
  0x2c   : > { %v194_v16 = vld [vmem:[%s2245_s24] sm:$0xff]  ;;  %v195_v18 = vld [vmem:[%s2245_s24 + $0x8] sm:$0xff]  ;;  %v196_v26 = vld [vmem:[%s2245_s24 + $0x10] sm:$0xff]  ;;  %s2090_s25 = sshll.u32 %s3249_s8, 6 }
  0x2d   : > { %v210_v17 = vunpack.c.l.bf16 %v194_v16  ;;  %v211_v19 = vunpack.c.h.bf16 %v194_v16  ;;  %v212_v20 = vunpack.c.l.bf16 %v195_v18  ;;  %v213_v25 = vunpack.c.h.bf16 %v195_v18  ;;  %v197_v37 = vld [vmem:[%s2245_s24 + $0x18] sm:$0xff]  ;;  %v198_v48 = vld [vmem:[%s2245_s24 + $0x20] sm:$0xff]  ;;  %v199_v0 = vld [vmem:[%s2245_s24 + $0x28] sm:$0xff]  ;;  %s2777_s28 = scalar_lea.vmem %s3105_s1, %s2090_s25 }
  0x2e   : > { %v214_v31 = vunpack.c.l.bf16 %v196_v26  ;;  %v215_v36 = vunpack.c.h.bf16 %v196_v26  ;;  %v216_v42 = vunpack.c.l.bf16 %v197_v37  ;;  %v217_v49 = vunpack.c.h.bf16 %v197_v37  ;;  %v200_v26 = vld [vmem:[%s2245_s24 + $0x30] sm:$0xff] }
  0x2f   : > { %274 = vst [vmem:[#allocation1] ss:$4 sm:$0xff] %v210_v17  ;;  %v218_v53 = vunpack.c.l.bf16 %v198_v48  ;;  %v219_v1 = vunpack.c.h.bf16 %v198_v48  ;;  %v220_v8 = vunpack.c.l.bf16 %v199_v0 }
  0x30   : > { %276 = vst [vmem:[#allocation1 + $0x20] ss:$4 sm:$0xff] %v211_v19 }
  0x36   : > { %v277_v21 = vld.sshfl [vmem:[#allocation1] sm:$0xff pattern:$0x73625140]  ;;  %v278_v22 = vld.sshfl [vmem:[#allocation1 + $0x8] sm:$0xff pattern:$0x73625140] }
  0x37   : > { %v279_v23 = vld.sshfl [vmem:[#allocation1 + $0x10] sm:$0xff pattern:$0x73625140]  ;;  %v280_v24 = vld.sshfl [vmem:[#allocation1 + $0x18] sm:$0xff pattern:$0x73625140] }
  0x38   : > { %285 = vst [vmem:[#allocation1] ss:$4 sm:$0xff] %v212_v20  ;;  %v281_v27 = vld.sshfl [vmem:[#allocation1 + $0x20] sm:$0xff pattern:$0x73625140]  ;;  %v564_v47 = vsel %vm563_vm0, %v277_v21, 0.0 }
  0x39   : > { %v2250_v28 = vld.sshfl [vmem:[#allocation1 + $0x28] sm:$0xff pattern:$0x73625140]  ;;  %v2252_v29 = vld.sshfl [vmem:[#allocation1 + $0x30] sm:$0xff pattern:$0x73625140] }
  0x3a   : > { %v2254_v30 = vld.sshfl [vmem:[#allocation1 + $0x38] sm:$0xff pattern:$0x73625140]  ;;  %v565_v50 = vrot.slane %v564_v47, 4  ;;  %v571_v56 = vsel %vm563_vm0, %v278_v22, 0.0  ;;  %v578_v62 = vsel %vm563_vm0, %v279_v23, 0.0 }
  0x3b   : > { %286 = vst [vmem:[#allocation1 + $0x20] ss:$4 sm:$0xff] %v213_v25  ;;  %v585_v63 = vsel %vm563_vm0, %v280_v24, 0.0  ;;  %v572_v2 = vrot.slane %v571_v56, 4  ;;  %v579_v4 = vrot.slane %v578_v62, 4  ;;  %v592_v12 = vsel %vm563_vm0, %v281_v27, 0.0 }
  0x3c   : > { %v566_v61 = vadd.f32 %v565_v50, %v564_v47  ;;  %v586_v5 = vrot.slane %v585_v63, 4  ;;  %v221_v24 = vunpack.c.h.bf16 %v199_v0  ;;  %v593_v37 = vrot.slane %v592_v12, 4 }
  0x3d   : > { %v573_v11 = vadd.f32 %v572_v2, %v571_v56  ;;  %v580_v16 = vadd.f32 %v579_v4, %v578_v62 }
  0x3e   : > { %v567_v3 = vrot.slane %v566_v61, 2  ;;  %v587_v17 = vadd.f32 %v586_v5, %v585_v63  ;;  %v594_v62 = vadd.f32 %v593_v37, %v592_v12  ;;  %v599_v63 = vsel %vm563_vm0, %v2250_v28, 0.0 }
  0x3f   : > { %v2256_v32 = vld.sshfl [vmem:[#allocation1] sm:$0xff pattern:$0x73625140]  ;;  %v2258_v33 = vld.sshfl [vmem:[#allocation1 + $0x8] sm:$0xff pattern:$0x73625140] }
  0x40   : > { %3106 = vst [vmem:[#allocation3_spill] sm:$0xff] %v2256_v32  ;;  %v2260_v34 = vld.sshfl [vmem:[#allocation1 + $0x10] sm:$0xff pattern:$0x73625140]  ;;  %v568_v15 = vadd.f32 %v567_v3, %v566_v61  ;;  %v574_v25 = vrot.slane %v573_v11, 2  ;;  %v595_v28 = vrot.slane %v594_v62, 2 }
  0x41   : > { %3107 = vst [vmem:[#allocation4_spill] sm:$0xff] %v2258_v33  ;;  %v2262_v35 = vld.sshfl [vmem:[#allocation1 + $0x18] sm:$0xff pattern:$0x73625140] }
  0x42   : > { %3108 = vst [vmem:[#allocation5_spill] sm:$0xff] %v2260_v34  ;;  %v2265_v38 = vld.sshfl [vmem:[#allocation1 + $0x20] sm:$0xff pattern:$0x73625140]  ;;  %v569_v27 = vrot.slane %v568_v15, 1 }
  0x43   : > { %3109 = vst [vmem:[#allocation6_spill] sm:$0xff] %v2262_v35  ;;  %v2267_v39 = vld.sshfl [vmem:[#allocation1 + $0x28] sm:$0xff pattern:$0x73625140]  ;;  %v2427_v35 = vld [vmem:[%s2245_s24 + $0x78] sm:$0xff] }
  0x44   : > { %295 = vst [vmem:[#allocation1] ss:$4 sm:$0xff] %v214_v31  ;;  %v2269_v40 = vld.sshfl [vmem:[#allocation1 + $0x30] sm:$0xff pattern:$0x73625140]  ;;  %v581_v31 = vrot.slane %v580_v16, 2  ;;  %v570_v2 = vadd.f32 %v569_v27, %v568_v15 }
  0x45   : > { %3110 = vst [vmem:[#allocation7_spill] sm:$0xff] %v2265_v38  ;;  %v2271_v41 = vld.sshfl [vmem:[#allocation1 + $0x38] sm:$0xff pattern:$0x73625140] }
  0x46   : > { %3111 = vst [vmem:[#allocation8_spill] sm:$0xff] %v2267_v39  ;;  %v582_v56 = vadd.f32 %v581_v31, %v580_v16  ;;  %v600_v31 = vrot.slane %v599_v63, 4  ;;  %v2338_v37 = vmul.f32 0.5, %v570_v2 }
  0x47   : > { %3112 = vst [vmem:[#allocation9_spill] sm:$0xff] %v2269_v40 }
  0x48   : > { %3113 = vst [vmem:[#allocation10_spill] sm:$0xff] %v2271_v41  ;;  %v583_v12 = vrot.slane %v582_v56, 1 }
  0x49   : > { %296 = vst [vmem:[#allocation1 + $0x20] ss:$4 sm:$0xff] %v215_v36  ;;  %v588_v36 = vrot.slane %v587_v17, 2 }
  0x4b   : > { %v297_v43 = vld.sshfl [vmem:[#allocation1] sm:$0xff pattern:$0x73625140]  ;;  %v298_v44 = vld.sshfl [vmem:[#allocation1 + $0x8] sm:$0xff pattern:$0x73625140]  ;;  %v589_v61 = vadd.f32 %v588_v36, %v587_v17  ;;  %v223_v36 = vunpack.c.h.bf16 %v200_v26 }
  0x4c   : > { %v299_v45 = vld.sshfl [vmem:[#allocation1 + $0x10] sm:$0xff pattern:$0x73625140]  ;;  %v300_v46 = vld.sshfl [vmem:[#allocation1 + $0x18] sm:$0xff pattern:$0x73625140] }
  0x4d   : > { %305 = vst [vmem:[#allocation1] ss:$4 sm:$0xff] %v216_v42  ;;  %v676_v20 = vsel %vm563_vm0, %v297_v43, 0.0  ;;  %v683_v21 = vsel %vm563_vm0, %v298_v44, 0.0  ;;  %v690_v22 = vsel %vm563_vm0, %v299_v45, 0.0  ;;  %v697_v23 = vsel %vm563_vm0, %v300_v46, 0.0 }
  0x4e   : > { %v677_v42 = vrot.slane %v676_v20, 4  ;;  %v684_v47 = vrot.slane %v683_v21, 4  ;;  %v691_v48 = vrot.slane %v690_v22, 4  ;;  %v222_v44 = vunpack.c.l.bf16 %v200_v26  ;;  %v2336_v17 = vld [vmem:[%s2245_s24 + $0x38] sm:$0xff] }
  0x4f   : > { %v575_v46 = vadd.f32 %v574_v25, %v573_v11  ;;  %v590_v25 = vrot.slane %v589_v61, 1  ;;  %v2349_v26 = vadd.f32 %v595_v28, %v594_v62 }
  0x50   : > { %v2275_v51 = vld.sshfl [vmem:[#allocation1 + $0x20] sm:$0xff pattern:$0x73625140]  ;;  %v2277_v52 = vld.sshfl [vmem:[#allocation1 + $0x28] sm:$0xff pattern:$0x73625140]  ;;  %v678_v5 = vadd.f32 %v677_v42, %v676_v20  ;;  %v692_v11 = vadd.f32 %v691_v48, %v690_v22  ;;  %v224_v20 = vunpack.c.l.bf16 %v2336_v17  ;;  %v584_v48 = vadd.f32 %v583_v12, %v582_v56 }
  0x51   : > { %v2279_v54 = vld.sshfl [vmem:[#allocation1 + $0x30] sm:$0xff pattern:$0x73625140]  ;;  %v2281_v55 = vld.sshfl [vmem:[#allocation1 + $0x38] sm:$0xff pattern:$0x73625140] }
  0x52   : > { %306 = vst [vmem:[#allocation1 + $0x20] ss:$4 sm:$0xff] %v217_v49  ;;  %v698_v49 = vrot.slane %v697_v23, 4  ;;  %v576_v16 = vrot.slane %v575_v46, 1  ;;  %v679_v15 = vrot.slane %v678_v5, 2 }
  0x54   : > { %v2284_v57 = vld.sshfl [vmem:[#allocation1] sm:$0xff pattern:$0x73625140]  ;;  %v2286_v58 = vld.sshfl [vmem:[#allocation1 + $0x8] sm:$0xff pattern:$0x73625140] }
  0x55   : > { %3114 = vst [vmem:[#allocation11_spill] sm:$0xff] %v2284_v57  ;;  %v2288_v59 = vld.sshfl [vmem:[#allocation1 + $0x10] sm:$0xff pattern:$0x73625140] }
  0x56   : > { %3115 = vst [vmem:[#allocation12_spill] sm:$0xff] %v2286_v58  ;;  %v2290_v60 = vld.sshfl [vmem:[#allocation1 + $0x18] sm:$0xff pattern:$0x73625140] }
  0x57   : > { %3116 = vst [vmem:[#allocation13_spill] sm:$0xff] %v2288_v59 }
  0x58   : > { %3117 = vst [vmem:[#allocation14_spill] sm:$0xff] %v2290_v60 }
  0x59   : > { %315 = vst [vmem:[#allocation1] ss:$4 sm:$0xff] %v218_v53  ;;  %v2295_v6 = vld.sshfl [vmem:[#allocation1 + $0x20] sm:$0xff pattern:$0x73625140] }
  0x5a   : > { %3118 = vst [vmem:[#allocation15_spill] sm:$0xff] %v2295_v6  ;;  %v2297_v7 = vld.sshfl [vmem:[#allocation1 + $0x28] sm:$0xff pattern:$0x73625140] }
  0x5b   : > { %3119 = vst [vmem:[#allocation16_spill] sm:$0xff] %v2297_v7  ;;  %v2299_v9 = vld.sshfl [vmem:[#allocation1 + $0x30] sm:$0xff pattern:$0x73625140] }
  0x5c   : > { %3120 = vst [vmem:[#allocation17_spill] sm:$0xff] %v2299_v9  ;;  %v2301_v10 = vld.sshfl [vmem:[#allocation1 + $0x38] sm:$0xff pattern:$0x73625140] }
  0x5d   : > { %3121 = vst [vmem:[#allocation18_spill] sm:$0xff] %v2301_v10  ;;  %v693_v10 = vrot.slane %v692_v11, 2 }
  0x5e   : > { %316 = vst [vmem:[#allocation1 + $0x20] ss:$4 sm:$0xff] %v219_v1 }
  0x5f   : > { %v694_v28 = vadd.f32 %v693_v10, %v692_v11 }
  0x60   : > { %v2304_v13 = vld.sshfl [vmem:[#allocation1] sm:$0xff pattern:$0x73625140]  ;;  %v2306_v14 = vld.sshfl [vmem:[#allocation1 + $0x8] sm:$0xff pattern:$0x73625140] }
  0x61   : > { %v2308_v18 = vld.sshfl [vmem:[#allocation1 + $0x10] sm:$0xff pattern:$0x73625140]  ;;  %v2310_v19 = vld.sshfl [vmem:[#allocation1 + $0x18] sm:$0xff pattern:$0x73625140] }
  0x62   : > { %325 = vst [vmem:[#allocation1] ss:$4 sm:$0xff] %v220_v8  ;;  %v685_v8 = vadd.f32 %v684_v47, %v683_v21  ;;  %v788_v2 = vsel %vm563_vm0, %v2304_v13, 0.0  ;;  %v795_v41 = vsel %vm563_vm0, %v2306_v14, 0.0  ;;  %v802_v40 = vsel %vm563_vm0, %v2308_v18, 0.0 }
  0x63   : > { %v2362_v18 = vmul.f32 0.5, %v584_v48 }
  0x64   : > { %v686_v27 = vrot.slane %v685_v8, 2 }
  0x65   : > { %v2317_v50 = vld.sshfl [vmem:[#allocation1 + $0x20] sm:$0xff pattern:$0x73625140]  ;;  %v2319_v43 = vld.sshfl [vmem:[#allocation1 + $0x28] sm:$0xff pattern:$0x73625140] }
  0x66   : > { %v2321_v53 = vld.sshfl [vmem:[#allocation1 + $0x30] sm:$0xff pattern:$0x73625140]  ;;  %v2323_v45 = vld.sshfl [vmem:[#allocation1 + $0x38] sm:$0xff pattern:$0x73625140]  ;;  %v687_v62 = vadd.f32 %v686_v27, %v685_v8 }
  0x67   : > { %326 = vst [vmem:[#allocation1 + $0x20] ss:$4 sm:$0xff] %v221_v24  ;;  %v699_v24 = vadd.f32 %v698_v49, %v697_v23  ;;  %v577_v23 = vadd.f32 %v576_v16, %v575_v46  ;;  %v591_v49 = vadd.f32 %v590_v25, %v589_v61  ;;  %v809_v46 = vsel %vm563_vm0, %v2310_v19, 0.0 }
  0x68   : > { %v680_v61 = vadd.f32 %v679_v15, %v678_v5  ;;  %v789_v5 = vrot.slane %v788_v2, 4  ;;  %v796_v8 = vrot.slane %v795_v41, 4  ;;  %v803_v15 = vrot.slane %v802_v40, 4 }
  0x69   : > { %v2327_v0 = vld.sshfl [vmem:[#allocation1] sm:$0xff pattern:$0x73625140]  ;;  %v2329_v1 = vld.sshfl [vmem:[#allocation1 + $0x8] sm:$0xff pattern:$0x73625140] }
  0x6a   : > { %3122 = vst [vmem:[#allocation19_spill] sm:$0xff] %v2327_v0  ;;  %v2331_v3 = vld.sshfl [vmem:[#allocation1 + $0x10] sm:$0xff pattern:$0x73625140]  ;;  %v700_v9 = vrot.slane %v699_v24, 2  ;;  %v2360_v14 = vmul.f32 0.5, %v577_v23  ;;  %v790_v6 = vadd.f32 %v789_v5, %v788_v2  ;;  %v797_v39 = vadd.f32 %v796_v8, %v795_v41 }
  0x6b   : > { %3123 = vst [vmem:[#allocation20_spill] sm:$0xff] %v2329_v1  ;;  %v2333_v4 = vld.sshfl [vmem:[#allocation1 + $0x18] sm:$0xff pattern:$0x73625140]  ;;  %v681_v27 = vrot.slane %v680_v61, 1  ;;  %v688_v10 = vrot.slane %v687_v62, 1  ;;  %v804_v38 = vadd.f32 %v803_v15, %v802_v40 }
  0x6c   : > { %3124 = vst [vmem:[#allocation21_spill] sm:$0xff] %v2331_v3  ;;  %v701_v13 = vadd.f32 %v700_v9, %v699_v24  ;;  %v810_v11 = vrot.slane %v809_v46, 4  ;;  %v2372_v9 = vsel %vm563_vm0, %v2275_v51, 0.0  ;;  %v2375_v24 = vld [vmem:[%s2245_s24 + $0x48] sm:$0xff]  ;;  %v2424_v8 = vld [vmem:[%s2245_s24 + $0x70] sm:$0xff] }
  0x6d   : > { %3125 = vst [vmem:[#allocation22_spill] sm:$0xff] %v2333_v4  ;;  %v682_v40 = vadd.f32 %v681_v27, %v680_v61  ;;  %v2412_v61 = vsel %vm563_vm0, %v2277_v52, 0.0  ;;  %v2415_v27 = vld [vmem:[%s2245_s24 + $0x58] sm:$0xff] }
  0x6e   : > { %335 = vst [vmem:[#allocation1] ss:$4 sm:$0xff] %v222_v44  ;;  %v2341_v21 = vld.sshfl [vmem:[#allocation1 + $0x20] sm:$0xff pattern:$0x73625140]  ;;  %v601_v44 = vadd.f32 %v600_v31, %v599_v63  ;;  %v225_v63 = vunpack.c.h.bf16 %v2336_v17  ;;  %v2364_v31 = vmul.f32 0.5, %v591_v49  ;;  %v811_v3 = vadd.f32 %v810_v11, %v809_v46 }
  0x6f   : > { %3126 = vst [vmem:[#allocation23_spill] sm:$0xff] %v2341_v21  ;;  %v2343_v22 = vld.sshfl [vmem:[#allocation1 + $0x28] sm:$0xff pattern:$0x73625140]  ;;  %v695_v49 = vrot.slane %v694_v28, 1 }
  0x70   : > { %3127 = vst [vmem:[#allocation24_spill] sm:$0xff] %v2343_v22  ;;  %v2345_v42 = vld.sshfl [vmem:[#allocation1 + $0x30] sm:$0xff pattern:$0x73625140]  ;;  %v602_v19 = vrot.slane %v601_v44, 2  ;;  %v2418_v11 = vld [vmem:[%s2245_s24 + $0x60] sm:$0xff] }
  0x71   : > { %3128 = vst [vmem:[#allocation25_spill] sm:$0xff] %v2345_v42  ;;  %v2347_v47 = vld.sshfl [vmem:[#allocation1 + $0x38] sm:$0xff pattern:$0x73625140] }
  0x72   : > { %3129 = vst [vmem:[#allocation26_spill] sm:$0xff] %v2347_v47  ;;  %v702_v47 = vrot.slane %v701_v13, 1 }
  0x73   : > { %336 = vst [vmem:[#allocation1 + $0x20] ss:$4 sm:$0xff] %v223_v36  ;;  %v2367_v36 = vld [vmem:[%s2245_s24 + $0x40] sm:$0xff] }
  0x74   : > { %v226_v42 = vunpack.c.l.bf16 %v2367_v36  ;;  %v227_v17 = vunpack.c.h.bf16 %v2367_v36 }
  0x75   : > { %v337_v16 = vld.sshfl [vmem:[#allocation1] sm:$0xff pattern:$0x73625140]  ;;  %v338_v56 = vld.sshfl [vmem:[#allocation1 + $0x8] sm:$0xff pattern:$0x73625140] }
  0x76   : > { %v339_v12 = vld.sshfl [vmem:[#allocation1 + $0x10] sm:$0xff pattern:$0x73625140]  ;;  %v340_v25 = vld.sshfl [vmem:[#allocation1 + $0x18] sm:$0xff pattern:$0x73625140] }
  0x77   : > { %345 = vst [vmem:[#allocation1] ss:$4 sm:$0xff] %v224_v20  ;;  %v2378_v20 = vld [vmem:[%s2245_s24 + $0x50] sm:$0xff]  ;;  %v900_v23 = vsel %vm563_vm0, %v337_v16, 0.0  ;;  %v907_v48 = vsel %vm563_vm0, %v338_v56, 0.0  ;;  %v2392_v16 = vadd.f32 %v602_v19, %v601_v44  ;;  %v914_v60 = vsel %vm563_vm0, %v339_v12, 0.0 }
  0x78   : > { %v901_v56 = vrot.slane %v900_v23, 4  ;;  %v908_v4 = vrot.slane %v907_v48, 4  ;;  %v696_v12 = vadd.f32 %v695_v49, %v694_v28  ;;  %v703_v19 = vadd.f32 %v702_v47, %v701_v13  ;;  %v2421_v13 = vld [vmem:[%s2245_s24 + $0x68] sm:$0xff] }
  0x79   : > { %v921_v5 = vsel %vm563_vm0, %v340_v25, 0.0  ;;  %v798_v28 = vrot.slane %v797_v39, 2  ;;  %v805_v47 = vrot.slane %v804_v38, 2  ;;  %v1476_v49 = vmul.f32 0.5, %v682_v40 }
  0x7a   : > { %v2384_v22 = vld.sshfl [vmem:[#allocation1 + $0x20] sm:$0xff pattern:$0x73625140]  ;;  %v2386_v21 = vld.sshfl [vmem:[#allocation1 + $0x28] sm:$0xff pattern:$0x73625140]  ;;  %v902_v25 = vadd.f32 %v901_v56, %v900_v23 }
  0x7b   : > { %v2388_v51 = vld.sshfl [vmem:[#allocation1 + $0x30] sm:$0xff pattern:$0x73625140]  ;;  %v2390_v7 = vld.sshfl [vmem:[#allocation1 + $0x38] sm:$0xff pattern:$0x73625140] }
  0x7c   : > { %3130 = vst [vmem:[#allocation27_spill] sm:$0xff] %v2388_v51  ;;  %v915_v44 = vrot.slane %v914_v60, 4  ;;  %v922_v59 = vrot.slane %v921_v5, 4  ;;  %v2429_v15 = vmul.f32 0.5, %v696_v12  ;;  %v2431_v36 = vmul.f32 0.5, %v703_v19 }
  0x7d   : > { %3131 = vst [vmem:[#allocation28_spill] sm:$0xff] %v2390_v7  ;;  %v799_v12 = vadd.f32 %v798_v28, %v797_v39  ;;  %v806_v19 = vadd.f32 %v805_v47, %v804_v38 }
  0x7e   : > { %346 = vst [vmem:[#allocation1 + $0x20] ss:$4 sm:$0xff] %v225_v63  ;;  %v2398_v34 = vld.sshfl [vmem:[#allocation1] sm:$0xff pattern:$0x73625140]  ;;  %v689_v63 = vadd.f32 %v688_v10, %v687_v62  ;;  %v791_v62 = vrot.slane %v790_v6, 2  ;;  %v909_v10 = vadd.f32 %v908_v4, %v907_v48  ;;  %v923_v58 = vadd.f32 %v922_v59, %v921_v5 }
  0x7f   : > { %3132 = vst [vmem:[#allocation29_spill] sm:$0xff] %v2398_v34  ;;  %v2400_v41 = vld.sshfl [vmem:[#allocation1 + $0x8] sm:$0xff pattern:$0x73625140]  ;;  %v800_v47 = vrot.slane %v799_v12, 1 }
  0x80   : > { %3133 = vst [vmem:[#allocation30_spill] sm:$0xff] %v2400_v41  ;;  %v2403_v2 = vld.sshfl [vmem:[#allocation1 + $0x10] sm:$0xff pattern:$0x73625140]  ;;  %v1477_v52 = vmul.f32 0.5, %v689_v63  ;;  %v792_v63 = vadd.f32 %v791_v62, %v790_v6  ;;  %v910_v1 = vrot.slane %v909_v10, 2 }
  0x81   : > { %3134 = vst [vmem:[#allocation31_spill] sm:$0xff] %v2403_v2  ;;  %v2405_v46 = vld.sshfl [vmem:[#allocation1 + $0x18] sm:$0xff pattern:$0x73625140]  ;;  %v916_v2 = vadd.f32 %v915_v44, %v914_v60  ;;  %v712_v41 = vrot.slane %v2412_v61, 4  ;;  %v2453_v60 = vpack.c.bf16 %v2360_v14, %v2338_v37  ;;  %v3140_v44 = vunpack.c.l.bf16 %v2375_v24 }
  0x82   : > { %3135 = vst [vmem:[#allocation32_spill] sm:$0xff] %v2405_v46  ;;  %v903_v46 = vrot.slane %v902_v25, 2  ;;  %v793_v62 = vrot.slane %v792_v63, 1  ;;  %v924_v37 = vrot.slane %v923_v58, 2  ;;  %v2464_v14 = vsel %vm563_vm0, %v2317_v50, 0.0 }
  0x83   : > { %355 = vst [vmem:[#allocation1] ss:$4 sm:$0xff] %v226_v42  ;;  %v812_v42 = vrot.slane %v811_v3, 2  ;;  %v917_v6 = vrot.slane %v916_v2, 2  ;;  %v2478_v50 = vadd.f32 %v712_v41, %v2412_v61 }
  0x84   : > { %v794_v4 = vadd.f32 %v793_v62, %v792_v63  ;;  %v3143_v63 = vunpack.c.h.bf16 %v2375_v24  ;;  %v2501_v24 = vpack.c.bf16 %v2431_v36, %v2429_v15 }
  0x85   : > { %v2437_v23 = vld.sshfl [vmem:[#allocation1 + $0x20] sm:$0xff pattern:$0x73625140]  ;;  %v2439_v48 = vld.sshfl [vmem:[#allocation1 + $0x28] sm:$0xff pattern:$0x73625140]  ;;  %v813_v34 = vadd.f32 %v812_v42, %v811_v3  ;;  %v918_v32 = vadd.f32 %v917_v6, %v916_v2 }
  0x86   : > { %3136 = vst [vmem:[#allocation33_spill] sm:$0xff] %v2437_v23  ;;  %v2441_v56 = vld.sshfl [vmem:[#allocation1 + $0x30] sm:$0xff pattern:$0x73625140]  ;;  %v807_v42 = vrot.slane %v806_v19, 1  ;;  %v911_v23 = vadd.f32 %v910_v1, %v909_v10  ;;  %v3141_v1 = vrot.slane %v2372_v9, 4 }
  0x87   : > { %3137 = vst [vmem:[#allocation34_spill] sm:$0xff] %v2439_v48  ;;  %v2443_v40 = vld.sshfl [vmem:[#allocation1 + $0x38] sm:$0xff pattern:$0x73625140]  ;;  %v814_v38 = vrot.slane %v813_v34, 1  ;;  %v904_v48 = vadd.f32 %v903_v46, %v902_v25 }
  0x88   : > { %3138 = vst [vmem:[#allocation35_spill] sm:$0xff] %v2441_v56  ;;  %v2475_v46 = vadd.f32 %v3141_v1, %v2372_v9  ;;  %v808_v57 = vadd.f32 %v807_v42, %v806_v19  ;;  %v912_v7 = vrot.slane %v911_v23, 1  ;;  %v2488_v9 = vsel %vm563_vm0, %v2319_v43, 0.0 }
  0x89   : > { %3139 = vst [vmem:[#allocation36_spill] sm:$0xff] %v2443_v40  ;;  %v1716_v40 = vunpack.c.l.b16 %v2453_v60  ;;  %v815_v33 = vadd.f32 %v814_v38, %v813_v34  ;;  %v905_v62 = vrot.slane %v904_v48, 1  ;;  %v2497_v34 = vpack.c.bf16 %v2364_v31, %v2362_v18 }
  0x8a   : > { %356 = vst [vmem:[#allocation1 + $0x20] ss:$4 sm:$0xff] %v227_v17  ;;  %v357_v0 = vld.sshfl [vmem:[#allocation1] sm:$0xff pattern:$0x73625140]  ;;  %v2455_v17 = vpack.c.bf16 %v1477_v52, %v1476_v49  ;;  %v3148_v42 = vunpack.c.l.bf16 %v2378_v20  ;;  %v919_v31 = vrot.slane %v918_v32, 1 }
  0x8b   : > { %v358_v56 = vld.sshfl [vmem:[#allocation1 + $0x8] sm:$0xff pattern:$0x73625140]  ;;  %v359_v39 = vld.sshfl [vmem:[#allocation1 + $0x10] sm:$0xff pattern:$0x73625140] }
  0x8c   : > { %v360_v3 = vld.sshfl [vmem:[#allocation1 + $0x18] sm:$0xff pattern:$0x73625140]  ;;  %v1012_v28 = vsel %vm563_vm0, %v357_v0, 0.0  ;;  %v1019_v59 = vsel %vm563_vm0, %v358_v56, 0.0  ;;  %v1026_v5 = vsel %vm563_vm0, %v359_v39, 0.0  ;;  %v1732_v1 = vunpack.c.l.b16 %v2455_v17 }
  0x8d   : > { %365 = vst [vmem:[#allocation1] ss:$4 sm:$0xff] %v3140_v44  ;;  %v1013_v49 = vrot.slane %v1012_v28, 4  ;;  %v1020_v52 = vrot.slane %v1019_v59, 4  ;;  %v1027_v44 = vrot.slane %v1026_v5, 4  ;;  %v1033_v0 = vsel %vm563_vm0, %v360_v3, 0.0 }
  0x8e   : > { %v801_v3 = vadd.f32 %v800_v47, %v799_v12  ;;  %v1034_v51 = vrot.slane %v1033_v0, 4  ;;  %v925_v12 = vadd.f32 %v924_v37, %v923_v58  ;;  %v1492_v58 = vmul.f32 0.5, %v794_v4 }
  0x8f   : > { %v1014_v43 = vadd.f32 %v1013_v49, %v1012_v28  ;;  %v1021_v6 = vadd.f32 %v1020_v52, %v1019_v59  ;;  %v1028_v38 = vadd.f32 %v1027_v44, %v1026_v5  ;;  %v920_v36 = vadd.f32 %v919_v31, %v918_v32 }
  0x90   : > { %v1035_v47 = vadd.f32 %v1034_v51, %v1033_v0  ;;  %v1493_v37 = vmul.f32 0.5, %v801_v3  ;;  %v926_v28 = vrot.slane %v925_v12, 1 }
  0x91   : > { %v2467_v56 = vld.sshfl [vmem:[#allocation1 + $0x20] sm:$0xff pattern:$0x73625140]  ;;  %v2469_v39 = vld.sshfl [vmem:[#allocation1 + $0x28] sm:$0xff pattern:$0x73625140] }
  0x92   : > { %v2480_v25 = vld.sshfl [vmem:[#allocation1 + $0x30] sm:$0xff pattern:$0x73625140]  ;;  %v2482_v10 = vld.sshfl [vmem:[#allocation1 + $0x38] sm:$0xff pattern:$0x73625140]  ;;  %v927_v3 = vadd.f32 %v926_v28, %v925_v12 }
  0x93   : > { %3142 = vst [vmem:[#allocation37_spill] sm:$0xff] %v2482_v10  ;;  %v1015_v51 = vrot.slane %v1014_v43, 2  ;;  %v1022_v5 = vrot.slane %v1021_v6, 2  ;;  %v1029_v49 = vrot.slane %v1028_v38, 2  ;;  %v1036_v52 = vrot.slane %v1035_v47, 2 }
  0x94   : > { %366 = vst [vmem:[#allocation1 + $0x20] ss:$4 sm:$0xff] %v3143_v63  ;;  %v2490_v41 = vld.sshfl [vmem:[#allocation1] sm:$0xff pattern:$0x73625140]  ;;  %v1494_v63 = vmul.f32 0.5, %v808_v57 }
  0x95   : > { %3144 = vst [vmem:[#allocation38_spill] sm:$0xff] %v2490_v41  ;;  %v2492_v61 = vld.sshfl [vmem:[#allocation1 + $0x8] sm:$0xff pattern:$0x73625140]  ;;  %v1510_v28 = vmul.f32 0.5, %v920_v36  ;;  %v3157_v36 = vrot.slane %v2475_v46, 2 }
  0x96   : > { %3145 = vst [vmem:[#allocation39_spill] sm:$0xff] %v2492_v61  ;;  %v2503_v2 = vld.sshfl [vmem:[#allocation1 + $0x10] sm:$0xff pattern:$0x73625140]  ;;  %v1495_v61 = vmul.f32 0.5, %v815_v33  ;;  %v3154_v33 = vrot.slane %v2392_v16, 1 }
  0x97   : > { %3146 = vst [vmem:[#allocation40_spill] sm:$0xff] %v2503_v2  ;;  %v2505_v19 = vld.sshfl [vmem:[#allocation1 + $0x18] sm:$0xff pattern:$0x73625140]  ;;  %v906_v2 = vadd.f32 %v905_v62, %v904_v48  ;;  %v2527_v62 = vsel %vm1844_vm1, %v1732_v1, %v1716_v40  ;;  %v3155_v48 = vunpack.c.h.bf16 %v2378_v20  ;;  %v1016_v1 = vadd.f32 %v1015_v51, %v1014_v43 }
  0x98   : > { %3147 = vst [vmem:[#allocation41_spill] sm:$0xff] %v2505_v19  ;;  %v913_v19 = vadd.f32 %v912_v7, %v911_v23  ;;  %v2537_v0 = vadd.f32 %v3154_v33, %v2392_v16  ;;  %v1030_v16 = vadd.f32 %v1029_v49, %v1028_v38  ;;  %v1037_v33 = vadd.f32 %v1036_v52, %v1035_v47 }
  0x99   : > { %375 = vst [vmem:[#allocation1] ss:$4 sm:$0xff] %v3148_v42  ;;  %v3153_v42 = vrot.slane %v2349_v26, 1  ;;  %v1508_v59 = vmul.f32 0.5, %v906_v2  ;;  %v2545_v20 = vpack.c.bf16 %v1495_v61, %v1494_v63  ;;  %v3156_v2 = vunpack.c.l.bf16 %v2415_v27 }
  0x9a   : > { %v1509_v15 = vmul.f32 0.5, %v913_v19  ;;  %v1038_v49 = vrot.slane %v1037_v33, 1 }
  0x9b   : > { %v2514_v57 = vld.sshfl [vmem:[#allocation1 + $0x20] sm:$0xff pattern:$0x73625140]  ;;  %v2516_v44 = vld.sshfl [vmem:[#allocation1 + $0x28] sm:$0xff pattern:$0x73625140]  ;;  %v2532_v4 = vadd.f32 %v3153_v42, %v2349_v26 }
  0x9c   : > { %3149 = vst [vmem:[#allocation42_spill] sm:$0xff] %v2514_v57  ;;  %v2521_v7 = vld.sshfl [vmem:[#allocation1 + $0x30] sm:$0xff pattern:$0x73625140]  ;;  %v2543_v57 = vpack.c.bf16 %v1493_v37, %v1492_v58  ;;  %v1511_v58 = vmul.f32 0.5, %v927_v3  ;;  %v1017_v37 = vrot.slane %v1016_v1, 1  ;;  %v708_v3 = vadd.f32 %v3157_v36, %v2475_v46 }
  0x9d   : > { %3150 = vst [vmem:[#allocation43_spill] sm:$0xff] %v2516_v44  ;;  %v2523_v23 = vld.sshfl [vmem:[#allocation1 + $0x38] sm:$0xff pattern:$0x73625140]  ;;  %v3162_v46 = vunpack.c.h.bf16 %v2415_v27 }
  0x9e   : > { %3151 = vst [vmem:[#allocation44_spill] sm:$0xff] %v2521_v7  ;;  %v1018_v26 = vadd.f32 %v1017_v37, %v1016_v1  ;;  %v2595_v37 = vpack.c.bf16 %v1511_v58, %v1510_v28  ;;  %v3169_v28 = vunpack.c.h.b16 %v2453_v60  ;;  %v3170_v58 = vunpack.c.h.b16 %v2455_v17 }
  0x9f   : > { %3152 = vst [vmem:[#allocation45_spill] sm:$0xff] %v2523_v23  ;;  %v1023_v23 = vadd.f32 %v1022_v5, %v1021_v6  ;;  %v1031_v5 = vrot.slane %v1030_v16, 1 }
  0xa0   : > { %376 = vst [vmem:[#allocation1 + $0x20] ss:$4 sm:$0xff] %v3155_v48  ;;  %v377_v18 = vld.sshfl [vmem:[#allocation1] sm:$0xff pattern:$0x73625140]  ;;  %v1748_v48 = vunpack.c.l.b16 %v2543_v57 }
  0xa1   : > { %v378_v40 = vld.sshfl [vmem:[#allocation1 + $0x8] sm:$0xff pattern:$0x73625140]  ;;  %v379_v42 = vld.sshfl [vmem:[#allocation1 + $0x10] sm:$0xff pattern:$0x73625140] }
  0xa2   : > { %v380_v44 = vld.sshfl [vmem:[#allocation1 + $0x18] sm:$0xff pattern:$0x73625140]  ;;  %v1124_v32 = vsel %vm563_vm0, %v377_v18, 0.0  ;;  %v1131_v12 = vsel %vm563_vm0, %v378_v40, 0.0  ;;  %v1138_v19 = vsel %vm563_vm0, %v379_v42, 0.0 }
  0xa3   : > { %385 = vst [vmem:[#allocation1] ss:$4 sm:$0xff] %v3156_v2  ;;  %v1145_v43 = vsel %vm563_vm0, %v380_v44, 0.0  ;;  %v1125_v6 = vrot.slane %v1124_v32, 4  ;;  %v1132_v31 = vrot.slane %v1131_v12, 4  ;;  %v1024_v38 = vrot.slane %v1023_v23, 1 }
  0xa4   : > { %v1139_v61 = vrot.slane %v1138_v19, 4  ;;  %v1146_v47 = vrot.slane %v1145_v43, 4 }
  0xa5   : > { %v1126_v63 = vadd.f32 %v1125_v6, %v1124_v32  ;;  %v1133_v51 = vadd.f32 %v1132_v31, %v1131_v12  ;;  %v1612_v32 = vpack.c.bf16 %v1509_v15, %v1508_v59  ;;  %v1749_v12 = vunpack.c.h.b16 %v2543_v57 }
  0xa6   : > { %v1140_v44 = vadd.f32 %v1139_v61, %v1138_v19  ;;  %v1147_v40 = vadd.f32 %v1146_v47, %v1145_v43  ;;  %v3160_v6 = vrot.slane %v2478_v50, 2  ;;  %v3161_v19 = vrot.slane %v2464_v14, 4 }
  0xa7   : > { %v2553_v18 = vld.sshfl [vmem:[#allocation1 + $0x20] sm:$0xff pattern:$0x73625140]  ;;  %v2555_v52 = vld.sshfl [vmem:[#allocation1 + $0x28] sm:$0xff pattern:$0x73625140]  ;;  %v1025_v7 = vadd.f32 %v1024_v38, %v1023_v23  ;;  %v1764_v10 = vunpack.c.l.b16 %v1612_v32 }
  0xa8   : > { %v2561_v42 = vld.sshfl [vmem:[#allocation1 + $0x30] sm:$0xff pattern:$0x73625140]  ;;  %v2563_v2 = vld.sshfl [vmem:[#allocation1 + $0x38] sm:$0xff pattern:$0x73625140]  ;;  %v2569_v31 = vadd.f32 %v3160_v6, %v2478_v50  ;;  %v2574_v43 = vadd.f32 %v3161_v19, %v2464_v14  ;;  %v1032_v50 = vadd.f32 %v1031_v5, %v1030_v16  ;;  %v1750_v6 = vunpack.c.l.b16 %v2545_v20 }
  0xa9   : > { %3158 = vst [vmem:[#allocation46_spill] sm:$0xff] %v2561_v42  ;;  %v1127_v61 = vrot.slane %v1126_v63, 2  ;;  %v1134_v47 = vrot.slane %v1133_v51, 2  ;;  %v1141_v36 = vrot.slane %v1140_v44, 2  ;;  %v1148_v15 = vrot.slane %v1147_v40, 2 }
  0xaa   : > { %3159 = vst [vmem:[#allocation47_spill] sm:$0xff] %v2563_v2  ;;  %v2578_v59 = vld.sshfl [vmem:[#allocation1] sm:$0xff pattern:$0x73625140]  ;;  %v3165_v42 = vunpack.c.l.bf16 %v2418_v11  ;;  %v3166_v23 = vrot.slane %v2488_v9, 4  ;;  %v1765_v16 = vunpack.c.h.b16 %v1612_v32  ;;  %v716_v38 = vrot.slane %v2569_v31, 1 }
  0xab   : > { %386 = vst [vmem:[#allocation1 + $0x20] ss:$4 sm:$0xff] %v3162_v46  ;;  %v2580_v57 = vld.sshfl [vmem:[#allocation1 + $0x8] sm:$0xff pattern:$0x73625140]  ;;  %v1128_v19 = vadd.f32 %v1127_v61, %v1126_v63  ;;  %v1135_v27 = vadd.f32 %v1134_v47, %v1133_v51  ;;  %v1039_v46 = vadd.f32 %v1038_v49, %v1037_v33  ;;  %v1142_v2 = vadd.f32 %v1141_v36, %v1140_v44 }
  0xac   : > { %3163 = vst [vmem:[#allocation48_spill] sm:$0xff] %v2578_v59  ;;  %v2583_v41 = vld.sshfl [vmem:[#allocation1 + $0x10] sm:$0xff pattern:$0x73625140]  ;;  %v1751_v59 = vunpack.c.h.b16 %v2545_v20  ;;  %v2593_v1 = vadd.f32 %v3166_v23, %v2488_v9  ;;  %v1524_v63 = vmul.f32 0.5, %v1018_v26  ;;  %v1525_v51 = vmul.f32 0.5, %v1025_v7 }
  0xad   : > { %3164 = vst [vmem:[#allocation49_spill] sm:$0xff] %v2580_v57  ;;  %v2585_v14 = vld.sshfl [vmem:[#allocation1 + $0x18] sm:$0xff pattern:$0x73625140]  ;;  %v709_v57 = vrot.slane %v708_v3, 1  ;;  %v1149_v5 = vadd.f32 %v1148_v15, %v1147_v40  ;;  %v1526_v49 = vmul.f32 0.5, %v1032_v50  ;;  %v1847_v9 = vsel %vm1846_vm2, %v1748_v48, %v2527_v62 }
  0xae   : > { %395 = vst [vmem:[#allocation1] ss:$4 sm:$0xff] %v3165_v42  ;;  %v1129_v44 = vrot.slane %v1128_v19, 1  ;;  %v1136_v42 = vrot.slane %v1135_v27, 1  ;;  %v1143_v20 = vrot.slane %v1142_v2, 1  ;;  %v1527_v61 = vmul.f32 0.5, %v1039_v46 }
  0xaf   : > { %v1858_v26 = vsel %vm1844_vm1, %v3170_v58, %v3169_v28  ;;  %v3171_v7 = vunpack.c.l.b16 %v2497_v34  ;;  %v3172_v40 = vunpack.c.l.b16 %v2501_v24  ;;  %v3173_v15 = vunpack.c.h.b16 %v2497_v34 }
  0xb0   : > { %v3174_v50 = vunpack.c.h.b16 %v2501_v24  ;;  %v1859_v60 = vsel %vm1846_vm2, %v1749_v12, %v1858_v26  ;;  %v2629_v28 = vadd.f32 %v709_v57, %v708_v3  ;;  %v3177_v58 = vunpack.c.h.bf16 %v2418_v11 }
  0xb1   : > { %v1865_v32 = vsel %vm1844_vm1, %v3172_v40, %v3171_v7  ;;  %v1150_v34 = vrot.slane %v1149_v5, 1  ;;  %v826_v24 = vrot.slane %v2593_v1, 2  ;;  %v928_v7 = vsel %vm563_vm0, %v2384_v22, 0.0 }
  0xb2   : > { %v2599_v47 = vld.sshfl [vmem:[#allocation1 + $0x20] sm:$0xff pattern:$0x73625140]  ;;  %v2601_v36 = vld.sshfl [vmem:[#allocation1 + $0x28] sm:$0xff pattern:$0x73625140]  ;;  %v1872_v46 = vsel %vm1844_vm1, %v3174_v50, %v3173_v15  ;;  %v1866_v17 = vsel %vm1846_vm2, %v1750_v6, %v1865_v32  ;;  %v1130_v6 = vadd.f32 %v1129_v44, %v1128_v19  ;;  %v2643_v3 = vsel %vm1848_vm3, %v1765_v16, %v1859_v60 }
  0xb3   : > { %3167 = vst [vmem:[#allocation50_spill] sm:$0xff] %v2599_v47  ;;  %v2620_v23 = vld.sshfl [vmem:[#allocation1 + $0x30] sm:$0xff pattern:$0x73625140]  ;;  %v2627_v48 = vsel %vm1846_vm2, %v1751_v59, %v1872_v46  ;;  %v2637_v40 = vmul.f32 0.5, %v2532_v4  ;;  %v2640_v59 = vsel %vm1848_vm3, %v1764_v10, %v1847_v9  ;;  %v1766_v11 = vunpack.c.l.b16 %v2595_v37 }
  0xb4   : > { %3168 = vst [vmem:[#allocation51_spill] sm:$0xff] %v2601_v36  ;;  %v2622_v62 = vld.sshfl [vmem:[#allocation1 + $0x38] sm:$0xff pattern:$0x73625140]  ;;  %v1137_v15 = vadd.f32 %v1136_v42, %v1135_v27  ;;  %v2646_v50 = vpack.c.bf16 %v1525_v51, %v1524_v63  ;;  %v1144_v22 = vadd.f32 %v1143_v20, %v1142_v2  ;;  %v2648_v46 = vpack.c.bf16 %v1527_v61, %v1526_v49 }
  0xb5   : > { %3175 = vst [vmem:[#allocation52_spill] sm:$0xff] %v2620_v23  ;;  %v397_v12 = vld.sshfl [vmem:[#allocation1] sm:$0xff pattern:$0x73625140]  ;;  %v3178_v4 = vunpack.c.l.bf16 %v2421_v13  ;;  %v2658_v27 = vsel %vm563_vm0, %v2386_v21, 0.0  ;;  %v1540_v2 = vmul.f32 0.5, %v1130_v6  ;;  %v1151_v63 = vadd.f32 %v1150_v34, %v1149_v5 }
  0xb6   : > { %3176 = vst [vmem:[#allocation53_spill] sm:$0xff] %v2622_v62  ;;  %v398_v26 = vld.sshfl [vmem:[#allocation1 + $0x8] sm:$0xff pattern:$0x73625140]  ;;  %v1236_v19 = vsel %vm563_vm0, %v397_v12, 0.0  ;;  %v1541_v61 = vmul.f32 0.5, %v1137_v15  ;;  %v1867_v33 = vsel %vm1848_vm3, %v1766_v11, %v1866_v17  ;;  %v2669_v21 = vadd.f32 %v716_v38, %v2569_v31 }
  0xb7   : > { %396 = vst [vmem:[#allocation1 + $0x20] ss:$4 sm:$0xff] %v3177_v58  ;;  %v399_v57 = vld.sshfl [vmem:[#allocation1 + $0x10] sm:$0xff pattern:$0x73625140]  ;;  %v1243_v10 = vsel %vm563_vm0, %v398_v26, 0.0  ;;  %v1780_v6 = vunpack.c.l.b16 %v2646_v50  ;;  %v3180_v17 = vunpack.c.h.bf16 %v2421_v13 }
  0xb8   : > { %v400_v32 = vld.sshfl [vmem:[#allocation1 + $0x18] sm:$0xff pattern:$0x73625140]  ;;  %v1250_v16 = vsel %vm563_vm0, %v399_v57, 0.0  ;;  %v1237_v9 = vrot.slane %v1236_v19, 4  ;;  %v1244_v60 = vrot.slane %v1243_v10, 4 }
  0xb9   : > { %405 = vst [vmem:[#allocation1] ss:$4 sm:$0xff] %v3178_v4  ;;  %v1257_v44 = vsel %vm563_vm0, %v400_v32, 0.0  ;;  %v929_v58 = vrot.slane %v928_v7, 4  ;;  %v1251_v51 = vrot.slane %v1250_v16, 4  ;;  %v1542_v12 = vmul.f32 0.5, %v1144_v22 }
  0xba   : > { %v1258_v49 = vrot.slane %v1257_v44, 4  ;;  %v1238_v42 = vadd.f32 %v1237_v9, %v1236_v19  ;;  %v1245_v20 = vadd.f32 %v1244_v60, %v1243_v10  ;;  %v1767_v4 = vunpack.c.h.b16 %v2595_v37 }
  0xbb   : > { %v1252_v32 = vadd.f32 %v1251_v51, %v1250_v16  ;;  %v3179_v22 = vrot.slane %v2574_v43, 2  ;;  %v827_v37 = vadd.f32 %v826_v24, %v2593_v1  ;;  %v1543_v10 = vmul.f32 0.5, %v1151_v63 }
  0xbc   : > { %v1259_v15 = vadd.f32 %v1258_v49, %v1257_v44  ;;  %v1239_v11 = vrot.slane %v1238_v42, 2  ;;  %v1246_v31 = vrot.slane %v1245_v20, 2  ;;  %v1628_v60 = vpack.c.bf16 %v1541_v61, %v1540_v2 }
  0xbd   : > { %v820_v19 = vadd.f32 %v3179_v22, %v2574_v43  ;;  %v1253_v38 = vrot.slane %v1252_v32, 2  ;;  %v1781_v44 = vunpack.c.h.b16 %v2646_v50  ;;  %v1782_v51 = vunpack.c.l.b16 %v2648_v46 }
  0xbe   : > { %v2660_v26 = vld.sshfl [vmem:[#allocation1 + $0x20] sm:$0xff pattern:$0x73625140]  ;;  %v2662_v57 = vld.sshfl [vmem:[#allocation1 + $0x28] sm:$0xff pattern:$0x73625140]  ;;  %v930_v49 = vadd.f32 %v929_v58, %v928_v7  ;;  %v1240_v13 = vadd.f32 %v1239_v11, %v1238_v42  ;;  %v1247_v24 = vadd.f32 %v1246_v31, %v1245_v20  ;;  %v3183_v63 = vunpack.c.l.bf16 %v2424_v8 }
  0xbf   : > { %v2671_v5 = vld.sshfl [vmem:[#allocation1 + $0x30] sm:$0xff pattern:$0x73625140]  ;;  %v2673_v34 = vld.sshfl [vmem:[#allocation1 + $0x38] sm:$0xff pattern:$0x73625140]  ;;  %v1254_v22 = vadd.f32 %v1253_v38, %v1252_v32  ;;  %v2697_v36 = vpack.c.bf16 %v1543_v10, %v1542_v12  ;;  %v1796_v47 = vunpack.c.l.b16 %v1628_v60  ;;  %v1861_v12 = vsel %vm1850_vm4, %v1781_v44, %v2643_v3 }
  0xc0   : > { %406 = vst [vmem:[#allocation1 + $0x20] ss:$4 sm:$0xff] %v3180_v17  ;;  %v2682_v16 = vld.sshfl [vmem:[#allocation1] sm:$0xff pattern:$0x73625140]  ;;  %v1783_v17 = vunpack.c.h.b16 %v2648_v46  ;;  %v1260_v62 = vrot.slane %v1259_v15, 2 }
  0xc1   : > { %v2684_v9 = vld.sshfl [vmem:[#allocation1 + $0x8] sm:$0xff pattern:$0x73625140]  ;;  %v2688_v43 = vld.sshfl [vmem:[#allocation1 + $0x10] sm:$0xff pattern:$0x73625140] }
  0xc2   : > { %3181 = vst [vmem:[#allocation54_spill] sm:$0xff] %v2688_v43  ;;  %v2690_v1 = vld.sshfl [vmem:[#allocation1 + $0x18] sm:$0xff pattern:$0x73625140]  ;;  %v821_v23 = vrot.slane %v820_v19, 1  ;;  %v828_v2 = vrot.slane %v827_v37, 1  ;;  %v1261_v42 = vadd.f32 %v1260_v62, %v1259_v15  ;;  %v1851_v43 = vsel %vm1850_vm4, %v1780_v6, %v2640_v59 }
  0xc3   : > { %3182 = vst [vmem:[#allocation55_spill] sm:$0xff] %v2690_v1  ;;  %v1040_v50 = vsel %vm563_vm0, %v2467_v56, 0.0  ;;  %v1241_v61 = vrot.slane %v1240_v13, 1  ;;  %v1248_v7 = vrot.slane %v1247_v24, 1  ;;  %v1255_v58 = vrot.slane %v1254_v22, 1 }
  0xc4   : > { %415 = vst [vmem:[#allocation1] ss:$4 sm:$0xff] %v3183_v63  ;;  %v931_v20 = vrot.slane %v930_v49, 2  ;;  %v936_v32 = vrot.slane %v2658_v27, 4  ;;  %v1041_v38 = vrot.slane %v1040_v50, 4  ;;  %v1797_v56 = vunpack.c.h.b16 %v1628_v60 }
  0xc5   : > { %v1242_v46 = vadd.f32 %v1241_v61, %v1240_v13  ;;  %v1249_v11 = vadd.f32 %v1248_v7, %v1247_v24  ;;  %v1256_v31 = vadd.f32 %v1255_v58, %v1254_v22  ;;  %v1874_v62 = vsel %vm1848_vm3, %v1767_v4, %v2627_v48 }
  0xc6   : > { %v1868_v13 = vsel %vm1850_vm4, %v1782_v51, %v1867_v33  ;;  %v1875_v24 = vsel %vm1850_vm4, %v1783_v17, %v1874_v62  ;;  %v2716_v22 = vadd.f32 %v821_v23, %v820_v19  ;;  %v2718_v60 = vadd.f32 %v828_v2, %v827_v37 }
  0xc7   : > { %v2700_v63 = vld.sshfl [vmem:[#allocation1 + $0x20] sm:$0xff pattern:$0x73625140]  ;;  %v2702_v1 = vld.sshfl [vmem:[#allocation1 + $0x28] sm:$0xff pattern:$0x73625140]  ;;  %v3185_v59 = vunpack.c.h.bf16 %v2424_v8  ;;  %v1853_v7 = vsel %vm1852_vm5, %v1796_v47, %v1851_v43  ;;  %v1798_v58 = vunpack.c.l.b16 %v2697_v36  ;;  %v1799_v33 = vunpack.c.h.b16 %v2697_v36 }
  0xc8   : > { %v2710_v15 = vld.sshfl [vmem:[#allocation1 + $0x30] sm:$0xff pattern:$0x73625140]  ;;  %v2712_v10 = vld.sshfl [vmem:[#allocation1 + $0x38] sm:$0xff pattern:$0x73625140]  ;;  %v932_v51 = vadd.f32 %v931_v20, %v930_v49  ;;  %v1862_v17 = vsel %vm1852_vm5, %v1797_v56, %v1861_v12  ;;  %v937_v2 = vadd.f32 %v936_v32, %v2658_v27 }
  0xc9   : > { %3184 = vst [vmem:[#allocation56_spill] sm:$0xff] %v2712_v10  ;;  %v1556_v6 = vmul.f32 0.5, %v1242_v46  ;;  %v1557_v3 = vmul.f32 0.5, %v1249_v11  ;;  %v1262_v44 = vrot.slane %v1261_v42, 1  ;;  %v1558_v61 = vmul.f32 0.5, %v1256_v31 }
  0xca   : > { %416 = vst [vmem:[#allocation1 + $0x20] ss:$4 sm:$0xff] %v3185_v59  ;;  %v3186_v46 = vunpack.c.l.bf16 %v2427_v35  ;;  %v933_v12 = vrot.slane %v932_v51, 1 }
  0xcb   : > { %v417_v48 = vld.sshfl [vmem:[#allocation1] sm:$0xff pattern:$0x73625140]  ;;  %v418_v4 = vld.sshfl [vmem:[#allocation1 + $0x8] sm:$0xff pattern:$0x73625140]  ;;  %v1636_v37 = vpack.c.bf16 %v1557_v3, %v1556_v6  ;;  %v1263_v8 = vadd.f32 %v1262_v44, %v1261_v42  ;;  %v1042_v6 = vadd.f32 %v1041_v38, %v1040_v50 }
  0xcc   : > { %v419_v23 = vld.sshfl [vmem:[#allocation1 + $0x10] sm:$0xff pattern:$0x73625140]  ;;  %v420_v19 = vld.sshfl [vmem:[#allocation1 + $0x18] sm:$0xff pattern:$0x73625140]  ;;  %v2751_v38 = vadd.f32 %v933_v12, %v932_v51 }
  0xcd   : > { %425 = vst [vmem:[#allocation1] ss:$4 sm:$0xff] %v3186_v46  ;;  %v1348_v11 = vsel %vm563_vm0, %v417_v48, 0.0  ;;  %v1355_v47 = vsel %vm563_vm0, %v418_v4, 0.0  ;;  %v1362_v43 = vsel %vm563_vm0, %v419_v23, 0.0  ;;  %v1369_v36 = vsel %vm563_vm0, %v420_v19, 0.0 }
  0xce   : > { %v1349_v49 = vrot.slane %v1348_v11, 4  ;;  %v1356_v20 = vrot.slane %v1355_v47, 4  ;;  %v1812_v31 = vunpack.c.l.b16 %v1636_v37  ;;  %v1813_v62 = vunpack.c.h.b16 %v1636_v37 }
  0xcf   : > { %v1363_v59 = vrot.slane %v1362_v43, 4  ;;  %v1370_v56 = vrot.slane %v1369_v36, 4  ;;  %v1559_v42 = vmul.f32 0.5, %v1263_v8  ;;  %v1047_v3 = vsel %vm563_vm0, %v2469_v39, 0.0 }
  0xd0   : > { %v1350_v27 = vadd.f32 %v1349_v49, %v1348_v11  ;;  %v1357_v32 = vadd.f32 %v1356_v20, %v1355_v47  ;;  %v1869_v46 = vsel %vm1852_vm5, %v1798_v58, %v1868_v13  ;;  %v2745_v8 = vsel %vm1854_vm6, %v1812_v31, %v1853_v7 }
  0xd1   : > { %v2735_v44 = vld.sshfl [vmem:[#allocation1 + $0x20] sm:$0xff pattern:$0x73625140]  ;;  %v2737_v48 = vld.sshfl [vmem:[#allocation1 + $0x28] sm:$0xff pattern:$0x73625140]  ;;  %v1364_v4 = vadd.f32 %v1363_v59, %v1362_v43  ;;  %v1371_v23 = vadd.f32 %v1370_v56, %v1369_v36  ;;  %v1637_v19 = vpack.c.bf16 %v1559_v42, %v1558_v61  ;;  %v2748_v50 = vsel %vm1854_vm6, %v1813_v62, %v1862_v17 }
  0xd2   : > { %v2740_v37 = vld.sshfl [vmem:[#allocation1 + $0x30] sm:$0xff pattern:$0x73625140]  ;;  %v2742_v10 = vld.sshfl [vmem:[#allocation1 + $0x38] sm:$0xff pattern:$0x73625140]  ;;  %v1876_v39 = vsel %vm1852_vm5, %v1799_v33, %v1875_v24  ;;  %v3187_v11 = vunpack.c.h.bf16 %v2427_v35 }
  0xd3   : > { %v1351_v61 = vrot.slane %v1350_v27, 2  ;;  %v1358_v13 = vrot.slane %v1357_v32, 2  ;;  %v1365_v58 = vrot.slane %v1364_v4, 2  ;;  %v1372_v47 = vrot.slane %v1371_v23, 2 }
  0xd4   : > { %426 = vst [vmem:[#allocation1 + $0x20] ss:$4 sm:$0xff] %v3187_v11  ;;  %v1814_v43 = vunpack.c.l.b16 %v1637_v19  ;;  %v1815_v36 = vunpack.c.h.b16 %v1637_v19  ;;  %v938_v49 = vrot.slane %v937_v2, 2  ;;  %v1043_v7 = vrot.slane %v1042_v6, 2 }
  0xd5   : > { %v1352_v20 = vadd.f32 %v1351_v61, %v1350_v27  ;;  %v1359_v31 = vadd.f32 %v1358_v13, %v1357_v32  ;;  %v1366_v17 = vadd.f32 %v1365_v58, %v1364_v4  ;;  %v1373_v62 = vadd.f32 %v1372_v47, %v1371_v23 }
  0xd6   : > { %v1870_v24 = vsel %vm1854_vm6, %v1814_v43, %v1869_v46  ;;  %v1877_v35 = vsel %vm1854_vm6, %v1815_v36, %v1876_v39  ;;  %v939_v33 = vadd.f32 %v938_v49, %v937_v2  ;;  %v1044_v51 = vadd.f32 %v1043_v7, %v1042_v6 }
  0xd7   : > { %v1353_v59 = vrot.slane %v1352_v20, 1  ;;  %v1360_v56 = vrot.slane %v1359_v31, 1  ;;  %v1367_v42 = vrot.slane %v1366_v17, 1  ;;  %v1374_v12 = vrot.slane %v1373_v62, 1 }
  0xd8   : > { %v940_v19 = vrot.slane %v939_v33, 1  ;;  %v1045_v11 = vrot.slane %v1044_v51, 1  ;;  %v1048_v27 = vrot.slane %v1047_v3, 4  ;;  %v1152_v32 = vsel %vm563_vm0, %v2553_v18, 0.0 }
  0xd9   : > { %v1354_v4 = vadd.f32 %v1353_v59, %v1352_v20  ;;  %v1361_v23 = vadd.f32 %v1360_v56, %v1359_v31  ;;  %v1368_v61 = vadd.f32 %v1367_v42, %v1366_v17  ;;  %v1375_v46 = vadd.f32 %v1374_v12, %v1373_v62 }
  0xda   : > { %v941_v39 = vadd.f32 %v940_v19, %v939_v33  ;;  %v1046_v2 = vadd.f32 %v1045_v11, %v1044_v51  ;;  %v1049_v6 = vadd.f32 %v1048_v27, %v1047_v3  ;;  %v1153_v13 = vrot.slane %v1152_v32, 4 }
  0xdb   : > { %v1572_v58 = vmul.f32 0.5, %v1354_v4  ;;  %v1573_v47 = vmul.f32 0.5, %v1361_v23  ;;  %v1574_v43 = vmul.f32 0.5, %v1368_v61  ;;  %v1575_v36 = vmul.f32 0.5, %v1375_v46 }
  0xdc   : > { %v1050_v49 = vrot.slane %v1049_v6, 2  ;;  %v1154_v7 = vadd.f32 %v1153_v13, %v1152_v32  ;;  %v1159_v18 = vsel %vm563_vm0, %v2555_v52, 0.0  ;;  %v1264_v20 = vsel %vm563_vm0, %v2660_v26, 0.0 }
  0xdd   : > { %v1644_v31 = vpack.c.bf16 %v1573_v47, %v1572_v58  ;;  %v1645_v17 = vpack.c.bf16 %v1575_v36, %v1574_v43  ;;  %v1160_v62 = vrot.slane %v1159_v18, 4  ;;  %v1265_v33 = vrot.slane %v1264_v20, 4 }
  0xde   : > { %v1051_v51 = vadd.f32 %v1050_v49, %v1049_v6  ;;  %v1155_v3 = vrot.slane %v1154_v7, 2  ;;  %v1271_v59 = vsel %vm563_vm0, %v2662_v57, 0.0  ;;  %v1376_v56 = vsel %vm563_vm0, %v2735_v44, 0.0 }
  0xdf   : > { %v1828_v42 = vunpack.c.l.b16 %v1644_v31  ;;  %v1829_v12 = vunpack.c.h.b16 %v1644_v31  ;;  %v1830_v19 = vunpack.c.l.b16 %v1645_v17  ;;  %v1831_v52 = vunpack.c.h.b16 %v1645_v17 }
  0xe0   : > { %v1052_v11 = vrot.slane %v1051_v51, 1  ;;  %v1156_v27 = vadd.f32 %v1155_v3, %v1154_v7  ;;  %v1161_v26 = vadd.f32 %v1160_v62, %v1159_v18  ;;  %v1266_v32 = vadd.f32 %v1265_v33, %v1264_v20 }
  0xe1   : > { %v1857_v57 = vsel %vm1856_vm7, %v1828_v42, %v2745_v8  ;;  %v1864_v44 = vsel %vm1856_vm7, %v1829_v12, %v2748_v50  ;;  %v1871_v4 = vsel %vm1856_vm7, %v1830_v19, %v1870_v24  ;;  %v1878_v23 = vsel %vm1856_vm7, %v1831_v52, %v1877_v35 }
  0xe2   : > { %v1963_v61 = vpack.c.b16 %v1864_v44, %v1857_v57  ;;  %v1964_v46 = vpack.c.b16 %v1878_v23, %v1871_v4  ;;  %v1053_v6 = vadd.f32 %v1052_v11, %v1051_v51  ;;  %v1157_v13 = vrot.slane %v1156_v27, 1 }
  0xe3   : > { %v1162_v58 = vrot.slane %v1161_v26, 2  ;;  %v1267_v47 = vrot.slane %v1266_v32, 2  ;;  %v1272_v43 = vrot.slane %v1271_v59, 4  ;;  %v1377_v36 = vrot.slane %v1376_v56, 4 }
  0xe4   : > { %1979 = vst [vmem:[%s2777_s28] sm:$0xff] %v1963_v61  ;;  %v1158_v49 = vadd.f32 %v1157_v13, %v1156_v27  ;;  %v1383_v8 = vsel %vm563_vm0, %v2737_v48, 0.0  ;;  %v1465_v50 = vmul.f32 0.5, %v2537_v0  ;;  %v1480_v7 = vmul.f32 0.5, %v2629_v28 }
  0xe5   : > { %1980 = vst [vmem:[%s2777_s28 + $0x8] sm:$0xff] %v1964_v46  ;;  %v1163_v24 = vadd.f32 %v1162_v58, %v1161_v26  ;;  %v1268_v35 = vadd.f32 %v1267_v47, %v1266_v32  ;;  %v1273_v18 = vadd.f32 %v1272_v43, %v1271_v59  ;;  %v1378_v20 = vadd.f32 %v1377_v36, %v1376_v56 }
  0xe6   : > { %v1384_v31 = vrot.slane %v1383_v8, 4  ;;  %v1481_v17 = vmul.f32 0.5, %v2669_v21  ;;  %v1496_v62 = vmul.f32 0.5, %v2716_v22  ;;  %v1497_v33 = vmul.f32 0.5, %v2718_v60 }
  0xe7   : > { %v1164_v51 = vrot.slane %v1163_v24, 1  ;;  %v1269_v3 = vrot.slane %v1268_v35, 1  ;;  %v1274_v42 = vrot.slane %v1273_v18, 2  ;;  %v1379_v48 = vrot.slane %v1378_v20, 2 }
  0xe8   : > { %v1385_v12 = vadd.f32 %v1384_v31, %v1383_v8  ;;  %v1512_v0 = vmul.f32 0.5, %v2751_v38  ;;  %v1513_v28 = vmul.f32 0.5, %v941_v39  ;;  %v1528_v19 = vmul.f32 0.5, %v1046_v2 }
  0xe9   : > { %v1165_v52 = vadd.f32 %v1164_v51, %v1163_v24  ;;  %v1270_v11 = vadd.f32 %v1269_v3, %v1268_v35  ;;  %v1275_v59 = vadd.f32 %v1274_v42, %v1273_v18  ;;  %v1380_v56 = vadd.f32 %v1379_v48, %v1378_v20 }
  0xea   : > { %v1386_v27 = vrot.slane %v1385_v12, 2  ;;  %v1529_v26 = vmul.f32 0.5, %v1053_v6  ;;  %v1544_v21 = vmul.f32 0.5, %v1158_v49  ;;  %v1590_v22 = vpack.c.bf16 %v1465_v50, %v2637_v40 }
  0xeb   : > { %v1276_v32 = vrot.slane %v1275_v59, 1  ;;  %v1381_v60 = vrot.slane %v1380_v56, 1  ;;  %v1545_v57 = vmul.f32 0.5, %v1165_v52  ;;  %v1560_v44 = vmul.f32 0.5, %v1270_v11 }
  0xec   : > { %v1387_v4 = vadd.f32 %v1386_v27, %v1385_v12  ;;  %v1598_v23 = vpack.c.bf16 %v1481_v17, %v1480_v7  ;;  %v1606_v61 = vpack.c.bf16 %v1497_v33, %v1496_v62  ;;  %v1614_v46 = vpack.c.bf16 %v1513_v28, %v1512_v0 }
  0xed   : > { %v1277_v38 = vadd.f32 %v1276_v32, %v1275_v59  ;;  %v1382_v39 = vadd.f32 %v1381_v60, %v1380_v56  ;;  %v1622_v2 = vpack.c.bf16 %v1529_v26, %v1528_v19  ;;  %v1630_v13 = vpack.c.bf16 %v1545_v57, %v1544_v21 }
  0xee   : > { %v1388_v58 = vrot.slane %v1387_v4, 1  ;;  %v1720_v47 = vunpack.c.l.b16 %v1590_v22  ;;  %v1721_v43 = vunpack.c.h.b16 %v1590_v22  ;;  %v1736_v36 = vunpack.c.l.b16 %v1598_v23 }
  0xef   : > { %v1561_v6 = vmul.f32 0.5, %v1277_v38  ;;  %v1576_v49 = vmul.f32 0.5, %v1382_v39  ;;  %v1737_v8 = vunpack.c.h.b16 %v1598_v23  ;;  %v1752_v40 = vunpack.c.l.b16 %v1606_v61 }
  0xf0   : > { %v1389_v50 = vadd.f32 %v1388_v58, %v1387_v4  ;;  %v1753_v24 = vunpack.c.h.b16 %v1606_v61  ;;  %v1768_v35 = vunpack.c.l.b16 %v1614_v46  ;;  %v1769_v18 = vunpack.c.h.b16 %v1614_v46 }
  0xf1   : > { %v1638_v20 = vpack.c.bf16 %v1561_v6, %v1560_v44  ;;  %v1784_v7 = vunpack.c.l.b16 %v1622_v2  ;;  %v1785_v31 = vunpack.c.h.b16 %v1622_v2  ;;  %v1800_v17 = vunpack.c.l.b16 %v1630_v13 }
  0xf2   : > { %v1577_v62 = vmul.f32 0.5, %v1389_v50  ;;  %v1801_v33 = vunpack.c.h.b16 %v1630_v13  ;;  %v1879_v51 = vsel %vm1844_vm1, %v1736_v36, %v1720_v47  ;;  %v1886_v3 = vsel %vm1844_vm1, %v1737_v8, %v1721_v43  ;;  %v3188_v36 = vld [vmem:[#allocation27_spill] sm:$0xff] }
  0xf3   : > { %v1816_v42 = vunpack.c.l.b16 %v1638_v20  ;;  %v1817_v48 = vunpack.c.h.b16 %v1638_v20  ;;  %v1880_v12 = vsel %vm1846_vm2, %v1752_v40, %v1879_v51  ;;  %v1887_v0 = vsel %vm1846_vm2, %v1753_v24, %v1886_v3 }
  0xf4   : > { %v1646_v28 = vpack.c.bf16 %v1577_v62, %v1576_v49  ;;  %v1881_v19 = vsel %vm1848_vm3, %v1768_v35, %v1880_v12  ;;  %v1888_v52 = vsel %vm1848_vm3, %v1769_v18, %v1887_v0  ;;  %v606_v11 = vsel %vm563_vm0, %v2252_v29, 0.0  ;;  %v3189_v35 = vld [vmem:[#allocation28_spill] sm:$0xff] }
  0xf5   : > { %v1882_v59 = vsel %vm1850_vm4, %v1784_v7, %v1881_v19  ;;  %v1889_v56 = vsel %vm1850_vm4, %v1785_v31, %v1888_v52  ;;  %v607_v27 = vrot.slane %v606_v11, 4  ;;  %v613_v26 = vsel %vm563_vm0, %v2254_v30, 0.0 }
  0xf6   : > { %v1832_v21 = vunpack.c.l.b16 %v1646_v28  ;;  %v1833_v22 = vunpack.c.h.b16 %v1646_v28  ;;  %v1883_v32 = vsel %vm1852_vm5, %v1800_v17, %v1882_v59  ;;  %v1890_v60 = vsel %vm1852_vm5, %v1801_v33, %v1889_v56 }
  0xf7   : > { %v1884_v57 = vsel %vm1854_vm6, %v1816_v42, %v1883_v32  ;;  %v1891_v44 = vsel %vm1854_vm6, %v1817_v48, %v1890_v60  ;;  %v608_v29 = vadd.f32 %v607_v27, %v606_v11  ;;  %v614_v4 = vrot.slane %v613_v26, 4 }
  0xf8   : > { %v1885_v23 = vsel %vm1856_vm7, %v1832_v21, %v1884_v57  ;;  %v1892_v61 = vsel %vm1856_vm7, %v1833_v22, %v1891_v44  ;;  %v718_v30 = vsel %vm563_vm0, %v2279_v54, 0.0  ;;  %v725_v46 = vsel %vm563_vm0, %v2281_v55, 0.0  ;;  %v3190_v44 = vld [vmem:[#allocation37_spill] sm:$0xff] }
  0xf9   : > { %v1965_v38 = vpack.c.b16 %v1892_v61, %v1885_v23  ;;  %v609_v39 = vrot.slane %v608_v29, 2  ;;  %v615_v2 = vadd.f32 %v614_v4, %v613_v26  ;;  %v719_v13 = vrot.slane %v718_v30, 4 }
  0xfa   : > { %v726_v58 = vrot.slane %v725_v46, 4  ;;  %v830_v47 = vsel %vm563_vm0, %v2321_v53, 0.0  ;;  %v837_v43 = vsel %vm563_vm0, %v2323_v45, 0.0  ;;  %v942_v6 = vsel %vm563_vm0, %v3188_v36, 0.0 }
  0xfb   : > { %1981 = vst [vmem:[%s2777_s28 + $0x10] sm:$0xff] %v1965_v38  ;;  %v610_v49 = vadd.f32 %v609_v39, %v608_v29  ;;  %v616_v54 = vrot.slane %v615_v2, 2  ;;  %v720_v8 = vadd.f32 %v719_v13, %v718_v30  ;;  %v831_v40 = vrot.slane %v830_v47, 4 }
  0xfc   : > { %v727_v55 = vadd.f32 %v726_v58, %v725_v46  ;;  %v838_v50 = vrot.slane %v837_v43, 4  ;;  %v943_v24 = vrot.slane %v942_v6, 4  ;;  %v949_v18 = vsel %vm563_vm0, %v3189_v35, 0.0 }
  0xfd   : > { %v611_v20 = vrot.slane %v610_v49, 1  ;;  %v617_v7 = vadd.f32 %v616_v54, %v615_v2  ;;  %v721_v53 = vrot.slane %v720_v8, 2  ;;  %v832_v31 = vadd.f32 %v831_v40, %v830_v47  ;;  %v3191_v2 = vld [vmem:[#allocation46_spill] sm:$0xff] }
  0xfe   : > { %v728_v17 = vrot.slane %v727_v55, 2  ;;  %v839_v45 = vadd.f32 %v838_v50, %v837_v43  ;;  %v944_v62 = vadd.f32 %v943_v24, %v942_v6  ;;  %v950_v33 = vrot.slane %v949_v18, 4 }
  0xff   : > { %v2827_v51 = vadd.f32 %v611_v20, %v610_v49  ;;  %v618_v3 = vrot.slane %v617_v7, 1  ;;  %v722_v42 = vadd.f32 %v721_v53, %v720_v8  ;;  %v833_v48 = vrot.slane %v832_v31, 2  ;;  %v3192_v49 = vld [vmem:[#allocation47_spill] sm:$0xff] }
 0x100   : > { %v729_v12 = vadd.f32 %v728_v17, %v727_v55  ;;  %v840_v0 = vrot.slane %v839_v45, 2  ;;  %v945_v28 = vrot.slane %v944_v62, 2  ;;  %v951_v19 = vadd.f32 %v950_v33, %v949_v18 }
 0x101   : > { %v2829_v52 = vadd.f32 %v618_v3, %v617_v7  ;;  %v723_v11 = vrot.slane %v722_v42, 1  ;;  %v834_v59 = vadd.f32 %v833_v48, %v832_v31  ;;  %v1054_v56 = vsel %vm563_vm0, %v2480_v25, 0.0 }
 0x102   : > { %v730_v27 = vrot.slane %v729_v12, 1  ;;  %v841_v26 = vadd.f32 %v840_v0, %v839_v45  ;;  %v946_v21 = vadd.f32 %v945_v28, %v944_v62  ;;  %v952_v22 = vrot.slane %v951_v19, 2 }
 0x103   : > { %v724_v32 = vadd.f32 %v723_v11, %v722_v42  ;;  %v835_v60 = vrot.slane %v834_v59, 1  ;;  %v1055_v57 = vrot.slane %v1054_v56, 4  ;;  %v1061_v29 = vsel %vm563_vm0, %v3190_v44, 0.0 }
 0x104   : > { %v731_v4 = vadd.f32 %v730_v27, %v729_v12  ;;  %v842_v23 = vrot.slane %v841_v26, 1  ;;  %v947_v61 = vrot.slane %v946_v21, 1  ;;  %v953_v30 = vadd.f32 %v952_v22, %v951_v19 }
 0x105   : > { %v836_v46 = vadd.f32 %v835_v60, %v834_v59  ;;  %v1056_v38 = vadd.f32 %v1055_v57, %v1054_v56  ;;  %v1062_v39 = vrot.slane %v1061_v29, 4  ;;  %v1166_v25 = vsel %vm563_vm0, %v3191_v2, 0.0 }
 0x106   : > { %v843_v13 = vadd.f32 %v842_v23, %v841_v26  ;;  %v948_v58 = vadd.f32 %v947_v61, %v946_v21  ;;  %v954_v47 = vrot.slane %v953_v30, 1  ;;  %v1167_v43 = vrot.slane %v1166_v25, 4 }
 0x107   : > { %v1057_v36 = vrot.slane %v1056_v38, 2  ;;  %v1063_v6 = vadd.f32 %v1062_v39, %v1061_v29  ;;  %v1173_v54 = vsel %vm563_vm0, %v3192_v49, 0.0  ;;  %v1278_v8 = vsel %vm563_vm0, %v2671_v5, 0.0 }
 0x108   : > { %v955_v40 = vadd.f32 %v954_v47, %v953_v30  ;;  %v1168_v55 = vadd.f32 %v1167_v43, %v1166_v25  ;;  %v1174_v50 = vrot.slane %v1173_v54, 4  ;;  %v1279_v24 = vrot.slane %v1278_v8, 4 }
 0x109   : > { %v1058_v35 = vadd.f32 %v1057_v36, %v1056_v38  ;;  %v1064_v18 = vrot.slane %v1063_v6, 2  ;;  %v1285_v20 = vsel %vm563_vm0, %v2673_v34, 0.0  ;;  %v1390_v7 = vsel %vm563_vm0, %v2740_v37, 0.0 }
 0x10a   : > { %v1169_v53 = vrot.slane %v1168_v55, 2  ;;  %v1175_v31 = vadd.f32 %v1174_v50, %v1173_v54  ;;  %v1280_v17 = vadd.f32 %v1279_v24, %v1278_v8  ;;  %v1286_v45 = vrot.slane %v1285_v20, 4 }
 0x10b   : > { %v1059_v62 = vrot.slane %v1058_v35, 1  ;;  %v1065_v33 = vadd.f32 %v1064_v18, %v1063_v6  ;;  %v1391_v3 = vrot.slane %v1390_v7, 4  ;;  %v1397_v5 = vsel %vm563_vm0, %v2742_v10, 0.0 }
 0x10c   : > { %v1170_v42 = vadd.f32 %v1169_v53, %v1168_v55  ;;  %v1176_v48 = vrot.slane %v1175_v31, 2  ;;  %v1281_v12 = vrot.slane %v1280_v17, 2  ;;  %v1287_v0 = vadd.f32 %v1286_v45, %v1285_v20 }
 0x10d   : > { %v1060_v28 = vadd.f32 %v1059_v62, %v1058_v35  ;;  %v1066_v19 = vrot.slane %v1065_v33, 1  ;;  %v1392_v34 = vadd.f32 %v1391_v3, %v1390_v7  ;;  %v1398_v11 = vrot.slane %v1397_v5, 4 }
 0x10e   : > { %v1171_v59 = vrot.slane %v1170_v42, 1  ;;  %v1177_v37 = vadd.f32 %v1176_v48, %v1175_v31  ;;  %v1282_v56 = vadd.f32 %v1281_v12, %v1280_v17  ;;  %v1288_v27 = vrot.slane %v1287_v0, 2 }
 0x10f   : > { %v1067_v26 = vadd.f32 %v1066_v19, %v1065_v33  ;;  %v1393_v21 = vrot.slane %v1392_v34, 2  ;;  %v1399_v22 = vadd.f32 %v1398_v11, %v1397_v5  ;;  %v1466_v60 = vmul.f32 0.5, %v2827_v51 }
 0x110   : > { %v1172_v57 = vadd.f32 %v1171_v59, %v1170_v42  ;;  %v1178_v44 = vrot.slane %v1177_v37, 1  ;;  %v1283_v10 = vrot.slane %v1282_v56, 1  ;;  %v1289_v29 = vadd.f32 %v1288_v27, %v1287_v0 }
 0x111   : > { %v1394_v23 = vadd.f32 %v1393_v21, %v1392_v34  ;;  %v1400_v61 = vrot.slane %v1399_v22, 2  ;;  %v1467_v30 = vmul.f32 0.5, %v2829_v52  ;;  %v1482_v38 = vmul.f32 0.5, %v724_v32 }
 0x112   : > { %v1179_v39 = vadd.f32 %v1178_v44, %v1177_v37  ;;  %v1284_v2 = vadd.f32 %v1283_v10, %v1282_v56  ;;  %v1290_v25 = vrot.slane %v1289_v29, 1  ;;  %v1483_v47 = vmul.f32 0.5, %v731_v4  ;;  %v3193_v44 = vld [vmem:[#allocation3_spill] sm:$0xff] }
 0x113   : > { %v1395_v43 = vrot.slane %v1394_v23, 1  ;;  %v1401_v36 = vadd.f32 %v1400_v61, %v1399_v22  ;;  %v1498_v6 = vmul.f32 0.5, %v836_v46  ;;  %v1499_v49 = vmul.f32 0.5, %v843_v13 }
 0x114   : > { %v1291_v54 = vadd.f32 %v1290_v25, %v1289_v29  ;;  %v1514_v8 = vmul.f32 0.5, %v948_v58  ;;  %v1515_v51 = vmul.f32 0.5, %v955_v40  ;;  %v1530_v55 = vmul.f32 0.5, %v1060_v28  ;;  %v3194_v29 = vld [vmem:[#allocation4_spill] sm:$0xff] }
 0x115   : > { %v1396_v50 = vadd.f32 %v1395_v43, %v1394_v23  ;;  %v1402_v24 = vrot.slane %v1401_v36, 1  ;;  %v1531_v35 = vmul.f32 0.5, %v1067_v26  ;;  %v1546_v18 = vmul.f32 0.5, %v1172_v57 }
 0x116   : > { %v1547_v20 = vmul.f32 0.5, %v1179_v39  ;;  %v1562_v7 = vmul.f32 0.5, %v1284_v2  ;;  %v1563_v52 = vmul.f32 0.5, %v1291_v54  ;;  %v1591_v32 = vpack.c.bf16 %v1467_v30, %v1466_v60 }
 0x117   : > { %v1403_v53 = vadd.f32 %v1402_v24, %v1401_v36  ;;  %v1578_v31 = vmul.f32 0.5, %v1396_v50  ;;  %v1599_v17 = vpack.c.bf16 %v1483_v47, %v1482_v38  ;;  %v1607_v4 = vpack.c.bf16 %v1499_v49, %v1498_v6  ;;  %v3195_v47 = vld [vmem:[#allocation11_spill] sm:$0xff]  ;;  %v3196_v36 = vld [vmem:[#allocation12_spill] sm:$0xff] }
 0x118   : > { %v1615_v45 = vpack.c.bf16 %v1515_v51, %v1514_v8  ;;  %v1623_v62 = vpack.c.bf16 %v1531_v35, %v1530_v55  ;;  %v1631_v46 = vpack.c.bf16 %v1547_v20, %v1546_v18  ;;  %v1639_v13 = vpack.c.bf16 %v1563_v52, %v1562_v7 }
 0x119   : > { %v1579_v33 = vmul.f32 0.5, %v1403_v53  ;;  %v1722_v58 = vunpack.c.l.b16 %v1591_v32  ;;  %v1723_v40 = vunpack.c.h.b16 %v1591_v32  ;;  %v1738_v3 = vunpack.c.l.b16 %v1599_v17 }
 0x11a   : > { %v1739_v5 = vunpack.c.h.b16 %v1599_v17  ;;  %v1754_v42 = vunpack.c.l.b16 %v1607_v4  ;;  %v1755_v48 = vunpack.c.h.b16 %v1607_v4  ;;  %v1770_v12 = vunpack.c.l.b16 %v1615_v45  ;;  %v3197_v17 = vld [vmem:[#allocation19_spill] sm:$0xff] }
 0x11b   : > { %v1647_v0 = vpack.c.bf16 %v1579_v33, %v1578_v31  ;;  %v1771_v28 = vunpack.c.h.b16 %v1615_v45  ;;  %v1786_v19 = vunpack.c.l.b16 %v1623_v62  ;;  %v1787_v34 = vunpack.c.h.b16 %v1623_v62 }
 0x11c   : > { %v1802_v11 = vunpack.c.l.b16 %v1631_v46  ;;  %v1803_v59 = vunpack.c.h.b16 %v1631_v46  ;;  %v1818_v37 = vunpack.c.l.b16 %v1639_v13  ;;  %v1819_v56 = vunpack.c.h.b16 %v1639_v13  ;;  %v3198_v13 = vld [vmem:[#allocation20_spill] sm:$0xff] }
 0x11d   : > { %v1834_v27 = vunpack.c.l.b16 %v1647_v0  ;;  %v1835_v26 = vunpack.c.h.b16 %v1647_v0  ;;  %v1893_v21 = vsel %vm1844_vm1, %v1738_v3, %v1722_v58  ;;  %v1900_v22 = vsel %vm1844_vm1, %v1739_v5, %v1723_v40  ;;  %v3199_v5 = vld [vmem:[#allocation29_spill] sm:$0xff] }
 0x11e   : > { %v1894_v60 = vsel %vm1846_vm2, %v1754_v42, %v1893_v21  ;;  %v1901_v57 = vsel %vm1846_vm2, %v1755_v48, %v1900_v22  ;;  %v620_v10 = vsel %vm563_vm0, %v3193_v44, 0.0  ;;  %v627_v23 = vsel %vm563_vm0, %v3194_v29, 0.0 }
 0x11f   : > { %v1895_v61 = vsel %vm1848_vm3, %v1770_v12, %v1894_v60  ;;  %v1902_v30 = vsel %vm1848_vm3, %v1771_v28, %v1901_v57  ;;  %v621_v38 = vrot.slane %v620_v10, 4  ;;  %v628_v39 = vrot.slane %v627_v23, 4 }
 0x120   : > { %v1896_v2 = vsel %vm1850_vm4, %v1786_v19, %v1895_v61  ;;  %v1903_v25 = vsel %vm1850_vm4, %v1787_v34, %v1902_v30  ;;  %v732_v43 = vsel %vm563_vm0, %v3195_v47, 0.0  ;;  %v739_v6 = vsel %vm563_vm0, %v3196_v36, 0.0  ;;  %v3202_v30 = vld [vmem:[#allocation39_spill] sm:$0xff] }
 0x121   : > { %v1897_v49 = vsel %vm1852_vm5, %v1802_v11, %v1896_v2  ;;  %v1904_v54 = vsel %vm1852_vm5, %v1803_v59, %v1903_v25  ;;  %v622_v8 = vadd.f32 %v621_v38, %v620_v10  ;;  %v629_v51 = vadd.f32 %v628_v39, %v627_v23  ;;  %v3200_v59 = vld [vmem:[#allocation30_spill] sm:$0xff] }
 0x122   : > { %v1898_v55 = vsel %vm1854_vm6, %v1818_v37, %v1897_v49  ;;  %v1905_v50 = vsel %vm1854_vm6, %v1819_v56, %v1904_v54  ;;  %v733_v24 = vrot.slane %v732_v43, 4  ;;  %v740_v35 = vrot.slane %v739_v6, 4  ;;  %v3201_v23 = vld [vmem:[#allocation38_spill] sm:$0xff] }
 0x123   : > { %v1899_v18 = vsel %vm1856_vm7, %v1834_v27, %v1898_v55  ;;  %v1906_v20 = vsel %vm1856_vm7, %v1835_v26, %v1905_v50  ;;  %v623_v7 = vrot.slane %v622_v8, 2  ;;  %v630_v52 = vrot.slane %v629_v51, 2  ;;  %v3204_v50 = vld [vmem:[#allocation49_spill] sm:$0xff] }
 0x124   : > { %v1966_v32 = vpack.c.b16 %v1906_v20, %v1899_v18  ;;  %v734_v53 = vadd.f32 %v733_v24, %v732_v43  ;;  %v741_v31 = vadd.f32 %v740_v35, %v739_v6  ;;  %v844_v4 = vsel %vm563_vm0, %v3197_v17, 0.0 }
 0x125   : > { %v624_v45 = vadd.f32 %v623_v7, %v622_v8  ;;  %v631_v62 = vadd.f32 %v630_v52, %v629_v51  ;;  %v845_v46 = vrot.slane %v844_v4, 4  ;;  %v851_v33 = vsel %vm563_vm0, %v3198_v13, 0.0  ;;  %v3203_v51 = vld [vmem:[#allocation48_spill] sm:$0xff]  ;;  %v427_v52 = vld.sshfl [vmem:[#allocation1] sm:$0xff pattern:$0x73625140] }
 0x126   : > { %1982 = vst [vmem:[%s2777_s28 + $0x18] sm:$0xff] %v1966_v32  ;;  %v735_v58 = vrot.slane %v734_v53, 2  ;;  %v742_v40 = vrot.slane %v741_v31, 2  ;;  %v852_v3 = vrot.slane %v851_v33, 4  ;;  %v956_v42 = vsel %vm563_vm0, %v3199_v5, 0.0 }
 0x127   : > { %v625_v48 = vrot.slane %v624_v45, 1  ;;  %v632_v12 = vrot.slane %v631_v62, 1  ;;  %v846_v0 = vadd.f32 %v845_v46, %v844_v4  ;;  %v957_v28 = vrot.slane %v956_v42, 4 }
 0x128   : > { %v736_v19 = vadd.f32 %v735_v58, %v734_v53  ;;  %v743_v34 = vadd.f32 %v742_v40, %v741_v31  ;;  %v853_v11 = vadd.f32 %v852_v3, %v851_v33  ;;  %v963_v37 = vsel %vm563_vm0, %v3200_v59, 0.0  ;;  %v428_v3 = vld.sshfl [vmem:[#allocation1 + $0x8] sm:$0xff pattern:$0x73625140] }
 0x129   : > { %v2880_v56 = vadd.f32 %v625_v48, %v624_v45  ;;  %v2882_v27 = vadd.f32 %v632_v12, %v631_v62  ;;  %v847_v26 = vrot.slane %v846_v0, 2  ;;  %v958_v21 = vadd.f32 %v957_v28, %v956_v42 }
 0x12a   : > { %v737_v22 = vrot.slane %v736_v19, 1  ;;  %v744_v60 = vrot.slane %v743_v34, 1  ;;  %v854_v57 = vrot.slane %v853_v11, 2  ;;  %v964_v44 = vrot.slane %v963_v37, 4 }
 0x12b   : > { %v848_v10 = vadd.f32 %v847_v26, %v846_v0  ;;  %v959_v29 = vrot.slane %v958_v21, 2  ;;  %v1068_v61 = vsel %vm563_vm0, %v3201_v23, 0.0  ;;  %v1075_v38 = vsel %vm563_vm0, %v3202_v30, 0.0 }
 0x12c   : > { %v2888_v39 = vadd.f32 %v737_v22, %v736_v19  ;;  %v2890_v2 = vadd.f32 %v744_v60, %v743_v34  ;;  %v855_v25 = vadd.f32 %v854_v57, %v853_v11  ;;  %v965_v47 = vadd.f32 %v964_v44, %v963_v37 }
 0x12d   : > { %v849_v43 = vrot.slane %v848_v10, 1  ;;  %v960_v36 = vadd.f32 %v959_v29, %v958_v21  ;;  %v1069_v6 = vrot.slane %v1068_v61, 4  ;;  %v1076_v49 = vrot.slane %v1075_v38, 4 }
 0x12e   : > { %v856_v54 = vrot.slane %v855_v25, 1  ;;  %v966_v8 = vrot.slane %v965_v47, 2  ;;  %v1180_v55 = vsel %vm563_vm0, %v3203_v51, 0.0  ;;  %v1187_v24 = vsel %vm563_vm0, %v3204_v50, 0.0 }
 0x12f   : > { %v850_v35 = vadd.f32 %v849_v43, %v848_v10  ;;  %v961_v18 = vrot.slane %v960_v36, 1  ;;  %v1070_v20 = vadd.f32 %v1069_v6, %v1068_v61  ;;  %v1077_v7 = vadd.f32 %v1076_v49, %v1075_v38 }
 0x130   : > { %v857_v32 = vadd.f32 %v856_v54, %v855_v25  ;;  %v967_v53 = vadd.f32 %v966_v8, %v965_v47  ;;  %v1181_v31 = vrot.slane %v1180_v55, 4  ;;  %v1188_v17 = vrot.slane %v1187_v24, 4 }
 0x131   : > { %v962_v4 = vadd.f32 %v961_v18, %v960_v36  ;;  %v1071_v45 = vrot.slane %v1070_v20, 2  ;;  %v1078_v62 = vrot.slane %v1077_v7, 2  ;;  %v1292_v46 = vsel %vm563_vm0, %v2682_v16, 0.0 }
 0x132   : > { %v968_v13 = vrot.slane %v967_v53, 1  ;;  %v1182_v33 = vadd.f32 %v1181_v31, %v1180_v55  ;;  %v1189_v58 = vadd.f32 %v1188_v17, %v1187_v24  ;;  %v1293_v40 = vrot.slane %v1292_v46, 4 }
 0x133   : > { %v1072_v5 = vadd.f32 %v1071_v45, %v1070_v20  ;;  %v1079_v42 = vadd.f32 %v1078_v62, %v1077_v7  ;;  %v1299_v48 = vsel %vm563_vm0, %v2684_v9, 0.0  ;;  %v1404_v12 = vsel %vm563_vm0, %v427_v52, 0.0 }
 0x134   : > { %v969_v0 = vadd.f32 %v968_v13, %v967_v53  ;;  %v1183_v28 = vrot.slane %v1182_v33, 2  ;;  %v1190_v19 = vrot.slane %v1189_v58, 2  ;;  %v1294_v34 = vadd.f32 %v1293_v40, %v1292_v46 }
 0x135   : > { %v1073_v11 = vrot.slane %v1072_v5, 1  ;;  %v1080_v59 = vrot.slane %v1079_v42, 1  ;;  %v1300_v37 = vrot.slane %v1299_v48, 4  ;;  %v1405_v16 = vrot.slane %v1404_v12, 4 }
 0x136   : > { %v1184_v26 = vadd.f32 %v1183_v28, %v1182_v33  ;;  %v1191_v21 = vadd.f32 %v1190_v19, %v1189_v58  ;;  %v1295_v22 = vrot.slane %v1294_v34, 2  ;;  %v1411_v60 = vsel %vm563_vm0, %v428_v3, 0.0 }
 0x137   : > { %v1074_v57 = vadd.f32 %v1073_v11, %v1072_v5  ;;  %v1081_v44 = vadd.f32 %v1080_v59, %v1079_v42  ;;  %v1301_v10 = vadd.f32 %v1300_v37, %v1299_v48  ;;  %v1406_v29 = vadd.f32 %v1405_v16, %v1404_v12 }
 0x138   : > { %v1185_v9 = vrot.slane %v1184_v26, 1  ;;  %v1192_v23 = vrot.slane %v1191_v21, 1  ;;  %v1296_v61 = vadd.f32 %v1295_v22, %v1294_v34  ;;  %v1412_v30 = vrot.slane %v1411_v60, 4 }
 0x139   : > { %v1302_v38 = vrot.slane %v1301_v10, 2  ;;  %v1407_v25 = vrot.slane %v1406_v29, 2  ;;  %v1468_v47 = vmul.f32 0.5, %v2880_v56  ;;  %v1469_v43 = vmul.f32 0.5, %v2882_v27 }
 0x13a   : > { %v1186_v36 = vadd.f32 %v1185_v9, %v1184_v26  ;;  %v1193_v6 = vadd.f32 %v1192_v23, %v1191_v21  ;;  %v1297_v49 = vrot.slane %v1296_v61, 1  ;;  %v1413_v54 = vadd.f32 %v1412_v30, %v1411_v60  ;;  %v3205_v30 = vld [vmem:[#allocation5_spill] sm:$0xff] }
 0x13b   : > { %v1303_v8 = vadd.f32 %v1302_v38, %v1301_v10  ;;  %v1408_v51 = vadd.f32 %v1407_v25, %v1406_v29  ;;  %v1484_v55 = vmul.f32 0.5, %v2888_v39  ;;  %v1485_v50 = vmul.f32 0.5, %v2890_v2  ;;  %v3206_v25 = vld [vmem:[#allocation6_spill] sm:$0xff] }
 0x13c   : > { %v1298_v24 = vadd.f32 %v1297_v49, %v1296_v61  ;;  %v1414_v18 = vrot.slane %v1413_v54, 2  ;;  %v1500_v20 = vmul.f32 0.5, %v850_v35  ;;  %v1501_v7 = vmul.f32 0.5, %v857_v32 }
 0x13d   : > { %v1304_v52 = vrot.slane %v1303_v8, 1  ;;  %v1409_v53 = vrot.slane %v1408_v51, 1  ;;  %v1516_v31 = vmul.f32 0.5, %v962_v4  ;;  %v1517_v56 = vmul.f32 0.5, %v969_v0 }
 0x13e   : > { %v1415_v17 = vadd.f32 %v1414_v18, %v1413_v54  ;;  %v1532_v27 = vmul.f32 0.5, %v1074_v57  ;;  %v1533_v45 = vmul.f32 0.5, %v1081_v44  ;;  %v1548_v62 = vmul.f32 0.5, %v1186_v36  ;;  %v3207_v18 = vld [vmem:[#allocation13_spill] sm:$0xff] }
 0x13f   : > { %v1305_v46 = vadd.f32 %v1304_v52, %v1303_v8  ;;  %v1410_v13 = vadd.f32 %v1409_v53, %v1408_v51  ;;  %v1549_v33 = vmul.f32 0.5, %v1193_v6  ;;  %v1564_v58 = vmul.f32 0.5, %v1298_v24 }
 0x140   : > { %v1416_v40 = vrot.slane %v1415_v17, 1  ;;  %v1592_v39 = vpack.c.bf16 %v1469_v43, %v1468_v47  ;;  %v1600_v3 = vpack.c.bf16 %v1485_v50, %v1484_v55  ;;  %v1608_v2 = vpack.c.bf16 %v1501_v7, %v1500_v20  ;;  %v3208_v7 = vld [vmem:[#allocation14_spill] sm:$0xff] }
 0x141   : > { %v1565_v5 = vmul.f32 0.5, %v1305_v46  ;;  %v1580_v42 = vmul.f32 0.5, %v1410_v13  ;;  %v1616_v35 = vpack.c.bf16 %v1517_v56, %v1516_v31  ;;  %v1624_v32 = vpack.c.bf16 %v1533_v45, %v1532_v27 }
 0x142   : > { %v1417_v48 = vadd.f32 %v1416_v40, %v1415_v17  ;;  %v1632_v12 = vpack.c.bf16 %v1549_v33, %v1548_v62  ;;  %v1724_v4 = vunpack.c.l.b16 %v1592_v39  ;;  %v1725_v0 = vunpack.c.h.b16 %v1592_v39  ;;  %v3209_v40 = vld [vmem:[#allocation21_spill] sm:$0xff] }
 0x143   : > { %v1640_v28 = vpack.c.bf16 %v1565_v5, %v1564_v58  ;;  %v1740_v19 = vunpack.c.l.b16 %v1600_v3  ;;  %v1741_v34 = vunpack.c.h.b16 %v1600_v3  ;;  %v1756_v11 = vunpack.c.l.b16 %v1608_v2 }
 0x144   : > { %v1581_v59 = vmul.f32 0.5, %v1417_v48  ;;  %v1757_v37 = vunpack.c.h.b16 %v1608_v2  ;;  %v1772_v16 = vunpack.c.l.b16 %v1616_v35  ;;  %v1773_v26 = vunpack.c.h.b16 %v1616_v35  ;;  %v3210_v48 = vld [vmem:[#allocation22_spill] sm:$0xff] }
 0x145   : > { %v1788_v21 = vunpack.c.l.b16 %v1624_v32  ;;  %v1789_v22 = vunpack.c.h.b16 %v1624_v32  ;;  %v1804_v60 = vunpack.c.l.b16 %v1632_v12  ;;  %v1805_v57 = vunpack.c.h.b16 %v1632_v12 }
 0x146   : > { %v1648_v44 = vpack.c.bf16 %v1581_v59, %v1580_v42  ;;  %v1820_v10 = vunpack.c.l.b16 %v1640_v28  ;;  %v1821_v29 = vunpack.c.h.b16 %v1640_v28  ;;  %v1907_v9 = vsel %vm1844_vm1, %v1740_v19, %v1724_v4  ;;  %v3211_v4 = vld [vmem:[#allocation31_spill] sm:$0xff] }
 0x147   : > { %v1908_v23 = vsel %vm1846_vm2, %v1756_v11, %v1907_v9  ;;  %v1914_v61 = vsel %vm1844_vm1, %v1741_v34, %v1725_v0  ;;  %v634_v38 = vsel %vm563_vm0, %v3205_v30, 0.0  ;;  %v641_v47 = vsel %vm563_vm0, %v3206_v25, 0.0 }
 0x148   : > { %v1836_v43 = vunpack.c.l.b16 %v1648_v44  ;;  %v1837_v36 = vunpack.c.h.b16 %v1648_v44  ;;  %v1909_v6 = vsel %vm1848_vm3, %v1772_v16, %v1908_v23  ;;  %v1915_v49 = vsel %vm1846_vm2, %v1757_v37, %v1914_v61 }
 0x149   : > { %v1910_v54 = vsel %vm1850_vm4, %v1788_v21, %v1909_v6  ;;  %v1916_v8 = vsel %vm1848_vm3, %v1773_v26, %v1915_v49  ;;  %v635_v51 = vrot.slane %v634_v38, 4  ;;  %v642_v55 = vrot.slane %v641_v47, 4  ;;  %v3212_v26 = vld [vmem:[#allocation32_spill] sm:$0xff]  ;;  %v3214_v49 = vld [vmem:[#allocation41_spill] sm:$0xff] }
 0x14a   : > { %v1911_v50 = vsel %vm1852_vm5, %v1804_v60, %v1910_v54  ;;  %v1917_v24 = vsel %vm1850_vm4, %v1789_v22, %v1916_v8  ;;  %v746_v20 = vsel %vm563_vm0, %v3207_v18, 0.0  ;;  %v753_v52 = vsel %vm563_vm0, %v3208_v7, 0.0 }
 0x14b   : > { %v1912_v53 = vsel %vm1854_vm6, %v1820_v10, %v1911_v50  ;;  %v1918_v31 = vsel %vm1852_vm5, %v1805_v57, %v1917_v24  ;;  %v636_v56 = vadd.f32 %v635_v51, %v634_v38  ;;  %v643_v17 = vadd.f32 %v642_v55, %v641_v47 }
 0x14c   : > { %v1913_v27 = vsel %vm1856_vm7, %v1836_v43, %v1912_v53  ;;  %v1919_v45 = vsel %vm1854_vm6, %v1821_v29, %v1918_v31  ;;  %v747_v62 = vrot.slane %v746_v20, 4  ;;  %v754_v46 = vrot.slane %v753_v52, 4 }
 0x14d   : > { %v1920_v13 = vsel %vm1856_vm7, %v1837_v36, %v1919_v45  ;;  %v637_v33 = vrot.slane %v636_v56, 2  ;;  %v644_v58 = vrot.slane %v643_v17, 2  ;;  %v858_v39 = vsel %vm563_vm0, %v3209_v40, 0.0  ;;  %v3213_v36 = vld [vmem:[#allocation40_spill] sm:$0xff] }
 0x14e   : > { %v1967_v3 = vpack.c.b16 %v1920_v13, %v1913_v27  ;;  %v748_v2 = vadd.f32 %v747_v62, %v746_v20  ;;  %v755_v5 = vadd.f32 %v754_v46, %v753_v52  ;;  %v859_v42 = vrot.slane %v858_v39, 4 }
 0x14f   : > { %v638_v35 = vadd.f32 %v637_v33, %v636_v56  ;;  %v645_v32 = vadd.f32 %v644_v58, %v643_v17  ;;  %v865_v12 = vsel %vm563_vm0, %v3210_v48, 0.0  ;;  %v970_v0 = vsel %vm563_vm0, %v3211_v4, 0.0  ;;  %v3215_v58 = vld [vmem:[#allocation54_spill] sm:$0xff]  ;;  %v3216_v48 = vld [vmem:[#allocation55_spill] sm:$0xff] }
 0x150   : > { %1983 = vst [vmem:[%s2777_s28 + $0x20] sm:$0xff] %v1967_v3  ;;  %v749_v28 = vrot.slane %v748_v2, 2  ;;  %v756_v19 = vrot.slane %v755_v5, 2  ;;  %v860_v34 = vadd.f32 %v859_v42, %v858_v39  ;;  %v866_v11 = vrot.slane %v865_v12, 4 }
 0x151   : > { %v639_v59 = vrot.slane %v638_v35, 1  ;;  %v646_v37 = vrot.slane %v645_v32, 1  ;;  %v971_v16 = vrot.slane %v970_v0, 4  ;;  %v977_v21 = vsel %vm563_vm0, %v3212_v26, 0.0 }
 0x152   : > { %v750_v22 = vadd.f32 %v749_v28, %v748_v2  ;;  %v757_v60 = vadd.f32 %v756_v19, %v755_v5  ;;  %v861_v57 = vrot.slane %v860_v34, 2  ;;  %v867_v44 = vadd.f32 %v866_v11, %v865_v12  ;;  %v429_v39 = vld.sshfl [vmem:[#allocation1 + $0x10] sm:$0xff pattern:$0x73625140] }
 0x153   : > { %v2937_v10 = vadd.f32 %v639_v59, %v638_v35  ;;  %v2939_v29 = vadd.f32 %v646_v37, %v645_v32  ;;  %v972_v9 = vadd.f32 %v971_v16, %v970_v0  ;;  %v978_v23 = vrot.slane %v977_v21, 4  ;;  %v430_v12 = vld.sshfl [vmem:[#allocation1 + $0x18] sm:$0xff pattern:$0x73625140] }
 0x154   : > { %v751_v61 = vrot.slane %v750_v22, 1  ;;  %v758_v30 = vrot.slane %v757_v60, 1  ;;  %v862_v38 = vadd.f32 %v861_v57, %v860_v34  ;;  %v868_v25 = vrot.slane %v867_v44, 2 }
 0x155   : > { %v973_v47 = vrot.slane %v972_v9, 2  ;;  %v979_v43 = vadd.f32 %v978_v23, %v977_v21  ;;  %v1082_v6 = vsel %vm563_vm0, %v3213_v36, 0.0  ;;  %v1089_v54 = vsel %vm563_vm0, %v3214_v49, 0.0 }
 0x156   : > { %v2945_v8 = vadd.f32 %v751_v61, %v750_v22  ;;  %v2947_v51 = vadd.f32 %v758_v30, %v757_v60  ;;  %v863_v55 = vrot.slane %v862_v38, 1  ;;  %v869_v50 = vadd.f32 %v868_v25, %v867_v44 }
 0x157   : > { %v974_v24 = vadd.f32 %v973_v47, %v972_v9  ;;  %v980_v18 = vrot.slane %v979_v43, 2  ;;  %v1083_v20 = vrot.slane %v1082_v6, 4  ;;  %v1090_v7 = vrot.slane %v1089_v54, 4 }
 0x158   : > { %v864_v52 = vadd.f32 %v863_v55, %v862_v38  ;;  %v870_v53 = vrot.slane %v869_v50, 1  ;;  %v1194_v31 = vsel %vm563_vm0, %v2583_v41, 0.0  ;;  %v1201_v56 = vsel %vm563_vm0, %v2585_v14, 0.0 }
 0x159   : > { %v975_v17 = vrot.slane %v974_v24, 1  ;;  %v981_v27 = vadd.f32 %v980_v18, %v979_v43  ;;  %v1084_v45 = vadd.f32 %v1083_v20, %v1082_v6  ;;  %v1091_v62 = vadd.f32 %v1090_v7, %v1089_v54 }
 0x15a   : > { %v871_v46 = vadd.f32 %v870_v53, %v869_v50  ;;  %v1195_v13 = vrot.slane %v1194_v31, 4  ;;  %v1202_v33 = vrot.slane %v1201_v56, 4  ;;  %v1306_v40 = vsel %vm563_vm0, %v3215_v58, 0.0 }
 0x15b   : > { %v976_v3 = vadd.f32 %v975_v17, %v974_v24  ;;  %v982_v2 = vrot.slane %v981_v27, 1  ;;  %v1085_v5 = vrot.slane %v1084_v45, 2  ;;  %v1092_v42 = vrot.slane %v1091_v62, 2 }
 0x15c   : > { %v1196_v35 = vadd.f32 %v1195_v13, %v1194_v31  ;;  %v1203_v41 = vadd.f32 %v1202_v33, %v1201_v56  ;;  %v1307_v32 = vrot.slane %v1306_v40, 4  ;;  %v1313_v14 = vsel %vm563_vm0, %v3216_v48, 0.0 }
 0x15d   : > { %v983_v4 = vadd.f32 %v982_v2, %v981_v27  ;;  %v1086_v0 = vadd.f32 %v1085_v5, %v1084_v45  ;;  %v1093_v28 = vadd.f32 %v1092_v42, %v1091_v62  ;;  %v1314_v19 = vrot.slane %v1313_v14, 4 }
 0x15e   : > { %v1197_v34 = vrot.slane %v1196_v35, 2  ;;  %v1204_v11 = vrot.slane %v1203_v41, 2  ;;  %v1308_v59 = vadd.f32 %v1307_v32, %v1306_v40  ;;  %v1418_v37 = vsel %vm563_vm0, %v429_v39, 0.0 }
 0x15f   : > { %v1087_v16 = vrot.slane %v1086_v0, 1  ;;  %v1094_v26 = vrot.slane %v1093_v28, 1  ;;  %v1315_v21 = vadd.f32 %v1314_v19, %v1313_v14  ;;  %v1419_v22 = vrot.slane %v1418_v37, 4 }
 0x160   : > { %v1198_v60 = vadd.f32 %v1197_v34, %v1196_v35  ;;  %v1205_v57 = vadd.f32 %v1204_v11, %v1203_v41  ;;  %v1309_v44 = vrot.slane %v1308_v59, 2  ;;  %v1425_v9 = vsel %vm563_vm0, %v430_v12, 0.0 }
 0x161   : > { %v1088_v23 = vadd.f32 %v1087_v16, %v1086_v0  ;;  %v1095_v61 = vadd.f32 %v1094_v26, %v1093_v28  ;;  %v1316_v30 = vrot.slane %v1315_v21, 2  ;;  %v1420_v38 = vadd.f32 %v1419_v22, %v1418_v37 }
 0x162   : > { %v1199_v25 = vrot.slane %v1198_v60, 1  ;;  %v1206_v47 = vrot.slane %v1205_v57, 1  ;;  %v1310_v43 = vadd.f32 %v1309_v44, %v1308_v59  ;;  %v1426_v36 = vrot.slane %v1425_v9, 4 }
 0x163   : > { %v1317_v6 = vadd.f32 %v1316_v30, %v1315_v21  ;;  %v1421_v49 = vrot.slane %v1420_v38, 2  ;;  %v1470_v54 = vmul.f32 0.5, %v2937_v10  ;;  %v1471_v55 = vmul.f32 0.5, %v2939_v29 }
 0x164   : > { %v1200_v50 = vadd.f32 %v1199_v25, %v1198_v60  ;;  %v1207_v24 = vadd.f32 %v1206_v47, %v1205_v57  ;;  %v1311_v18 = vrot.slane %v1310_v43, 1  ;;  %v1427_v20 = vadd.f32 %v1426_v36, %v1425_v9  ;;  %v3217_v47 = vld [vmem:[#allocation7_spill] sm:$0xff]  ;;  %v3218_v36 = vld [vmem:[#allocation8_spill] sm:$0xff] }
 0x165   : > { %v1318_v7 = vrot.slane %v1317_v6, 1  ;;  %v1422_v53 = vadd.f32 %v1421_v49, %v1420_v38  ;;  %v1486_v31 = vmul.f32 0.5, %v2945_v8  ;;  %v1487_v56 = vmul.f32 0.5, %v2947_v51 }
 0x166   : > { %v1312_v17 = vadd.f32 %v1311_v18, %v1310_v43  ;;  %v1428_v27 = vrot.slane %v1427_v20, 2  ;;  %v1502_v45 = vmul.f32 0.5, %v864_v52  ;;  %v1503_v62 = vmul.f32 0.5, %v871_v46 }
 0x167   : > { %v1319_v13 = vadd.f32 %v1318_v7, %v1317_v6  ;;  %v1423_v33 = vrot.slane %v1422_v53, 1  ;;  %v1518_v58 = vmul.f32 0.5, %v976_v3  ;;  %v1519_v10 = vmul.f32 0.5, %v983_v4 }
 0x168   : > { %v1429_v40 = vadd.f32 %v1428_v27, %v1427_v20  ;;  %v1534_v29 = vmul.f32 0.5, %v1088_v23  ;;  %v1535_v39 = vmul.f32 0.5, %v1095_v61  ;;  %v1550_v2 = vmul.f32 0.5, %v1200_v50  ;;  %v3220_v27 = vld [vmem:[#allocation16_spill] sm:$0xff] }
 0x169   : > { %v1424_v5 = vadd.f32 %v1423_v33, %v1422_v53  ;;  %v1551_v42 = vmul.f32 0.5, %v1207_v24  ;;  %v1566_v35 = vmul.f32 0.5, %v1312_v17  ;;  %v1567_v41 = vmul.f32 0.5, %v1319_v13 }
 0x16a   : > { %v1430_v32 = vrot.slane %v1429_v40, 1  ;;  %v1593_v8 = vpack.c.bf16 %v1471_v55, %v1470_v54  ;;  %v1601_v48 = vpack.c.bf16 %v1487_v56, %v1486_v31  ;;  %v1609_v51 = vpack.c.bf16 %v1503_v62, %v1502_v45  ;;  %v3219_v56 = vld [vmem:[#allocation15_spill] sm:$0xff] }
 0x16b   : > { %v1582_v14 = vmul.f32 0.5, %v1424_v5  ;;  %v1617_v12 = vpack.c.bf16 %v1519_v10, %v1518_v58  ;;  %v1625_v52 = vpack.c.bf16 %v1535_v39, %v1534_v29  ;;  %v1633_v46 = vpack.c.bf16 %v1551_v42, %v1550_v2 }
 0x16c   : > { %v1431_v0 = vadd.f32 %v1430_v32, %v1429_v40  ;;  %v1641_v28 = vpack.c.bf16 %v1567_v41, %v1566_v35  ;;  %v1726_v3 = vunpack.c.l.b16 %v1593_v8  ;;  %v1727_v4 = vunpack.c.h.b16 %v1593_v8  ;;  %v3221_v35 = vld [vmem:[#allocation23_spill] sm:$0xff] }
 0x16d   : > { %v1742_v19 = vunpack.c.l.b16 %v1601_v48  ;;  %v1743_v34 = vunpack.c.h.b16 %v1601_v48  ;;  %v1758_v11 = vunpack.c.l.b16 %v1609_v51  ;;  %v1759_v59 = vunpack.c.h.b16 %v1609_v51  ;;  %v3222_v51 = vld [vmem:[#allocation24_spill] sm:$0xff] }
 0x16e   : > { %v1583_v37 = vmul.f32 0.5, %v1431_v0  ;;  %v1774_v16 = vunpack.c.l.b16 %v1617_v12  ;;  %v1775_v26 = vunpack.c.h.b16 %v1617_v12  ;;  %v1790_v21 = vunpack.c.l.b16 %v1625_v52  ;;  %v3223_v0 = vld [vmem:[#allocation33_spill] sm:$0xff] }
 0x16f   : > { %v1791_v22 = vunpack.c.h.b16 %v1625_v52  ;;  %v1806_v60 = vunpack.c.l.b16 %v1633_v46  ;;  %v1807_v57 = vunpack.c.h.b16 %v1633_v46  ;;  %v1822_v44 = vunpack.c.l.b16 %v1641_v28 }
 0x170   : > { %v1649_v9 = vpack.c.bf16 %v1583_v37, %v1582_v14  ;;  %v1823_v23 = vunpack.c.h.b16 %v1641_v28  ;;  %v1921_v61 = vsel %vm1844_vm1, %v1742_v19, %v1726_v3  ;;  %v1928_v30 = vsel %vm1844_vm1, %v1743_v34, %v1727_v4 }
 0x171   : > { %v1922_v38 = vsel %vm1846_vm2, %v1758_v11, %v1921_v61  ;;  %v1929_v25 = vsel %vm1846_vm2, %v1759_v59, %v1928_v30  ;;  %v648_v43 = vsel %vm563_vm0, %v3217_v47, 0.0  ;;  %v655_v6 = vsel %vm563_vm0, %v3218_v36, 0.0 }
 0x172   : > { %v1838_v49 = vunpack.c.l.b16 %v1649_v9  ;;  %v1839_v54 = vunpack.c.h.b16 %v1649_v9  ;;  %v1923_v55 = vsel %vm1848_vm3, %v1774_v16, %v1922_v38  ;;  %v1930_v50 = vsel %vm1848_vm3, %v1775_v26, %v1929_v25  ;;  %v3224_v16 = vld [vmem:[#allocation34_spill] sm:$0xff] }
 0x173   : > { %v1924_v24 = vsel %vm1850_vm4, %v1790_v21, %v1923_v55  ;;  %v1931_v18 = vsel %vm1850_vm4, %v1791_v22, %v1930_v50  ;;  %v649_v20 = vrot.slane %v648_v43, 4  ;;  %v656_v7 = vrot.slane %v655_v6, 4 }
 0x174   : > { %v1925_v53 = vsel %vm1852_vm5, %v1806_v60, %v1924_v24  ;;  %v1932_v31 = vsel %vm1852_vm5, %v1807_v57, %v1931_v18  ;;  %v760_v17 = vsel %vm563_vm0, %v3219_v56, 0.0  ;;  %v767_v45 = vsel %vm563_vm0, %v3220_v27, 0.0 }
 0x175   : > { %v1926_v62 = vsel %vm1854_vm6, %v1822_v44, %v1925_v53  ;;  %v1933_v13 = vsel %vm1854_vm6, %v1823_v23, %v1932_v31  ;;  %v650_v33 = vadd.f32 %v649_v20, %v648_v43  ;;  %v657_v58 = vadd.f32 %v656_v7, %v655_v6  ;;  %v3225_v6 = vld [vmem:[#allocation42_spill] sm:$0xff] }
 0x176   : > { %v1927_v10 = vsel %vm1856_vm7, %v1838_v49, %v1926_v62  ;;  %v1934_v40 = vsel %vm1856_vm7, %v1839_v54, %v1933_v13  ;;  %v761_v29 = vrot.slane %v760_v17, 4  ;;  %v768_v39 = vrot.slane %v767_v45, 4  ;;  %v3226_v54 = vld [vmem:[#allocation43_spill] sm:$0xff] }
 0x177   : > { %v1968_v2 = vpack.c.b16 %v1934_v40, %v1927_v10  ;;  %v651_v5 = vrot.slane %v650_v33, 2  ;;  %v658_v42 = vrot.slane %v657_v58, 2  ;;  %v872_v41 = vsel %vm563_vm0, %v3221_v35, 0.0  ;;  %v3228_v13 = vld [vmem:[#allocation51_spill] sm:$0xff] }
 0x178   : > { %v762_v32 = vadd.f32 %v761_v29, %v760_v17  ;;  %v769_v8 = vadd.f32 %v768_v39, %v767_v45  ;;  %v873_v48 = vrot.slane %v872_v41, 4  ;;  %v879_v14 = vsel %vm563_vm0, %v3222_v51, 0.0  ;;  %v3227_v45 = vld [vmem:[#allocation50_spill] sm:$0xff]  ;;  %v432_v51 = vld.sshfl [vmem:[#allocation1 + $0x28] sm:$0xff pattern:$0x73625140] }
 0x179   : > { %1984 = vst [vmem:[%s2777_s28 + $0x28] sm:$0xff] %v1968_v2  ;;  %v652_v12 = vadd.f32 %v651_v5, %v650_v33  ;;  %v659_v52 = vadd.f32 %v658_v42, %v657_v58  ;;  %v880_v46 = vrot.slane %v879_v14, 4  ;;  %v984_v28 = vsel %vm563_vm0, %v3223_v0, 0.0  ;;  %v431_v58 = vld.sshfl [vmem:[#allocation1 + $0x20] sm:$0xff pattern:$0x73625140] }
 0x17a   : > { %v763_v3 = vrot.slane %v762_v32, 2  ;;  %v770_v4 = vrot.slane %v769_v8, 2  ;;  %v874_v19 = vadd.f32 %v873_v48, %v872_v41  ;;  %v985_v34 = vrot.slane %v984_v28, 4 }
 0x17b   : > { %v653_v11 = vrot.slane %v652_v12, 1  ;;  %v660_v59 = vrot.slane %v659_v52, 1  ;;  %v881_v37 = vadd.f32 %v880_v46, %v879_v14  ;;  %v991_v26 = vsel %vm563_vm0, %v3224_v16, 0.0 }
 0x17c   : > { %v764_v21 = vadd.f32 %v763_v3, %v762_v32  ;;  %v771_v22 = vadd.f32 %v770_v4, %v769_v8  ;;  %v875_v60 = vrot.slane %v874_v19, 2  ;;  %v986_v57 = vadd.f32 %v985_v34, %v984_v28 }
 0x17d   : > { %v2994_v44 = vadd.f32 %v653_v11, %v652_v12  ;;  %v2996_v9 = vadd.f32 %v660_v59, %v659_v52  ;;  %v882_v23 = vrot.slane %v881_v37, 2  ;;  %v992_v61 = vrot.slane %v991_v26, 4 }
 0x17e   : > { %v765_v30 = vrot.slane %v764_v21, 1  ;;  %v772_v38 = vrot.slane %v771_v22, 1  ;;  %v876_v25 = vadd.f32 %v875_v60, %v874_v19  ;;  %v987_v47 = vrot.slane %v986_v57, 2 }
 0x17f   : > { %v883_v43 = vadd.f32 %v882_v23, %v881_v37  ;;  %v993_v36 = vadd.f32 %v992_v61, %v991_v26  ;;  %v1096_v49 = vsel %vm563_vm0, %v3225_v6, 0.0  ;;  %v1103_v55 = vsel %vm563_vm0, %v3226_v54, 0.0 }
 0x180   : > { %v3002_v50 = vadd.f32 %v765_v30, %v764_v21  ;;  %v3004_v24 = vadd.f32 %v772_v38, %v771_v22  ;;  %v877_v18 = vrot.slane %v876_v25, 1  ;;  %v988_v20 = vadd.f32 %v987_v47, %v986_v57 }
 0x181   : > { %v884_v7 = vrot.slane %v883_v43, 1  ;;  %v994_v53 = vrot.slane %v993_v36, 2  ;;  %v1097_v31 = vrot.slane %v1096_v49, 4  ;;  %v1104_v56 = vrot.slane %v1103_v55, 4 }
 0x182   : > { %v878_v17 = vadd.f32 %v877_v18, %v876_v25  ;;  %v989_v27 = vrot.slane %v988_v20, 1  ;;  %v1208_v62 = vsel %vm563_vm0, %v3227_v45, 0.0  ;;  %v1215_v33 = vsel %vm563_vm0, %v3228_v13, 0.0 }
 0x183   : > { %v885_v10 = vadd.f32 %v884_v7, %v883_v43  ;;  %v995_v40 = vadd.f32 %v994_v53, %v993_v36  ;;  %v1098_v29 = vadd.f32 %v1097_v31, %v1096_v49  ;;  %v1105_v39 = vadd.f32 %v1104_v56, %v1103_v55 }
 0x184   : > { %v990_v2 = vadd.f32 %v989_v27, %v988_v20  ;;  %v1209_v5 = vrot.slane %v1208_v62, 4  ;;  %v1216_v42 = vrot.slane %v1215_v33, 4  ;;  %v1320_v35 = vsel %vm563_vm0, %v2700_v63, 0.0 }
 0x185   : > { %v996_v41 = vrot.slane %v995_v40, 1  ;;  %v1099_v32 = vrot.slane %v1098_v29, 2  ;;  %v1106_v8 = vrot.slane %v1105_v39, 2  ;;  %v1321_v48 = vrot.slane %v1320_v35, 4 }
 0x186   : > { %v1210_v14 = vadd.f32 %v1209_v5, %v1208_v62  ;;  %v1217_v12 = vadd.f32 %v1216_v42, %v1215_v33  ;;  %v1327_v52 = vsel %vm563_vm0, %v2702_v1, 0.0  ;;  %v1432_v46 = vsel %vm563_vm0, %v431_v58, 0.0 }
 0x187   : > { %v997_v0 = vadd.f32 %v996_v41, %v995_v40  ;;  %v1100_v28 = vadd.f32 %v1099_v32, %v1098_v29  ;;  %v1107_v3 = vadd.f32 %v1106_v8, %v1105_v39  ;;  %v1322_v4 = vadd.f32 %v1321_v48, %v1320_v35 }
 0x188   : > { %v1211_v19 = vrot.slane %v1210_v14, 2  ;;  %v1218_v34 = vrot.slane %v1217_v12, 2  ;;  %v1328_v11 = vrot.slane %v1327_v52, 4  ;;  %v1433_v63 = vrot.slane %v1432_v46, 4 }
 0x189   : > { %v1101_v59 = vrot.slane %v1100_v28, 1  ;;  %v1108_v37 = vrot.slane %v1107_v3, 1  ;;  %v1323_v16 = vrot.slane %v1322_v4, 2  ;;  %v1439_v26 = vsel %vm563_vm0, %v432_v51, 0.0 }
 0x18a   : > { %v1212_v21 = vadd.f32 %v1211_v19, %v1210_v14  ;;  %v1219_v22 = vadd.f32 %v1218_v34, %v1217_v12  ;;  %v1329_v60 = vadd.f32 %v1328_v11, %v1327_v52  ;;  %v1434_v57 = vadd.f32 %v1433_v63, %v1432_v46 }
 0x18b   : > { %v1102_v1 = vadd.f32 %v1101_v59, %v1100_v28  ;;  %v1109_v23 = vadd.f32 %v1108_v37, %v1107_v3  ;;  %v1324_v61 = vadd.f32 %v1323_v16, %v1322_v4  ;;  %v1440_v30 = vrot.slane %v1439_v26, 4 }
 0x18c   : > { %v1213_v38 = vrot.slane %v1212_v21, 1  ;;  %v1220_v25 = vrot.slane %v1219_v22, 1  ;;  %v1330_v47 = vrot.slane %v1329_v60, 2  ;;  %v1435_v43 = vrot.slane %v1434_v57, 2 }
 0x18d   : > { %v1325_v36 = vrot.slane %v1324_v61, 1  ;;  %v1441_v6 = vadd.f32 %v1440_v30, %v1439_v26  ;;  %v1472_v49 = vmul.f32 0.5, %v2994_v44  ;;  %v1473_v54 = vmul.f32 0.5, %v2996_v9 }
 0x18e   : > { %v1214_v55 = vadd.f32 %v1213_v38, %v1212_v21  ;;  %v1221_v18 = vadd.f32 %v1220_v25, %v1219_v22  ;;  %v1331_v20 = vadd.f32 %v1330_v47, %v1329_v60  ;;  %v1436_v7 = vadd.f32 %v1435_v43, %v1434_v57 }
 0x18f   : > { %v1326_v53 = vadd.f32 %v1325_v36, %v1324_v61  ;;  %v1442_v31 = vrot.slane %v1441_v6, 2  ;;  %v1488_v56 = vmul.f32 0.5, %v3002_v50  ;;  %v1489_v27 = vmul.f32 0.5, %v3004_v24 }
 0x190   : > { %v1332_v45 = vrot.slane %v1331_v20, 1  ;;  %v1437_v62 = vrot.slane %v1436_v7, 1  ;;  %v1504_v13 = vmul.f32 0.5, %v878_v17  ;;  %v1505_v33 = vmul.f32 0.5, %v885_v10 }
 0x191   : > { %v1443_v58 = vadd.f32 %v1442_v31, %v1441_v6  ;;  %v1520_v40 = vmul.f32 0.5, %v990_v2  ;;  %v1521_v29 = vmul.f32 0.5, %v997_v0  ;;  %v1536_v44 = vmul.f32 0.5, %v1102_v1  ;;  %v3229_v1 = vld [vmem:[#allocation9_spill] sm:$0xff]  ;;  %v3230_v6 = vld [vmem:[#allocation10_spill] sm:$0xff] }
 0x192   : > { %v1333_v39 = vadd.f32 %v1332_v45, %v1331_v20  ;;  %v1438_v9 = vadd.f32 %v1437_v62, %v1436_v7  ;;  %v1537_v5 = vmul.f32 0.5, %v1109_v23  ;;  %v1552_v42 = vmul.f32 0.5, %v1214_v55  ;;  %v3231_v20 = vld [vmem:[#allocation17_spill] sm:$0xff] }
 0x193   : > { %v1444_v35 = vrot.slane %v1443_v58, 1  ;;  %v1553_v41 = vmul.f32 0.5, %v1221_v18  ;;  %v1568_v32 = vmul.f32 0.5, %v1326_v53  ;;  %v1594_v8 = vpack.c.bf16 %v1473_v54, %v1472_v49 }
 0x194   : > { %v1569_v48 = vmul.f32 0.5, %v1333_v39  ;;  %v1584_v50 = vmul.f32 0.5, %v1438_v9  ;;  %v1602_v51 = vpack.c.bf16 %v1489_v27, %v1488_v56  ;;  %v1610_v24 = vpack.c.bf16 %v1505_v33, %v1504_v13  ;;  %v3232_v33 = vld [vmem:[#allocation18_spill] sm:$0xff] }
 0x195   : > { %v1445_v14 = vadd.f32 %v1444_v35, %v1443_v58  ;;  %v1618_v12 = vpack.c.bf16 %v1521_v29, %v1520_v40  ;;  %v1626_v17 = vpack.c.bf16 %v1537_v5, %v1536_v44  ;;  %v1634_v10 = vpack.c.bf16 %v1553_v41, %v1552_v42  ;;  %v3233_v35 = vld [vmem:[#allocation25_spill] sm:$0xff] }
 0x196   : > { %v1642_v52 = vpack.c.bf16 %v1569_v48, %v1568_v32  ;;  %v1728_v2 = vunpack.c.l.b16 %v1594_v8  ;;  %v1729_v46 = vunpack.c.h.b16 %v1594_v8  ;;  %v1744_v0 = vunpack.c.l.b16 %v1602_v51 }
 0x197   : > { %v1585_v28 = vmul.f32 0.5, %v1445_v14  ;;  %v1745_v3 = vunpack.c.h.b16 %v1602_v51  ;;  %v1760_v4 = vunpack.c.l.b16 %v1610_v24  ;;  %v1761_v19 = vunpack.c.h.b16 %v1610_v24 }
 0x198   : > { %v1776_v34 = vunpack.c.l.b16 %v1618_v12  ;;  %v1777_v11 = vunpack.c.h.b16 %v1618_v12  ;;  %v1792_v63 = vunpack.c.l.b16 %v1626_v17  ;;  %v1793_v59 = vunpack.c.h.b16 %v1626_v17  ;;  %v3235_v17 = vld [vmem:[#allocation35_spill] sm:$0xff] }
 0x199   : > { %v1650_v37 = vpack.c.bf16 %v1585_v28, %v1584_v50  ;;  %v1808_v16 = vunpack.c.l.b16 %v1634_v10  ;;  %v1809_v26 = vunpack.c.h.b16 %v1634_v10  ;;  %v1824_v21 = vunpack.c.l.b16 %v1642_v52  ;;  %v3234_v50 = vld [vmem:[#allocation26_spill] sm:$0xff] }
 0x19a   : > { %v1825_v22 = vunpack.c.h.b16 %v1642_v52  ;;  %v1935_v60 = vsel %vm1844_vm1, %v1744_v0, %v1728_v2  ;;  %v1942_v57 = vsel %vm1844_vm1, %v1745_v3, %v1729_v46  ;;  %v662_v23 = vsel %vm563_vm0, %v3229_v1, 0.0 }
 0x19b   : > { %v1840_v61 = vunpack.c.l.b16 %v1650_v37  ;;  %v1841_v30 = vunpack.c.h.b16 %v1650_v37  ;;  %v1936_v38 = vsel %vm1846_vm2, %v1760_v4, %v1935_v60  ;;  %v1943_v25 = vsel %vm1846_vm2, %v1761_v19, %v1942_v57  ;;  %v3236_v19 = vld [vmem:[#allocation36_spill] sm:$0xff] }
 0x19c   : > { %v1937_v47 = vsel %vm1848_vm3, %v1776_v34, %v1936_v38  ;;  %v1944_v43 = vsel %vm1848_vm3, %v1777_v11, %v1943_v25  ;;  %v663_v36 = vrot.slane %v662_v23, 4  ;;  %v669_v49 = vsel %vm563_vm0, %v3230_v6, 0.0  ;;  %v3238_v6 = vld [vmem:[#allocation45_spill] sm:$0xff] }
 0x19d   : > { %v1938_v54 = vsel %vm1850_vm4, %v1792_v63, %v1937_v47  ;;  %v1945_v55 = vsel %vm1850_vm4, %v1793_v59, %v1944_v43  ;;  %v670_v18 = vrot.slane %v669_v49, 4  ;;  %v774_v7 = vsel %vm563_vm0, %v3231_v20, 0.0 }
 0x19e   : > { %v1939_v53 = vsel %vm1852_vm5, %v1808_v16, %v1938_v54  ;;  %v1946_v31 = vsel %vm1852_vm5, %v1809_v26, %v1945_v55  ;;  %v664_v56 = vadd.f32 %v663_v36, %v662_v23  ;;  %v775_v27 = vrot.slane %v774_v7, 4  ;;  %v3237_v23 = vld [vmem:[#allocation44_spill] sm:$0xff] }
 0x19f   : > { %v1940_v45 = vsel %vm1854_vm6, %v1824_v21, %v1939_v53  ;;  %v1947_v62 = vsel %vm1854_vm6, %v1825_v22, %v1946_v31  ;;  %v671_v13 = vadd.f32 %v670_v18, %v669_v49  ;;  %v781_v58 = vsel %vm563_vm0, %v3232_v33, 0.0  ;;  %v3239_v54 = vld [vmem:[#allocation52_spill] sm:$0xff] }
 0x1a0   : > { %v1941_v40 = vsel %vm1856_vm7, %v1840_v61, %v1940_v45  ;;  %v1948_v29 = vsel %vm1856_vm7, %v1841_v30, %v1947_v62  ;;  %v665_v44 = vrot.slane %v664_v56, 2  ;;  %v776_v39 = vadd.f32 %v775_v27, %v774_v7 }
 0x1a1   : > { %v1969_v9 = vpack.c.b16 %v1948_v29, %v1941_v40  ;;  %v672_v5 = vrot.slane %v671_v13, 2  ;;  %v782_v42 = vrot.slane %v781_v58, 4  ;;  %v886_v41 = vsel %vm563_vm0, %v3233_v35, 0.0  ;;  %v433_v29 = vld.sshfl [vmem:[#allocation1 + $0x30] sm:$0xff pattern:$0x73625140] }
 0x1a2   : > { %v666_v32 = vadd.f32 %v665_v44, %v664_v56  ;;  %v777_v8 = vrot.slane %v776_v39, 2  ;;  %v887_v48 = vrot.slane %v886_v41, 4  ;;  %v893_v51 = vsel %vm563_vm0, %v3234_v50, 0.0 }
 0x1a3   : > { %1985 = vst [vmem:[%s2777_s28 + $0x30] sm:$0xff] %v1969_v9  ;;  %v673_v24 = vadd.f32 %v672_v5, %v671_v13  ;;  %v783_v14 = vadd.f32 %v782_v42, %v781_v58  ;;  %v894_v12 = vrot.slane %v893_v51, 4  ;;  %v998_v10 = vsel %vm563_vm0, %v3235_v17, 0.0  ;;  %v3240_v58 = vld [vmem:[#allocation53_spill] sm:$0xff] }
 0x1a4   : > { %v667_v52 = vrot.slane %v666_v32, 1  ;;  %v778_v2 = vadd.f32 %v777_v8, %v776_v39  ;;  %v888_v46 = vadd.f32 %v887_v48, %v886_v41  ;;  %v999_v0 = vrot.slane %v998_v10, 4  ;;  %v434_v48 = vld.sshfl [vmem:[#allocation1 + $0x38] sm:$0xff pattern:$0x73625140] }
 0x1a5   : > { %v674_v28 = vrot.slane %v673_v24, 1  ;;  %v784_v3 = vrot.slane %v783_v14, 2  ;;  %v895_v4 = vadd.f32 %v894_v12, %v893_v51  ;;  %v1005_v34 = vsel %vm563_vm0, %v3236_v19, 0.0 }
 0x1a6   : > { %v3051_v11 = vadd.f32 %v667_v52, %v666_v32  ;;  %v779_v63 = vrot.slane %v778_v2, 1  ;;  %v889_v59 = vrot.slane %v888_v46, 2  ;;  %v1000_v37 = vadd.f32 %v999_v0, %v998_v10  ;;  %v3241_v32 = vld [vmem:[#allocation56_spill] sm:$0xff] }
 0x1a7   : > { %v3053_v16 = vadd.f32 %v674_v28, %v673_v24  ;;  %v785_v26 = vadd.f32 %v784_v3, %v783_v14  ;;  %v896_v21 = vrot.slane %v895_v4, 2  ;;  %v1006_v22 = vrot.slane %v1005_v34, 4 }
 0x1a8   : > { %v3055_v60 = vadd.f32 %v779_v63, %v778_v2  ;;  %v890_v57 = vadd.f32 %v889_v59, %v888_v46  ;;  %v1001_v1 = vrot.slane %v1000_v37, 2  ;;  %v1110_v61 = vsel %vm563_vm0, %v3237_v23, 0.0 }
 0x1a9   : > { %v786_v30 = vrot.slane %v785_v26, 1  ;;  %v897_v38 = vadd.f32 %v896_v21, %v895_v4  ;;  %v1007_v25 = vadd.f32 %v1006_v22, %v1005_v34  ;;  %v1111_v47 = vrot.slane %v1110_v61, 4 }
 0x1aa   : > { %v891_v43 = vrot.slane %v890_v57, 1  ;;  %v1002_v36 = vadd.f32 %v1001_v1, %v1000_v37  ;;  %v1117_v49 = vsel %vm563_vm0, %v3238_v6, 0.0  ;;  %v1222_v55 = vsel %vm563_vm0, %v3239_v54, 0.0 }
 0x1ab   : > { %v787_v18 = vadd.f32 %v786_v30, %v785_v26  ;;  %v898_v20 = vrot.slane %v897_v38, 1  ;;  %v1008_v7 = vrot.slane %v1007_v25, 2  ;;  %v1112_v53 = vadd.f32 %v1111_v47, %v1110_v61 }
 0x1ac   : > { %v892_v31 = vadd.f32 %v891_v43, %v890_v57  ;;  %v1003_v56 = vrot.slane %v1002_v36, 1  ;;  %v1118_v27 = vrot.slane %v1117_v49, 4  ;;  %v1223_v45 = vrot.slane %v1222_v55, 4 }
 0x1ad   : > { %v899_v62 = vadd.f32 %v898_v20, %v897_v38  ;;  %v1009_v13 = vadd.f32 %v1008_v7, %v1007_v25  ;;  %v1113_v33 = vrot.slane %v1112_v53, 2  ;;  %v1229_v40 = vsel %vm563_vm0, %v3240_v58, 0.0 }
 0x1ae   : > { %v1004_v44 = vadd.f32 %v1003_v56, %v1002_v36  ;;  %v1119_v39 = vadd.f32 %v1118_v27, %v1117_v49  ;;  %v1224_v9 = vadd.f32 %v1223_v45, %v1222_v55  ;;  %v1230_v5 = vrot.slane %v1229_v40, 4 }
 0x1af   : > { %v1010_v42 = vrot.slane %v1009_v13, 1  ;;  %v1114_v35 = vadd.f32 %v1113_v33, %v1112_v53  ;;  %v1334_v41 = vsel %vm563_vm0, %v2710_v15, 0.0  ;;  %v1341_v8 = vsel %vm563_vm0, %v3241_v32, 0.0 }
 0x1b0   : > { %v1120_v50 = vrot.slane %v1119_v39, 2  ;;  %v1225_v51 = vrot.slane %v1224_v9, 2  ;;  %v1231_v24 = vadd.f32 %v1230_v5, %v1229_v40  ;;  %v1335_v14 = vrot.slane %v1334_v41, 4 }
 0x1b1   : > { %v1011_v12 = vadd.f32 %v1010_v42, %v1009_v13  ;;  %v1115_v17 = vrot.slane %v1114_v35, 1  ;;  %v1342_v10 = vrot.slane %v1341_v8, 4  ;;  %v1446_v52 = vsel %vm563_vm0, %v433_v29, 0.0 }
 0x1b2   : > { %v1121_v2 = vadd.f32 %v1120_v50, %v1119_v39  ;;  %v1226_v46 = vadd.f32 %v1225_v51, %v1224_v9  ;;  %v1232_v0 = vrot.slane %v1231_v24, 2  ;;  %v1336_v28 = vadd.f32 %v1335_v14, %v1334_v41 }
 0x1b3   : > { %v1116_v3 = vadd.f32 %v1115_v17, %v1114_v35  ;;  %v1343_v4 = vadd.f32 %v1342_v10, %v1341_v8  ;;  %v1447_v15 = vrot.slane %v1446_v52, 4  ;;  %v1453_v19 = vsel %vm563_vm0, %v434_v48, 0.0 }
 0x1b4   : > { %v1122_v34 = vrot.slane %v1121_v2, 1  ;;  %v1227_v63 = vrot.slane %v1226_v46, 1  ;;  %v1233_v59 = vadd.f32 %v1232_v0, %v1231_v24  ;;  %v1337_v37 = vrot.slane %v1336_v28, 2 }
 0x1b5   : > { %v1344_v26 = vrot.slane %v1343_v4, 2  ;;  %v1448_v21 = vadd.f32 %v1447_v15, %v1446_v52  ;;  %v1454_v22 = vrot.slane %v1453_v19, 4  ;;  %v1474_v57 = vmul.f32 0.5, %v3051_v11 }
 0x1b6   : > { %v1123_v1 = vadd.f32 %v1122_v34, %v1121_v2  ;;  %v1228_v23 = vadd.f32 %v1227_v63, %v1226_v46  ;;  %v1234_v61 = vrot.slane %v1233_v59, 1  ;;  %v1338_v30 = vadd.f32 %v1337_v37, %v1336_v28 }
 0x1b7   : > { %v1345_v38 = vadd.f32 %v1344_v26, %v1343_v4  ;;  %v1449_v25 = vrot.slane %v1448_v21, 2  ;;  %v1455_v47 = vadd.f32 %v1454_v22, %v1453_v19  ;;  %v1475_v43 = vmul.f32 0.5, %v3053_v16 }
 0x1b8   : > { %v1235_v36 = vadd.f32 %v1234_v61, %v1233_v59  ;;  %v1339_v6 = vrot.slane %v1338_v30, 1  ;;  %v1490_v49 = vmul.f32 0.5, %v3055_v60  ;;  %v1491_v54 = vmul.f32 0.5, %v787_v18 }
 0x1b9   : > { %v1346_v55 = vrot.slane %v1345_v38, 1  ;;  %v1450_v20 = vadd.f32 %v1449_v25, %v1448_v21  ;;  %v1456_v7 = vrot.slane %v1455_v47, 2  ;;  %v1506_v53 = vmul.f32 0.5, %v892_v31 }
 0x1ba   : > { %v1340_v56 = vadd.f32 %v1339_v6, %v1338_v30  ;;  %v1507_v11 = vmul.f32 0.5, %v899_v62  ;;  %v1522_v27 = vmul.f32 0.5, %v1004_v44  ;;  %v1523_v45 = vmul.f32 0.5, %v1011_v12 }
 0x1bb   : > { %v1347_v13 = vadd.f32 %v1346_v55, %v1345_v38  ;;  %v1451_v33 = vrot.slane %v1450_v20, 1  ;;  %v1457_v58 = vadd.f32 %v1456_v7, %v1455_v47  ;;  %v1538_v40 = vmul.f32 0.5, %v1116_v3 }
 0x1bc   : > { %v1539_v29 = vmul.f32 0.5, %v1123_v1  ;;  %v1554_v39 = vmul.f32 0.5, %v1228_v23  ;;  %v1555_v16 = vmul.f32 0.5, %v1235_v36  ;;  %v1570_v42 = vmul.f32 0.5, %v1340_v56 }
 0x1bd   : > { %v1452_v9 = vadd.f32 %v1451_v33, %v1450_v20  ;;  %v1458_v5 = vrot.slane %v1457_v58, 1  ;;  %v1571_v60 = vmul.f32 0.5, %v1347_v13  ;;  %v1595_v18 = vpack.c.bf16 %v1475_v43, %v1474_v57 }
 0x1be   : > { %v1603_v35 = vpack.c.bf16 %v1491_v54, %v1490_v49  ;;  %v1611_v41 = vpack.c.bf16 %v1507_v11, %v1506_v53  ;;  %v1619_v32 = vpack.c.bf16 %v1523_v45, %v1522_v27  ;;  %v1627_v62 = vpack.c.bf16 %v1539_v29, %v1538_v40 }
 0x1bf   : > { %v1459_v31 = vadd.f32 %v1458_v5, %v1457_v58  ;;  %v1586_v8 = vmul.f32 0.5, %v1452_v9  ;;  %v1635_v44 = vpack.c.bf16 %v1555_v16, %v1554_v39  ;;  %v1643_v24 = vpack.c.bf16 %v1571_v60, %v1570_v42 }
 0x1c0   : > { %v1746_v48 = vunpack.c.l.b16 %v1603_v35  ;;  %v1747_v50 = vunpack.c.h.b16 %v1603_v35  ;;  %v1762_v14 = vunpack.c.l.b16 %v1611_v41  ;;  %v1763_v12 = vunpack.c.h.b16 %v1611_v41 }
 0x1c1   : > { %v1587_v51 = vmul.f32 0.5, %v1459_v31  ;;  %v1730_v17 = vunpack.c.l.b16 %v1595_v18  ;;  %v1731_v10 = vunpack.c.h.b16 %v1595_v18  ;;  %v1778_v52 = vunpack.c.l.b16 %v1619_v32 }
 0x1c2   : > { %v1779_v2 = vunpack.c.h.b16 %v1619_v32  ;;  %v1794_v0 = vunpack.c.l.b16 %v1627_v62  ;;  %v1795_v28 = vunpack.c.h.b16 %v1627_v62  ;;  %v1810_v3 = vunpack.c.l.b16 %v1635_v44 }
 0x1c3   : > { %v1651_v46 = vpack.c.bf16 %v1587_v51, %v1586_v8  ;;  %v1811_v4 = vunpack.c.h.b16 %v1635_v44  ;;  %v1949_v15 = vsel %vm1844_vm1, %v1746_v48, %v1730_v17  ;;  %v1956_v19 = vsel %vm1844_vm1, %v1747_v50, %v1731_v10 }
 0x1c4   : > { %v1826_v34 = vunpack.c.l.b16 %v1643_v24  ;;  %v1827_v63 = vunpack.c.h.b16 %v1643_v24  ;;  %v1950_v59 = vsel %vm1846_vm2, %v1762_v14, %v1949_v15  ;;  %v1957_v37 = vsel %vm1846_vm2, %v1763_v12, %v1956_v19 }
 0x1c5   : > { %v1842_v26 = vunpack.c.l.b16 %v1651_v46  ;;  %v1843_v21 = vunpack.c.h.b16 %v1651_v46  ;;  %v1951_v22 = vsel %vm1848_vm3, %v1778_v52, %v1950_v59  ;;  %v1958_v57 = vsel %vm1848_vm3, %v1779_v2, %v1957_v37 }
 0x1c6   : > { %v1952_v1 = vsel %vm1850_vm4, %v1794_v0, %v1951_v22  ;;  %v1959_v23 = vsel %vm1850_vm4, %v1795_v28, %v1958_v57 }
 0x1c7   : > { %v1953_v61 = vsel %vm1852_vm5, %v1810_v3, %v1952_v1  ;;  %v1960_v30 = vsel %vm1852_vm5, %v1811_v4, %v1959_v23 }
 0x1c8   : > { %v1954_v38 = vsel %vm1854_vm6, %v1826_v34, %v1953_v61  ;;  %v1961_v25 = vsel %vm1854_vm6, %v1827_v63, %v1960_v30 }
 0x1c9   : > { %v1955_v47 = vsel %vm1856_vm7, %v1842_v26, %v1954_v38  ;;  %v1962_v43 = vsel %vm1856_vm7, %v1843_v21, %v1961_v25 }
 0x1ca   : > { %v1970_v36 = vpack.c.b16 %v1962_v43, %v1955_v47 }
 0x1cc   : > { %1986 = vst [vmem:[%s2777_s28 + $0x38] sm:$0xff] %v1970_v36 }
 0x1cd PF: > { %s11_s10 = sadd.s32 1, %s2169_s10   ;;  %s3242_s6 = smov %s2157_s7 }
 0x1ce   : > { %p8_p10 = scmp.ge.s32.totalorder %s11_s10, 8   ;;  %s3243_s7 = smov %s2216_s14 }
 0x1cf   : > { %s3244_s8 = smov %s2165_s9  ;;  %s3245_s9 = smov %s3247_s11 }
 0x1d0   :  { %10 = sbr.rel (!%p8_p10) target bundleno = 3 (0x3), region = 83 }

// kernel: pcb_forward.3
= control target key start
LH: loop header
LB: loop body
LE: loop exit
PB: predicated region body
PF: predicated region fallthrough
CT: control target
= control target key end

     0   :  { %s11292_s21 = smov 0   ;;  %s13288_s0 = inlined_call_operand.vmem [shape: bf16[6,8,2048], index: 0, kind: input, shape index: {}]   ;;  %s13289_s1 = inlined_call_operand.vmem [shape: bf16[6,2048,256], index: 1, kind: input, shape index: {}]   ;;  %s13290_s2 = inlined_call_operand.vmem [shape: f32[6,1,256], index: 2, kind: input, shape index: {}]   ;;  %s13291_s3 = inlined_call_operand.vmem [shape: bf16[6,256,128], index: 3, kind: input, shape index: {}]   ;;  %s13292_s4 = inlined_call_operand.vmem [shape: f32[6,1,128], index: 4, kind: input, shape index: {}]   ;;  %s13293_s5 = inlined_call_operand.vmem [shape: f32[6,8,128], index: 5, kind: output, shape index: {0}]   ;;  %s13294_s6 = inlined_call_operand.vmem [shape: f32[6,8,256], index: 6, kind: output, shape index: {1}]  }
   0x1 LB: > { %s7129_s22 = sadd.s32 4294967295, %s11255_s21   ;;  %p7133_p0 = scmp.ge.s32.totalorder %s11255_s21, 1  ;;  %s11255_s21 = sphi %s11292_s21, %s17_s21  }
   0x2   : > { %p262_p1 = scmp.lt.s32.totalorder %s11255_s21, 3 }
   0x4   : > { %p263_p2 = pnand %p7133_p0, %p262_p1 }
   0x5   : > { %s320_s23 = smul.u32 (!%p263_p2), 3, %s7129_s22 }
   0x6   : > { %266 = sbr.rel (%p263_p2) target bundleno = 1066 (0x42a), region = 40 }
   0x7   : > { %p321_p3 = scmp.lt.s32.totalorder (!%p263_p2), %s320_s23, 5 }
   0xb   : > { %s13296_s23 = smov (!%p321_p3, %s320_s23), 5 }
   0xc   : > { %s10411_s24 = sshll.u32 %s13296_s23, 11  ;;  %s10410_s28 = sshll.u32 %s13296_s23, 6 }
   0xd   : > { %s11306_s27 = scalar_lea.vmem %s13289_s1, %s10411_s24  ;;  %s11396_s7 = scalar_lea.vmem %s13288_s0, %s10410_s28 }
   0xe   : > { %v7202_v0 = vld [vmem:[%s11306_s27 + $0x70] sm:$0xf]  ;;  %v10429_v1 = vld [vmem:[%s11306_s27 + $0x74] sm:$0xf0]  ;;  %v7194_v11 = vld [vmem:[%s11306_s27 + $0x60] sm:$0xf]  ;;  %s13237_s24 = scalar_lea.vmem %s13292_s4, %s13296_s23 }
   0xf   : > { %v7266_v2 = vld [vmem:[%s11306_s27 + $0xf0] sm:$0xf]  ;;  %v7203_v3 = vor.u32 %v10429_v1, %v7202_v0  ;;  %v10445_v4 = vld [vmem:[%s11306_s27 + $0xf4] sm:$0xf0]  ;;  %v10427_v13 = vld [vmem:[%s11306_s27 + $0x64] sm:$0xf0] }
  0x10   : > { %v7330_v5 = vld [vmem:[%s11306_s27 + $0x170] sm:$0xf]  ;;  %v10461_v6 = vld [vmem:[%s11306_s27 + $0x174] sm:$0xf0]  ;;  %v7267_v7 = vor.u32 %v10445_v4, %v7266_v2  ;;  %v7258_v14 = vld [vmem:[%s11306_s27 + $0xe0] sm:$0xf]  ;;  %v7195_v16 = vor.u32 %v10427_v13, %v7194_v11 }
  0x11   : > { %v7331_v8 = vor.u32 %v10461_v6, %v7330_v5  ;;  %v7394_v9 = vld [vmem:[%s11306_s27 + $0x1f0] sm:$0xf]  ;;  %v10477_v10 = vld [vmem:[%s11306_s27 + $0x1f4] sm:$0xf0]  ;;  %2511 = vmatpush.bf16.msra.mxu0 %v7203_v3  ;;  %v10443_v15 = vld [vmem:[%s11306_s27 + $0xe4] sm:$0xf0] }
  0x12   : > { %v7395_v12 = vor.u32 %v10477_v10, %v7394_v9  ;;  %2524 = vmatpush.bf16.msra.mxu1 %v7267_v7  ;;  %v7259_v17 = vor.u32 %v10443_v15, %v7258_v14  ;;  %v7322_v18 = vld [vmem:[%s11306_s27 + $0x160] sm:$0xf]  ;;  %v10459_v19 = vld [vmem:[%s11306_s27 + $0x164] sm:$0xf0]  ;;  %v7186_v23 = vld [vmem:[%s11306_s27 + $0x50] sm:$0xf] }
  0x13   : > { %2537 = vmatpush.bf16.msra.mxu2 %v7331_v8  ;;  %v7386_v20 = vld [vmem:[%s11306_s27 + $0x1e0] sm:$0xf]  ;;  %v7323_v21 = vor.u32 %v10459_v19, %v7322_v18  ;;  %v10475_v22 = vld [vmem:[%s11306_s27 + $0x1e4] sm:$0xf0]  ;;  %v10425_v24 = vld [vmem:[%s11306_s27 + $0x54] sm:$0xf0] }
  0x14   : > { %2550 = vmatpush.bf16.msra.mxu3 %v7395_v12  ;;  %v7387_v25 = vor.u32 %v10475_v22, %v7386_v20  ;;  %v7250_v26 = vld [vmem:[%s11306_s27 + $0xd0] sm:$0xf]  ;;  %v10441_v27 = vld [vmem:[%s11306_s27 + $0xd4] sm:$0xf0]  ;;  %v7187_v29 = vor.u32 %v10425_v24, %v7186_v23  ;;  %v7178_v35 = vld [vmem:[%s11306_s27 + $0x40] sm:$0xf] }
  0x15   : > { %v7314_v28 = vld [vmem:[%s11306_s27 + $0x150] sm:$0xf]  ;;  %2512 = vmatpush.bf16.msra.mxu0 %v7195_v16  ;;  %v10457_v30 = vld [vmem:[%s11306_s27 + $0x154] sm:$0xf0]  ;;  %v7251_v33 = vor.u32 %v10441_v27, %v7250_v26  ;;  %v10423_v36 = vld [vmem:[%s11306_s27 + $0x44] sm:$0xf0] }
  0x16   : > { %v7378_v31 = vld [vmem:[%s11306_s27 + $0x1d0] sm:$0xf]  ;;  %v10473_v32 = vld [vmem:[%s11306_s27 + $0x1d4] sm:$0xf0]  ;;  %2525 = vmatpush.bf16.msra.mxu1 %v7259_v17  ;;  %v7315_v34 = vor.u32 %v10457_v30, %v7314_v28  ;;  %v7242_v37 = vld [vmem:[%s11306_s27 + $0xc0] sm:$0xf]  ;;  %v7179_v44 = vor.u32 %v10423_v36, %v7178_v35 }
  0x17   : > { %2538 = vmatpush.bf16.msra.mxu2 %v7323_v21  ;;  %v7379_v38 = vor.u32 %v10473_v32, %v7378_v31  ;;  %v10439_v39 = vld [vmem:[%s11306_s27 + $0xc4] sm:$0xf0]  ;;  %v7306_v40 = vld [vmem:[%s11306_s27 + $0x140] sm:$0xf]  ;;  %v7170_v47 = vld [vmem:[%s11306_s27 + $0x30] sm:$0xf] }
  0x18   : > { %2551 = vmatpush.bf16.msra.mxu3 %v7387_v25  ;;  %v10455_v41 = vld [vmem:[%s11306_s27 + $0x144] sm:$0xf0]  ;;  %v7370_v42 = vld [vmem:[%s11306_s27 + $0x1c0] sm:$0xf]  ;;  %v7243_v45 = vor.u32 %v10439_v39, %v7242_v37  ;;  %v10421_v48 = vld [vmem:[%s11306_s27 + $0x34] sm:$0xf0] }
  0x19   : > { %v10471_v43 = vld [vmem:[%s11306_s27 + $0x1c4] sm:$0xf0]  ;;  %2513 = vmatpush.bf16.msra.mxu0 %v7187_v29  ;;  %v7307_v46 = vor.u32 %v10455_v41, %v7306_v40  ;;  %v7234_v49 = vld [vmem:[%s11306_s27 + $0xb0] sm:$0xf]  ;;  %v10437_v51 = vld [vmem:[%s11306_s27 + $0xb4] sm:$0xf0]  ;;  %v7171_v56 = vor.u32 %v10421_v48, %v7170_v47 }
  0x1a   : > { %2526 = vmatpush.bf16.msra.mxu1 %v7251_v33  ;;  %v7371_v50 = vor.u32 %v10471_v43, %v7370_v42  ;;  %v7298_v52 = vld [vmem:[%s11306_s27 + $0x130] sm:$0xf]  ;;  %v10453_v53 = vld [vmem:[%s11306_s27 + $0x134] sm:$0xf0]  ;;  %v7235_v57 = vor.u32 %v10437_v51, %v7234_v49  ;;  %v7162_v59 = vld [vmem:[%s11306_s27 + $0x20] sm:$0xf] }
  0x1b   : > { %2539 = vmatpush.bf16.msra.mxu2 %v7315_v34  ;;  %v7362_v54 = vld [vmem:[%s11306_s27 + $0x1b0] sm:$0xf]  ;;  %v10469_v55 = vld [vmem:[%s11306_s27 + $0x1b4] sm:$0xf0]  ;;  %v7299_v58 = vor.u32 %v10453_v53, %v7298_v52  ;;  %v10419_v60 = vld [vmem:[%s11306_s27 + $0x24] sm:$0xf0] }
  0x1c   : > { %2552 = vmatpush.bf16.msra.mxu3 %v7379_v38  ;;  %v7226_v61 = vld [vmem:[%s11306_s27 + $0xa0] sm:$0xf]  ;;  %v7363_v62 = vor.u32 %v10469_v55, %v7362_v54  ;;  %v10435_v63 = vld [vmem:[%s11306_s27 + $0xa4] sm:$0xf0]  ;;  %v7163_v4 = vor.u32 %v10419_v60, %v7162_v59  ;;  %v7154_v7 = vld [vmem:[%s11306_s27 + $0x10] sm:$0xf] }
  0x1d   : > { %2514 = vmatpush.bf16.msra.mxu0 %v7179_v44  ;;  %v7290_v0 = vld [vmem:[%s11306_s27 + $0x120] sm:$0xf]  ;;  %v10451_v1 = vld [vmem:[%s11306_s27 + $0x124] sm:$0xf0]  ;;  %v7227_v5 = vor.u32 %v10435_v63, %v7226_v61  ;;  %v10417_v8 = vld [vmem:[%s11306_s27 + $0x14] sm:$0xf0] }
  0x1e   : > { %2527 = vmatpush.bf16.msra.mxu1 %v7243_v45  ;;  %v7354_v2 = vld [vmem:[%s11306_s27 + $0x1a0] sm:$0xf]  ;;  %v10467_v3 = vld [vmem:[%s11306_s27 + $0x1a4] sm:$0xf0]  ;;  %v7291_v6 = vor.u32 %v10451_v1, %v7290_v0  ;;  %v7218_v9 = vld [vmem:[%s11306_s27 + $0x90] sm:$0xf]  ;;  %v7155_v16 = vor.u32 %v10417_v8, %v7154_v7 }
  0x1f   : > { %2540 = vmatpush.bf16.msra.mxu2 %v7307_v46  ;;  %v7355_v10 = vor.u32 %v10467_v3, %v7354_v2  ;;  %v10433_v11 = vld [vmem:[%s11306_s27 + $0x94] sm:$0xf0]  ;;  %v7282_v12 = vld [vmem:[%s11306_s27 + $0x110] sm:$0xf]  ;;  %v7146_v17 = vld [vmem:[%s11306_s27] sm:$0xf] }
  0x20   : > { %2553 = vmatpush.bf16.msra.mxu3 %v7371_v50  ;;  %v10449_v13 = vld [vmem:[%s11306_s27 + $0x114] sm:$0xf0]  ;;  %v7346_v14 = vld [vmem:[%s11306_s27 + $0x190] sm:$0xf]  ;;  %v10415_v18 = vld [vmem:[%s11306_s27 + $0x4] sm:$0xf0]  ;;  %v7219_v19 = vor.u32 %v10433_v11, %v7218_v9 }
  0x21   : > { %2515 = vmatpush.bf16.msra.mxu0 %v7171_v56  ;;  %v10465_v15 = vld [vmem:[%s11306_s27 + $0x194] sm:$0xf0]  ;;  %v7283_v20 = vor.u32 %v10449_v13, %v7282_v12  ;;  %v7210_v21 = vld [vmem:[%s11306_s27 + $0x80] sm:$0xf]  ;;  %v10431_v22 = vld [vmem:[%s11306_s27 + $0x84] sm:$0xf0]  ;;  %v7147_v31 = vor.u32 %v10415_v18, %v7146_v17 }
  0x22   : > { %2528 = vmatpush.bf16.msra.mxu1 %v7235_v57  ;;  %v7274_v23 = vld [vmem:[%s11306_s27 + $0x100] sm:$0xf]  ;;  %v7347_v24 = vor.u32 %v10465_v15, %v7346_v14  ;;  %v10447_v25 = vld [vmem:[%s11306_s27 + $0x104] sm:$0xf0]  ;;  %v7458_v28 = vld [vmem:[%s11306_s27 + $0x270] sm:$0xf]  ;;  %v7211_v35 = vor.u32 %v10431_v22, %v7210_v21 }
  0x23   : > { %2541 = vmatpush.bf16.msra.mxu2 %v7299_v58  ;;  %v7338_v26 = vld [vmem:[%s11306_s27 + $0x180] sm:$0xf]  ;;  %v10463_v27 = vld [vmem:[%s11306_s27 + $0x184] sm:$0xf0]  ;;  %v10493_v29 = vld [vmem:[%s11306_s27 + $0x274] sm:$0xf0]  ;;  %v7275_v36 = vor.u32 %v10447_v25, %v7274_v23 }
  0x24   : > { %2554 = vmatpush.bf16.msra.mxu3 %v7363_v62  ;;  %v7522_v30 = vld [vmem:[%s11306_s27 + $0x2f0] sm:$0xf]  ;;  %v10509_v32 = vld [vmem:[%s11306_s27 + $0x2f4] sm:$0xf0]  ;;  %v7339_v39 = vor.u32 %v10463_v27, %v7338_v26  ;;  %v7459_v40 = vor.u32 %v10493_v29, %v7458_v28  ;;  %v7450_v43 = vld [vmem:[%s11306_s27 + $0x260] sm:$0xf] }
  0x25   : > { %2516 = vmatpush.bf16.msra.mxu0 %v7163_v4  ;;  %v7586_v33 = vld [vmem:[%s11306_s27 + $0x370] sm:$0xf]  ;;  %v10525_v34 = vld [vmem:[%s11306_s27 + $0x374] sm:$0xf0]  ;;  %v7523_v41 = vor.u32 %v10509_v32, %v7522_v30  ;;  %v10491_v44 = vld [vmem:[%s11306_s27 + $0x264] sm:$0xf0] }
  0x26   : > { %2529 = vmatpush.bf16.msra.mxu1 %v7227_v5  ;;  %v7650_v37 = vld [vmem:[%s11306_s27 + $0x3f0] sm:$0xf]  ;;  %v10541_v38 = vld [vmem:[%s11306_s27 + $0x3f4] sm:$0xf0]  ;;  %v7587_v42 = vor.u32 %v10525_v34, %v7586_v33  ;;  %v7514_v45 = vld [vmem:[%s11306_s27 + $0x2e0] sm:$0xf]  ;;  %v7451_v52 = vor.u32 %v10491_v44, %v7450_v43 }
  0x27   : > { %2542 = vmatpush.bf16.msra.mxu2 %v7291_v6  ;;  %v7651_v46 = vor.u32 %v10541_v38, %v7650_v37  ;;  %v10507_v47 = vld [vmem:[%s11306_s27 + $0x2e4] sm:$0xf0]  ;;  %v7578_v48 = vld [vmem:[%s11306_s27 + $0x360] sm:$0xf]  ;;  %v7442_v53 = vld [vmem:[%s11306_s27 + $0x250] sm:$0xf] }
  0x28   : > { %2555 = vmatpush.bf16.msra.mxu3 %v7355_v10  ;;  %v10523_v49 = vld [vmem:[%s11306_s27 + $0x364] sm:$0xf0]  ;;  %v7642_v50 = vld [vmem:[%s11306_s27 + $0x3e0] sm:$0xf]  ;;  %v7515_v54 = vor.u32 %v10507_v47, %v7514_v45  ;;  %v10489_v56 = vld [vmem:[%s11306_s27 + $0x254] sm:$0xf0] }
  0x29   : > { %2517 = vmatpush.bf16.msra.mxu0 %v7155_v16  ;;  %v10539_v51 = vld [vmem:[%s11306_s27 + $0x3e4] sm:$0xf0]  ;;  %v7579_v55 = vor.u32 %v10523_v49, %v7578_v48  ;;  %v7506_v57 = vld [vmem:[%s11306_s27 + $0x2d0] sm:$0xf]  ;;  %v10505_v58 = vld [vmem:[%s11306_s27 + $0x2d4] sm:$0xf0]  ;;  %v7443_v0 = vor.u32 %v10489_v56, %v7442_v53 }
  0x2a   : > { %2530 = vmatpush.bf16.msra.mxu1 %v7219_v19  ;;  %v7643_v59 = vor.u32 %v10539_v51, %v7642_v50  ;;  %v7570_v60 = vld [vmem:[%s11306_s27 + $0x350] sm:$0xf]  ;;  %v10521_v61 = vld [vmem:[%s11306_s27 + $0x354] sm:$0xf0]  ;;  %v7507_v1 = vor.u32 %v10505_v58, %v7506_v57  ;;  %v366_v2 = vld [vmem:[%s11396_s7 + $0x8] sm:$0xff]  ;;  %s7138_s8 = sshll.u32 %s13296_s23, 1 }
  0x2b   : > { %2543 = vmatpush.bf16.msra.mxu2 %v7283_v20  ;;  %v7634_v62 = vld [vmem:[%s11306_s27 + $0x3d0] sm:$0xf]  ;;  %v10537_v63 = vld [vmem:[%s11306_s27 + $0x3d4] sm:$0xf0]  ;;  %v365_v3 = vld [vmem:[%s11396_s7] sm:$0xff]  ;;  %v7571_v4 = vor.u32 %v10521_v61, %v7570_v60  ;;  %v1185_v8 = vunpack.c.l.b16 %v366_v2  ;;  %v1186_v10 = vunpack.c.h.b16 %v366_v2  ;;  %s11730_s11 = scalar_lea.vmem %s13290_s2, %s7138_s8  ;;  %s10413_s12 = sshll.u32 %s13296_s23, 4 }
  0x2c   : > { %2556 = vmatpush.bf16.msra.mxu3 %v7347_v24  ;;  %v7434_v5 = vld [vmem:[%s11306_s27 + $0x240] sm:$0xf]  ;;  %v10487_v6 = vld [vmem:[%s11306_s27 + $0x244] sm:$0xf0]  ;;  %v1183_v9 = vunpack.c.l.b16 %v365_v3  ;;  %v7635_v11 = vor.u32 %v10537_v63, %v7634_v62  ;;  %v1184_v15 = vunpack.c.h.b16 %v365_v3  ;;  %v7426_v25 = vld [vmem:[%s11306_s27 + $0x230] sm:$0xf]  ;;  %s12674_s15 = scalar_lea.vmem %s13294_s6, %s10413_s12 }
  0x2d   : > { %2518 = vmatpush.bf16.msra.mxu0 %v7147_v31  ;;  %v7498_v7 = vld [vmem:[%s11306_s27 + $0x2c0] sm:$0xf]  ;;  %v10503_v12 = vld [vmem:[%s11306_s27 + $0x2c4] sm:$0xf0]  ;;  %v11412_v18 = vpack.c.b16 %v1185_v8, %v1185_v8  ;;  %v11416_v20 = vpack.c.b16 %v1186_v10, %v1186_v10  ;;  %v7435_v21 = vor.u32 %v10487_v6, %v7434_v5  ;;  %v10485_v26 = vld [vmem:[%s11306_s27 + $0x234] sm:$0xf0] }
  0x2e   : > { %2531 = vmatpush.bf16.msra.mxu1 %v7211_v35  ;;  %v7562_v13 = vld [vmem:[%s11306_s27 + $0x340] sm:$0xf]  ;;  %v10519_v14 = vld [vmem:[%s11306_s27 + $0x344] sm:$0xf0]  ;;  %v11414_v19 = vpack.c.b16 %v1183_v9, %v1183_v9  ;;  %v11418_v22 = vpack.c.b16 %v1184_v15, %v1184_v15  ;;  %v7499_v23 = vor.u32 %v10503_v12, %v7498_v7  ;;  %v7490_v27 = vld [vmem:[%s11306_s27 + $0x2b0] sm:$0xf]  ;;  %v7427_v34 = vor.u32 %v10485_v26, %v7426_v25 }
  0x2f   : > { %2544 = vmatpush.bf16.msra.mxu2 %v7275_v36  ;;  %v7626_v16 = vld [vmem:[%s11306_s27 + $0x3c0] sm:$0xf]  ;;  %v10535_v17 = vld [vmem:[%s11306_s27 + $0x3c4] sm:$0xf0]  ;;  %v7563_v24 = vor.u32 %v10519_v14, %v7562_v13  ;;  %v10501_v29 = vld [vmem:[%s11306_s27 + $0x2b4] sm:$0xf0] }
  0x30   : > { %2557 = vmatpush.bf16.msra.mxu3 %v7339_v39  ;;  %v7627_v28 = vor.u32 %v10535_v17, %v7626_v16  ;;  %v7554_v30 = vld [vmem:[%s11306_s27 + $0x330] sm:$0xf]  ;;  %v10517_v31 = vld [vmem:[%s11306_s27 + $0x334] sm:$0xf0]  ;;  %2519 = vmatmul.bf16.vlgmr.msra.gmra.mxu0 %v11414_v19  ;;  %v7491_v35 = vor.u32 %v10501_v29, %v7490_v27  ;;  %v7418_v37 = vld [vmem:[%s11306_s27 + $0x220] sm:$0xf] }
  0x31   : > { %2563 = vmatpush.bf16.msrb.mxu0 %v7459_v40  ;;  %v7618_v32 = vld [vmem:[%s11306_s27 + $0x3b0] sm:$0xf]  ;;  %v10533_v33 = vld [vmem:[%s11306_s27 + $0x3b4] sm:$0xf0]  ;;  %2532 = vmatmul.bf16.vlgmr.msra.gmra.mxu1 %v11418_v22  ;;  %v7555_v36 = vor.u32 %v10517_v31, %v7554_v30  ;;  %v10483_v38 = vld [vmem:[%s11306_s27 + $0x224] sm:$0xf0] }
  0x32   : > { %2576 = vmatpush.bf16.msrb.mxu1 %v7523_v41  ;;  %2545 = vmatmul.bf16.vlgmr.msra.gmra.mxu2 %v11412_v18  ;;  %v7482_v39 = vld [vmem:[%s11306_s27 + $0x2a0] sm:$0xf]  ;;  %v7619_v40 = vor.u32 %v10533_v33, %v7618_v32  ;;  %v10499_v41 = vld [vmem:[%s11306_s27 + $0x2a4] sm:$0xf0]  ;;  %v7410_v49 = vld [vmem:[%s11306_s27 + $0x210] sm:$0xf] }
  0x33   : > { %2589 = vmatpush.bf16.msrb.mxu2 %v7587_v42  ;;  %2558 = vmatmul.bf16.vlgmr.msra.gmra.mxu3 %v11416_v20  ;;  %v7546_v42 = vld [vmem:[%s11306_s27 + $0x320] sm:$0xf]  ;;  %v10515_v43 = vld [vmem:[%s11306_s27 + $0x324] sm:$0xf0]  ;;  %v7483_v47 = vor.u32 %v10499_v41, %v7482_v39  ;;  %v10481_v50 = vld [vmem:[%s11306_s27 + $0x214] sm:$0xf0] }
  0x34   : > { %2602 = vmatpush.bf16.msrb.mxu3 %v7651_v46  ;;  %v7610_v44 = vld [vmem:[%s11306_s27 + $0x3a0] sm:$0xf]  ;;  %v10531_v45 = vld [vmem:[%s11306_s27 + $0x3a4] sm:$0xf0]  ;;  %v7419_v46 = vor.u32 %v10483_v38, %v7418_v37  ;;  %v7547_v48 = vor.u32 %v10515_v43, %v7546_v42  ;;  %v7474_v51 = vld [vmem:[%s11306_s27 + $0x290] sm:$0xf] }
  0x35   : > { %2564 = vmatpush.bf16.msrb.mxu0 %v7451_v52  ;;  %v7611_v52 = vor.u32 %v10531_v45, %v7610_v44  ;;  %v10497_v53 = vld [vmem:[%s11306_s27 + $0x294] sm:$0xf0]  ;;  %v7602_v56 = vld [vmem:[%s11306_s27 + $0x390] sm:$0xf]  ;;  %v7402_v58 = vld [vmem:[%s11306_s27 + $0x200] sm:$0xf] }
  0x36   : > { %2577 = vmatpush.bf16.msrb.mxu1 %v7515_v54  ;;  %v7538_v54 = vld [vmem:[%s11306_s27 + $0x310] sm:$0xf]  ;;  %v10529_v57 = vld [vmem:[%s11306_s27 + $0x394] sm:$0xf0]  ;;  %v10479_v60 = vld [vmem:[%s11306_s27 + $0x204] sm:$0xf0]  ;;  %v7475_v63 = vor.u32 %v10497_v53, %v7474_v51 }
  0x37   : > { %2590 = vmatpush.bf16.msrb.mxu2 %v7579_v55  ;;  %v10513_v55 = vld [vmem:[%s11306_s27 + $0x314] sm:$0xf0]  ;;  %v7466_v61 = vld [vmem:[%s11306_s27 + $0x280] sm:$0xf]  ;;  %v10495_v62 = vld [vmem:[%s11306_s27 + $0x284] sm:$0xf0] }
  0x38   : > { %2603 = vmatpush.bf16.msrb.mxu3 %v7643_v59  ;;  %v7411_v59 = vor.u32 %v10481_v50, %v7410_v49  ;;  %v10511_v2 = vld [vmem:[%s11306_s27 + $0x304] sm:$0xf0]  ;;  %v368_v3 = vld [vmem:[%s11396_s7 + $0x18] sm:$0xff]  ;;  %v7594_v5 = vld [vmem:[%s11306_s27 + $0x380] sm:$0xf]  ;;  %v7467_v16 = vor.u32 %v10495_v62, %v7466_v61  ;;  %s10412_s16 = sshll.u32 %s13296_s23, 7 }
  0x39   : > { %2565 = vmatpush.bf16.msrb.mxu0 %v7443_v0  ;;  %v7539_v0 = vor.u32 %v10513_v55, %v7538_v54  ;;  %v10527_v6 = vld [vmem:[%s11306_s27 + $0x384] sm:$0xf0]  ;;  %v367_v7 = vld [vmem:[%s11396_s7 + $0x10] sm:$0xff]  ;;  %v10557_v9 = vld [vmem:[%s11306_s27 + $0x474] sm:$0xf0]  ;;  %v1189_v15 = vunpack.c.l.b16 %v368_v3  ;;  %v1190_v25 = vunpack.c.h.b16 %v368_v3  ;;  %s13200_s19 = scalar_lea.vmem %s13291_s3, %s10412_s16  ;;  %s7141_s25 = sshll.u32 %s13296_s23, 3 }
  0x3a   : > { %2578 = vmatpush.bf16.msrb.mxu1 %v7507_v1  ;;  %v7530_v1 = vld [vmem:[%s11306_s27 + $0x300] sm:$0xf]  ;;  %v7714_v8 = vld [vmem:[%s11306_s27 + $0x470] sm:$0xf]  ;;  %v10573_v12 = vld [vmem:[%s11306_s27 + $0x4f4] sm:$0xf0]  ;;  %v7595_v26 = vor.u32 %v10527_v6, %v7594_v5  ;;  %s356_s28 = scalar_lea.vmem %s13293_s5, %s7141_s25 }
  0x3b   : > { %2591 = vmatpush.bf16.msrb.mxu2 %v7571_v4  ;;  %v7603_v4 = vor.u32 %v10529_v57, %v7602_v56  ;;  %v7778_v10 = vld [vmem:[%s11306_s27 + $0x4f0] sm:$0xf]  ;;  %v10589_v14 = vld [vmem:[%s11306_s27 + $0x574] sm:$0xf0]  ;;  %v7531_v17 = vor.u32 %v10511_v2, %v7530_v1  ;;  %v7715_v27 = vor.u32 %v10557_v9, %v7714_v8  ;;  %v7706_v31 = vld [vmem:[%s11306_s27 + $0x460] sm:$0xf]  ;;  %v11472_v38 = vpack.c.b16 %v1189_v15, %v1189_v15 }
  0x3c   : > { %2604 = vmatpush.bf16.msrb.mxu3 %v7635_v11  ;;  %v7403_v11 = vor.u32 %v10479_v60, %v7402_v58  ;;  %v7842_v13 = vld [vmem:[%s11306_s27 + $0x570] sm:$0xf]  ;;  %v7779_v29 = vor.u32 %v10573_v12, %v7778_v10  ;;  %v10555_v32 = vld [vmem:[%s11306_s27 + $0x464] sm:$0xf0]  ;;  %v7770_v33 = vld [vmem:[%s11306_s27 + $0x4e0] sm:$0xf]  ;;  %v11478_v42 = vpack.c.b16 %v1190_v25, %v1190_v25 }
  0x3d   : > { %2566 = vmatpush.bf16.msrb.mxu0 %v7435_v21  ;;  %v7906_v21 = vld [vmem:[%s11306_s27 + $0x5f0] sm:$0xf]  ;;  %v7843_v30 = vor.u32 %v10589_v14, %v7842_v13  ;;  %v10587_v37 = vld [vmem:[%s11306_s27 + $0x564] sm:$0xf0]  ;;  %v7898_v39 = vld [vmem:[%s11306_s27 + $0x5e0] sm:$0xf]  ;;  %v7707_v43 = vor.u32 %v10555_v32, %v7706_v31 }
  0x3e   : > { %2579 = vmatpush.bf16.msrb.mxu1 %v7499_v23  ;;  %v10605_v23 = vld [vmem:[%s11306_s27 + $0x5f4] sm:$0xf0]  ;;  %v7762_v49 = vld [vmem:[%s11306_s27 + $0x4d0] sm:$0xf]  ;;  %v10551_v60 = vld [vmem:[%s11306_s27 + $0x444] sm:$0xf0] }
  0x3f   : > { %2592 = vmatpush.bf16.msrb.mxu2 %v7563_v24  ;;  %v1187_v24 = vunpack.c.l.b16 %v367_v7  ;;  %v10569_v51 = vld [vmem:[%s11306_s27 + $0x4d4] sm:$0xf0]  ;;  %v7890_v54 = vld [vmem:[%s11306_s27 + $0x5d0] sm:$0xf]  ;;  %v7754_v61 = vld [vmem:[%s11306_s27 + $0x4c0] sm:$0xf] }
  0x40   : > { %2605 = vmatpush.bf16.msrb.mxu3 %v7627_v28  ;;  %v1188_v28 = vunpack.c.h.b16 %v367_v7  ;;  %v10585_v53 = vld [vmem:[%s11306_s27 + $0x554] sm:$0xf0]  ;;  %v7763_v57 = vor.u32 %v10569_v51, %v7762_v49  ;;  %v10583_v1 = vld [vmem:[%s11306_s27 + $0x544] sm:$0xf0]  ;;  %v7882_v2 = vld [vmem:[%s11306_s27 + $0x5c0] sm:$0xf] }
  0x41   : > { %2567 = vmatpush.bf16.msrb.mxu0 %v7427_v34  ;;  %v7907_v34 = vor.u32 %v10605_v23, %v7906_v21  ;;  %v11476_v41 = vpack.c.b16 %v1187_v24, %v1187_v24  ;;  %v10601_v55 = vld [vmem:[%s11306_s27 + $0x5d4] sm:$0xf0]  ;;  %v10599_v3 = vld [vmem:[%s11306_s27 + $0x5c4] sm:$0xf0]  ;;  %v7682_v7 = vld [vmem:[%s11306_s27 + $0x430] sm:$0xf] }
  0x42   : > { %2580 = vmatpush.bf16.msrb.mxu1 %v7491_v35  ;;  %v10571_v35 = vld [vmem:[%s11306_s27 + $0x4e4] sm:$0xf0]  ;;  %v11480_v44 = vpack.c.b16 %v1188_v28, %v1188_v28  ;;  %v7891_v62 = vor.u32 %v10601_v55, %v7890_v54  ;;  %v10549_v8 = vld [vmem:[%s11306_s27 + $0x434] sm:$0xf0]  ;;  %v7746_v9 = vld [vmem:[%s11306_s27 + $0x4b0] sm:$0xf]  ;;  %v7883_v10 = vor.u32 %v10599_v3, %v7882_v2 }
  0x43   : > { %2593 = vmatpush.bf16.msrb.mxu2 %v7555_v36  ;;  %v7834_v36 = vld [vmem:[%s11306_s27 + $0x560] sm:$0xf]  ;;  %v7771_v45 = vor.u32 %v10571_v35, %v7770_v33  ;;  %v7810_v12 = vld [vmem:[%s11306_s27 + $0x530] sm:$0xf]  ;;  %v10581_v13 = vld [vmem:[%s11306_s27 + $0x534] sm:$0xf0] }
  0x44   : > { %2606 = vmatpush.bf16.msrb.mxu3 %v7619_v40  ;;  %v10603_v40 = vld [vmem:[%s11306_s27 + $0x5e4] sm:$0xf0]  ;;  %v7874_v14 = vld [vmem:[%s11306_s27 + $0x5b0] sm:$0xf]  ;;  %v10597_v15 = vld [vmem:[%s11306_s27 + $0x5b4] sm:$0xf0]  ;;  %v7811_v21 = vor.u32 %v10581_v13, %v7810_v12 }
  0x45   : > { %2568 = vmatpush.bf16.msrb.mxu0 %v7419_v46  ;;  %v7835_v46 = vor.u32 %v10587_v37, %v7834_v36  ;;  %v7899_v50 = vor.u32 %v10603_v40, %v7898_v39  ;;  %v7674_v23 = vld [vmem:[%s11306_s27 + $0x420] sm:$0xf]  ;;  %v10547_v24 = vld [vmem:[%s11306_s27 + $0x424] sm:$0xf0]  ;;  %v7666_v35 = vld [vmem:[%s11306_s27 + $0x410] sm:$0xf] }
  0x46   : > { %2581 = vmatpush.bf16.msrb.mxu1 %v7483_v47  ;;  %v7698_v47 = vld [vmem:[%s11306_s27 + $0x450] sm:$0xf]  ;;  %v7738_v25 = vld [vmem:[%s11306_s27 + $0x4a0] sm:$0xf]  ;;  %v10595_v31 = vld [vmem:[%s11306_s27 + $0x5a4] sm:$0xf0]  ;;  %v7675_v32 = vor.u32 %v10547_v24, %v7674_v23 }
  0x47   : > { %2594 = vmatpush.bf16.msrb.mxu2 %v7547_v48  ;;  %v10553_v48 = vld [vmem:[%s11306_s27 + $0x454] sm:$0xf0]  ;;  %v7802_v28 = vld [vmem:[%s11306_s27 + $0x520] sm:$0xf]  ;;  %v7730_v37 = vld [vmem:[%s11306_s27 + $0x490] sm:$0xf] }
  0x48   : > { %2607 = vmatpush.bf16.msrb.mxu3 %v7611_v52  ;;  %v7826_v52 = vld [vmem:[%s11306_s27 + $0x550] sm:$0xf]  ;;  %v7699_v56 = vor.u32 %v10553_v48, %v7698_v47  ;;  %v10545_v36 = vld [vmem:[%s11306_s27 + $0x414] sm:$0xf0]  ;;  %v7658_v48 = vld [vmem:[%s11306_s27 + $0x400] sm:$0xf] }
  0x49   : > { %2569 = vmatpush.bf16.msrb.mxu0 %v7411_v59  ;;  %v7827_v58 = vor.u32 %v10585_v53, %v7826_v52  ;;  %v7690_v59 = vld [vmem:[%s11306_s27 + $0x440] sm:$0xf]  ;;  %v10561_v40 = vld [vmem:[%s11306_s27 + $0x494] sm:$0xf0]  ;;  %v7667_v49 = vor.u32 %v10545_v36, %v7666_v35  ;;  %v10559_v52 = vld [vmem:[%s11306_s27 + $0x484] sm:$0xf0] }
  0x4a   : > { %2582 = vmatpush.bf16.msrb.mxu1 %v7475_v63  ;;  %v10567_v63 = vld [vmem:[%s11306_s27 + $0x4c4] sm:$0xf0]  ;;  %v10593_v47 = vld [vmem:[%s11306_s27 + $0x594] sm:$0xf0]  ;;  %v7722_v51 = vld [vmem:[%s11306_s27 + $0x480] sm:$0xf]  ;;  %v7731_v53 = vor.u32 %v10561_v40, %v7730_v37 }
  0x4b   : > { %2595 = vmatpush.bf16.msrb.mxu2 %v7539_v0  ;;  %v7818_v0 = vld [vmem:[%s11306_s27 + $0x540] sm:$0xf]  ;;  %v7755_v5 = vor.u32 %v10567_v63, %v7754_v61  ;;  %v370_v61 = vld [vmem:[%s11396_s7 + $0x28] sm:$0xff]  ;;  %v10621_v63 = vld [vmem:[%s11306_s27 + $0x674] sm:$0xf0] }
  0x4c   : > { %2608 = vmatpush.bf16.msrb.mxu3 %v7603_v4  ;;  %v7691_v4 = vor.u32 %v10551_v60, %v7690_v59  ;;  %v7819_v6 = vor.u32 %v10583_v1, %v7818_v0  ;;  %v7786_v55 = vld [vmem:[%s11306_s27 + $0x500] sm:$0xf]  ;;  %v10591_v60 = vld [vmem:[%s11306_s27 + $0x584] sm:$0xf0]  ;;  %v8034_v0 = vld [vmem:[%s11306_s27 + $0x6f0] sm:$0xf] }
  0x4d   : > { %2570 = vmatpush.bf16.msrb.mxu0 %v7403_v11  ;;  %v10565_v11 = vld [vmem:[%s11306_s27 + $0x4b4] sm:$0xf0]  ;;  %v7850_v59 = vld [vmem:[%s11306_s27 + $0x580] sm:$0xf]  ;;  %v8098_v3 = vld [vmem:[%s11306_s27 + $0x770] sm:$0xf] }
  0x4e   : > { %2583 = vmatpush.bf16.msrb.mxu1 %v7467_v16  ;;  %v7683_v16 = vor.u32 %v10549_v8, %v7682_v7  ;;  %v10637_v2 = vld [vmem:[%s11306_s27 + $0x6f4] sm:$0xf0]  ;;  %v8162_v8 = vld [vmem:[%s11306_s27 + $0x7f0] sm:$0xf]  ;;  %v7851_v12 = vor.u32 %v10591_v60, %v7850_v59  ;;  %v8026_v23 = vld [vmem:[%s11306_s27 + $0x6e0] sm:$0xf] }
  0x4f   : > { %2596 = vmatpush.bf16.msrb.mxu2 %v7531_v17  ;;  %v7747_v17 = vor.u32 %v10565_v11, %v7746_v9  ;;  %v10669_v9 = vld [vmem:[%s11306_s27 + $0x7f4] sm:$0xf0]  ;;  %v7954_v37 = vld [vmem:[%s11306_s27 + $0x650] sm:$0xf]  ;;  %v10647_v59 = vld [vmem:[%s11306_s27 + $0x744] sm:$0xf0] }
  0x50   : > { %2609 = vmatpush.bf16.msrb.mxu3 %v7595_v26  ;;  %2571 = vmatmul.bf16.vlgmr.msrb.gmra.mxu0 %v11476_v41  ;;  %v7875_v26 = vor.u32 %v10597_v15, %v7874_v14  ;;  %v1194_v14 = vunpack.c.h.b16 %v370_v61  ;;  %v8035_v15 = vor.u32 %v10637_v2, %v8034_v0  ;;  %v8163_v24 = vor.u32 %v10669_v9, %v8162_v8  ;;  %v8018_v40 = vld [vmem:[%s11306_s27 + $0x6d0] sm:$0xf]  ;;  %v8138_v60 = vld [vmem:[%s11306_s27 + $0x7c0] sm:$0xf]  ;;  %v10613_v2 = vld [vmem:[%s11306_s27 + $0x634] sm:$0xf0] }
  0x51   : > { %2615 = vmatpush.bf16.msra.mxu0 %v7715_v27  ;;  %2584 = vmatmul.bf16.vlgmr.msrb.gmra.mxu1 %v11480_v44  ;;  %v10563_v27 = vld [vmem:[%s11306_s27 + $0x4a4] sm:$0xf0]  ;;  %v8130_v8 = vld [vmem:[%s11306_s27 + $0x7b0] sm:$0xf]  ;;  %v10661_v9 = vld [vmem:[%s11306_s27 + $0x7b4] sm:$0xf0] }
  0x52   : > { %2628 = vmatpush.bf16.msra.mxu1 %v7779_v29  ;;  %2597 = vmatmul.bf16.vlgmr.msrb.gmra.mxu2 %v11472_v38  ;;  %v10579_v29 = vld [vmem:[%s11306_s27 + $0x524] sm:$0xf0]  ;;  %v7739_v33 = vor.u32 %v10563_v27, %v7738_v25  ;;  %v8090_v27 = vld [vmem:[%s11306_s27 + $0x760] sm:$0xf] }
  0x53   : > { %2641 = vmatpush.bf16.msra.mxu2 %v7843_v30  ;;  %2610 = vmatmul.bf16.vlgmr.msrb.gmra.mxu3 %v11478_v42  ;;  %v7866_v30 = vld [vmem:[%s11306_s27 + $0x5a0] sm:$0xf] }
  0x54   : > { %2654 = vmatpush.bf16.msra.mxu3 %v7907_v34  ;;  %v7803_v34 = vor.u32 %v10579_v29, %v7802_v28  ;;  %v7867_v39 = vor.u32 %v10595_v31, %v7866_v30  ;;  %v10651_v28 = vld [vmem:[%s11306_s27 + $0x764] sm:$0xf0]  ;;  %v8154_v31 = vld [vmem:[%s11306_s27 + $0x7e0] sm:$0xf] }
  0x55   : > { %2616 = vmatpush.bf16.msra.mxu0 %v7707_v43  ;;  %v7794_v43 = vld [vmem:[%s11306_s27 + $0x510] sm:$0xf]  ;;  %v8091_v36 = vor.u32 %v10651_v28, %v8090_v27 }
  0x56   : > { %2629 = vmatpush.bf16.msra.mxu1 %v7771_v45  ;;  %v10577_v45 = vld [vmem:[%s11306_s27 + $0x514] sm:$0xf0] }
  0x57   : > { %2642 = vmatpush.bf16.msra.mxu2 %v7835_v46  ;;  %v7858_v46 = vld [vmem:[%s11306_s27 + $0x590] sm:$0xf]  ;;  %v7795_v54 = vor.u32 %v10577_v45, %v7794_v43  ;;  %v10633_v45 = vld [vmem:[%s11306_s27 + $0x6d4] sm:$0xf0] }
  0x58   : > { %2655 = vmatpush.bf16.msra.mxu3 %v7899_v50  ;;  %v10543_v50 = vld [vmem:[%s11306_s27 + $0x404] sm:$0xf0] }
  0x59   : > { %2617 = vmatpush.bf16.msra.mxu0 %v7699_v56  ;;  %v10575_v56 = vld [vmem:[%s11306_s27 + $0x504] sm:$0xf0]  ;;  %v7659_v1 = vor.u32 %v10543_v50, %v7658_v48  ;;  %v8146_v48 = vld [vmem:[%s11306_s27 + $0x7d0] sm:$0xf] }
  0x5a   : > { %2630 = vmatpush.bf16.msra.mxu1 %v7763_v57  ;;  %v369_v57 = vld [vmem:[%s11396_s7 + $0x20] sm:$0xff]  ;;  %v7787_v7 = vor.u32 %v10575_v56, %v7786_v55 }
  0x5b   : > { %2643 = vmatpush.bf16.msra.mxu2 %v7827_v58  ;;  %v7859_v58 = vor.u32 %v10593_v47, %v7858_v46  ;;  %v1192_v11 = vunpack.c.h.b16 %v369_v57  ;;  %v8082_v46 = vld [vmem:[%s11306_s27 + $0x750] sm:$0xf]  ;;  %v10649_v47 = vld [vmem:[%s11306_s27 + $0x754] sm:$0xf0]  ;;  %v8010_v55 = vld [vmem:[%s11306_s27 + $0x6c0] sm:$0xf] }
  0x5c   : > { %2656 = vmatpush.bf16.msra.mxu3 %v7891_v62  ;;  %v7970_v62 = vld [vmem:[%s11306_s27 + $0x670] sm:$0xf] }
  0x5d   : > { %2618 = vmatpush.bf16.msra.mxu0 %v7691_v4  ;;  %v10653_v4 = vld [vmem:[%s11306_s27 + $0x774] sm:$0xf0]  ;;  %v7971_v13 = vor.u32 %v10621_v63, %v7970_v62  ;;  %v11554_v30 = vpack.c.b16 %v1192_v11, %v1192_v11 }
  0x5e   : > { %2631 = vmatpush.bf16.msra.mxu1 %v7755_v5  ;;  %v1191_v5 = vunpack.c.l.b16 %v369_v57  ;;  %v10631_v57 = vld [vmem:[%s11306_s27 + $0x6c4] sm:$0xf0] }
  0x5f   : > { %2644 = vmatpush.bf16.msra.mxu2 %v7819_v6  ;;  %v7723_v6 = vor.u32 %v10559_v52, %v7722_v51  ;;  %v8019_v51 = vor.u32 %v10633_v45, %v8018_v40  ;;  %v8083_v52 = vor.u32 %v10649_v47, %v8082_v46  ;;  %v8011_v63 = vor.u32 %v10631_v57, %v8010_v55  ;;  %v10641_v40 = vld [vmem:[%s11306_s27 + $0x714] sm:$0xf0]  ;;  %v7914_v46 = vld [vmem:[%s11306_s27 + $0x600] sm:$0xf]  ;;  %v371_v55 = vld [vmem:[%s11396_s7 + $0x30] sm:$0xff] }
  0x60   : > { %2657 = vmatpush.bf16.msra.mxu3 %v7883_v10  ;;  %v1193_v10 = vunpack.c.l.b16 %v370_v61  ;;  %v11547_v25 = vpack.c.b16 %v1191_v5, %v1191_v5  ;;  %v10663_v61 = vld [vmem:[%s11306_s27 + $0x7c4] sm:$0xf0]  ;;  %v10629_v5 = vld [vmem:[%s11306_s27 + $0x6b4] sm:$0xf0]  ;;  %v8106_v57 = vld [vmem:[%s11306_s27 + $0x780] sm:$0xf] }
  0x61   : > { %2619 = vmatpush.bf16.msra.mxu0 %v7683_v16  ;;  %v8099_v16 = vor.u32 %v10653_v4, %v8098_v3  ;;  %v8002_v3 = vld [vmem:[%s11306_s27 + $0x6b0] sm:$0xf]  ;;  %v8139_v4 = vor.u32 %v10663_v61, %v8138_v60  ;;  %v10657_v45 = vld [vmem:[%s11306_s27 + $0x794] sm:$0xf0]  ;;  %v10428_v60 = vld [vmem:[%s11306_s27 + $0x74] sm:$0xf] }
  0x62   : > { %2632 = vmatpush.bf16.msra.mxu1 %v7747_v17  ;;  %v7962_v17 = vld [vmem:[%s11306_s27 + $0x660] sm:$0xf]  ;;  %v11552_v29 = vpack.c.b16 %v1193_v10, %v1193_v10  ;;  %v8003_v11 = vor.u32 %v10629_v5, %v8002_v3  ;;  %v7204_v61 = vld [vmem:[%s11306_s27 + $0x78] sm:$0xf0]  ;;  %v1195_v3 = vunpack.c.l.b16 %v371_v55 }
  0x63   : > { %2645 = vmatpush.bf16.msra.mxu2 %v7811_v21  ;;  %v10619_v21 = vld [vmem:[%s11306_s27 + $0x664] sm:$0xf0] }
  0x64   : > { %2658 = vmatpush.bf16.msra.mxu3 %v7875_v26  ;;  %v10635_v26 = vld [vmem:[%s11306_s27 + $0x6e4] sm:$0xf0] }
  0x65   : > { %2620 = vmatpush.bf16.msra.mxu0 %v7675_v32  ;;  %v10667_v32 = vld [vmem:[%s11306_s27 + $0x7e4] sm:$0xf0]  ;;  %v8027_v35 = vor.u32 %v10635_v26, %v8026_v23 }
  0x66   : > { %2633 = vmatpush.bf16.msra.mxu1 %v7739_v33  ;;  %v11558_v33 = vpack.c.b16 %v1194_v14, %v1194_v14  ;;  %v8155_v43 = vor.u32 %v10667_v32, %v8154_v31  ;;  %v10611_v14 = vld [vmem:[%s11306_s27 + $0x624] sm:$0xf0]  ;;  %v7922_v32 = vld [vmem:[%s11306_s27 + $0x610] sm:$0xf] }
  0x67   : > { %2646 = vmatpush.bf16.msra.mxu2 %v7803_v34  ;;  %v7963_v34 = vor.u32 %v10619_v21, %v7962_v17  ;;  %v10627_v17 = vld [vmem:[%s11306_s27 + $0x6a4] sm:$0xf0]  ;;  %v8058_v21 = vld [vmem:[%s11306_s27 + $0x720] sm:$0xf] }
  0x68   : > { %2659 = vmatpush.bf16.msra.mxu3 %v7867_v39  ;;  %v10617_v39 = vld [vmem:[%s11306_s27 + $0x654] sm:$0xf0]  ;;  %v10643_v23 = vld [vmem:[%s11306_s27 + $0x724] sm:$0xf0] }
  0x69   : > { %2621 = vmatpush.bf16.msra.mxu0 %v7667_v49  ;;  %v10665_v49 = vld [vmem:[%s11306_s27 + $0x7d4] sm:$0xf0]  ;;  %v7955_v50 = vor.u32 %v10617_v39, %v7954_v37  ;;  %v10659_v26 = vld [vmem:[%s11306_s27 + $0x7a4] sm:$0xf0]  ;;  %v8059_v31 = vor.u32 %v10643_v23, %v8058_v21  ;;  %v8050_v39 = vld [vmem:[%s11306_s27 + $0x710] sm:$0xf]  ;;  %v11625_v23 = vpack.c.b16 %v1195_v3, %v1195_v3 }
  0x6a   : > { %2634 = vmatpush.bf16.msra.mxu1 %v7731_v53  ;;  %v7946_v53 = vld [vmem:[%s11306_s27 + $0x640] sm:$0xf]  ;;  %v8147_v56 = vor.u32 %v10665_v49, %v8146_v48  ;;  %v10625_v37 = vld [vmem:[%s11306_s27 + $0x694] sm:$0xf0]  ;;  %v10607_v48 = vld [vmem:[%s11306_s27 + $0x604] sm:$0xf0] }
  0x6b   : > { %2647 = vmatpush.bf16.msra.mxu2 %v7795_v54  ;;  %v10615_v54 = vld [vmem:[%s11306_s27 + $0x644] sm:$0xf0]  ;;  %v7978_v49 = vld [vmem:[%s11306_s27 + $0x680] sm:$0xf]  ;;  %v10420_v3 = vld [vmem:[%s11306_s27 + $0x34] sm:$0xf] }
  0x6c   : > { %2660 = vmatpush.bf16.msra.mxu3 %v7859_v58  ;;  %v8074_v58 = vld [vmem:[%s11306_s27 + $0x740] sm:$0xf]  ;;  %v7947_v62 = vor.u32 %v10615_v54, %v7946_v53  ;;  %v10639_v54 = vld [vmem:[%s11306_s27 + $0x704] sm:$0xf0] }
  0x6d   : > { %2622 = vmatpush.bf16.msra.mxu0 %v7659_v1  ;;  %v8075_v0 = vor.u32 %v10647_v59, %v8074_v58  ;;  %v7938_v1 = vld [vmem:[%s11306_s27 + $0x630] sm:$0xf]  ;;  %v8042_v53 = vld [vmem:[%s11306_s27 + $0x700] sm:$0xf]  ;;  %v10655_v58 = vld [vmem:[%s11306_s27 + $0x784] sm:$0xf0] }
  0x6e   : > { %2635 = vmatpush.bf16.msra.mxu1 %v7723_v6  ;;  %v8066_v6 = vld [vmem:[%s11306_s27 + $0x730] sm:$0xf]  ;;  %v7939_v10 = vor.u32 %v10613_v2, %v7938_v1  ;;  %v372_v59 = vld [vmem:[%s11396_s7 + $0x38] sm:$0xff]  ;;  %v10460_v1 = vld [vmem:[%s11306_s27 + $0x174] sm:$0xf]  ;;  %v8043_v5 = vor.u32 %v10639_v54, %v8042_v53 }
  0x6f   : > { %2648 = vmatpush.bf16.msra.mxu2 %v7787_v7  ;;  %v10645_v7 = vld [vmem:[%s11306_s27 + $0x734] sm:$0xf0]  ;;  %v7332_v2 = vld [vmem:[%s11306_s27 + $0x178] sm:$0xf0] }
  0x70   : > { %2661 = vmatpush.bf16.msra.mxu3 %v7851_v12  ;;  %2623 = vmatmul.bf16.vlgmr.msra.gmra.mxu0 %v11547_v25  ;;  %v8067_v12 = vor.u32 %v10645_v7, %v8066_v6  ;;  %v10476_v6 = vld [vmem:[%s11306_s27 + $0x1f4] sm:$0xf]  ;;  %v7396_v7 = vld [vmem:[%s11306_s27 + $0x1f8] sm:$0xf0] }
  0x71   : > { %2667 = vmatpush.bf16.msrb.mxu0 %v7971_v13  ;;  %2636 = vmatmul.bf16.vlgmr.msra.gmra.mxu1 %v11554_v30  ;;  %v7930_v13 = vld [vmem:[%s11306_s27 + $0x620] sm:$0xf]  ;;  %v7399_v21 = vor.u32 %v10476_v6, %v7396_v7  ;;  %v7236_v7 = vld [vmem:[%s11306_s27 + $0xb8] sm:$0xf0] }
  0x72   : > { %2680 = vmatpush.bf16.msrb.mxu1 %v8035_v15  ;;  %2649 = vmatmul.bf16.vlgmr.msra.gmra.mxu2 %v11552_v29  ;;  %v7994_v15 = vld [vmem:[%s11306_s27 + $0x6a0] sm:$0xf]  ;;  %v7931_v27 = vor.u32 %v10611_v14, %v7930_v13  ;;  %v7335_v14 = vor.u32 %v10460_v1, %v7332_v2 }
  0x73   : > { %2693 = vmatpush.bf16.msrb.mxu2 %v8099_v16  ;;  %2662 = vmatmul.bf16.vlgmr.msra.gmra.mxu3 %v11558_v33  ;;  %v8131_v16 = vor.u32 %v10661_v9, %v8130_v8  ;;  %v7995_v28 = vor.u32 %v10627_v17, %v7994_v15  ;;  %v1197_v8 = vunpack.c.l.b16 %v372_v59  ;;  %v1196_v9 = vunpack.c.h.b16 %v371_v55  ;;  %v10426_v15 = vld [vmem:[%s11306_s27 + $0x64] sm:$0xf] }
  0x74   : > { %2706 = vmatpush.bf16.msrb.mxu3 %v8163_v24  ;;  %v8122_v24 = vld [vmem:[%s11306_s27 + $0x7a0] sm:$0xf]  ;;  %v10442_v17 = vld [vmem:[%s11306_s27 + $0xe4] sm:$0xf] }
  0x75   : > { %2668 = vmatpush.bf16.msrb.mxu0 %v7963_v34  ;;  %v10609_v34 = vld [vmem:[%s11306_s27 + $0x614] sm:$0xf0]  ;;  %v10422_v55 = vld [vmem:[%s11306_s27 + $0x44] sm:$0xf] }
  0x76   : > { %2681 = vmatpush.bf16.msrb.mxu1 %v8027_v35  ;;  %v7986_v35 = vld [vmem:[%s11306_s27 + $0x690] sm:$0xf]  ;;  %v7923_v47 = vor.u32 %v10609_v34, %v7922_v32  ;;  %v10474_v32 = vld [vmem:[%s11306_s27 + $0x1e4] sm:$0xf]  ;;  %v7388_v34 = vld [vmem:[%s11306_s27 + $0x1e8] sm:$0xf0] }
  0x77   : > { %2694 = vmatpush.bf16.msrb.mxu2 %v8091_v36  ;;  %v8123_v36 = vor.u32 %v10659_v26, %v8122_v24  ;;  %v7260_v24 = vld [vmem:[%s11306_s27 + $0xe8] sm:$0xf0]  ;;  %v10458_v26 = vld [vmem:[%s11306_s27 + $0x164] sm:$0xf] }
  0x78   : > { %2707 = vmatpush.bf16.msrb.mxu3 %v8155_v43  ;;  %v8114_v43 = vld [vmem:[%s11306_s27 + $0x790] sm:$0xf] }
  0x79   : > { %2669 = vmatpush.bf16.msrb.mxu0 %v7955_v50  ;;  %v10623_v50 = vld [vmem:[%s11306_s27 + $0x684] sm:$0xf0] }
  0x7a   : > { %2682 = vmatpush.bf16.msrb.mxu1 %v8019_v51  ;;  %v7987_v51 = vor.u32 %v10625_v37, %v7986_v35  ;;  %v7263_v37 = vor.u32 %v10442_v17, %v7260_v24  ;;  %v10434_v17 = vld [vmem:[%s11306_s27 + $0xa4] sm:$0xf]  ;;  %v7228_v24 = vld [vmem:[%s11306_s27 + $0xa8] sm:$0xf0] }
  0x7b   : > { %2695 = vmatpush.bf16.msrb.mxu2 %v8083_v52  ;;  %v8051_v52 = vor.u32 %v10641_v40, %v8050_v39  ;;  %v10424_v40 = vld [vmem:[%s11306_s27 + $0x54] sm:$0xf] }
  0x7c   : > { %2708 = vmatpush.bf16.msrb.mxu3 %v8147_v56  ;;  %v8115_v56 = vor.u32 %v10657_v45, %v8114_v43  ;;  %v7188_v43 = vld [vmem:[%s11306_s27 + $0x58] sm:$0xf0]  ;;  %v10440_v45 = vld [vmem:[%s11306_s27 + $0xd4] sm:$0xf] }
  0x7d   : > { %2670 = vmatpush.bf16.msrb.mxu0 %v7947_v62  ;;  %v10444_v62 = vld [vmem:[%s11306_s27 + $0xf4] sm:$0xf] }
  0x7e   : > { %2683 = vmatpush.bf16.msrb.mxu1 %v8011_v63  ;;  %v7915_v63 = vor.u32 %v10607_v48, %v7914_v46  ;;  %v7391_v46 = vor.u32 %v10474_v32, %v7388_v34  ;;  %v10456_v48 = vld [vmem:[%s11306_s27 + $0x154] sm:$0xf]  ;;  %v10466_v32 = vld [vmem:[%s11306_s27 + $0x1a4] sm:$0xf]  ;;  %v7356_v34 = vld [vmem:[%s11306_s27 + $0x1a8] sm:$0xf0] }
  0x7f   : > { %2696 = vmatpush.bf16.msrb.mxu2 %v8075_v0  ;;  %v7268_v0 = vld [vmem:[%s11306_s27 + $0xf8] sm:$0xf0] }
  0x80   : > { %2709 = vmatpush.bf16.msrb.mxu3 %v8139_v4  ;;  %v7979_v4 = vor.u32 %v10623_v50, %v7978_v49  ;;  %v7271_v13 = vor.u32 %v10444_v62, %v7268_v0  ;;  %v7316_v49 = vld [vmem:[%s11306_s27 + $0x158] sm:$0xf0]  ;;  %v10472_v50 = vld [vmem:[%s11306_s27 + $0x1d4] sm:$0xf]  ;;  %v10470_v62 = vld [vmem:[%s11306_s27 + $0x1c4] sm:$0xf] }
  0x81   : > { %2671 = vmatpush.bf16.msrb.mxu0 %v7939_v10  ;;  %v8107_v10 = vor.u32 %v10655_v58, %v8106_v57  ;;  %v7319_v54 = vor.u32 %v10456_v48, %v7316_v49  ;;  %v10438_v57 = vld [vmem:[%s11306_s27 + $0xc4] sm:$0xf]  ;;  %v10448_v48 = vld [vmem:[%s11306_s27 + $0x114] sm:$0xf]  ;;  %v7284_v49 = vld [vmem:[%s11306_s27 + $0x118] sm:$0xf0] }
  0x82   : > { %2684 = vmatpush.bf16.msrb.mxu1 %v8003_v11  ;;  %v7207_v11 = vor.u32 %v10428_v60, %v7204_v61  ;;  %v10454_v60 = vld [vmem:[%s11306_s27 + $0x144] sm:$0xf]  ;;  %v7308_v61 = vld [vmem:[%s11306_s27 + $0x148] sm:$0xf0] }
  0x83   : > { %2697 = vmatpush.bf16.msrb.mxu2 %v8067_v12  ;;  %v1198_v12 = vunpack.c.h.b16 %v372_v59  ;;  %v7244_v59 = vld [vmem:[%s11306_s27 + $0xc8] sm:$0xf0]  ;;  %v7311_v2 = vor.u32 %v10454_v60, %v7308_v61 }
  0x84   : > { %2710 = vmatpush.bf16.msrb.mxu3 %v8131_v16  ;;  %v7196_v16 = vld [vmem:[%s11306_s27 + $0x68] sm:$0xf0]  ;;  %v7247_v1 = vor.u32 %v10438_v57, %v7244_v59  ;;  %v10430_v57 = vld [vmem:[%s11306_s27 + $0x84] sm:$0xf] }
  0x85   : > { %2672 = vmatpush.bf16.msrb.mxu0 %v7931_v27  ;;  %v7324_v27 = vld [vmem:[%s11306_s27 + $0x168] sm:$0xf0]  ;;  %v11636_v35 = vpack.c.b16 %v1198_v12, %v1198_v12  ;;  %v10446_v59 = vld [vmem:[%s11306_s27 + $0x104] sm:$0xf] }
  0x86   : > { %2685 = vmatpush.bf16.msrb.mxu1 %v7995_v28  ;;  %v11630_v28 = vpack.c.b16 %v1197_v8, %v1197_v8  ;;  %v7327_v39 = vor.u32 %v10458_v26, %v7324_v27  ;;  %v10452_v8 = vld [vmem:[%s11306_s27 + $0x134] sm:$0xf]  ;;  %v10450_v26 = vld [vmem:[%s11306_s27 + $0x124] sm:$0xf]  ;;  %v7292_v27 = vld [vmem:[%s11306_s27 + $0x128] sm:$0xf0] }
  0x87   : > { %2698 = vmatpush.bf16.msrb.mxu2 %v8059_v31  ;;  %v11632_v31 = vpack.c.b16 %v1196_v9, %v1196_v9  ;;  %v7300_v9 = vld [vmem:[%s11306_s27 + $0x138] sm:$0xf0]  ;;  %v7276_v61 = vld [vmem:[%s11306_s27 + $0x108] sm:$0xf0] }
  0x88   : > { %2711 = vmatpush.bf16.msrb.mxu3 %v8123_v36  ;;  %v7199_v36 = vor.u32 %v10426_v15, %v7196_v16  ;;  %v10418_v15 = vld [vmem:[%s11306_s27 + $0x24] sm:$0xf]  ;;  %v7164_v16 = vld [vmem:[%s11306_s27 + $0x28] sm:$0xf0] }
  0x89   : > { %2673 = vmatpush.bf16.msrb.mxu0 %v7923_v47  ;;  %v7252_v47 = vld [vmem:[%s11306_s27 + $0xd8] sm:$0xf0] }
  0x8a   : > { %2686 = vmatpush.bf16.msrb.mxu1 %v7987_v51  ;;  %v7380_v51 = vld [vmem:[%s11306_s27 + $0x1d8] sm:$0xf0]  ;;  %v7255_v53 = vor.u32 %v10440_v45, %v7252_v47  ;;  %v10432_v45 = vld [vmem:[%s11306_s27 + $0x94] sm:$0xf] }
  0x8b   : > { %2699 = vmatpush.bf16.msrb.mxu2 %v8051_v52  ;;  %v7191_v52 = vor.u32 %v10424_v40, %v7188_v43  ;;  %v7383_v58 = vor.u32 %v10472_v50, %v7380_v51  ;;  %v10416_v40 = vld [vmem:[%s11306_s27 + $0x14] sm:$0xf]  ;;  %v7156_v43 = vld [vmem:[%s11306_s27 + $0x18] sm:$0xf0] }
  0x8c   : > { %2712 = vmatpush.bf16.msrb.mxu3 %v8115_v56  ;;  %v7180_v56 = vld [vmem:[%s11306_s27 + $0x48] sm:$0xf0]  ;;  %v7220_v47 = vld [vmem:[%s11306_s27 + $0x98] sm:$0xf0]  ;;  %v10464_v50 = vld [vmem:[%s11306_s27 + $0x194] sm:$0xf] }
  0x8d   : > { %2674 = vmatpush.bf16.msrb.mxu0 %v7915_v63  ;;  %v7372_v63 = vld [vmem:[%s11306_s27 + $0x1c8] sm:$0xf0]  ;;  %v7183_v0 = vor.u32 %v10422_v55, %v7180_v56  ;;  %v7348_v51 = vld [vmem:[%s11306_s27 + $0x198] sm:$0xf0]  ;;  %v7223_v55 = vor.u32 %v10432_v45, %v7220_v47  ;;  %v7287_v56 = vor.u32 %v10448_v48, %v7284_v49  ;;  %v10504_v45 = vld [vmem:[%s11306_s27 + $0x2d4] sm:$0xf] }
  0x8e   : > { %2687 = vmatpush.bf16.msrb.mxu1 %v7979_v4  ;;  %v7172_v4 = vld [vmem:[%s11306_s27 + $0x38] sm:$0xf0]  ;;  %v7375_v6 = vor.u32 %v10470_v62, %v7372_v63  ;;  %v7351_v60 = vor.u32 %v10464_v50, %v7348_v51  ;;  %v10462_v62 = vld [vmem:[%s11306_s27 + $0x184] sm:$0xf]  ;;  %v7340_v63 = vld [vmem:[%s11306_s27 + $0x188] sm:$0xf0] }
  0x8f   : > { %2700 = vmatpush.bf16.msrb.mxu2 %v8043_v5  ;;  %v10436_v5 = vld [vmem:[%s11306_s27 + $0xb4] sm:$0xf]  ;;  %v7175_v12 = vor.u32 %v10420_v3, %v7172_v4  ;;  %v7524_v4 = vld [vmem:[%s11306_s27 + $0x2f8] sm:$0xf0] }
  0x90   : > { %2713 = vmatpush.bf16.msrb.mxu3 %v8107_v10  ;;  %2675 = vmatmul.bf16.vlgmr.msrb.gmra.mxu0 %v11625_v23  ;;  %v10468_v10 = vld [vmem:[%s11306_s27 + $0x1b4] sm:$0xf]  ;;  %v7508_v47 = vld [vmem:[%s11306_s27 + $0x2d8] sm:$0xf0] }
  0x91   : > { %2719 = vmatpush.bf16.msra.mxu0 %v7207_v11  ;;  %2688 = vmatmul.bf16.vlgmr.msrb.gmra.mxu1 %v11632_v31  ;;  %v7364_v11 = vld [vmem:[%s11306_s27 + $0x1b8] sm:$0xf0]  ;;  %v10520_v48 = vld [vmem:[%s11306_s27 + $0x354] sm:$0xf] }
  0x92   : > { %2732 = vmatpush.bf16.msra.mxu1 %v7271_v13  ;;  %2701 = vmatmul.bf16.vlgmr.msrb.gmra.mxu2 %v11630_v28  ;;  %v7239_v13 = vor.u32 %v10436_v5, %v7236_v7  ;;  %v10524_v5 = vld [vmem:[%s11306_s27 + $0x374] sm:$0xf]  ;;  %v7572_v49 = vld [vmem:[%s11306_s27 + $0x358] sm:$0xf0] }
  0x93   : > { %2745 = vmatpush.bf16.msra.mxu2 %v7335_v14  ;;  %2714 = vmatmul.bf16.vlgmr.msrb.gmra.mxu3 %v11636_v35  ;;  %v7303_v14 = vor.u32 %v10452_v8, %v7300_v9  ;;  %v7279_v8 = vor.u32 %v10446_v59, %v7276_v61  ;;  %v10540_v9 = vld [vmem:[%s11306_s27 + $0x3f4] sm:$0xf]  ;;  %v7636_v51 = vld [vmem:[%s11306_s27 + $0x3d8] sm:$0xf0]  ;;  %v10534_v59 = vld [vmem:[%s11306_s27 + $0x3c4] sm:$0xf] }
  0x94   : > { %2758 = vmatpush.bf16.msra.mxu3 %v7399_v21  ;;  %v7367_v21 = vor.u32 %v10468_v10, %v7364_v11  ;;  %v7652_v10 = vld [vmem:[%s11306_s27 + $0x3f8] sm:$0xf0]  ;;  %v7343_v11 = vor.u32 %v10462_v62, %v7340_v63  ;;  %v10536_v50 = vld [vmem:[%s11306_s27 + $0x3d4] sm:$0xf] }
  0x95   : > { %2720 = vmatpush.bf16.msra.mxu0 %v7199_v36  ;;  %v7167_v36 = vor.u32 %v10418_v15, %v7164_v16  ;;  %v10490_v15 = vld [vmem:[%s11306_s27 + $0x264] sm:$0xf]  ;;  %v7452_v16 = vld [vmem:[%s11306_s27 + $0x268] sm:$0xf0]  ;;  %v10484_v61 = vld [vmem:[%s11306_s27 + $0x234] sm:$0xf] }
  0x96   : > { %2733 = vmatpush.bf16.msra.mxu1 %v7263_v37  ;;  %v7231_v37 = vor.u32 %v10434_v17, %v7228_v24  ;;  %v10506_v17 = vld [vmem:[%s11306_s27 + $0x2e4] sm:$0xf]  ;;  %v7516_v24 = vld [vmem:[%s11306_s27 + $0x2e8] sm:$0xf0] }
  0x97   : > { %2746 = vmatpush.bf16.msra.mxu2 %v7327_v39  ;;  %v7295_v39 = vor.u32 %v10450_v26, %v7292_v27  ;;  %v10522_v26 = vld [vmem:[%s11306_s27 + $0x364] sm:$0xf]  ;;  %v7580_v27 = vld [vmem:[%s11306_s27 + $0x368] sm:$0xf0] }
  0x98   : > { %2759 = vmatpush.bf16.msra.mxu3 %v7391_v46  ;;  %v7359_v46 = vor.u32 %v10466_v32, %v7356_v34  ;;  %v10538_v32 = vld [vmem:[%s11306_s27 + $0x3e4] sm:$0xf]  ;;  %v7644_v34 = vld [vmem:[%s11306_s27 + $0x3e8] sm:$0xf0] }
  0x99   : > { %2721 = vmatpush.bf16.msra.mxu0 %v7191_v52  ;;  %v7159_v52 = vor.u32 %v10416_v40, %v7156_v43  ;;  %v10488_v40 = vld [vmem:[%s11306_s27 + $0x254] sm:$0xf]  ;;  %v7444_v43 = vld [vmem:[%s11306_s27 + $0x258] sm:$0xf0] }
  0x9a   : > { %2734 = vmatpush.bf16.msra.mxu1 %v7255_v53  ;;  %v10414_v53 = vld [vmem:[%s11306_s27 + $0x4] sm:$0xf] }
  0x9b   : > { %2747 = vmatpush.bf16.msra.mxu2 %v7319_v54  ;;  %v7148_v54 = vld [vmem:[%s11306_s27 + $0x8] sm:$0xf0] }
  0x9c   : > { %2760 = vmatpush.bf16.msra.mxu3 %v7383_v58  ;;  %v7212_v58 = vld [vmem:[%s11306_s27 + $0x88] sm:$0xf0]  ;;  %v7151_v3 = vor.u32 %v10414_v53, %v7148_v54  ;;  %v7575_v53 = vor.u32 %v10520_v48, %v7572_v49  ;;  %v10486_v54 = vld [vmem:[%s11306_s27 + $0x244] sm:$0xf]  ;;  %v7476_v48 = vld [vmem:[%s11306_s27 + $0x298] sm:$0xf0] }
  0x9d   : > { %2722 = vmatpush.bf16.msra.mxu0 %v7183_v0  ;;  %v10492_v0 = vld [vmem:[%s11306_s27 + $0x274] sm:$0xf]  ;;  %v7215_v7 = vor.u32 %v10430_v57, %v7212_v58  ;;  %v10518_v57 = vld [vmem:[%s11306_s27 + $0x344] sm:$0xf]  ;;  %v7564_v58 = vld [vmem:[%s11306_s27 + $0x348] sm:$0xf0] }
  0x9e   : > { %2735 = vmatpush.bf16.msra.mxu1 %v7247_v1  ;;  %v7460_v1 = vld [vmem:[%s11306_s27 + $0x278] sm:$0xf0]  ;;  %v7567_v63 = vor.u32 %v10518_v57, %v7564_v58  ;;  %v10512_v49 = vld [vmem:[%s11306_s27 + $0x314] sm:$0xf]  ;;  %v7468_v57 = vld [vmem:[%s11306_s27 + $0x288] sm:$0xf0] }
  0x9f   : > { %2748 = vmatpush.bf16.msra.mxu2 %v7311_v2  ;;  %v10508_v2 = vld [vmem:[%s11306_s27 + $0x2f4] sm:$0xf]  ;;  %v10510_v58 = vld [vmem:[%s11306_s27 + $0x304] sm:$0xf] }
  0xa0   : > { %2761 = vmatpush.bf16.msra.mxu3 %v7375_v6  ;;  %v7588_v6 = vld [vmem:[%s11306_s27 + $0x378] sm:$0xf0] }
  0xa1   : > { %2723 = vmatpush.bf16.msra.mxu0 %v7175_v12  ;;  %v7463_v12 = vor.u32 %v10492_v0, %v7460_v1  ;;  %v7428_v0 = vld [vmem:[%s11306_s27 + $0x238] sm:$0xf0]  ;;  %v10500_v1 = vld [vmem:[%s11306_s27 + $0x2b4] sm:$0xf] }
  0xa2   : > { %2736 = vmatpush.bf16.msra.mxu1 %v7239_v13  ;;  %v7527_v13 = vor.u32 %v10508_v2, %v7524_v4  ;;  %v7492_v2 = vld [vmem:[%s11306_s27 + $0x2b8] sm:$0xf0]  ;;  %v10516_v4 = vld [vmem:[%s11306_s27 + $0x334] sm:$0xf] }
  0xa3   : > { %2749 = vmatpush.bf16.msra.mxu2 %v7303_v14  ;;  %v7591_v14 = vor.u32 %v10524_v5, %v7588_v6  ;;  %v7556_v5 = vld [vmem:[%s11306_s27 + $0x338] sm:$0xf0]  ;;  %v1157_v6 = vld [vmem:[%s11730_s11] sm:$0x3] }
  0xa4   : > { %2762 = vmatpush.bf16.msra.mxu3 %v7367_v21  ;;  %v7655_v21 = vor.u32 %v10540_v9, %v7652_v10  ;;  %v7431_v9 = vor.u32 %v10484_v61, %v7428_v0  ;;  %v10482_v10 = vld [vmem:[%s11306_s27 + $0x224] sm:$0xf] }
  0xa5   : > { %2724 = vmatpush.bf16.msra.mxu0 %v7167_v36  ;;  %v7455_v36 = vor.u32 %v10490_v15, %v7452_v16  ;;  %v1163_v15 = vperm.slane %v1157_v6, 0  ;;  %v10526_v61 = vld [vmem:[%s11306_s27 + $0x384] sm:$0xf]  ;;  %v10588_v6 = vld [vmem:[%s11306_s27 + $0x574] sm:$0xf] }
  0xa6   : > { %2737 = vmatpush.bf16.msra.mxu1 %v7231_v37  ;;  %v7519_v37 = vor.u32 %v10506_v17, %v7516_v24  ;;  %v7484_v17 = vld [vmem:[%s11306_s27 + $0x2a8] sm:$0xf0] }
  0xa7   : > { %2750 = vmatpush.bf16.msra.mxu2 %v7295_v39  ;;  %v7583_v39 = vor.u32 %v10522_v26, %v7580_v27  ;;  %v7548_v24 = vld [vmem:[%s11306_s27 + $0x328] sm:$0xf0]  ;;  %v10530_v26 = vld [vmem:[%s11306_s27 + $0x3a4] sm:$0xf] }
  0xa8   : > { %2763 = vmatpush.bf16.msra.mxu3 %v7359_v46  ;;  %v7647_v46 = vor.u32 %v10538_v32, %v7644_v34  ;;  %v7612_v27 = vld [vmem:[%s11306_s27 + $0x3a8] sm:$0xf0] }
  0xa9   : > { %2725 = vmatpush.bf16.msra.mxu0 %v7159_v52  ;;  %v7447_v52 = vor.u32 %v10488_v40, %v7444_v43  ;;  %v7412_v40 = vld [vmem:[%s11306_s27 + $0x218] sm:$0xf0]  ;;  %v10496_v43 = vld [vmem:[%s11306_s27 + $0x294] sm:$0xf] }
  0xaa   : > { %2738 = vmatpush.bf16.msra.mxu1 %v7223_v55  ;;  %v7436_v55 = vld [vmem:[%s11306_s27 + $0x248] sm:$0xf0] }
  0xab   : > { %2751 = vmatpush.bf16.msra.mxu2 %v7287_v56  ;;  %v10502_v56 = vld [vmem:[%s11306_s27 + $0x2c4] sm:$0xf] }
  0xac   : > { %2764 = vmatpush.bf16.msra.mxu3 %v7351_v60  ;;  %v7439_v60 = vor.u32 %v10486_v54, %v7436_v55  ;;  %v10478_v54 = vld [vmem:[%s11306_s27 + $0x204] sm:$0xf]  ;;  %v7404_v55 = vld [vmem:[%s11306_s27 + $0x208] sm:$0xf0] }
  0xad   : > { %2726 = vmatpush.bf16.msra.mxu0 %v7151_v3  ;;  %v2520_v34 = vpop.f32.mrf.mxu0 }
  0xae   : > { %2739 = vmatpush.bf16.msra.mxu1 %v7215_v7  ;;  %v10532_v7 = vld [vmem:[%s11306_s27 + $0x3b4] sm:$0xf] }
  0xaf   : > { %2752 = vmatpush.bf16.msra.mxu2 %v7279_v8  ;;  %v7620_v8 = vld [vmem:[%s11306_s27 + $0x3b8] sm:$0xf0] }
  0xb0   : > { %2765 = vmatpush.bf16.msra.mxu3 %v7343_v11  ;;  %2727 = vmatmul.bf16.vlgmr.msra.gmra.mxu0 %v11414_v19  ;;  %v7639_v19 = vor.u32 %v10536_v50, %v7636_v51  ;;  %v7495_v11 = vor.u32 %v10500_v1, %v7492_v2  ;;  %v7623_v16 = vor.u32 %v10532_v7, %v7620_v8  ;;  %v7540_v50 = vld [vmem:[%s11306_s27 + $0x318] sm:$0xf0]  ;;  %v10528_v51 = vld [vmem:[%s11306_s27 + $0x394] sm:$0xf] }
  0xb1   : > { %2771 = vmatpush.bf16.msrb.mxu0 %v7463_v12  ;;  %2740 = vmatmul.bf16.vlgmr.msra.gmra.mxu1 %v11418_v22  ;;  %v7628_v22 = vld [vmem:[%s11306_s27 + $0x3c8] sm:$0xf0]  ;;  %v7559_v12 = vor.u32 %v10516_v4, %v7556_v5  ;;  %v10556_v1 = vld [vmem:[%s11306_s27 + $0x474] sm:$0xf]  ;;  %v7716_v2 = vld [vmem:[%s11306_s27 + $0x478] sm:$0xf0]  ;;  %v7407_v4 = vor.u32 %v10478_v54, %v7404_v55 }
  0xb2   : > { %2784 = vmatpush.bf16.msrb.mxu1 %v7527_v13  ;;  %2753 = vmatmul.bf16.vlgmr.msra.gmra.mxu2 %v11412_v18  ;;  %v7511_v18 = vor.u32 %v10504_v45, %v7508_v47  ;;  %v7631_v3 = vor.u32 %v10534_v59, %v7628_v22  ;;  %v7420_v13 = vld [vmem:[%s11306_s27 + $0x228] sm:$0xf0]  ;;  %v2521_v45 = vadd.f32 %v2520_v34, %v1163_v15  ;;  %v7780_v5 = vld [vmem:[%s11306_s27 + $0x4f8] sm:$0xf0]  ;;  %v10600_v55 = vld [vmem:[%s11306_s27 + $0x5d4] sm:$0xf] }
  0xb3   : > { %2797 = vmatpush.bf16.msrb.mxu2 %v7591_v14  ;;  %2766 = vmatmul.bf16.vlgmr.msra.gmra.mxu3 %v11416_v20  ;;  %v7500_v20 = vld [vmem:[%s11306_s27 + $0x2c8] sm:$0xf0]  ;;  %v10498_v14 = vld [vmem:[%s11306_s27 + $0x2a4] sm:$0xf]  ;;  %v7423_v32 = vor.u32 %v10482_v10, %v7420_v13  ;;  %v7615_v47 = vor.u32 %v10530_v26, %v7612_v27  ;;  %v7844_v7 = vld [vmem:[%s11306_s27 + $0x578] sm:$0xf0] }
  0xb4   : > { %2810 = vmatpush.bf16.msrb.mxu3 %v7655_v21  ;;  %v7503_v62 = vor.u32 %v10502_v56, %v7500_v20  ;;  %v10514_v21 = vld [vmem:[%s11306_s27 + $0x324] sm:$0xf]  ;;  %v7479_v56 = vor.u32 %v10496_v43, %v7476_v48  ;;  %v7908_v13 = vld [vmem:[%s11306_s27 + $0x5f8] sm:$0xf0]  ;;  %v7708_v26 = vld [vmem:[%s11306_s27 + $0x468] sm:$0xf0] }
  0xb5   : > { %2772 = vmatpush.bf16.msrb.mxu0 %v7455_v36  ;;  %v7487_v36 = vor.u32 %v10498_v14, %v7484_v17  ;;  %v10494_v20 = vld [vmem:[%s11306_s27 + $0x284] sm:$0xf]  ;;  %v2546_v59 = vpop.f32.mrf.mxu2  ;;  %v7772_v34 = vld [vmem:[%s11306_s27 + $0x4e8] sm:$0xf0]  ;;  %v7828_v54 = vld [vmem:[%s11306_s27 + $0x558] sm:$0xf0] }
  0xb6   : > { %2785 = vmatpush.bf16.msrb.mxu1 %v7519_v37  ;;  %v7551_v37 = vor.u32 %v10514_v21, %v7548_v24  ;;  %v2559_v0 = vpop.f32.mrf.mxu3  ;;  %v7471_v10 = vor.u32 %v10494_v20, %v7468_v57  ;;  %v7847_v21 = vor.u32 %v10588_v6, %v7844_v7  ;;  %v10554_v24 = vld [vmem:[%s11306_s27 + $0x464] sm:$0xf] }
  0xb7   : > { %2798 = vmatpush.bf16.msrb.mxu2 %v7583_v39  ;;  %v10480_v39 = vld [vmem:[%s11306_s27 + $0x214] sm:$0xf]  ;;  %v10570_v27 = vld [vmem:[%s11306_s27 + $0x4e4] sm:$0xf] }
  0xb8   : > { %2811 = vmatpush.bf16.msrb.mxu3 %v7647_v46  ;;  %v2533_v46 = vpop.f32.mrf.mxu1  ;;  %v10550_v57 = vld [vmem:[%s11306_s27 + $0x444] sm:$0xf] }
  0xb9   : > { %2773 = vmatpush.bf16.msrb.mxu0 %v7447_v52  ;;  %v7604_v52 = vld [vmem:[%s11306_s27 + $0x398] sm:$0xf0] }
  0xba   : > { %2786 = vmatpush.bf16.msrb.mxu1 %v7511_v18  ;;  %v2534_v18 = vadd.f32 %v2533_v46, %v2521_v45  ;;  %v7607_v22 = vor.u32 %v10528_v51, %v7604_v52  ;;  %v7711_v45 = vor.u32 %v10554_v24, %v7708_v26  ;;  %v10568_v51 = vld [vmem:[%s11306_s27 + $0x4d4] sm:$0xf]  ;;  %v10562_v24 = vld [vmem:[%s11306_s27 + $0x4a4] sm:$0xf] }
  0xbb   : > { %2799 = vmatpush.bf16.msrb.mxu2 %v7575_v53  ;;  %v7415_v53 = vor.u32 %v10480_v39, %v7412_v40  ;;  %v10602_v39 = vld [vmem:[%s11306_s27 + $0x5e4] sm:$0xf]  ;;  %v7900_v40 = vld [vmem:[%s11306_s27 + $0x5e8] sm:$0xf0] }
  0xbc   : > { %2812 = vmatpush.bf16.msrb.mxu3 %v7639_v19  ;;  %v7543_v19 = vor.u32 %v10512_v49, %v7540_v50  ;;  %v10552_v49 = vld [vmem:[%s11306_s27 + $0x454] sm:$0xf]  ;;  %v7700_v50 = vld [vmem:[%s11306_s27 + $0x458] sm:$0xf0]  ;;  %v7903_v52 = vor.u32 %v10602_v39, %v7900_v40  ;;  %v10594_v40 = vld [vmem:[%s11306_s27 + $0x5a4] sm:$0xf] }
  0xbd   : > { %2774 = vmatpush.bf16.msrb.mxu0 %v7439_v60  ;;  %v7532_v60 = vld [vmem:[%s11306_s27 + $0x308] sm:$0xf0]  ;;  %v2548_v43 = vpop.f32.mrf.mxu2 }
  0xbe   : > { %2787 = vmatpush.bf16.msrb.mxu1 %v7503_v62  ;;  %v7596_v62 = vld [vmem:[%s11306_s27 + $0x388] sm:$0xf0]  ;;  %v2561_v46 = vpop.f32.mrf.mxu3 }
  0xbf   : > { %2800 = vmatpush.bf16.msrb.mxu2 %v7567_v63  ;;  %v2547_v63 = vadd.f32 %v2546_v59, %v2534_v18  ;;  %v7599_v15 = vor.u32 %v10526_v61, %v7596_v62  ;;  %v7764_v18 = vld [vmem:[%s11306_s27 + $0x4d8] sm:$0xf0]  ;;  %v10566_v59 = vld [vmem:[%s11306_s27 + $0x4c4] sm:$0xf]  ;;  %v7884_v62 = vld [vmem:[%s11306_s27 + $0x5c8] sm:$0xf0] }
  0xc0   : > { %2813 = vmatpush.bf16.msrb.mxu3 %v7631_v3  ;;  %v10572_v3 = vld [vmem:[%s11306_s27 + $0x4f4] sm:$0xf]  ;;  %v2535_v14 = vpop.f32.mrf.mxu1  ;;  %v10598_v61 = vld [vmem:[%s11306_s27 + $0x5c4] sm:$0xf]  ;;  %v7868_v43 = vld [vmem:[%s11306_s27 + $0x5a8] sm:$0xf0] }
  0xc1   : > { %2775 = vmatpush.bf16.msrb.mxu0 %v7431_v9  ;;  %v11771_v8 = vadd.f32 %v2559_v0, %v2547_v63  ;;  %v2522_v9 = vpop.f32.mrf.mxu0  ;;  %v7783_v17 = vor.u32 %v10572_v3, %v7780_v5  ;;  %v7684_v3 = vld [vmem:[%s11306_s27 + $0x438] sm:$0xf0]  ;;  %v7887_v7 = vor.u32 %v10598_v61, %v7884_v62 }
  0xc2   : > { %2788 = vmatpush.bf16.msrb.mxu1 %v7495_v11  ;;  %v7535_v11 = vor.u32 %v10510_v58, %v7532_v60  ;;  %v7692_v58 = vld [vmem:[%s11306_s27 + $0x448] sm:$0xf0]  ;;  %v7748_v9 = vld [vmem:[%s11306_s27 + $0x4b8] sm:$0xf0] }
  0xc3   : > { %2801 = vmatpush.bf16.msrb.mxu2 %v7559_v12  ;;  %v10604_v12 = vld [vmem:[%s11306_s27 + $0x5f4] sm:$0xf]  ;;  %v7820_v60 = vld [vmem:[%s11306_s27 + $0x548] sm:$0xf0] }
  0xc4   : > { %2814 = vmatpush.bf16.msrb.mxu3 %v7623_v16  ;;  %v7719_v16 = vor.u32 %v10556_v1, %v7716_v2  ;;  %v10548_v2 = vld [vmem:[%s11306_s27 + $0x434] sm:$0xf] }
  0xc5   : > { %2776 = vmatpush.bf16.msrb.mxu0 %v7423_v32  ;;  %v7911_v32 = vor.u32 %v10604_v12, %v7908_v13  ;;  %v10596_v12 = vld [vmem:[%s11306_s27 + $0x5b4] sm:$0xf]  ;;  %v7876_v13 = vld [vmem:[%s11306_s27 + $0x5b8] sm:$0xf0] }
  0xc6   : > { %2789 = vmatpush.bf16.msrb.mxu1 %v7487_v36  ;;  %v10586_v36 = vld [vmem:[%s11306_s27 + $0x564] sm:$0xf] }
  0xc7   : > { %2802 = vmatpush.bf16.msrb.mxu2 %v7551_v37  ;;  %v7836_v37 = vld [vmem:[%s11306_s27 + $0x568] sm:$0xf0] }
  0xc8   : > { %2815 = vmatpush.bf16.msrb.mxu3 %v7615_v47  ;;  %v7775_v47 = vor.u32 %v10570_v27, %v7772_v34  ;;  %v7839_v48 = vor.u32 %v10586_v36, %v7836_v37  ;;  %v7879_v27 = vor.u32 %v10596_v12, %v7876_v13  ;;  %v10578_v34 = vld [vmem:[%s11306_s27 + $0x524] sm:$0xf]  ;;  %v7804_v36 = vld [vmem:[%s11306_s27 + $0x528] sm:$0xf0]  ;;  %v10668_v12 = vld [vmem:[%s11306_s27 + $0x7f4] sm:$0xf] }
  0xc9   : > { %2777 = vmatpush.bf16.msrb.mxu0 %v7415_v53  ;;  %v10584_v53 = vld [vmem:[%s11306_s27 + $0x554] sm:$0xf]  ;;  %v8164_v13 = vld [vmem:[%s11306_s27 + $0x7f8] sm:$0xf0] }
  0xca   : > { %2790 = vmatpush.bf16.msrb.mxu1 %v7479_v56  ;;  %v7892_v56 = vld [vmem:[%s11306_s27 + $0x5d8] sm:$0xf0]  ;;  %v7831_v20 = vor.u32 %v10584_v53, %v7828_v54  ;;  %v7871_v53 = vor.u32 %v10594_v40, %v7868_v43 }
  0xcb   : > { %2803 = vmatpush.bf16.msrb.mxu2 %v7543_v19  ;;  %v7703_v19 = vor.u32 %v10552_v49, %v7700_v50  ;;  %v7807_v49 = vor.u32 %v10578_v34, %v7804_v36  ;;  %v10544_v50 = vld [vmem:[%s11306_s27 + $0x414] sm:$0xf]  ;;  %v7732_v54 = vld [vmem:[%s11306_s27 + $0x498] sm:$0xf0]  ;;  %v8092_v34 = vld [vmem:[%s11306_s27 + $0x768] sm:$0xf0] }
  0xcc   : > { %2816 = vmatpush.bf16.msrb.mxu3 %v7607_v22  ;;  %v7756_v22 = vld [vmem:[%s11306_s27 + $0x4c8] sm:$0xf0]  ;;  %v10666_v36 = vld [vmem:[%s11306_s27 + $0x7e4] sm:$0xf] }
  0xcd   : > { %2778 = vmatpush.bf16.msrb.mxu0 %v7407_v4  ;;  %v2572_v63 = vpop.f32.mrf.mxu0  ;;  %v7759_v0 = vor.u32 %v10566_v59, %v7756_v22  ;;  %v10564_v4 = vld [vmem:[%s11306_s27 + $0x4b4] sm:$0xf]  ;;  %v10558_v22 = vld [vmem:[%s11306_s27 + $0x484] sm:$0xf] }
  0xce   : > { %2791 = vmatpush.bf16.msrb.mxu1 %v7471_v10  ;;  %v2573_v5 = vadd.f32 %v2572_v63, %v11771_v8  ;;  %v2585_v6 = vpop.f32.mrf.mxu1  ;;  %v10580_v10 = vld [vmem:[%s11306_s27 + $0x534] sm:$0xf]  ;;  %v7751_v8 = vor.u32 %v10564_v4, %v7748_v9  ;;  %v10590_v63 = vld [vmem:[%s11306_s27 + $0x584] sm:$0xf]  ;;  %v8100_v9 = vld [vmem:[%s11306_s27 + $0x778] sm:$0xf0] }
  0xcf   : > { %2804 = vmatpush.bf16.msrb.mxu2 %v7535_v11  ;;  %v7812_v11 = vld [vmem:[%s11306_s27 + $0x538] sm:$0xf0]  ;;  %v10636_v4 = vld [vmem:[%s11306_s27 + $0x6f4] sm:$0xf] }
  0xd0   : > { %2817 = vmatpush.bf16.msrb.mxu3 %v7599_v15  ;;  %2779 = vmatmul.bf16.vlgmr.msrb.gmra.mxu0 %v11476_v41  ;;  %v7895_v41 = vor.u32 %v10600_v55, %v7892_v56  ;;  %v2586_v14 = vadd.f32 %v2585_v6, %v2573_v5  ;;  %v7687_v15 = vor.u32 %v10548_v2, %v7684_v3  ;;  %v10576_v55 = vld [vmem:[%s11306_s27 + $0x514] sm:$0xf]  ;;  %v7796_v56 = vld [vmem:[%s11306_s27 + $0x518] sm:$0xf0] }
  0xd1   : > { %2823 = vmatpush.bf16.msra.mxu0 %v7719_v16  ;;  %2792 = vmatmul.bf16.vlgmr.msrb.gmra.mxu1 %v11480_v44  ;;  %v7695_v44 = vor.u32 %v10550_v57, %v7692_v58  ;;  %v7815_v16 = vor.u32 %v10580_v10, %v7812_v11  ;;  %v10542_v57 = vld [vmem:[%s11306_s27 + $0x404] sm:$0xf]  ;;  %v7660_v58 = vld [vmem:[%s11306_s27 + $0x408] sm:$0xf0]  ;;  %v10620_v2 = vld [vmem:[%s11306_s27 + $0x674] sm:$0xf] }
  0xd2   : > { %2836 = vmatpush.bf16.msra.mxu1 %v7783_v17  ;;  %2805 = vmatmul.bf16.vlgmr.msrb.gmra.mxu2 %v11472_v38  ;;  %v7767_v38 = vor.u32 %v10568_v51, %v7764_v18  ;;  %v10546_v17 = vld [vmem:[%s11306_s27 + $0x424] sm:$0xf]  ;;  %v7668_v51 = vld [vmem:[%s11306_s27 + $0x418] sm:$0xf0]  ;;  %v7663_v5 = vor.u32 %v10542_v57, %v7660_v58  ;;  %v8076_v57 = vld [vmem:[%s11306_s27 + $0x748] sm:$0xf0] }
  0xd3   : > { %2849 = vmatpush.bf16.msra.mxu2 %v7847_v21  ;;  %2818 = vmatmul.bf16.vlgmr.msrb.gmra.mxu3 %v11478_v42  ;;  %v10582_v42 = vld [vmem:[%s11306_s27 + $0x544] sm:$0xf]  ;;  %v7676_v21 = vld [vmem:[%s11306_s27 + $0x428] sm:$0xf0]  ;;  %v7972_v3 = vld [vmem:[%s11306_s27 + $0x678] sm:$0xf0] }
  0xd4   : > { %2862 = vmatpush.bf16.msra.mxu3 %v7911_v32  ;;  %v7823_v1 = vor.u32 %v10582_v42, %v7820_v60  ;;  %v7740_v32 = vld [vmem:[%s11306_s27 + $0x4a8] sm:$0xf0]  ;;  %v10574_v60 = vld [vmem:[%s11306_s27 + $0x504] sm:$0xf]  ;;  %v8036_v6 = vld [vmem:[%s11306_s27 + $0x6f8] sm:$0xf0] }
  0xd5   : > { %2824 = vmatpush.bf16.msra.mxu0 %v7711_v45  ;;  %v2598_v26 = vpop.f32.mrf.mxu2  ;;  %v7679_v45 = vor.u32 %v10546_v17, %v7676_v21  ;;  %v7724_v42 = vld [vmem:[%s11306_s27 + $0x488] sm:$0xf0]  ;;  %v10618_v17 = vld [vmem:[%s11306_s27 + $0x664] sm:$0xf] }
  0xd6   : > { %2837 = vmatpush.bf16.msra.mxu1 %v7775_v47  ;;  %v2599_v37 = vadd.f32 %v2598_v26, %v2586_v14  ;;  %v2611_v39 = vpop.f32.mrf.mxu3  ;;  %v2574_v47 = vpop.f32.mrf.mxu0  ;;  %v7727_v10 = vor.u32 %v10558_v22, %v7724_v42  ;;  %v7964_v21 = vld [vmem:[%s11306_s27 + $0x668] sm:$0xf0]  ;;  %v8167_v26 = vor.u32 %v10668_v12, %v8164_v13  ;;  %v10662_v58 = vld [vmem:[%s11306_s27 + $0x7c4] sm:$0xf] }
  0xd7   : > { %2850 = vmatpush.bf16.msra.mxu2 %v7839_v48  ;;  %v7743_v48 = vor.u32 %v10562_v24, %v7740_v32  ;;  %v2587_v18 = vpop.f32.mrf.mxu1  ;;  %v10634_v24 = vld [vmem:[%s11306_s27 + $0x6e4] sm:$0xf]  ;;  %v7956_v47 = vld [vmem:[%s11306_s27 + $0x658] sm:$0xf0] }
  0xd8   : > { %2863 = vmatpush.bf16.msra.mxu3 %v7903_v52  ;;  %v11820_v46 = vadd.f32 %v2611_v39, %v2599_v37  ;;  %v10560_v52 = vld [vmem:[%s11306_s27 + $0x494] sm:$0xf]  ;;  %v10650_v32 = vld [vmem:[%s11306_s27 + $0x764] sm:$0xf]  ;;  %v8156_v37 = vld [vmem:[%s11306_s27 + $0x7e8] sm:$0xf0]  ;;  %v7967_v39 = vor.u32 %v10618_v17, %v7964_v21 }
  0xd9   : > { %2825 = vmatpush.bf16.msra.mxu0 %v7703_v19  ;;  %v10592_v19 = vld [vmem:[%s11306_s27 + $0x594] sm:$0xf]  ;;  %v7735_v59 = vor.u32 %v10560_v52, %v7732_v54  ;;  %v8095_v43 = vor.u32 %v10650_v32, %v8092_v34  ;;  %v8084_v52 = vld [vmem:[%s11306_s27 + $0x758] sm:$0xf0]  ;;  %v10626_v12 = vld [vmem:[%s11306_s27 + $0x6a4] sm:$0xf] }
  0xda   : > { %2838 = vmatpush.bf16.msra.mxu1 %v7767_v38  ;;  %v7860_v38 = vld [vmem:[%s11306_s27 + $0x598] sm:$0xf0]  ;;  %v10664_v18 = vld [vmem:[%s11306_s27 + $0x7d4] sm:$0xf] }
  0xdb   : > { %2851 = vmatpush.bf16.msra.mxu2 %v7831_v20  ;;  %v7671_v20 = vor.u32 %v10544_v50, %v7668_v51  ;;  %v7863_v62 = vor.u32 %v10592_v19, %v7860_v38  ;;  %v8020_v50 = vld [vmem:[%s11306_s27 + $0x6d8] sm:$0xf0]  ;;  %v10648_v51 = vld [vmem:[%s11306_s27 + $0x754] sm:$0xf]  ;;  %v7948_v19 = vld [vmem:[%s11306_s27 + $0x648] sm:$0xf0] }
  0xdc   : > { %2864 = vmatpush.bf16.msra.mxu3 %v7895_v41  ;;  %v7799_v41 = vor.u32 %v10576_v55, %v7796_v56  ;;  %v8087_v55 = vor.u32 %v10648_v51, %v8084_v52  ;;  %v10614_v56 = vld [vmem:[%s11306_s27 + $0x644] sm:$0xf]  ;;  %v8012_v38 = vld [vmem:[%s11306_s27 + $0x6c8] sm:$0xf0]  ;;  %v10656_v51 = vld [vmem:[%s11306_s27 + $0x794] sm:$0xf] }
  0xdd   : > { %2826 = vmatpush.bf16.msra.mxu0 %v7695_v44  ;;  %v2600_v61 = vpop.f32.mrf.mxu2  ;;  %v7788_v44 = vld [vmem:[%s11306_s27 + $0x508] sm:$0xf0]  ;;  %v7951_v22 = vor.u32 %v10614_v56, %v7948_v19  ;;  %v8116_v52 = vld [vmem:[%s11306_s27 + $0x798] sm:$0xf0]  ;;  %v10622_v56 = vld [vmem:[%s11306_s27 + $0x684] sm:$0xf] }
  0xde   : > { %2839 = vmatpush.bf16.msra.mxu1 %v7759_v0  ;;  %v7852_v0 = vld [vmem:[%s11306_s27 + $0x588] sm:$0xf0]  ;;  %v7791_v11 = vor.u32 %v10574_v60, %v7788_v44  ;;  %v7940_v44 = vld [vmem:[%s11306_s27 + $0x638] sm:$0xf0] }
  0xdf   : > { %2852 = vmatpush.bf16.msra.mxu2 %v7823_v1  ;;  %v2613_v1 = vpop.f32.mrf.mxu3  ;;  %v7855_v14 = vor.u32 %v10590_v63, %v7852_v0  ;;  %v10628_v63 = vld [vmem:[%s11306_s27 + $0x6b4] sm:$0xf]  ;;  %v7980_v19 = vld [vmem:[%s11306_s27 + $0x688] sm:$0xf0] }
  0xe0   : > { %2865 = vmatpush.bf16.msra.mxu3 %v7887_v7  ;;  %v10652_v7 = vld [vmem:[%s11306_s27 + $0x774] sm:$0xf] }
  0xe1   : > { %2827 = vmatpush.bf16.msra.mxu0 %v7687_v15  ;;  %v7975_v15 = vor.u32 %v10620_v2, %v7972_v3  ;;  %v8004_v2 = vld [vmem:[%s11306_s27 + $0x6b8] sm:$0xf0]  ;;  %v10644_v3 = vld [vmem:[%s11306_s27 + $0x734] sm:$0xf] }
  0xe2   : > { %2840 = vmatpush.bf16.msra.mxu1 %v7751_v8  ;;  %v8039_v8 = vor.u32 %v10636_v4, %v8036_v6  ;;  %v10660_v4 = vld [vmem:[%s11306_s27 + $0x7b4] sm:$0xf] }
  0xe3   : > { %2853 = vmatpush.bf16.msra.mxu2 %v7815_v16  ;;  %v8103_v16 = vor.u32 %v10652_v7, %v8100_v9  ;;  %v8007_v7 = vor.u32 %v10628_v63, %v8004_v2 }
  0xe4   : > { %2866 = vmatpush.bf16.msra.mxu3 %v7879_v27  ;;  %v8028_v27 = vld [vmem:[%s11306_s27 + $0x6e8] sm:$0xf0] }
  0xe5   : > { %2828 = vmatpush.bf16.msra.mxu0 %v7679_v45  ;;  %v8031_v40 = vor.u32 %v10634_v24, %v8028_v27  ;;  %v10616_v45 = vld [vmem:[%s11306_s27 + $0x654] sm:$0xf]  ;;  %v10658_v24 = vld [vmem:[%s11306_s27 + $0x7a4] sm:$0xf] }
  0xe6   : > { %2841 = vmatpush.bf16.msra.mxu1 %v7743_v48  ;;  %v10632_v48 = vld [vmem:[%s11306_s27 + $0x6d4] sm:$0xf] }
  0xe7   : > { %2854 = vmatpush.bf16.msra.mxu2 %v7807_v49  ;;  %v8159_v49 = vor.u32 %v10666_v36, %v8156_v37  ;;  %v8023_v54 = vor.u32 %v10632_v48, %v8020_v50  ;;  %v7988_v48 = vld [vmem:[%s11306_s27 + $0x698] sm:$0xf0] }
  0xe8   : > { %2867 = vmatpush.bf16.msra.mxu3 %v7871_v53  ;;  %v8148_v53 = vld [vmem:[%s11306_s27 + $0x7d8] sm:$0xf0] }
  0xe9   : > { %2829 = vmatpush.bf16.msra.mxu0 %v7671_v20  ;;  %v10646_v20 = vld [vmem:[%s11306_s27 + $0x744] sm:$0xf]  ;;  %v8052_v50 = vld [vmem:[%s11306_s27 + $0x718] sm:$0xf0] }
  0xea   : > { %2842 = vmatpush.bf16.msra.mxu1 %v7735_v59  ;;  %v8140_v59 = vld [vmem:[%s11306_s27 + $0x7c8] sm:$0xf0]  ;;  %v8079_v61 = vor.u32 %v10646_v20, %v8076_v57  ;;  %v10654_v20 = vld [vmem:[%s11306_s27 + $0x784] sm:$0xf] }
  0xeb   : > { %2855 = vmatpush.bf16.msra.mxu2 %v7799_v41  ;;  %v8143_v0 = vor.u32 %v10662_v58, %v8140_v59  ;;  %v8108_v57 = vld [vmem:[%s11306_s27 + $0x788] sm:$0xf0]  ;;  %v8226_v58 = vld [vmem:[%s11306_s27 + $0x870] sm:$0xf]  ;;  %v10685_v59 = vld [vmem:[%s11306_s27 + $0x874] sm:$0xf0] }
  0xec   : > { %2868 = vmatpush.bf16.msra.mxu3 %v7863_v62  ;;  %v10612_v62 = vld [vmem:[%s11306_s27 + $0x634] sm:$0xf]  ;;  %v8111_v2 = vor.u32 %v10654_v20, %v8108_v57  ;;  %v10693_v20 = vld [vmem:[%s11306_s27 + $0x8b4] sm:$0xf0]  ;;  %v8322_v57 = vld [vmem:[%s11306_s27 + $0x930] sm:$0xf] }
  0xed   : > { %2830 = vmatpush.bf16.msra.mxu0 %v7663_v5  ;;  %v8132_v5 = vld [vmem:[%s11306_s27 + $0x7b8] sm:$0xf0]  ;;  %v7943_v6 = vor.u32 %v10612_v62, %v7940_v44  ;;  %v10717_v62 = vld [vmem:[%s11306_s27 + $0x974] sm:$0xf0]  ;;  %v7983_v44 = vor.u32 %v10622_v56, %v7980_v19  ;;  %v8194_v56 = vld [vmem:[%s11306_s27 + $0x830] sm:$0xf] }
  0xee   : > { %2843 = vmatpush.bf16.msra.mxu1 %v7727_v10  ;;  %v2637_v42 = vpop.f32.mrf.mxu1  ;;  %v10610_v10 = vld [vmem:[%s11306_s27 + $0x624] sm:$0xf]  ;;  %v8135_v13 = vor.u32 %v10660_v4, %v8132_v5  ;;  %v8218_v5 = vld [vmem:[%s11306_s27 + $0x860] sm:$0xf]  ;;  %v10677_v19 = vld [vmem:[%s11306_s27 + $0x834] sm:$0xf0] }
  0xef   : > { %2856 = vmatpush.bf16.msra.mxu2 %v7791_v11  ;;  %v7932_v11 = vld [vmem:[%s11306_s27 + $0x628] sm:$0xf0] }
  0xf0   : > { %2869 = vmatpush.bf16.msra.mxu3 %v7855_v14  ;;  %2831 = vmatmul.bf16.vlgmr.msra.gmra.mxu0 %v11547_v25  ;;  %v7959_v25 = vor.u32 %v10616_v45, %v7956_v47  ;;  %v7935_v32 = vor.u32 %v10610_v10, %v7932_v11  ;;  %v10624_v45 = vld [vmem:[%s11306_s27 + $0x694] sm:$0xf]  ;;  %v10699_v10 = vld [vmem:[%s11306_s27 + $0x8e4] sm:$0xf0]  ;;  %v8346_v11 = vld [vmem:[%s11306_s27 + $0x960] sm:$0xf] }
  0xf1   : > { %2875 = vmatpush.bf16.msrb.mxu0 %v7975_v15  ;;  %2844 = vmatmul.bf16.vlgmr.msra.gmra.mxu1 %v11554_v30  ;;  %v8151_v30 = vor.u32 %v10664_v18, %v8148_v53  ;;  %v7996_v15 = vld [vmem:[%s11306_s27 + $0x6a8] sm:$0xf0]  ;;  %v10606_v53 = vld [vmem:[%s11306_s27 + $0x604] sm:$0xf] }
  0xf2   : > { %2888 = vmatpush.bf16.msrb.mxu1 %v8039_v8  ;;  %2857 = vmatmul.bf16.vlgmr.msra.gmra.mxu2 %v11552_v29  ;;  %v10630_v29 = vld [vmem:[%s11306_s27 + $0x6c4] sm:$0xf]  ;;  %v7999_v37 = vor.u32 %v10626_v12, %v7996_v15  ;;  %v10715_v12 = vld [vmem:[%s11306_s27 + $0x964] sm:$0xf0] }
  0xf3   : > { %2901 = vmatpush.bf16.msrb.mxu2 %v8103_v16  ;;  %2870 = vmatmul.bf16.vlgmr.msra.gmra.mxu3 %v11558_v33  ;;  %v2624_v33 = vpop.f32.mrf.mxu0  ;;  %v8015_v60 = vor.u32 %v10630_v29, %v8012_v38  ;;  %v10642_v8 = vld [vmem:[%s11306_s27 + $0x724] sm:$0xf]  ;;  %v8060_v16 = vld [vmem:[%s11306_s27 + $0x728] sm:$0xf0] }
  0xf4   : > { %2914 = vmatpush.bf16.msrb.mxu3 %v8167_v26  ;;  %v2625_v41 = vadd.f32 %v2624_v33, %v11820_v46  ;;  %v8068_v46 = vld [vmem:[%s11306_s27 + $0x738] sm:$0xf0]  ;;  %v8124_v26 = vld [vmem:[%s11306_s27 + $0x7a8] sm:$0xf0]  ;;  %v10638_v29 = vld [vmem:[%s11306_s27 + $0x704] sm:$0xf] }
  0xf5   : > { %2876 = vmatpush.bf16.msrb.mxu0 %v7967_v39  ;;  %v8071_v9 = vor.u32 %v10644_v3, %v8068_v46  ;;  %v2650_v14 = vpop.f32.mrf.mxu2  ;;  %v8063_v39 = vor.u32 %v10642_v8, %v8060_v16  ;;  %v8127_v47 = vor.u32 %v10658_v24, %v8124_v26  ;;  %v8044_v38 = vld [vmem:[%s11306_s27 + $0x708] sm:$0xf0]  ;;  %v8227_v3 = vor.u32 %v10685_v59, %v8226_v58  ;;  %v8274_v24 = vld [vmem:[%s11306_s27 + $0x8d0] sm:$0xf]  ;;  %v10725_v58 = vld [vmem:[%s11306_s27 + $0x9b4] sm:$0xf0] }
  0xf6   : > { %2889 = vmatpush.bf16.msrb.mxu1 %v8031_v40  ;;  %v2638_v1 = vadd.f32 %v2637_v42, %v2625_v41  ;;  %v2663_v21 = vpop.f32.mrf.mxu3  ;;  %v2639_v34 = vpop.f32.mrf.mxu1  ;;  %v10608_v40 = vld [vmem:[%s11306_s27 + $0x614] sm:$0xf]  ;;  %v8290_v41 = vld [vmem:[%s11306_s27 + $0x8f0] sm:$0xf]  ;;  %v8047_v63 = vor.u32 %v10638_v29, %v8044_v38  ;;  %v8347_v16 = vor.u32 %v10715_v12, %v8346_v11  ;;  %v8195_v59 = vor.u32 %v10677_v19, %v8194_v56 }
  0xf7   : > { %2902 = vmatpush.bf16.msrb.mxu2 %v8095_v43  ;;  %v7924_v43 = vld [vmem:[%s11306_s27 + $0x618] sm:$0xf0]  ;;  %v10713_v34 = vld [vmem:[%s11306_s27 + $0x954] sm:$0xf0]  ;;  %v8258_v29 = vld [vmem:[%s11306_s27 + $0x8b0] sm:$0xf] }
  0xf8   : > { %2915 = vmatpush.bf16.msrb.mxu3 %v8159_v49  ;;  %v2651_v17 = vadd.f32 %v2650_v14, %v2638_v1  ;;  %v10640_v49 = vld [vmem:[%s11306_s27 + $0x714] sm:$0xf]  ;;  %v7927_v18 = vor.u32 %v10608_v40, %v7924_v43  ;;  %v10733_v1 = vld [vmem:[%s11306_s27 + $0x9f4] sm:$0xf0]  ;;  %v10731_v14 = vld [vmem:[%s11306_s27 + $0x9e4] sm:$0xf0] }
  0xf9   : > { %2877 = vmatpush.bf16.msrb.mxu0 %v7959_v25  ;;  %v7916_v25 = vld [vmem:[%s11306_s27 + $0x608] sm:$0xf0]  ;;  %v8178_v12 = vld [vmem:[%s11306_s27 + $0x810] sm:$0xf] }
  0xfa   : > { %2890 = vmatpush.bf16.msrb.mxu1 %v8023_v54  ;;  %v11891_v36 = vadd.f32 %v2663_v21, %v2651_v17  ;;  %v7991_v54 = vor.u32 %v10624_v45, %v7988_v48  ;;  %v7919_v42 = vor.u32 %v10606_v53, %v7916_v25  ;;  %v8210_v17 = vld [vmem:[%s11306_s27 + $0x850] sm:$0xf]  ;;  %v10681_v21 = vld [vmem:[%s11306_s27 + $0x854] sm:$0xf0]  ;;  %v8202_v45 = vld [vmem:[%s11306_s27 + $0x840] sm:$0xf] }
  0xfb   : > { %2903 = vmatpush.bf16.msrb.mxu2 %v8087_v55  ;;  %v2626_v27 = vpop.f32.mrf.mxu0  ;;  %v8055_v55 = vor.u32 %v10640_v49, %v8052_v50  ;;  %v10695_v48 = vld [vmem:[%s11306_s27 + $0x8c4] sm:$0xf0]  ;;  %v8330_v49 = vld [vmem:[%s11306_s27 + $0x940] sm:$0xf] }
  0xfc   : > { %2916 = vmatpush.bf16.msrb.mxu3 %v8151_v30  ;;  %v8119_v30 = vor.u32 %v10656_v51, %v8116_v52  ;;  %v10697_v27 = vld [vmem:[%s11306_s27 + $0x8d4] sm:$0xf0]  ;;  %v10711_v50 = vld [vmem:[%s11306_s27 + $0x944] sm:$0xf0]  ;;  %v8394_v51 = vld [vmem:[%s11306_s27 + $0x9c0] sm:$0xf] }
  0xfd   : > { %2878 = vmatpush.bf16.msrb.mxu0 %v7951_v22  ;;  %v2652_v33 = vpop.f32.mrf.mxu2  ;;  %v8275_v40 = vor.u32 %v10697_v27, %v8274_v24  ;;  %v10727_v52 = vld [vmem:[%s11306_s27 + $0x9c4] sm:$0xf0]  ;;  %v10721_v24 = vld [vmem:[%s11306_s27 + $0x994] sm:$0xf0] }
  0xfe   : > { %2891 = vmatpush.bf16.msrb.mxu1 %v8015_v60  ;;  %v2665_v22 = vpop.f32.mrf.mxu3  ;;  %v10701_v60 = vld [vmem:[%s11306_s27 + $0x8f4] sm:$0xf0]  ;;  %v8386_v33 = vld [vmem:[%s11306_s27 + $0x9b0] sm:$0xf] }
  0xff   : > { %2904 = vmatpush.bf16.msrb.mxu2 %v8079_v61  ;;  %v8354_v61 = vld [vmem:[%s11306_s27 + $0x970] sm:$0xf]  ;;  %v8291_v46 = vor.u32 %v10701_v60, %v8290_v41  ;;  %v8259_v41 = vor.u32 %v10693_v20, %v8258_v29  ;;  %v10675_v60 = vld [vmem:[%s11306_s27 + $0x824] sm:$0xf0] }
 0x100   : > { %2917 = vmatpush.bf16.msrb.mxu3 %v8143_v0  ;;  %v8418_v0 = vld [vmem:[%s11306_s27 + $0x9f0] sm:$0xf]  ;;  %v8355_v4 = vor.u32 %v10717_v62, %v8354_v61  ;;  %v8250_v61 = vld [vmem:[%s11306_s27 + $0x8a0] sm:$0xf]  ;;  %v8387_v62 = vor.u32 %v10725_v58, %v8386_v33 }
 0x101   : > { %2879 = vmatpush.bf16.msrb.mxu0 %v7943_v6  ;;  %v10683_v6 = vld [vmem:[%s11306_s27 + $0x864] sm:$0xf0]  ;;  %v8674_v29 = vld [vmem:[%s11306_s27 + $0xbf0] sm:$0xf] }
 0x102   : > { %2892 = vmatpush.bf16.msrb.mxu1 %v8007_v7  ;;  %v8282_v7 = vld [vmem:[%s11306_s27 + $0x8e0] sm:$0xf]  ;;  %v8219_v15 = vor.u32 %v10683_v6, %v8218_v5 }
 0x103   : > { %2905 = vmatpush.bf16.msrb.mxu2 %v8071_v9  ;;  %v8419_v9 = vor.u32 %v10733_v1, %v8418_v0  ;;  %v8283_v8 = vor.u32 %v10699_v10, %v8282_v7  ;;  %v8314_v0 = vld [vmem:[%s11306_s27 + $0x920] sm:$0xf]  ;;  %v10707_v1 = vld [vmem:[%s11306_s27 + $0x924] sm:$0xf0] }
 0x104   : > { %2918 = vmatpush.bf16.msrb.mxu3 %v8135_v13  ;;  %v8410_v13 = vld [vmem:[%s11306_s27 + $0x9e0] sm:$0xf]  ;;  %v8315_v11 = vor.u32 %v10707_v1, %v8314_v0  ;;  %v10795_v1 = vld [vmem:[%s11306_s27 + $0xbe4] sm:$0xf0] }
 0x105   : > { %2880 = vmatpush.bf16.msrb.mxu0 %v7935_v32  ;;  %v8411_v26 = vor.u32 %v10731_v14, %v8410_v13  ;;  %v8338_v32 = vld [vmem:[%s11306_s27 + $0x950] sm:$0xf]  ;;  %v10673_v13 = vld [vmem:[%s11306_s27 + $0x814] sm:$0xf0]  ;;  %v8666_v0 = vld [vmem:[%s11306_s27 + $0xbe0] sm:$0xf] }
 0x106   : > { %2893 = vmatpush.bf16.msrb.mxu1 %v7999_v37  ;;  %v8402_v37 = vld [vmem:[%s11306_s27 + $0x9d0] sm:$0xf]  ;;  %v8339_v43 = vor.u32 %v10713_v34, %v8338_v32  ;;  %v8179_v27 = vor.u32 %v10673_v13, %v8178_v12  ;;  %v10671_v32 = vld [vmem:[%s11306_s27 + $0x804] sm:$0xf0]  ;;  %v8234_v34 = vld [vmem:[%s11306_s27 + $0x880] sm:$0xf]  ;;  %v8667_v12 = vor.u32 %v10795_v1, %v8666_v0 }
 0x107   : > { %2906 = vmatpush.bf16.msrb.mxu2 %v8063_v39  ;;  %v10729_v39 = vld [vmem:[%s11306_s27 + $0x9d4] sm:$0xf0]  ;;  %v8242_v14 = vld [vmem:[%s11306_s27 + $0x890] sm:$0xf] }
 0x108   : > { %2919 = vmatpush.bf16.msrb.mxu3 %v8127_v47  ;;  %v10679_v47 = vld [vmem:[%s11306_s27 + $0x844] sm:$0xf0]  ;;  %v10761_v13 = vld [vmem:[%s11306_s27 + $0xad4] sm:$0xf0] }
 0x109   : > { %2881 = vmatpush.bf16.msrb.mxu0 %v7927_v18  ;;  %v8203_v53 = vor.u32 %v10679_v47, %v8202_v45  ;;  %v374_v45 = vld [vmem:[%s11396_s7 + $0x48] sm:$0xff] }
 0x10a   : > { %2894 = vmatpush.bf16.msrb.mxu1 %v7991_v54  ;;  %v2938_v20 = vunpack.c.h.b16 %v374_v45 }
 0x10b   : > { %2907 = vmatpush.bf16.msrb.mxu2 %v8055_v55  ;;  %v8331_v55 = vor.u32 %v10711_v50, %v8330_v49  ;;  %v373_v49 = vld [vmem:[%s11396_s7 + $0x40] sm:$0xff]  ;;  %v8482_v50 = vld [vmem:[%s11306_s27 + $0xa70] sm:$0xf] }
 0x10c   : > { %2920 = vmatpush.bf16.msrb.mxu3 %v8119_v30  ;;  %v8395_v30 = vor.u32 %v10727_v52, %v8394_v51  ;;  %v8546_v51 = vld [vmem:[%s11306_s27 + $0xaf0] sm:$0xf]  ;;  %v2936_v33 = vunpack.c.h.b16 %v373_v49 }
 0x10d   : > { %2882 = vmatpush.bf16.msrb.mxu0 %v7919_v42  ;;  %v8186_v42 = vld [vmem:[%s11306_s27 + $0x820] sm:$0xf] }
 0x10e   : > { %2895 = vmatpush.bf16.msrb.mxu1 %v7983_v44  ;;  %v2689_v25 = vpop.f32.mrf.mxu1  ;;  %v8187_v6 = vor.u32 %v10675_v60, %v8186_v42  ;;  %v8538_v42 = vld [vmem:[%s11306_s27 + $0xae0] sm:$0xf] }
 0x10f   : > { %2908 = vmatpush.bf16.msrb.mxu2 %v8047_v63  ;;  %v10691_v63 = vld [vmem:[%s11306_s27 + $0x8a4] sm:$0xf0] }
 0x110   : > { %2921 = vmatpush.bf16.msrb.mxu3 %v8111_v2  ;;  %2883 = vmatmul.bf16.vlgmr.msrb.gmra.mxu0 %v11625_v23  ;;  %v8211_v23 = vor.u32 %v10681_v21, %v8210_v17  ;;  %v8251_v10 = vor.u32 %v10691_v63, %v8250_v61  ;;  %v10705_v17 = vld [vmem:[%s11306_s27 + $0x914] sm:$0xf0]  ;;  %v8370_v21 = vld [vmem:[%s11306_s27 + $0x990] sm:$0xf]  ;;  %v10763_v61 = vld [vmem:[%s11306_s27 + $0xae4] sm:$0xf0] }
 0x111   : > { %4263 = vmatpush.bf16.msra.mxu0 %v8227_v3  ;;  %2896 = vmatmul.bf16.vlgmr.msrb.gmra.mxu1 %v11632_v31  ;;  %v8403_v31 = vor.u32 %v10729_v39, %v8402_v37  ;;  %v10687_v37 = vld [vmem:[%s11306_s27 + $0x884] sm:$0xf0]  ;;  %v8371_v47 = vor.u32 %v10721_v24, %v8370_v21  ;;  %v8458_v21 = vld [vmem:[%s11306_s27 + $0xa40] sm:$0xf] }
 0x112   : > { %4276 = vmatpush.bf16.msra.mxu1 %v8291_v46  ;;  %2909 = vmatmul.bf16.vlgmr.msrb.gmra.mxu2 %v11630_v28  ;;  %v8266_v28 = vld [vmem:[%s11306_s27 + $0x8c0] sm:$0xf]  ;;  %v8235_v56 = vor.u32 %v10687_v37, %v8234_v34 }
 0x113   : > { %4289 = vmatpush.bf16.msra.mxu2 %v8355_v4  ;;  %2922 = vmatmul.bf16.vlgmr.msrb.gmra.mxu3 %v11636_v35  ;;  %v2676_v35 = vpop.f32.mrf.mxu0  ;;  %v8267_v54 = vor.u32 %v10695_v48, %v8266_v28  ;;  %v8378_v46 = vld [vmem:[%s11306_s27 + $0x9a0] sm:$0xf]  ;;  %v10723_v4 = vld [vmem:[%s11306_s27 + $0x9a4] sm:$0xf0] }
 0x114   : > { %4302 = vmatpush.bf16.msra.mxu3 %v8419_v9  ;;  %v2677_v18 = vadd.f32 %v2676_v35, %v11891_v36  ;;  %v10709_v36 = vld [vmem:[%s11306_s27 + $0x934] sm:$0xf0]  ;;  %v8362_v28 = vld [vmem:[%s11306_s27 + $0x980] sm:$0xf] }
 0x115   : > { %4264 = vmatpush.bf16.msra.mxu0 %v8219_v15  ;;  %v8323_v22 = vor.u32 %v10709_v36, %v8322_v57  ;;  %v2702_v44 = vpop.f32.mrf.mxu2  ;;  %v8379_v15 = vor.u32 %v10723_v4, %v8378_v46  ;;  %v10749_v35 = vld [vmem:[%s11306_s27 + $0xa74] sm:$0xf0]  ;;  %v12004_v4 = vpack.c.b16 %v2936_v33, %v2936_v33  ;;  %v11247_v34 = vld [vmem:[%s11730_s11] sm:$0x3] }
 0x116   : > { %4277 = vmatpush.bf16.msra.mxu1 %v8283_v8  ;;  %v2690_v38 = vadd.f32 %v2689_v25, %v2677_v18  ;;  %v2715_v3 = vpop.f32.mrf.mxu3  ;;  %v2691_v7 = vpop.f32.mrf.mxu1  ;;  %v10689_v8 = vld [vmem:[%s11306_s27 + $0x894] sm:$0xf0]  ;;  %v8610_v25 = vld [vmem:[%s11306_s27 + $0xb70] sm:$0xf]  ;;  %v8483_v36 = vor.u32 %v10749_v35, %v8482_v50  ;;  %v1164_v37 = vperm.slane %v11247_v34, 1 }
 0x117   : > { %4290 = vmatpush.bf16.msra.mxu2 %v8347_v16  ;;  %v8306_v16 = vld [vmem:[%s11306_s27 + $0x910] sm:$0xf]  ;;  %v8243_v39 = vor.u32 %v10689_v8, %v8242_v14  ;;  %v10741_v35 = vld [vmem:[%s11306_s27 + $0xa34] sm:$0xf0]  ;;  %v8506_v33 = vld [vmem:[%s11306_s27 + $0xaa0] sm:$0xf] }
 0x118   : > { %4303 = vmatpush.bf16.msra.mxu3 %v8411_v26  ;;  %v2703_v2 = vadd.f32 %v2702_v44, %v2690_v38  ;;  %v8170_v26 = vld [vmem:[%s11306_s27 + $0x800] sm:$0xf]  ;;  %v2935_v38 = vunpack.c.l.b16 %v373_v49  ;;  %v10779_v44 = vld [vmem:[%s11306_s27 + $0xb64] sm:$0xf0]  ;;  %v8466_v7 = vld [vmem:[%s11306_s27 + $0xa50] sm:$0xf] }
 0x119   : > { %4265 = vmatpush.bf16.msra.mxu0 %v8211_v23  ;;  %v8307_v23 = vor.u32 %v10705_v17, %v8306_v16  ;;  %v8171_v18 = vor.u32 %v10671_v32, %v8170_v26  ;;  %v8594_v14 = vld [vmem:[%s11306_s27 + $0xb50] sm:$0xf]  ;;  %v10793_v16 = vld [vmem:[%s11306_s27 + $0xbd4] sm:$0xf0]  ;;  %v8522_v32 = vld [vmem:[%s11306_s27 + $0xac0] sm:$0xf] }
 0x11a   : > { %4278 = vmatpush.bf16.msra.mxu1 %v8275_v40  ;;  %v11962_v9 = vadd.f32 %v2715_v3, %v2703_v2  ;;  %v8298_v40 = vld [vmem:[%s11306_s27 + $0x900] sm:$0xf]  ;;  %v12000_v2 = vpack.c.b16 %v2935_v38, %v2935_v38  ;;  %v12002_v3 = vpack.c.b16 %v2938_v20, %v2938_v20  ;;  %v8658_v8 = vld [vmem:[%s11306_s27 + $0xbd0] sm:$0xf] }
 0x11b   : > { %4291 = vmatpush.bf16.msra.mxu2 %v8339_v43  ;;  %v2678_v5 = vpop.f32.mrf.mxu0  ;;  %v10703_v43 = vld [vmem:[%s11306_s27 + $0x904] sm:$0xf0]  ;;  %v8450_v50 = vld [vmem:[%s11306_s27 + $0xa30] sm:$0xf] }
 0x11c   : > { %4304 = vmatpush.bf16.msra.mxu3 %v8403_v31  ;;  %v10719_v31 = vld [vmem:[%s11306_s27 + $0x984] sm:$0xf0]  ;;  %v8299_v19 = vor.u32 %v10703_v43, %v8298_v40  ;;  %v8539_v5 = vor.u32 %v10763_v61, %v8538_v42  ;;  %v8586_v40 = vld [vmem:[%s11306_s27 + $0xb40] sm:$0xf] }
 0x11d   : > { %4266 = vmatpush.bf16.msra.mxu0 %v8203_v53  ;;  %v2704_v48 = vpop.f32.mrf.mxu2  ;;  %v10765_v53 = vld [vmem:[%s11306_s27 + $0xaf4] sm:$0xf0]  ;;  %v8363_v57 = vor.u32 %v10719_v31, %v8362_v28  ;;  %v10775_v43 = vld [vmem:[%s11306_s27 + $0xb44] sm:$0xf0] }
 0x11e   : > { %4279 = vmatpush.bf16.msra.mxu1 %v8267_v54  ;;  %v2717_v52 = vpop.f32.mrf.mxu3  ;;  %v10781_v54 = vld [vmem:[%s11306_s27 + $0xb74] sm:$0xf0]  ;;  %v8547_v58 = vor.u32 %v10765_v53, %v8546_v51  ;;  %v8587_v49 = vor.u32 %v10775_v43, %v8586_v40  ;;  %v8514_v51 = vld [vmem:[%s11306_s27 + $0xab0] sm:$0xf]  ;;  %v10771_v42 = vld [vmem:[%s11306_s27 + $0xb24] sm:$0xf0] }
 0x11f   : > { %4292 = vmatpush.bf16.msra.mxu2 %v8331_v55  ;;  %v2937_v55 = vunpack.c.l.b16 %v374_v45  ;;  %v8650_v45 = vld [vmem:[%s11306_s27 + $0xbc0] sm:$0xf]  ;;  %v376_v40 = vld [vmem:[%s11396_s7 + $0x58] sm:$0xff] }
 0x120   : > { %4305 = vmatpush.bf16.msra.mxu3 %v8395_v30  ;;  %v10797_v30 = vld [vmem:[%s11306_s27 + $0xbf4] sm:$0xf0] }
 0x121   : > { %4267 = vmatpush.bf16.msra.mxu0 %v8195_v59  ;;  %v8611_v59 = vor.u32 %v10781_v54, %v8610_v25  ;;  %v8675_v60 = vor.u32 %v10797_v30, %v8674_v29  ;;  %v11996_v63 = vpack.c.b16 %v2937_v55, %v2937_v55  ;;  %v10757_v25 = vld [vmem:[%s11306_s27 + $0xab4] sm:$0xf0]  ;;  %v8578_v54 = vld [vmem:[%s11306_s27 + $0xb30] sm:$0xf]  ;;  %v8451_v30 = vor.u32 %v10741_v35, %v8450_v50 }
 0x122   : > { %4280 = vmatpush.bf16.msra.mxu1 %v8259_v41  ;;  %v8474_v41 = vld [vmem:[%s11306_s27 + $0xa60] sm:$0xf]  ;;  %v10773_v55 = vld [vmem:[%s11306_s27 + $0xb34] sm:$0xf0]  ;;  %v8515_v38 = vor.u32 %v10757_v25, %v8514_v51  ;;  %v8802_v35 = vld [vmem:[%s11306_s27 + $0xcf0] sm:$0xf]  ;;  %v2941_v25 = vunpack.c.l.b16 %v376_v40 }
 0x123   : > { %4293 = vmatpush.bf16.msra.mxu2 %v8323_v22  ;;  %v10747_v22 = vld [vmem:[%s11306_s27 + $0xa64] sm:$0xf0]  ;;  %v8579_v20 = vor.u32 %v10773_v55, %v8578_v54  ;;  %v10813_v50 = vld [vmem:[%s11306_s27 + $0xc74] sm:$0xf0] }
 0x124   : > { %4306 = vmatpush.bf16.msra.mxu3 %v8387_v62  ;;  %v8602_v62 = vld [vmem:[%s11306_s27 + $0xb60] sm:$0xf]  ;;  %v8475_v46 = vor.u32 %v10747_v22, %v8474_v41  ;;  %v10755_v41 = vld [vmem:[%s11306_s27 + $0xaa4] sm:$0xf0] }
 0x125   : > { %4268 = vmatpush.bf16.msra.mxu0 %v8187_v6  ;;  %v8603_v6 = vor.u32 %v10779_v44, %v8602_v62  ;;  %v8570_v22 = vld [vmem:[%s11306_s27 + $0xb20] sm:$0xf]  ;;  %v10787_v44 = vld [vmem:[%s11306_s27 + $0xba4] sm:$0xf0] }
 0x126   : > { %4281 = vmatpush.bf16.msra.mxu1 %v8251_v10  ;;  %v10745_v10 = vld [vmem:[%s11306_s27 + $0xa54] sm:$0xf0]  ;;  %v8634_v62 = vld [vmem:[%s11306_s27 + $0xba0] sm:$0xf] }
 0x127   : > { %4294 = vmatpush.bf16.msra.mxu2 %v8315_v11  ;;  %v8530_v11 = vld [vmem:[%s11306_s27 + $0xad0] sm:$0xf]  ;;  %v8467_v17 = vor.u32 %v10745_v10, %v8466_v7  ;;  %v10737_v10 = vld [vmem:[%s11306_s27 + $0xa14] sm:$0xf0] }
 0x128   : > { %4307 = vmatpush.bf16.msra.mxu3 %v8379_v15  ;;  %v10777_v15 = vld [vmem:[%s11306_s27 + $0xb54] sm:$0xf0]  ;;  %v8531_v24 = vor.u32 %v10761_v13, %v8530_v11  ;;  %v8434_v7 = vld [vmem:[%s11306_s27 + $0xa10] sm:$0xf]  ;;  %v8635_v13 = vor.u32 %v10787_v44, %v8634_v62  ;;  %v12077_v62 = vpack.c.b16 %v2941_v25, %v2941_v25  ;;  %v8922_v44 = vld [vmem:[%s11306_s27 + $0xde0] sm:$0xf] }
 0x129   : > { %4269 = vmatpush.bf16.msra.mxu0 %v8179_v27  ;;  %v8595_v26 = vor.u32 %v10777_v15, %v8594_v14  ;;  %v10743_v27 = vld [vmem:[%s11306_s27 + $0xa44] sm:$0xf0]  ;;  %v8498_v11 = vld [vmem:[%s11306_s27 + $0xa90] sm:$0xf]  ;;  %v10753_v14 = vld [vmem:[%s11306_s27 + $0xa94] sm:$0xf0] }
 0x12a   : > { %4282 = vmatpush.bf16.msra.mxu1 %v8243_v39  ;;  %v8659_v39 = vor.u32 %v10793_v16, %v8658_v8  ;;  %v8459_v28 = vor.u32 %v10743_v27, %v8458_v21  ;;  %v8562_v15 = vld [vmem:[%s11306_s27 + $0xb10] sm:$0xf]  ;;  %v10769_v8 = vld [vmem:[%s11306_s27 + $0xb14] sm:$0xf0]  ;;  %v8426_v21 = vld [vmem:[%s11306_s27 + $0xa00] sm:$0xf]  ;;  %v8499_v34 = vor.u32 %v10753_v14, %v8498_v11 }
 0x12b   : > { %4295 = vmatpush.bf16.msra.mxu2 %v8307_v23  ;;  %v10759_v23 = vld [vmem:[%s11306_s27 + $0xac4] sm:$0xf0]  ;;  %v8626_v16 = vld [vmem:[%s11306_s27 + $0xb90] sm:$0xf]  ;;  %v8490_v27 = vld [vmem:[%s11306_s27 + $0xa80] sm:$0xf] }
 0x12c   : > { %4308 = vmatpush.bf16.msra.mxu3 %v8371_v47  ;;  %v10791_v47 = vld [vmem:[%s11306_s27 + $0xbc4] sm:$0xf0]  ;;  %v8523_v48 = vor.u32 %v10759_v23, %v8522_v32  ;;  %v8786_v14 = vld [vmem:[%s11306_s27 + $0xcd0] sm:$0xf]  ;;  %v10821_v25 = vld [vmem:[%s11306_s27 + $0xcb4] sm:$0xf0] }
 0x12d   : > { %4270 = vmatpush.bf16.msra.mxu0 %v8171_v18  ;;  %v2728_v31 = vpop.f32.mrf.mxu0  ;;  %v8651_v53 = vor.u32 %v10791_v47, %v8650_v45  ;;  %v10751_v32 = vld [vmem:[%s11306_s27 + $0xa84] sm:$0xf0]  ;;  %v8618_v47 = vld [vmem:[%s11306_s27 + $0xb80] sm:$0xf] }
 0x12e   : > { %4283 = vmatpush.bf16.msra.mxu1 %v8235_v56  ;;  %v2729_v52 = vadd.f32 %v2728_v31, %v1164_v37  ;;  %v2741_v18 = vpop.f32.mrf.mxu1  ;;  %v8642_v56 = vld [vmem:[%s11306_s27 + $0xbb0] sm:$0xf]  ;;  %v8563_v37 = vor.u32 %v10769_v8, %v8562_v15  ;;  %v10767_v23 = vld [vmem:[%s11306_s27 + $0xb04] sm:$0xf0]  ;;  %v8491_v54 = vor.u32 %v10751_v32, %v8490_v27  ;;  %v10825_v8 = vld [vmem:[%s11306_s27 + $0xcd4] sm:$0xf0] }
 0x12f   : > { %4296 = vmatpush.bf16.msra.mxu2 %v8299_v19  ;;  %v10789_v19 = vld [vmem:[%s11306_s27 + $0xbb4] sm:$0xf0]  ;;  %v375_v31 = vld [vmem:[%s11396_s7 + $0x50] sm:$0xff]  ;;  %v8787_v27 = vor.u32 %v10825_v8, %v8786_v14 }
 0x130   : > { %4309 = vmatpush.bf16.msra.mxu3 %v8363_v57  ;;  %4271 = vmatmul.bf16.vlgmr.msra.gmra.mxu0 %v12000_v2  ;;  %v2742_v29 = vadd.f32 %v2741_v18, %v2729_v52  ;;  %v8442_v57 = vld [vmem:[%s11306_s27 + $0xa20] sm:$0xf]  ;;  %v10829_v52 = vld [vmem:[%s11306_s27 + $0xcf4] sm:$0xf0]  ;;  %v8866_v18 = vld [vmem:[%s11306_s27 + $0xd70] sm:$0xf] }
 0x131   : > { %4315 = vmatpush.bf16.msrb.mxu0 %v8483_v36  ;;  %4284 = vmatmul.bf16.vlgmr.msra.gmra.mxu1 %v12004_v4  ;;  %v10739_v36 = vld [vmem:[%s11306_s27 + $0xa24] sm:$0xf0]  ;;  %v10817_v8 = vld [vmem:[%s11306_s27 + $0xc94] sm:$0xf0] }
 0x132   : > { %4328 = vmatpush.bf16.msrb.mxu1 %v8547_v58  ;;  %4297 = vmatmul.bf16.vlgmr.msra.gmra.mxu2 %v11996_v63  ;;  %v8443_v0 = vor.u32 %v10739_v36, %v8442_v57  ;;  %v2940_v57 = vunpack.c.h.b16 %v375_v31  ;;  %v8803_v36 = vor.u32 %v10829_v52, %v8802_v35  ;;  %v8706_v35 = vld [vmem:[%s11306_s27 + $0xc30] sm:$0xf] }
 0x133   : > { %4341 = vmatpush.bf16.msrb.mxu2 %v8611_v59  ;;  %4310 = vmatmul.bf16.vlgmr.msra.gmra.mxu3 %v12002_v3  ;;  %v8643_v59 = vor.u32 %v10789_v19, %v8642_v56  ;;  %v8930_v56 = vld [vmem:[%s11306_s27 + $0xdf0] sm:$0xf]  ;;  %v10861_v19 = vld [vmem:[%s11306_s27 + $0xdf4] sm:$0xf0] }
 0x134   : > { %4354 = vmatpush.bf16.msrb.mxu3 %v8675_v60  ;;  %v8770_v52 = vld [vmem:[%s11306_s27 + $0xcb0] sm:$0xf] }
 0x135   : > { %4316 = vmatpush.bf16.msrb.mxu0 %v8475_v46  ;;  %v2754_v58 = vpop.f32.mrf.mxu2  ;;  %v2730_v46 = vpop.f32.mrf.mxu0 }
 0x136   : > { %4329 = vmatpush.bf16.msrb.mxu1 %v8539_v5  ;;  %v2755_v60 = vadd.f32 %v2754_v58, %v2742_v29  ;;  %v2767_v61 = vpop.f32.mrf.mxu3  ;;  %v8507_v5 = vor.u32 %v10755_v41, %v8506_v33  ;;  %v2939_v29 = vunpack.c.l.b16 %v375_v31  ;;  %v8730_v58 = vld [vmem:[%s11306_s27 + $0xc60] sm:$0xf] }
 0x137   : > { %4342 = vmatpush.bf16.msrb.mxu2 %v8603_v6  ;;  %v8571_v6 = vor.u32 %v10771_v42, %v8570_v22  ;;  %v8794_v41 = vld [vmem:[%s11306_s27 + $0xce0] sm:$0xf]  ;;  %v8931_v22 = vor.u32 %v10861_v19, %v8930_v56  ;;  %v10827_v42 = vld [vmem:[%s11306_s27 + $0xce4] sm:$0xf0]  ;;  %v8898_v56 = vld [vmem:[%s11306_s27 + $0xdb0] sm:$0xf] }
 0x138   : > { %4355 = vmatpush.bf16.msrb.mxu3 %v8667_v12  ;;  %v12043_v1 = vadd.f32 %v2767_v61, %v2755_v60  ;;  %v2743_v12 = vpop.f32.mrf.mxu1  ;;  %v8858_v60 = vld [vmem:[%s11306_s27 + $0xd60] sm:$0xf]  ;;  %v10843_v61 = vld [vmem:[%s11306_s27 + $0xd64] sm:$0xf0]  ;;  %v12081_v46 = vpack.c.b16 %v2939_v29, %v2939_v29  ;;  %v10853_v19 = vld [vmem:[%s11306_s27 + $0xdb4] sm:$0xf0] }
 0x139   : > { %4317 = vmatpush.bf16.msrb.mxu0 %v8467_v17  ;;  %v10785_v17 = vld [vmem:[%s11306_s27 + $0xb94] sm:$0xf0]  ;;  %v8859_v11 = vor.u32 %v10843_v61, %v8858_v60  ;;  %v8722_v12 = vld [vmem:[%s11306_s27 + $0xc50] sm:$0xf]  ;;  %v8890_v60 = vld [vmem:[%s11306_s27 + $0xda0] sm:$0xf] }
 0x13a   : > { %4330 = vmatpush.bf16.msrb.mxu1 %v8531_v24  ;;  %v8435_v24 = vor.u32 %v10737_v10, %v8434_v7  ;;  %v8627_v45 = vor.u32 %v10785_v17, %v8626_v16  ;;  %v12085_v7 = vpack.c.b16 %v2940_v57, %v2940_v57  ;;  %v8795_v10 = vor.u32 %v10827_v42, %v8794_v41  ;;  %v8850_v16 = vld [vmem:[%s11306_s27 + $0xd50] sm:$0xf]  ;;  %v10841_v17 = vld [vmem:[%s11306_s27 + $0xd54] sm:$0xf0]  ;;  %v10803_v57 = vld [vmem:[%s11306_s27 + $0xc24] sm:$0xf0] }
 0x13b   : > { %4343 = vmatpush.bf16.msrb.mxu2 %v8595_v26  ;;  %v10735_v26 = vld [vmem:[%s11306_s27 + $0xa04] sm:$0xf0]  ;;  %v8851_v32 = vor.u32 %v10841_v17, %v8850_v16  ;;  %v8826_v41 = vld [vmem:[%s11306_s27 + $0xd20] sm:$0xf]  ;;  %v8818_v16 = vld [vmem:[%s11306_s27 + $0xd10] sm:$0xf] }
 0x13c   : > { %4356 = vmatpush.bf16.msrb.mxu3 %v8659_v39  ;;  %v8554_v39 = vld [vmem:[%s11306_s27 + $0xb00] sm:$0xf]  ;;  %v8427_v51 = vor.u32 %v10735_v26, %v8426_v21  ;;  %v8914_v21 = vld [vmem:[%s11306_s27 + $0xdd0] sm:$0xf]  ;;  %v10851_v61 = vld [vmem:[%s11306_s27 + $0xda4] sm:$0xf0] }
 0x13d   : > { %4318 = vmatpush.bf16.msrb.mxu0 %v8459_v28  ;;  %v2756_v43 = vpop.f32.mrf.mxu2  ;;  %v10783_v28 = vld [vmem:[%s11306_s27 + $0xb84] sm:$0xf0]  ;;  %v8555_v55 = vor.u32 %v10767_v23, %v8554_v39  ;;  %v8778_v39 = vld [vmem:[%s11306_s27 + $0xcc0] sm:$0xf]  ;;  %v10833_v17 = vld [vmem:[%s11306_s27 + $0xd14] sm:$0xf0] }
 0x13e   : > { %4331 = vmatpush.bf16.msrb.mxu1 %v8523_v48  ;;  %v2769_v48 = vpop.f32.mrf.mxu3  ;;  %v8842_v43 = vld [vmem:[%s11306_s27 + $0xd40] sm:$0xf] }
 0x13f   : > { %4344 = vmatpush.bf16.msrb.mxu2 %v8587_v49  ;;  %v8738_v49 = vld [vmem:[%s11306_s27 + $0xc70] sm:$0xf] }
 0x140   : > { %4357 = vmatpush.bf16.msrb.mxu3 %v8651_v53  ;;  %v10845_v53 = vld [vmem:[%s11306_s27 + $0xd74] sm:$0xf0] }
 0x141   : > { %4319 = vmatpush.bf16.msrb.mxu0 %v8451_v30  ;;  %v2942_v30 = vunpack.c.h.b16 %v376_v40  ;;  %v8867_v33 = vor.u32 %v10845_v53, %v8866_v18  ;;  %v10823_v40 = vld [vmem:[%s11306_s27 + $0xcc4] sm:$0xf0] }
 0x142   : > { %4332 = vmatpush.bf16.msrb.mxu1 %v8515_v38  ;;  %v8619_v38 = vor.u32 %v10783_v28, %v8618_v47  ;;  %v8906_v47 = vld [vmem:[%s11306_s27 + $0xdc0] sm:$0xf]  ;;  %v10855_v28 = vld [vmem:[%s11306_s27 + $0xdc4] sm:$0xf0] }
 0x143   : > { %4345 = vmatpush.bf16.msrb.mxu2 %v8579_v20  ;;  %v8739_v20 = vor.u32 %v10813_v50, %v8738_v49  ;;  %v8779_v49 = vor.u32 %v10823_v40, %v8778_v39  ;;  %v8907_v53 = vor.u32 %v10855_v28, %v8906_v47  ;;  %v8810_v40 = vld [vmem:[%s11306_s27 + $0xd00] sm:$0xf] }
 0x144   : > { %4358 = vmatpush.bf16.msrb.mxu3 %v8643_v59  ;;  %v10811_v59 = vld [vmem:[%s11306_s27 + $0xc64] sm:$0xf0] }
 0x145   : > { %4320 = vmatpush.bf16.msrb.mxu0 %v8443_v0  ;;  %v10859_v0 = vld [vmem:[%s11306_s27 + $0xde4] sm:$0xf0] }
 0x146   : > { %4333 = vmatpush.bf16.msrb.mxu1 %v8507_v5  ;;  %v12083_v5 = vpack.c.b16 %v2942_v30, %v2942_v30  ;;  %v8923_v15 = vor.u32 %v10859_v0, %v8922_v44  ;;  %v8771_v30 = vor.u32 %v10821_v25, %v8770_v52  ;;  %v10877_v52 = vld [vmem:[%s11306_s27 + $0xe74] sm:$0xf0] }
 0x147   : > { %4346 = vmatpush.bf16.msrb.mxu2 %v8571_v6  ;;  %v8731_v6 = vor.u32 %v10811_v59, %v8730_v58  ;;  %v8899_v58 = vor.u32 %v10853_v19, %v8898_v56  ;;  %v10819_v59 = vld [vmem:[%s11306_s27 + $0xca4] sm:$0xf0]  ;;  %v10909_v56 = vld [vmem:[%s11306_s27 + $0xf74] sm:$0xf0] }
 0x148   : > { %4359 = vmatpush.bf16.msrb.mxu3 %v8635_v13  ;;  %v10809_v13 = vld [vmem:[%s11306_s27 + $0xc54] sm:$0xf0] }
 0x149   : > { %4321 = vmatpush.bf16.msrb.mxu0 %v8435_v24  ;;  %v10857_v24 = vld [vmem:[%s11306_s27 + $0xdd4] sm:$0xf0]  ;;  %v8723_v26 = vor.u32 %v10809_v13, %v8722_v12  ;;  %v8754_v13 = vld [vmem:[%s11306_s27 + $0xc90] sm:$0xf] }
 0x14a   : > { %4334 = vmatpush.bf16.msrb.mxu1 %v8499_v34  ;;  %v8714_v34 = vld [vmem:[%s11306_s27 + $0xc40] sm:$0xf]  ;;  %v8915_v23 = vor.u32 %v10857_v24, %v8914_v21  ;;  %v10801_v12 = vld [vmem:[%s11306_s27 + $0xc14] sm:$0xf0]  ;;  %v8882_v21 = vld [vmem:[%s11306_s27 + $0xd90] sm:$0xf]  ;;  %v8755_v39 = vor.u32 %v10817_v8, %v8754_v13 }
 0x14b   : > { %4347 = vmatpush.bf16.msrb.mxu2 %v8563_v37  ;;  %v10807_v37 = vld [vmem:[%s11306_s27 + $0xc44] sm:$0xf0]  ;;  %v10849_v24 = vld [vmem:[%s11306_s27 + $0xd94] sm:$0xf0]  ;;  %v9178_v8 = vld [vmem:[%s11306_s27 + $0xfe0] sm:$0xf] }
 0x14c   : > { %4360 = vmatpush.bf16.msrb.mxu3 %v8627_v45  ;;  %v10839_v45 = vld [vmem:[%s11306_s27 + $0xd44] sm:$0xf0]  ;;  %v8715_v31 = vor.u32 %v10807_v37, %v8714_v34  ;;  %v8746_v34 = vld [vmem:[%s11306_s27 + $0xc80] sm:$0xf]  ;;  %v8883_v28 = vor.u32 %v10849_v24, %v8882_v21 }
 0x14d   : > { %4322 = vmatpush.bf16.msrb.mxu0 %v8427_v51  ;;  %v12107_v48 = vpop.f32.mrf.mxu0  ;;  %v8843_v50 = vor.u32 %v10839_v45, %v8842_v43  ;;  %v10805_v51 = vld [vmem:[%s11306_s27 + $0xc34] sm:$0xf0]  ;;  %v10815_v37 = vld [vmem:[%s11306_s27 + $0xc84] sm:$0xf0]  ;;  %v377_v45 = vld [vmem:[%s11396_s7 + $0x60] sm:$0xff] }
 0x14e   : > { %4335 = vmatpush.bf16.msrb.mxu1 %v8491_v54  ;;  %v12112_v18 = vpop.f32.mrf.mxu1  ;;  %v8834_v54 = vld [vmem:[%s11306_s27 + $0xd30] sm:$0xf]  ;;  %v8707_v29 = vor.u32 %v10805_v51, %v8706_v35  ;;  %v10831_v43 = vld [vmem:[%s11306_s27 + $0xd04] sm:$0xf0]  ;;  %v2943_v19 = vunpack.c.l.b16 %v377_v45 }
 0x14f   : > { %4348 = vmatpush.bf16.msrb.mxu2 %v8555_v55  ;;  %v10837_v55 = vld [vmem:[%s11306_s27 + $0xd34] sm:$0xf0]  ;;  %v8994_v51 = vld [vmem:[%s11306_s27 + $0xe70] sm:$0xf]  ;;  %v10907_v13 = vld [vmem:[%s11306_s27 + $0xf64] sm:$0xf0] }
 0x150   : > { %4361 = vmatpush.bf16.msrb.mxu3 %v8619_v38  ;;  %4323 = vmatmul.bf16.vlgmr.msrb.gmra.mxu0 %v12081_v46  ;;  %v8835_v38 = vor.u32 %v10837_v55, %v8834_v54  ;;  %v10893_v54 = vld [vmem:[%s11306_s27 + $0xef4] sm:$0xf0]  ;;  %v9122_v55 = vld [vmem:[%s11306_s27 + $0xf70] sm:$0xf] }
 0x151   : > { %4367 = vmatpush.bf16.msra.mxu0 %v8739_v20  ;;  %4336 = vmatmul.bf16.vlgmr.msrb.gmra.mxu1 %v12085_v7  ;;  %v8698_v20 = vld [vmem:[%s11306_s27 + $0xc20] sm:$0xf] }
 0x152   : > { %4380 = vmatpush.bf16.msra.mxu1 %v8803_v36  ;;  %4349 = vmatmul.bf16.vlgmr.msrb.gmra.mxu2 %v12077_v62  ;;  %v8762_v36 = vld [vmem:[%s11306_s27 + $0xca0] sm:$0xf]  ;;  %v8699_v44 = vor.u32 %v10803_v57, %v8698_v20  ;;  %v10925_v20 = vld [vmem:[%s11306_s27 + $0xff4] sm:$0xf0] }
 0x153   : > { %4393 = vmatpush.bf16.msra.mxu2 %v8867_v33  ;;  %4362 = vmatmul.bf16.vlgmr.msrb.gmra.mxu3 %v12083_v5 }
 0x154   : > { %4406 = vmatpush.bf16.msra.mxu3 %v8931_v22  ;;  %v10835_v22 = vld [vmem:[%s11306_s27 + $0xd24] sm:$0xf0] }
 0x155   : > { %4368 = vmatpush.bf16.msra.mxu0 %v8731_v6  ;;  %v12122_v33 = vpop.f32.mrf.mxu2  ;;  %v2782_v0 = vpop.f32.mrf.mxu0  ;;  %v8763_v6 = vor.u32 %v10819_v59, %v8762_v36  ;;  %v2944_v36 = vunpack.c.h.b16 %v377_v45  ;;  %v8995_v59 = vor.u32 %v10877_v52, %v8994_v51  ;;  %v10921_v45 = vld [vmem:[%s11306_s27 + $0xfd4] sm:$0xf0]  ;;  %v10887_v52 = vld [vmem:[%s11306_s27 + $0xec4] sm:$0xf0] }
 0x156   : > { %4381 = vmatpush.bf16.msra.mxu1 %v8795_v10  ;;  %v12127_v42 = vpop.f32.mrf.mxu3  ;;  %v8827_v10 = vor.u32 %v10835_v22, %v8826_v41  ;;  %v2795_v14 = vpop.f32.mrf.mxu1  ;;  %v9050_v0 = vld [vmem:[%s11306_s27 + $0xee0] sm:$0xf] }
 0x157   : > { %4394 = vmatpush.bf16.msra.mxu2 %v8859_v11  ;;  %v8690_v11 = vld [vmem:[%s11306_s27 + $0xc10] sm:$0xf] }
 0x158   : > { %4407 = vmatpush.bf16.msra.mxu3 %v8923_v15  ;;  %v8891_v15 = vor.u32 %v10851_v61, %v8890_v60  ;;  %v9123_v60 = vor.u32 %v10909_v56, %v9122_v55  ;;  %v8986_v61 = vld [vmem:[%s11306_s27 + $0xe60] sm:$0xf]  ;;  %v10919_v56 = vld [vmem:[%s11306_s27 + $0xfc4] sm:$0xf0] }
 0x159   : > { %4369 = vmatpush.bf16.msra.mxu0 %v8723_v26  ;;  %v8682_v26 = vld [vmem:[%s11306_s27 + $0xc00] sm:$0xf] }
 0x15a   : > { %4382 = vmatpush.bf16.msra.mxu1 %v8787_v27  ;;  %v8691_v27 = vor.u32 %v10801_v12, %v8690_v11  ;;  %v10891_v11 = vld [vmem:[%s11306_s27 + $0xee4] sm:$0xf0]  ;;  %v9114_v12 = vld [vmem:[%s11306_s27 + $0xf60] sm:$0xf] }
 0x15b   : > { %4395 = vmatpush.bf16.msra.mxu2 %v8851_v32  ;;  %v10799_v32 = vld [vmem:[%s11306_s27 + $0xc04] sm:$0xf0]  ;;  %v9051_v24 = vor.u32 %v10891_v11, %v9050_v0  ;;  %v9162_v55 = vld [vmem:[%s11306_s27 + $0xfc0] sm:$0xf] }
 0x15c   : > { %4408 = vmatpush.bf16.msra.mxu3 %v8915_v23  ;;  %v8819_v23 = vor.u32 %v10833_v17, %v8818_v16  ;;  %v8683_v25 = vor.u32 %v10799_v32, %v8682_v26  ;;  %v10923_v16 = vld [vmem:[%s11306_s27 + $0xfe4] sm:$0xf0]  ;;  %v9115_v26 = vor.u32 %v10907_v13, %v9114_v12  ;;  %v10873_v32 = vld [vmem:[%s11306_s27 + $0xe54] sm:$0xf0]  ;;  %v8954_v12 = vld [vmem:[%s11306_s27 + $0xe20] sm:$0xf] }
 0x15d   : > { %4370 = vmatpush.bf16.msra.mxu0 %v8715_v31  ;;  %v2808_v47 = vpop.f32.mrf.mxu2  ;;  %v8874_v31 = vld [vmem:[%s11306_s27 + $0xd80] sm:$0xf]  ;;  %v10867_v13 = vld [vmem:[%s11306_s27 + $0xe24] sm:$0xf0] }
 0x15e   : > { %4383 = vmatpush.bf16.msra.mxu1 %v8779_v49  ;;  %v10847_v49 = vld [vmem:[%s11306_s27 + $0xd84] sm:$0xf0]  ;;  %v2821_v35 = vpop.f32.mrf.mxu3 }
 0x15f   : > { %4396 = vmatpush.bf16.msra.mxu2 %v8843_v50  ;;  %v378_v50 = vld [vmem:[%s11396_s7 + $0x68] sm:$0xff]  ;;  %v9034_v35 = vld [vmem:[%s11306_s27 + $0xec0] sm:$0xf] }
 0x160   : > { %4409 = vmatpush.bf16.msra.mxu3 %v8907_v53  ;;  %v9058_v53 = vld [vmem:[%s11306_s27 + $0xef0] sm:$0xf]  ;;  %v2945_v57 = vunpack.c.l.b16 %v378_v50  ;;  %v2946_v41 = vunpack.c.h.b16 %v378_v50  ;;  %v10871_v50 = vld [vmem:[%s11306_s27 + $0xe44] sm:$0xf0] }
 0x161   : > { %4371 = vmatpush.bf16.msra.mxu0 %v8707_v29  ;;  %v8747_v29 = vor.u32 %v10815_v37, %v8746_v34  ;;  %v9059_v22 = vor.u32 %v10893_v54, %v9058_v53  ;;  %v9042_v34 = vld [vmem:[%s11306_s27 + $0xed0] sm:$0xf]  ;;  %v9179_v37 = vor.u32 %v10923_v16, %v9178_v8  ;;  %v9098_v53 = vld [vmem:[%s11306_s27 + $0xf40] sm:$0xf] }
 0x162   : > { %4384 = vmatpush.bf16.msra.mxu1 %v8771_v30  ;;  %v8811_v30 = vor.u32 %v10831_v43, %v8810_v40  ;;  %v12165_v14 = vpack.c.b16 %v2945_v57, %v2945_v57  ;;  %v12171_v17 = vpack.c.b16 %v2946_v41, %v2946_v41  ;;  %v10905_v40 = vld [vmem:[%s11306_s27 + $0xf54] sm:$0xf0]  ;;  %v9170_v43 = vld [vmem:[%s11306_s27 + $0xfd0] sm:$0xf]  ;;  %v9018_v8 = vld [vmem:[%s11306_s27 + $0xea0] sm:$0xf] }
 0x163   : > { %4397 = vmatpush.bf16.msra.mxu2 %v8835_v38  ;;  %v9186_v38 = vld [vmem:[%s11306_s27 + $0xff0] sm:$0xf]  ;;  %v9171_v51 = vor.u32 %v10921_v45, %v9170_v43  ;;  %v10869_v57 = vld [vmem:[%s11306_s27 + $0xe34] sm:$0xf0] }
 0x164   : > { %4410 = vmatpush.bf16.msra.mxu3 %v8899_v58  ;;  %v8875_v58 = vor.u32 %v10847_v49, %v8874_v31  ;;  %v8970_v49 = vld [vmem:[%s11306_s27 + $0xe40] sm:$0xf]  ;;  %v9090_v41 = vld [vmem:[%s11306_s27 + $0xf30] sm:$0xf] }
 0x165   : > { %4372 = vmatpush.bf16.msra.mxu0 %v8699_v44  ;;  %v10875_v44 = vld [vmem:[%s11306_s27 + $0xe64] sm:$0xf0]  ;;  %v8946_v45 = vld [vmem:[%s11306_s27 + $0xe10] sm:$0xf] }
 0x166   : > { %4385 = vmatpush.bf16.msra.mxu1 %v8763_v6  ;;  %v9187_v6 = vor.u32 %v10925_v20, %v9186_v38  ;;  %v8987_v21 = vor.u32 %v10875_v44, %v8986_v61  ;;  %v8962_v20 = vld [vmem:[%s11306_s27 + $0xe30] sm:$0xf]  ;;  %v10917_v61 = vld [vmem:[%s11306_s27 + $0xfb4] sm:$0xf0]  ;;  %v2781_v44 = vadd.f32 %v12107_v48, %v12043_v1  ;;  %v10899_v1 = vld [vmem:[%s11306_s27 + $0xf24] sm:$0xf0] }
 0x167   : > { %4398 = vmatpush.bf16.msra.mxu2 %v8827_v10  ;;  %v12160_v10 = vpack.c.b16 %v2943_v19, %v2943_v19  ;;  %v8971_v19 = vor.u32 %v10871_v50, %v8970_v49  ;;  %v8963_v0 = vor.u32 %v10869_v57, %v8962_v20  ;;  %v10881_v49 = vld [vmem:[%s11306_s27 + $0xe94] sm:$0xf0]  ;;  %v9066_v20 = vld [vmem:[%s11306_s27 + $0xf00] sm:$0xf]  ;;  %v10895_v57 = vld [vmem:[%s11306_s27 + $0xf04] sm:$0xf0] }
 0x168   : > { %4411 = vmatpush.bf16.msra.mxu3 %v8891_v15  ;;  %v12167_v15 = vpack.c.b16 %v2944_v36, %v2944_v36  ;;  %v9026_v36 = vld [vmem:[%s11306_s27 + $0xeb0] sm:$0xf]  ;;  %v10897_v50 = vld [vmem:[%s11306_s27 + $0xf14] sm:$0xf0] }
 0x169   : > { %4373 = vmatpush.bf16.msra.mxu0 %v8691_v27  ;;  %v8978_v27 = vld [vmem:[%s11306_s27 + $0xe50] sm:$0xf] }
 0x16a   : > { %4386 = vmatpush.bf16.msra.mxu1 %v8755_v39  ;;  %v10889_v39 = vld [vmem:[%s11306_s27 + $0xed4] sm:$0xf0]  ;;  %v8979_v47 = vor.u32 %v10873_v32, %v8978_v27  ;;  %v9146_v27 = vld [vmem:[%s11306_s27 + $0xfa0] sm:$0xf]  ;;  %v10915_v32 = vld [vmem:[%s11306_s27 + $0xfa4] sm:$0xf0] }
 0x16b   : > { %4399 = vmatpush.bf16.msra.mxu2 %v8819_v23  ;;  %v9106_v23 = vld [vmem:[%s11306_s27 + $0xf50] sm:$0xf] }
 0x16c   : > { %4412 = vmatpush.bf16.msra.mxu3 %v8883_v28  ;;  %v9043_v28 = vor.u32 %v10889_v39, %v9042_v34  ;;  %v9107_v31 = vor.u32 %v10905_v40, %v9106_v23  ;;  %v8955_v39 = vor.u32 %v10867_v13, %v8954_v12  ;;  %v8292_v12 = vld [vmem:[%s11306_s27 + $0x8f8] sm:$0xf0]  ;;  %v10716_v13 = vld [vmem:[%s11306_s27 + $0x974] sm:$0xf] }
 0x16d   : > { %4374 = vmatpush.bf16.msra.mxu0 %v8683_v25  ;;  %v10903_v25 = vld [vmem:[%s11306_s27 + $0xf44] sm:$0xf0]  ;;  %v12191_v54 = vpop.f32.mrf.mxu0 }
 0x16e   : > { %4387 = vmatpush.bf16.msra.mxu1 %v8747_v29  ;;  %v12195_v29 = vpop.f32.mrf.mxu1  ;;  %v9099_v38 = vor.u32 %v10903_v25, %v9098_v53 }
 0x16f   : > { %4400 = vmatpush.bf16.msra.mxu2 %v8811_v30  ;;  %v9035_v30 = vor.u32 %v10887_v52, %v9034_v35  ;;  %v9138_v35 = vld [vmem:[%s11306_s27 + $0xf90] sm:$0xf]  ;;  %v8938_v52 = vld [vmem:[%s11306_s27 + $0xe00] sm:$0xf] }
 0x170   : > { %4413 = vmatpush.bf16.msra.mxu3 %v8875_v58  ;;  %4375 = vmatmul.bf16.vlgmr.msra.gmra.mxu0 %v12160_v10  ;;  %v9163_v58 = vor.u32 %v10919_v56, %v9162_v55  ;;  %v10863_v55 = vld [vmem:[%s11306_s27 + $0xe04] sm:$0xf0]  ;;  %v9002_v56 = vld [vmem:[%s11306_s27 + $0xe80] sm:$0xf] }
 0x171   : > { %4419 = vmatpush.bf16.msrb.mxu0 %v8995_v59  ;;  %4388 = vmatmul.bf16.vlgmr.msra.gmra.mxu1 %v12167_v15  ;;  %v10885_v59 = vld [vmem:[%s11306_s27 + $0xeb4] sm:$0xf0] }
 0x172   : > { %4432 = vmatpush.bf16.msrb.mxu1 %v9059_v22  ;;  %4401 = vmatmul.bf16.vlgmr.msra.gmra.mxu2 %v12165_v14  ;;  %v10901_v22 = vld [vmem:[%s11306_s27 + $0xf34] sm:$0xf0] }
 0x173   : > { %4445 = vmatpush.bf16.msrb.mxu2 %v9123_v60  ;;  %4414 = vmatmul.bf16.vlgmr.msra.gmra.mxu3 %v12171_v17  ;;  %v9154_v60 = vld [vmem:[%s11306_s27 + $0xfb0] sm:$0xf]  ;;  %v9091_v11 = vor.u32 %v10901_v22, %v9090_v41  ;;  %v380_v41 = vld [vmem:[%s11396_s7 + $0x78] sm:$0xff] }
 0x174   : > { %4458 = vmatpush.bf16.msrb.mxu3 %v9187_v6  ;;  %v9027_v6 = vor.u32 %v10885_v59, %v9026_v36  ;;  %v9155_v16 = vor.u32 %v10917_v61, %v9154_v60  ;;  %v379_v36 = vld [vmem:[%s11396_s7 + $0x70] sm:$0xff]  ;;  %v10911_v59 = vld [vmem:[%s11306_s27 + $0xf84] sm:$0xf0]  ;;  %v8228_v61 = vld [vmem:[%s11306_s27 + $0x878] sm:$0xf0] }
 0x175   : > { %4420 = vmatpush.bf16.msrb.mxu0 %v8987_v21  ;;  %v12210_v21 = vpop.f32.mrf.mxu2  ;;  %v2834_v34 = vpop.f32.mrf.mxu0  ;;  %v10684_v60 = vld [vmem:[%s11306_s27 + $0x874] sm:$0xf] }
 0x176   : > { %4433 = vmatpush.bf16.msrb.mxu1 %v9051_v24  ;;  %v10883_v24 = vld [vmem:[%s11306_s27 + $0xea4] sm:$0xf0]  ;;  %v12215_v48 = vpop.f32.mrf.mxu3  ;;  %v2847_v23 = vpop.f32.mrf.mxu1  ;;  %v2948_v34 = vunpack.c.h.b16 %v379_v36 }
 0x177   : > { %4446 = vmatpush.bf16.msrb.mxu2 %v9115_v26  ;;  %v9082_v26 = vld [vmem:[%s11306_s27 + $0xf20] sm:$0xf]  ;;  %v9019_v40 = vor.u32 %v10883_v24, %v9018_v8  ;;  %v8356_v8 = vld [vmem:[%s11306_s27 + $0x978] sm:$0xf0] }
 0x178   : > { %4459 = vmatpush.bf16.msrb.mxu3 %v9179_v37  ;;  %v2794_v37 = vadd.f32 %v12112_v18, %v2781_v44  ;;  %v9083_v43 = vor.u32 %v10899_v1, %v9082_v26  ;;  %v9074_v18 = vld [vmem:[%s11306_s27 + $0xf10] sm:$0xf]  ;;  %v10700_v44 = vld [vmem:[%s11306_s27 + $0x8f4] sm:$0xf]  ;;  %v9067_v26 = vor.u32 %v10895_v57, %v9066_v20  ;;  %v8212_v20 = vld [vmem:[%s11306_s27 + $0x858] sm:$0xf0] }
 0x179   : > { %4421 = vmatpush.bf16.msrb.mxu0 %v8979_v47  ;;  %v10865_v47 = vld [vmem:[%s11306_s27 + $0xe14] sm:$0xf0]  ;;  %v10732_v1 = vld [vmem:[%s11306_s27 + $0x9f4] sm:$0xf] }
 0x17a   : > { %4434 = vmatpush.bf16.msrb.mxu1 %v9043_v28  ;;  %v9010_v28 = vld [vmem:[%s11306_s27 + $0xe90] sm:$0xf]  ;;  %v2807_v53 = vadd.f32 %v12122_v33, %v2794_v37  ;;  %v8947_v25 = vor.u32 %v10865_v47, %v8946_v45  ;;  %v8231_v37 = vor.u32 %v10684_v60, %v8228_v61  ;;  %v10682_v45 = vld [vmem:[%s11306_s27 + $0x864] sm:$0xf]  ;;  %v8220_v47 = vld [vmem:[%s11306_s27 + $0x868] sm:$0xf0] }
 0x17b   : > { %4447 = vmatpush.bf16.msrb.mxu2 %v9107_v31  ;;  %v9147_v31 = vor.u32 %v10915_v32, %v9146_v27  ;;  %v8420_v27 = vld [vmem:[%s11306_s27 + $0x9f8] sm:$0xf0]  ;;  %v2949_v32 = vunpack.c.l.b16 %v380_v41  ;;  %v10696_v57 = vld [vmem:[%s11306_s27 + $0x8d4] sm:$0xf] }
 0x17c   : > { %4460 = vmatpush.bf16.msrb.mxu3 %v9171_v51  ;;  %v10913_v51 = vld [vmem:[%s11306_s27 + $0xf94] sm:$0xf0] }
 0x17d   : > { %4422 = vmatpush.bf16.msrb.mxu0 %v8971_v19  ;;  %v10879_v19 = vld [vmem:[%s11306_s27 + $0xe84] sm:$0xf0]  ;;  %v9139_v33 = vor.u32 %v10913_v51, %v9138_v35  ;;  %v2860_v22 = vpop.f32.mrf.mxu2  ;;  %v8348_v35 = vld [vmem:[%s11306_s27 + $0x968] sm:$0xf0]  ;;  %v12259_v51 = vpack.c.b16 %v2948_v34, %v2948_v34 }
 0x17e   : > { %4435 = vmatpush.bf16.msrb.mxu1 %v9035_v30  ;;  %v9011_v30 = vor.u32 %v10881_v49, %v9010_v28  ;;  %v9003_v24 = vor.u32 %v10879_v19, %v9002_v56  ;;  %v10698_v28 = vld [vmem:[%s11306_s27 + $0x8e4] sm:$0xf]  ;;  %v8404_v22 = vld [vmem:[%s11306_s27 + $0x9d8] sm:$0xf0] }
 0x17f   : > { %4448 = vmatpush.bf16.msrb.mxu2 %v9099_v38  ;;  %v9075_v38 = vor.u32 %v10897_v50, %v9074_v18  ;;  %v8284_v18 = vld [vmem:[%s11306_s27 + $0x8e8] sm:$0xf0]  ;;  %v10714_v50 = vld [vmem:[%s11306_s27 + $0x964] sm:$0xf] }
 0x180   : > { %4461 = vmatpush.bf16.msrb.mxu3 %v9163_v58  ;;  %v9130_v58 = vld [vmem:[%s11306_s27 + $0xf80] sm:$0xf]  ;;  %v8287_v19 = vor.u32 %v10698_v28, %v8284_v18  ;;  %v10724_v28 = vld [vmem:[%s11306_s27 + $0x9b4] sm:$0xf] }
 0x181   : > { %4423 = vmatpush.bf16.msrb.mxu0 %v8963_v0  ;;  %v2873_v0 = vpop.f32.mrf.mxu3 }
 0x182   : > { %4436 = vmatpush.bf16.msrb.mxu1 %v9027_v6  ;;  %v2820_v6 = vadd.f32 %v12127_v42, %v2807_v53  ;;  %v9131_v42 = vor.u32 %v10911_v59, %v9130_v58  ;;  %v8412_v53 = vld [vmem:[%s11306_s27 + $0x9e8] sm:$0xf0]  ;;  %v10712_v58 = vld [vmem:[%s11306_s27 + $0x954] sm:$0xf]  ;;  %v8340_v59 = vld [vmem:[%s11306_s27 + $0x958] sm:$0xf0] }
 0x183   : > { %4449 = vmatpush.bf16.msrb.mxu2 %v9091_v11  ;;  %v8939_v11 = vor.u32 %v10863_v55, %v8938_v52  ;;  %v10730_v52 = vld [vmem:[%s11306_s27 + $0x9e4] sm:$0xf]  ;;  %v8223_v55 = vor.u32 %v10682_v45, %v8220_v47  ;;  %v8204_v0 = vld [vmem:[%s11306_s27 + $0x848] sm:$0xf0]  ;;  %v10708_v45 = vld [vmem:[%s11306_s27 + $0x934] sm:$0xf] }
 0x184   : > { %4462 = vmatpush.bf16.msrb.mxu3 %v9155_v16  ;;  %v2947_v16 = vunpack.c.l.b16 %v379_v36  ;;  %v2833_v23 = vadd.f32 %v12191_v54, %v2820_v6  ;;  %v12257_v54 = vpack.c.b16 %v2949_v32, %v2949_v32  ;;  %v8415_v36 = vor.u32 %v10730_v52, %v8412_v53  ;;  %v10694_v6 = vld [vmem:[%s11306_s27 + $0x8c4] sm:$0xf]  ;;  %v8324_v47 = vld [vmem:[%s11306_s27 + $0x938] sm:$0xf0] }
 0x185   : > { %4424 = vmatpush.bf16.msrb.mxu0 %v8955_v39  ;;  %v2950_v39 = vunpack.c.h.b16 %v380_v41  ;;  %v10728_v41 = vld [vmem:[%s11306_s27 + $0x9d4] sm:$0xf]  ;;  %v8327_v52 = vor.u32 %v10708_v45, %v8324_v47  ;;  %v10674_v53 = vld [vmem:[%s11306_s27 + $0x824] sm:$0xf]  ;;  %v8300_v45 = vld [vmem:[%s11306_s27 + $0x908] sm:$0xf0] }
 0x186   : > { %4437 = vmatpush.bf16.msrb.mxu1 %v9019_v40  ;;  %v8295_v40 = vor.u32 %v10700_v44, %v8292_v12  ;;  %v12252_v49 = vpack.c.b16 %v2947_v16, %v2947_v16  ;;  %v2846_v56 = vadd.f32 %v12195_v29, %v2833_v23  ;;  %v8343_v44 = vor.u32 %v10712_v58, %v8340_v59  ;;  %v8268_v12 = vld [vmem:[%s11306_s27 + $0x8c8] sm:$0xf0]  ;;  %v8196_v23 = vld [vmem:[%s11306_s27 + $0x838] sm:$0xf0]  ;;  %v10722_v58 = vld [vmem:[%s11306_s27 + $0x9a4] sm:$0xf] }
 0x187   : > { %4450 = vmatpush.bf16.msrb.mxu2 %v9083_v43  ;;  %v8359_v43 = vor.u32 %v10716_v13, %v8356_v8  ;;  %v10710_v13 = vld [vmem:[%s11306_s27 + $0x944] sm:$0xf]  ;;  %v8332_v8 = vld [vmem:[%s11306_s27 + $0x948] sm:$0xf0] }
 0x188   : > { %4463 = vmatpush.bf16.msrb.mxu3 %v9147_v31  ;;  %v8423_v31 = vor.u32 %v10732_v1, %v8420_v27  ;;  %v2859_v29 = vadd.f32 %v12210_v21, %v2846_v56  ;;  %v10678_v21 = vld [vmem:[%s11306_s27 + $0x844] sm:$0xf]  ;;  %v8396_v1 = vld [vmem:[%s11306_s27 + $0x9c8] sm:$0xf0] }
 0x189   : > { %4425 = vmatpush.bf16.msrb.mxu0 %v8947_v25  ;;  %v12263_v25 = vpack.c.b16 %v2950_v39, %v2950_v39  ;;  %v8207_v27 = vor.u32 %v10678_v21, %v8204_v0  ;;  %v10676_v39 = vld [vmem:[%s11306_s27 + $0x834] sm:$0xf]  ;;  %v10690_v56 = vld [vmem:[%s11306_s27 + $0x8a4] sm:$0xf]  ;;  %v8380_v59 = vld [vmem:[%s11306_s27 + $0x9a8] sm:$0xf0] }
 0x18a   : > { %4438 = vmatpush.bf16.msrb.mxu1 %v9011_v30  ;;  %v8351_v30 = vor.u32 %v10714_v50, %v8348_v35  ;;  %v2872_v16 = vadd.f32 %v12215_v48, %v2859_v29  ;;  %v10692_v48 = vld [vmem:[%s11306_s27 + $0x8b4] sm:$0xf]  ;;  %v8199_v18 = vor.u32 %v10676_v39, %v8196_v23  ;;  %v8180_v0 = vld [vmem:[%s11306_s27 + $0x818] sm:$0xf0]  ;;  %v10686_v23 = vld [vmem:[%s11306_s27 + $0x884] sm:$0xf] }
 0x18b   : > { %4451 = vmatpush.bf16.msrb.mxu2 %v9075_v38  ;;  %v10680_v38 = vld [vmem:[%s11306_s27 + $0x854] sm:$0xf]  ;;  %v10718_v47 = vld [vmem:[%s11306_s27 + $0x984] sm:$0xf] }
 0x18c   : > { %4464 = vmatpush.bf16.msrb.mxu3 %v9139_v33  ;;  %v8276_v33 = vld [vmem:[%s11306_s27 + $0x8d8] sm:$0xf0]  ;;  %v8215_v60 = vor.u32 %v10680_v38, %v8212_v20  ;;  %v8252_v38 = vld [vmem:[%s11306_s27 + $0x8a8] sm:$0xf0]  ;;  %v10706_v20 = vld [vmem:[%s11306_s27 + $0x924] sm:$0xf] }
 0x18d   : > { %4426 = vmatpush.bf16.msrb.mxu0 %v8939_v11  ;;  %v8279_v61 = vor.u32 %v10696_v57, %v8276_v33  ;;  %v8407_v11 = vor.u32 %v10728_v41, %v8404_v22  ;;  %v8316_v57 = vld [vmem:[%s11306_s27 + $0x928] sm:$0xf0]  ;;  %v10672_v21 = vld [vmem:[%s11306_s27 + $0x814] sm:$0xf] }
 0x18e   : > { %4439 = vmatpush.bf16.msrb.mxu1 %v9003_v24  ;;  %v2884_v24 = vpop.f32.mrf.mxu0  ;;  %v2897_v32 = vpop.f32.mrf.mxu1 }
 0x18f   : > { %4452 = vmatpush.bf16.msrb.mxu2 %v9067_v26  ;;  %v10726_v26 = vld [vmem:[%s11306_s27 + $0x9c4] sm:$0xf]  ;;  %v2885_v34 = vadd.f32 %v2884_v24, %v2872_v16  ;;  %v10720_v16 = vld [vmem:[%s11306_s27 + $0x994] sm:$0xf]  ;;  %v8372_v24 = vld [vmem:[%s11306_s27 + $0x998] sm:$0xf0] }
 0x190   : > { %4465 = vmatpush.bf16.msrb.mxu3 %v9131_v42  ;;  %4427 = vmatmul.bf16.vlgmr.msrb.gmra.mxu0 %v12252_v49  ;;  %v8271_v42 = vor.u32 %v10694_v6, %v8268_v12  ;;  %v10688_v6 = vld [vmem:[%s11306_s27 + $0x894] sm:$0xf]  ;;  %v8244_v12 = vld [vmem:[%s11306_s27 + $0x898] sm:$0xf0] }
 0x191   : > { %4471 = vmatpush.bf16.msra.mxu0 %v8231_v37  ;;  %4440 = vmatmul.bf16.vlgmr.msrb.gmra.mxu1 %v12259_v51  ;;  %v8335_v37 = vor.u32 %v10710_v13, %v8332_v8  ;;  %v2898_v50 = vadd.f32 %v2897_v32, %v2885_v34  ;;  %v10704_v13 = vld [vmem:[%s11306_s27 + $0x914] sm:$0xf]  ;;  %v8308_v8 = vld [vmem:[%s11306_s27 + $0x918] sm:$0xf0]  ;;  %v10670_v32 = vld [vmem:[%s11306_s27 + $0x804] sm:$0xf] }
 0x192   : > { %4484 = vmatpush.bf16.msra.mxu1 %v8295_v40  ;;  %4453 = vmatmul.bf16.vlgmr.msrb.gmra.mxu2 %v12257_v54  ;;  %v8399_v40 = vor.u32 %v10726_v26, %v8396_v1  ;;  %v6431_v26 = vmul.f32 %v11962_v9, %v11962_v9  ;;  %v8172_v34 = vld [vmem:[%s11306_s27 + $0x808] sm:$0xf0] }
 0x193   : > { %4497 = vmatpush.bf16.msra.mxu2 %v8359_v43  ;;  %4466 = vmatmul.bf16.vlgmr.msrb.gmra.mxu3 %v12263_v25  ;;  %v8260_v43 = vld [vmem:[%s11306_s27 + $0x8b8] sm:$0xf0] }
 0x194   : > { %4510 = vmatpush.bf16.msra.mxu3 %v8423_v31  ;;  %v8388_v31 = vld [vmem:[%s11306_s27 + $0x9b8] sm:$0xf0]  ;;  %v8263_v35 = vor.u32 %v10692_v48, %v8260_v43  ;;  %v8236_v48 = vld [vmem:[%s11306_s27 + $0x888] sm:$0xf0]  ;;  %v8375_v43 = vor.u32 %v10720_v16, %v8372_v24 }
 0x195   : > { %4472 = vmatpush.bf16.msra.mxu0 %v8223_v55  ;;  %v8188_v55 = vld [vmem:[%s11306_s27 + $0x828] sm:$0xf0]  ;;  %v8468_v24 = vld [vmem:[%s11306_s27 + $0xa58] sm:$0xf0] }
 0x196   : > { %4485 = vmatpush.bf16.msra.mxu1 %v8287_v19  ;;  %v8391_v19 = vor.u32 %v10724_v28, %v8388_v31  ;;  %v2923_v33 = vpop.f32.mrf.mxu3  ;;  %v2886_v29 = vpop.f32.mrf.mxu0  ;;  %v8191_v41 = vor.u32 %v10674_v53, %v8188_v55  ;;  %v8364_v28 = vld [vmem:[%s11306_s27 + $0x988] sm:$0xf0]  ;;  %v8175_v53 = vor.u32 %v10670_v32, %v8172_v34  ;;  %v8548_v55 = vld [vmem:[%s11306_s27 + $0xaf8] sm:$0xf0]  ;;  %v10776_v32 = vld [vmem:[%s11306_s27 + $0xb54] sm:$0xf] }
 0x197   : > { %4498 = vmatpush.bf16.msra.mxu2 %v8351_v30  ;;  %v2910_v30 = vpop.f32.mrf.mxu2  ;;  %v2899_v22 = vpop.f32.mrf.mxu1  ;;  %v10746_v29 = vld [vmem:[%s11306_s27 + $0xa64] sm:$0xf]  ;;  %v8596_v34 = vld [vmem:[%s11306_s27 + $0xb58] sm:$0xf0] }
 0x198   : > { %4511 = vmatpush.bf16.msra.mxu3 %v8415_v36  ;;  %v2911_v36 = vadd.f32 %v2910_v30, %v2898_v50  ;;  %v8484_v50 = vld [vmem:[%s11306_s27 + $0xa78] sm:$0xf0]  ;;  %v8239_v30 = vor.u32 %v10686_v23, %v8236_v48  ;;  %v10762_v22 = vld [vmem:[%s11306_s27 + $0xae4] sm:$0xf] }
 0x199   : > { %4473 = vmatpush.bf16.msra.mxu0 %v8215_v60  ;;  %v10742_v48 = vld [vmem:[%s11306_s27 + $0xa44] sm:$0xf] }
 0x19a   : > { %4486 = vmatpush.bf16.msra.mxu1 %v8279_v61  ;;  %v12304_v60 = vadd.f32 %v2923_v33, %v2911_v36  ;;  %v8255_v61 = vor.u32 %v10690_v56, %v8252_v38  ;;  %v10780_v56 = vld [vmem:[%s11306_s27 + $0xb74] sm:$0xf]  ;;  %v8367_v36 = vor.u32 %v10718_v47, %v8364_v28  ;;  %v10774_v28 = vld [vmem:[%s11306_s27 + $0xb44] sm:$0xf] }
 0x19b   : > { %4499 = vmatpush.bf16.msra.mxu2 %v8343_v44  ;;  %v8319_v44 = vor.u32 %v10706_v20, %v8316_v57  ;;  %v10796_v20 = vld [vmem:[%s11306_s27 + $0xbf4] sm:$0xf]  ;;  %v8676_v57 = vld [vmem:[%s11306_s27 + $0xbf8] sm:$0xf0] }
 0x19c   : > { %4512 = vmatpush.bf16.msra.mxu3 %v8407_v11  ;;  %v8383_v11 = vor.u32 %v10722_v58, %v8380_v59  ;;  %v6432_v1 = vmul.f32 %v12304_v60, %v12304_v60 }
 0x19d   : > { %4474 = vmatpush.bf16.msra.mxu0 %v8207_v27  ;;  %v8183_v27 = vor.u32 %v10672_v21, %v8180_v0  ;;  %v10778_v21 = vld [vmem:[%s11306_s27 + $0xb64] sm:$0xf]  ;;  %v8604_v0 = vld [vmem:[%s11306_s27 + $0xb68] sm:$0xf0] }
 0x19e   : > { %4487 = vmatpush.bf16.msra.mxu1 %v8271_v42  ;;  %v8247_v42 = vor.u32 %v10688_v6, %v8244_v12  ;;  %v6437_v39 = vadd.f32 %v6432_v1, %v6431_v26  ;;  %v10794_v6 = vld [vmem:[%s11306_s27 + $0xbe4] sm:$0xf]  ;;  %v8607_v16 = vor.u32 %v10778_v21, %v8604_v0  ;;  %v10760_v26 = vld [vmem:[%s11306_s27 + $0xad4] sm:$0xf]  ;;  %v8532_v1 = vld [vmem:[%s11306_s27 + $0xad8] sm:$0xf0] }
 0x19f   : > { %4500 = vmatpush.bf16.msra.mxu2 %v8335_v37  ;;  %v8311_v37 = vor.u32 %v10704_v13, %v8308_v8  ;;  %v2912_v31 = vpop.f32.mrf.mxu2  ;;  %v10744_v13 = vld [vmem:[%s11306_s27 + $0xa54] sm:$0xf]  ;;  %v8444_v21 = vld [vmem:[%s11306_s27 + $0xa28] sm:$0xf0]  ;;  %v10754_v0 = vld [vmem:[%s11306_s27 + $0xaa4] sm:$0xf] }
 0x1a0   : > { %4513 = vmatpush.bf16.msra.mxu3 %v8399_v40  ;;  %v10702_v40 = vld [vmem:[%s11306_s27 + $0x904] sm:$0xf]  ;;  %6438 = vadd.xlane.f32.xlu0 %v6437_v39  ;;  %v8660_v39 = vld [vmem:[%s11306_s27 + $0xbd8] sm:$0xf0]  ;;  %v8471_v23 = vor.u32 %v10744_v13, %v8468_v24  ;;  %v8588_v31 = vld [vmem:[%s11306_s27 + $0xb48] sm:$0xf0] }
 0x1a1   : > { %4475 = vmatpush.bf16.msra.mxu0 %v8199_v18  ;;  %v10748_v18 = vld [vmem:[%s11306_s27 + $0xa74] sm:$0xf]  ;;  %v8303_v38 = vor.u32 %v10702_v40, %v8300_v45  ;;  %v8599_v40 = vor.u32 %v10776_v32, %v8596_v34  ;;  %v10758_v45 = vld [vmem:[%s11306_s27 + $0xac4] sm:$0xf] }
 0x1a2   : > { %4488 = vmatpush.bf16.msra.mxu1 %v8263_v35  ;;  %v10764_v35 = vld [vmem:[%s11306_s27 + $0xaf4] sm:$0xf]  ;;  %v8487_v33 = vor.u32 %v10748_v18, %v8484_v50  ;;  %v10790_v18 = vld [vmem:[%s11306_s27 + $0xbc4] sm:$0xf]  ;;  %v8652_v50 = vld [vmem:[%s11306_s27 + $0xbc8] sm:$0xf0] }
 0x1a3   : > { %4501 = vmatpush.bf16.msra.mxu2 %v8327_v52  ;;  %v2925_v52 = vpop.f32.mrf.mxu3  ;;  %v8551_v58 = vor.u32 %v10764_v35, %v8548_v55  ;;  %v10740_v55 = vld [vmem:[%s11306_s27 + $0xa34] sm:$0xf]  ;;  %v10770_v13 = vld [vmem:[%s11306_s27 + $0xb24] sm:$0xf] }
 0x1a4   : > { %4514 = vmatpush.bf16.msra.mxu3 %v8391_v19  ;;  %v8612_v19 = vld [vmem:[%s11306_s27 + $0xb78] sm:$0xf0] }
 0x1a5   : > { %4476 = vmatpush.bf16.msra.mxu0 %v8191_v41  ;;  %v8615_v59 = vor.u32 %v10780_v56, %v8612_v19  ;;  %v8476_v41 = vld [vmem:[%s11306_s27 + $0xa68] sm:$0xf0]  ;;  %v8452_v56 = vld [vmem:[%s11306_s27 + $0xa38] sm:$0xf0]  ;;  %v10756_v19 = vld [vmem:[%s11306_s27 + $0xab4] sm:$0xf] }
 0x1a6   : > { %4489 = vmatpush.bf16.msra.mxu1 %v8255_v61  ;;  %v8679_v61 = vor.u32 %v10796_v20, %v8676_v57  ;;  %v8479_v12 = vor.u32 %v10746_v29, %v8476_v41  ;;  %v8655_v20 = vor.u32 %v10790_v18, %v8652_v50  ;;  %v8516_v57 = vld [vmem:[%s11306_s27 + $0xab8] sm:$0xf0]  ;;  %v8455_v41 = vor.u32 %v10740_v55, %v8452_v56  ;;  %v8428_v18 = vld [vmem:[%s11306_s27 + $0xa08] sm:$0xf0] }
 0x1a7   : > { %4502 = vmatpush.bf16.msra.mxu2 %v8319_v44  ;;  %v8540_v44 = vld [vmem:[%s11306_s27 + $0xae8] sm:$0xf0] }
 0x1a8   : > { %4515 = vmatpush.bf16.msra.mxu3 %v8383_v11  ;;  %v8668_v11 = vld [vmem:[%s11306_s27 + $0xbe8] sm:$0xf0]  ;;  %v8543_v8 = vor.u32 %v10762_v22, %v8540_v44  ;;  %v8519_v22 = vor.u32 %v10756_v19, %v8516_v57  ;;  %v10738_v44 = vld [vmem:[%s11306_s27 + $0xa24] sm:$0xf]  ;;  %v10812_v57 = vld [vmem:[%s11306_s27 + $0xc74] sm:$0xf] }
 0x1a9   : > { %4477 = vmatpush.bf16.msra.mxu0 %v8183_v27  ;;  %v8671_v27 = vor.u32 %v10794_v6, %v8668_v11  ;;  %v8556_v19 = vld [vmem:[%s11306_s27 + $0xb08] sm:$0xf0] }
 0x1aa   : > { %4490 = vmatpush.bf16.msra.mxu1 %v8247_v42  ;;  %v1158_v42 = vld [vmem:[%s11730_s11 + $0x2] sm:$0x3] }
 0x1ab   : > { %4503 = vmatpush.bf16.msra.mxu2 %v8311_v37  ;;  %v10792_v37 = vld [vmem:[%s11306_s27 + $0xbd4] sm:$0xf]  ;;  %v1165_v47 = vperm.slane %v1158_v42, 0 }
 0x1ac   : > { %4516 = vmatpush.bf16.msra.mxu3 %v8375_v43  ;;  %v8460_v43 = vld [vmem:[%s11306_s27 + $0xa48] sm:$0xf0] }
 0x1ad   : > { %4478 = vmatpush.bf16.msra.mxu0 %v8175_v53  ;;  %v4272_v35 = vpop.f32.mrf.mxu0  ;;  %v8591_v53 = vor.u32 %v10774_v28, %v8588_v31  ;;  %v10734_v31 = vld [vmem:[%s11306_s27 + $0xa04] sm:$0xf] }
 0x1ae   : > { %4491 = vmatpush.bf16.msra.mxu1 %v8239_v30  ;;  %v4273_v30 = vadd.f32 %v4272_v35, %v1165_v47  ;;  %v8564_v47 = vld [vmem:[%s11306_s27 + $0xb18] sm:$0xf0]  ;;  %v10750_v35 = vld [vmem:[%s11306_s27 + $0xa84] sm:$0xf] }
 0x1af   : > { %4504 = vmatpush.bf16.msra.mxu2 %v8303_v38  ;;  %v4285_v38 = vpop.f32.mrf.mxu1 }
 0x1b0   : > { %4517 = vmatpush.bf16.msra.mxu3 %v8367_v36  ;;  %4479 = vmatmul.bf16.vlgmr.msra.gmra.mxu0 %v12000_v2  ;;  %v8663_v2 = vor.u32 %v10792_v37, %v8660_v39  ;;  %v10772_v36 = vld [vmem:[%s11306_s27 + $0xb34] sm:$0xf]  ;;  %v4286_v29 = vadd.f32 %v4285_v38, %v4273_v30  ;;  %v10782_v30 = vld [vmem:[%s11306_s27 + $0xb84] sm:$0xf]  ;;  %v8620_v38 = vld [vmem:[%s11306_s27 + $0xb88] sm:$0xf0] }
 0x1b1   : > { %4523 = vmatpush.bf16.msrb.mxu0 %v8487_v33  ;;  %4492 = vmatmul.bf16.vlgmr.msra.gmra.mxu1 %v12004_v4  ;;  %v8463_v4 = vor.u32 %v10742_v48, %v8460_v43  ;;  %v8580_v33 = vld [vmem:[%s11306_s27 + $0xb38] sm:$0xf0]  ;;  %v10736_v39 = vld [vmem:[%s11306_s27 + $0xa14] sm:$0xf] }
 0x1b2   : > { %4536 = vmatpush.bf16.msrb.mxu1 %v8551_v58  ;;  %4505 = vmatmul.bf16.vlgmr.msra.gmra.mxu2 %v11996_v63  ;;  %v8535_v63 = vor.u32 %v10760_v26, %v8532_v1  ;;  %v10788_v58 = vld [vmem:[%s11306_s27 + $0xbb4] sm:$0xf]  ;;  %v10786_v26 = vld [vmem:[%s11306_s27 + $0xba4] sm:$0xf]  ;;  %v8636_v1 = vld [vmem:[%s11306_s27 + $0xba8] sm:$0xf0] }
 0x1b3   : > { %4549 = vmatpush.bf16.msrb.mxu2 %v8615_v59  ;;  %4518 = vmatmul.bf16.vlgmr.msra.gmra.mxu3 %v12002_v3  ;;  %v8524_v3 = vld [vmem:[%s11306_s27 + $0xac8] sm:$0xf0]  ;;  %v8644_v59 = vld [vmem:[%s11306_s27 + $0xbb8] sm:$0xf0]  ;;  %v10752_v48 = vld [vmem:[%s11306_s27 + $0xa94] sm:$0xf] }
 0x1b4   : > { %4562 = vmatpush.bf16.msrb.mxu3 %v8679_v61  ;;  %v8527_v52 = vor.u32 %v10758_v45, %v8524_v3  ;;  %v8583_v61 = vor.u32 %v10772_v36, %v8580_v33  ;;  %v8647_v11 = vor.u32 %v10788_v58, %v8644_v59  ;;  %v8500_v43 = vld [vmem:[%s11306_s27 + $0xa98] sm:$0xf0]  ;;  %v10768_v45 = vld [vmem:[%s11306_s27 + $0xb14] sm:$0xf]  ;;  %v8431_v58 = vor.u32 %v10734_v31, %v8428_v18 }
 0x1b5   : > { %4524 = vmatpush.bf16.msrb.mxu0 %v8479_v12  ;;  %v4298_v6 = vpop.f32.mrf.mxu2  ;;  %v8508_v12 = vld [vmem:[%s11306_s27 + $0xaa8] sm:$0xf0]  ;;  %v4274_v34 = vpop.f32.mrf.mxu0  ;;  %v8628_v3 = vld [vmem:[%s11306_s27 + $0xb98] sm:$0xf0]  ;;  %v8503_v50 = vor.u32 %v10752_v48, %v8500_v43  ;;  %v10828_v33 = vld [vmem:[%s11306_s27 + $0xcf4] sm:$0xf] }
 0x1b6   : > { %4537 = vmatpush.bf16.msrb.mxu1 %v8543_v8  ;;  %v8572_v8 = vld [vmem:[%s11306_s27 + $0xb28] sm:$0xf0]  ;;  %v4311_v24 = vpop.f32.mrf.mxu3  ;;  %v8511_v42 = vor.u32 %v10754_v0, %v8508_v12  ;;  %v8740_v36 = vld [vmem:[%s11306_s27 + $0xc78] sm:$0xf0]  ;;  %v8623_v0 = vor.u32 %v10782_v30, %v8620_v38  ;;  %v10858_v34 = vld [vmem:[%s11306_s27 + $0xde4] sm:$0xf] }
 0x1b7   : > { %4550 = vmatpush.bf16.msrb.mxu2 %v8607_v16  ;;  %v4299_v16 = vadd.f32 %v4298_v6, %v4286_v29  ;;  %v8575_v37 = vor.u32 %v10770_v13, %v8572_v8  ;;  %v8804_v59 = vld [vmem:[%s11306_s27 + $0xcf8] sm:$0xf0]  ;;  %v10844_v29 = vld [vmem:[%s11306_s27 + $0xd74] sm:$0xf]  ;;  %v8743_v6 = vor.u32 %v10812_v57, %v8740_v36  ;;  %v10810_v13 = vld [vmem:[%s11306_s27 + $0xc64] sm:$0xf] }
 0x1b8   : > { %4563 = vmatpush.bf16.msrb.mxu3 %v8671_v27  ;;  %v8447_v27 = vor.u32 %v10738_v44, %v8444_v21  ;;  %v10860_v44 = vld [vmem:[%s11306_s27 + $0xdf4] sm:$0xf]  ;;  %v8932_v21 = vld [vmem:[%s11306_s27 + $0xdf8] sm:$0xf0]  ;;  %v8732_v8 = vld [vmem:[%s11306_s27 + $0xc68] sm:$0xf0] }
 0x1b9   : > { %4525 = vmatpush.bf16.msrb.mxu0 %v8471_v23  ;;  %v12379_v32 = vadd.f32 %v4311_v24, %v4299_v16  ;;  %v8436_v23 = vld [vmem:[%s11306_s27 + $0xa18] sm:$0xf0]  ;;  %v10826_v16 = vld [vmem:[%s11306_s27 + $0xce4] sm:$0xf]  ;;  %v8935_v24 = vor.u32 %v10860_v44, %v8932_v21  ;;  %v10808_v48 = vld [vmem:[%s11306_s27 + $0xc54] sm:$0xf] }
 0x1ba   : > { %4538 = vmatpush.bf16.msrb.mxu1 %v8535_v63  ;;  %v4287_v63 = vpop.f32.mrf.mxu1  ;;  %v8439_v28 = vor.u32 %v10736_v39, %v8436_v23  ;;  %v8708_v57 = vld [vmem:[%s11306_s27 + $0xc38] sm:$0xf0]  ;;  %v10820_v36 = vld [vmem:[%s11306_s27 + $0xcb4] sm:$0xf] }
 0x1bb   : > { %4551 = vmatpush.bf16.msrb.mxu2 %v8599_v40  ;;  %v8639_v40 = vor.u32 %v10786_v26, %v8636_v1  ;;  %v8796_v26 = vld [vmem:[%s11306_s27 + $0xce8] sm:$0xf0]  ;;  %v10842_v1 = vld [vmem:[%s11306_s27 + $0xd64] sm:$0xf]  ;;  %v8724_v63 = vld [vmem:[%s11306_s27 + $0xc58] sm:$0xf0] }
 0x1bc   : > { %4564 = vmatpush.bf16.msrb.mxu3 %v8663_v2  ;;  %v10784_v2 = vld [vmem:[%s11306_s27 + $0xb94] sm:$0xf]  ;;  %v8799_v39 = vor.u32 %v10826_v16, %v8796_v26  ;;  %v8727_v31 = vor.u32 %v10808_v48, %v8724_v63  ;;  %v8900_v44 = vld [vmem:[%s11306_s27 + $0xdb8] sm:$0xf0]  ;;  %v10834_v26 = vld [vmem:[%s11306_s27 + $0xd24] sm:$0xf] }
 0x1bd   : > { %4526 = vmatpush.bf16.msrb.mxu0 %v8463_v4  ;;  %v8567_v4 = vor.u32 %v10768_v45, %v8564_v47  ;;  %v4300_v55 = vpop.f32.mrf.mxu2  ;;  %v8631_v56 = vor.u32 %v10784_v2, %v8628_v3  ;;  %v8788_v45 = vld [vmem:[%s11306_s27 + $0xcd8] sm:$0xf0]  ;;  %v10840_v47 = vld [vmem:[%s11306_s27 + $0xd54] sm:$0xf] }
 0x1be   : > { %4539 = vmatpush.bf16.msrb.mxu1 %v8527_v52  ;;  %v8492_v52 = vld [vmem:[%s11306_s27 + $0xa88] sm:$0xf0]  ;;  %v8852_v2 = vld [vmem:[%s11306_s27 + $0xd58] sm:$0xf0]  ;;  %v10856_v3 = vld [vmem:[%s11306_s27 + $0xdd4] sm:$0xf] }
 0x1bf   : > { %4552 = vmatpush.bf16.msrb.mxu2 %v8591_v53  ;;  %v10766_v53 = vld [vmem:[%s11306_s27 + $0xb04] sm:$0xf]  ;;  %v8855_v18 = vor.u32 %v10840_v47, %v8852_v2  ;;  %v10816_v47 = vld [vmem:[%s11306_s27 + $0xc94] sm:$0xf] }
 0x1c0   : > { %4565 = vmatpush.bf16.msrb.mxu3 %v8655_v20  ;;  %v4313_v20 = vpop.f32.mrf.mxu3  ;;  %v10854_v55 = vld [vmem:[%s11306_s27 + $0xdc4] sm:$0xf] }
 0x1c1   : > { %4527 = vmatpush.bf16.msrb.mxu0 %v8455_v41  ;;  %v8868_v41 = vld [vmem:[%s11306_s27 + $0xd78] sm:$0xf0]  ;;  %v10804_v20 = vld [vmem:[%s11306_s27 + $0xc34] sm:$0xf] }
 0x1c2   : > { %4540 = vmatpush.bf16.msrb.mxu1 %v8519_v22  ;;  %v8495_v22 = vor.u32 %v10750_v35, %v8492_v52  ;;  %v8871_v12 = vor.u32 %v10844_v29, %v8868_v41  ;;  %v10822_v35 = vld [vmem:[%s11306_s27 + $0xcc4] sm:$0xf]  ;;  %v8780_v52 = vld [vmem:[%s11306_s27 + $0xcc8] sm:$0xf0]  ;;  %v8772_v29 = vld [vmem:[%s11306_s27 + $0xcb8] sm:$0xf0] }
 0x1c3   : > { %4553 = vmatpush.bf16.msrb.mxu2 %v8583_v61  ;;  %v8559_v61 = vor.u32 %v10766_v53, %v8556_v19  ;;  %v8844_v53 = vld [vmem:[%s11306_s27 + $0xd48] sm:$0xf0]  ;;  %v8783_v30 = vor.u32 %v10822_v35, %v8780_v52  ;;  %v10836_v41 = vld [vmem:[%s11306_s27 + $0xd34] sm:$0xf]  ;;  %v10798_v35 = vld [vmem:[%s11306_s27 + $0xc04] sm:$0xf] }
 0x1c4   : > { %4566 = vmatpush.bf16.msrb.mxu3 %v8647_v11  ;;  %v8807_v11 = vor.u32 %v10828_v33, %v8804_v59 }
 0x1c5   : > { %4528 = vmatpush.bf16.msrb.mxu0 %v8447_v27  ;;  %v8860_v27 = vld [vmem:[%s11306_s27 + $0xd68] sm:$0xf0] }
 0x1c6   : > { %4541 = vmatpush.bf16.msrb.mxu1 %v8511_v42  ;;  %v8924_v42 = vld [vmem:[%s11306_s27 + $0xde8] sm:$0xf0]  ;;  %v8863_v23 = vor.u32 %v10842_v1, %v8860_v27 }
 0x1c7   : > { %4554 = vmatpush.bf16.msrb.mxu2 %v8575_v37  ;;  %v8735_v37 = vor.u32 %v10810_v13, %v8732_v8  ;;  %v8927_v43 = vor.u32 %v10858_v34, %v8924_v42  ;;  %v10818_v13 = vld [vmem:[%s11306_s27 + $0xca4] sm:$0xf]  ;;  %v8828_v1 = vld [vmem:[%s11306_s27 + $0xd28] sm:$0xf0] }
 0x1c8   : > { %4567 = vmatpush.bf16.msrb.mxu3 %v8639_v40  ;;  %v10824_v40 = vld [vmem:[%s11306_s27 + $0xcd4] sm:$0xf]  ;;  %v10850_v42 = vld [vmem:[%s11306_s27 + $0xda4] sm:$0xf] }
 0x1c9   : > { %4529 = vmatpush.bf16.msrb.mxu0 %v8439_v28  ;;  %v8916_v28 = vld [vmem:[%s11306_s27 + $0xdd8] sm:$0xf0] }
 0x1ca   : > { %4542 = vmatpush.bf16.msrb.mxu1 %v8503_v50  ;;  %v10806_v50 = vld [vmem:[%s11306_s27 + $0xc44] sm:$0xf] }
 0x1cb   : > { %4555 = vmatpush.bf16.msrb.mxu2 %v8567_v4  ;;  %v8716_v4 = vld [vmem:[%s11306_s27 + $0xc48] sm:$0xf0] }
 0x1cc   : > { %4568 = vmatpush.bf16.msrb.mxu3 %v8631_v56  ;;  %v8908_v56 = vld [vmem:[%s11306_s27 + $0xdc8] sm:$0xf0] }
 0x1cd   : > { %4530 = vmatpush.bf16.msrb.mxu0 %v8431_v58  ;;  %v4324_v19 = vpop.f32.mrf.mxu0  ;;  %v8911_v59 = vor.u32 %v10854_v55, %v8908_v56  ;;  %v8748_v55 = vld [vmem:[%s11306_s27 + $0xc88] sm:$0xf0]  ;;  %v10830_v56 = vld [vmem:[%s11306_s27 + $0xd04] sm:$0xf] }
 0x1ce   : > { %4543 = vmatpush.bf16.msrb.mxu1 %v8495_v22  ;;  %v4325_v33 = vadd.f32 %v4324_v19, %v12379_v32  ;;  %v4337_v58 = vpop.f32.mrf.mxu1  ;;  %v8836_v22 = vld [vmem:[%s11306_s27 + $0xd38] sm:$0xf0]  ;;  %v8775_v32 = vor.u32 %v10820_v36, %v8772_v29  ;;  %v10876_v36 = vld [vmem:[%s11306_s27 + $0xe74] sm:$0xf] }
 0x1cf   : > { %4556 = vmatpush.bf16.msrb.mxu2 %v8559_v61  ;;  %v10852_v61 = vld [vmem:[%s11306_s27 + $0xdb4] sm:$0xf]  ;;  %v9060_v29 = vld [vmem:[%s11306_s27 + $0xef8] sm:$0xf0] }
 0x1d0   : > { %4569 = vmatpush.bf16.msrb.mxu3 %v8623_v0  ;;  %4531 = vmatmul.bf16.vlgmr.msrb.gmra.mxu0 %v12081_v46  ;;  %v8919_v46 = vor.u32 %v10856_v3, %v8916_v28  ;;  %v4338_v21 = vadd.f32 %v4337_v58, %v4325_v33  ;;  %v8711_v0 = vor.u32 %v10804_v20, %v8708_v57  ;;  %v8756_v28 = vld [vmem:[%s11306_s27 + $0xc98] sm:$0xf0]  ;;  %v8876_v20 = vld [vmem:[%s11306_s27 + $0xd88] sm:$0xf0]  ;;  %v10892_v58 = vld [vmem:[%s11306_s27 + $0xef4] sm:$0xf] }
 0x1d1   : > { %4575 = vmatpush.bf16.msra.mxu0 %v8743_v6  ;;  %4544 = vmatmul.bf16.vlgmr.msrb.gmra.mxu1 %v12085_v7  ;;  %v8719_v7 = vor.u32 %v10806_v50, %v8716_v4  ;;  %v8839_v6 = vor.u32 %v10836_v41, %v8836_v22  ;;  %v8903_v16 = vor.u32 %v10852_v61, %v8900_v44  ;;  %v8884_v50 = vld [vmem:[%s11306_s27 + $0xd98] sm:$0xf0]  ;;  %v10908_v41 = vld [vmem:[%s11306_s27 + $0xf74] sm:$0xf] }
 0x1d2   : > { %4588 = vmatpush.bf16.msra.mxu1 %v8807_v11  ;;  %4557 = vmatmul.bf16.vlgmr.msrb.gmra.mxu2 %v12077_v62  ;;  %v8791_v62 = vor.u32 %v10824_v40, %v8788_v45  ;;  %v10802_v11 = vld [vmem:[%s11306_s27 + $0xc24] sm:$0xf]  ;;  %v8831_v40 = vor.u32 %v10834_v26, %v8828_v1  ;;  %v8692_v45 = vld [vmem:[%s11306_s27 + $0xc18] sm:$0xf0]  ;;  %v8759_v52 = vor.u32 %v10816_v47, %v8756_v28  ;;  %v9052_v26 = vld [vmem:[%s11306_s27 + $0xee8] sm:$0xf0] }
 0x1d3   : > { %4601 = vmatpush.bf16.msra.mxu2 %v8871_v12  ;;  %4570 = vmatmul.bf16.vlgmr.msrb.gmra.mxu3 %v12083_v5  ;;  %v10838_v5 = vld [vmem:[%s11306_s27 + $0xd44] sm:$0xf]  ;;  %v8700_v12 = vld [vmem:[%s11306_s27 + $0xc28] sm:$0xf0]  ;;  %v8996_v33 = vld [vmem:[%s11306_s27 + $0xe78] sm:$0xf0] }
 0x1d4   : > { %4614 = vmatpush.bf16.msra.mxu3 %v8935_v24  ;;  %v8847_v38 = vor.u32 %v10838_v5, %v8844_v53  ;;  %v8764_v24 = vld [vmem:[%s11306_s27 + $0xca8] sm:$0xf0]  ;;  %v10814_v53 = vld [vmem:[%s11306_s27 + $0xc84] sm:$0xf]  ;;  %v9124_v22 = vld [vmem:[%s11306_s27 + $0xf78] sm:$0xf0] }
 0x1d5   : > { %4576 = vmatpush.bf16.msra.mxu0 %v8735_v37  ;;  %v4350_v8 = vpop.f32.mrf.mxu2  ;;  %v8892_v37 = vld [vmem:[%s11306_s27 + $0xda8] sm:$0xf0]  ;;  %v4326_v48 = vpop.f32.mrf.mxu0  ;;  %v8767_v63 = vor.u32 %v10818_v13, %v8764_v24  ;;  %v8751_v61 = vor.u32 %v10814_v53, %v8748_v55  ;;  %v10874_v13 = vld [vmem:[%s11306_s27 + $0xe64] sm:$0xf]  ;;  %v9044_v47 = vld [vmem:[%s11306_s27 + $0xed8] sm:$0xf0] }
 0x1d6   : > { %4589 = vmatpush.bf16.msra.mxu1 %v8799_v39  ;;  %v4351_v27 = vadd.f32 %v4350_v8, %v4338_v21  ;;  %v4363_v34 = vpop.f32.mrf.mxu3  ;;  %v8703_v39 = vor.u32 %v10802_v11, %v8700_v12  ;;  %v4339_v2 = vpop.f32.mrf.mxu1  ;;  %v8895_v3 = vor.u32 %v10850_v42, %v8892_v37  ;;  %v10924_v21 = vld [vmem:[%s11306_s27 + $0xff4] sm:$0xf]  ;;  %v9063_v11 = vor.u32 %v10892_v58, %v9060_v29  ;;  %v8988_v8 = vld [vmem:[%s11306_s27 + $0xe68] sm:$0xf0]  ;;  %v10906_v1 = vld [vmem:[%s11306_s27 + $0xf64] sm:$0xf] }
 0x1d7   : > { %4602 = vmatpush.bf16.msra.mxu2 %v8863_v23  ;;  %v9127_v12 = vor.u32 %v10908_v41, %v9124_v22  ;;  %v9180_v42 = vld [vmem:[%s11306_s27 + $0xfe8] sm:$0xf0]  ;;  %v8991_v37 = vor.u32 %v10874_v13, %v8988_v8  ;;  %v10904_v2 = vld [vmem:[%s11306_s27 + $0xf54] sm:$0xf]  ;;  %v9028_v58 = vld [vmem:[%s11306_s27 + $0xeb8] sm:$0xf0] }
 0x1d8   : > { %4615 = vmatpush.bf16.msra.mxu3 %v8927_v43  ;;  %v12450_v23 = vadd.f32 %v4363_v34, %v4351_v27  ;;  %v10800_v43 = vld [vmem:[%s11306_s27 + $0xc14] sm:$0xf]  ;;  %v9116_v27 = vld [vmem:[%s11306_s27 + $0xf68] sm:$0xf0]  ;;  %v10922_v34 = vld [vmem:[%s11306_s27 + $0xfe4] sm:$0xf] }
 0x1d9   : > { %4577 = vmatpush.bf16.msra.mxu0 %v8727_v31  ;;  %v10832_v31 = vld [vmem:[%s11306_s27 + $0xd14] sm:$0xf]  ;;  %v8695_v4 = vor.u32 %v10800_v43, %v8692_v45  ;;  %v9119_v48 = vor.u32 %v10906_v1, %v9116_v27  ;;  %v9183_v45 = vor.u32 %v10922_v34, %v9180_v42  ;;  %v9164_v53 = vld [vmem:[%s11306_s27 + $0xfc8] sm:$0xf0]  ;;  %v9156_v41 = vld [vmem:[%s11306_s27 + $0xfb8] sm:$0xf0] }
 0x1da   : > { %4590 = vmatpush.bf16.msra.mxu1 %v8791_v62  ;;  %v8820_v62 = vld [vmem:[%s11306_s27 + $0xd18] sm:$0xf0]  ;;  %v10888_v43 = vld [vmem:[%s11306_s27 + $0xed4] sm:$0xf]  ;;  %v10898_v13 = vld [vmem:[%s11306_s27 + $0xf24] sm:$0xf] }
 0x1db   : > { %4603 = vmatpush.bf16.msra.mxu2 %v8855_v18  ;;  %v10848_v18 = vld [vmem:[%s11306_s27 + $0xd94] sm:$0xf]  ;;  %v8823_v5 = vor.u32 %v10832_v31, %v8820_v62  ;;  %v9172_v31 = vld [vmem:[%s11306_s27 + $0xfd8] sm:$0xf0]  ;;  %v9047_v62 = vor.u32 %v10888_v43, %v9044_v47  ;;  %v9084_v8 = vld [vmem:[%s11306_s27 + $0xf28] sm:$0xf0] }
 0x1dc   : > { %4616 = vmatpush.bf16.msra.mxu3 %v8919_v46  ;;  %v8684_v46 = vld [vmem:[%s11306_s27 + $0xc08] sm:$0xf0]  ;;  %v8887_v19 = vor.u32 %v10848_v18, %v8884_v50  ;;  %v10920_v28 = vld [vmem:[%s11306_s27 + $0xfd4] sm:$0xf]  ;;  %v10870_v50 = vld [vmem:[%s11306_s27 + $0xe44] sm:$0xf] }
 0x1dd   : > { %4578 = vmatpush.bf16.msra.mxu0 %v8719_v7  ;;  %v4352_v7 = vpop.f32.mrf.mxu2  ;;  %v10916_v29 = vld [vmem:[%s11306_s27 + $0xfb4] sm:$0xf]  ;;  %v9148_v1 = vld [vmem:[%s11306_s27 + $0xfa8] sm:$0xf0]  ;;  %v9012_v47 = vld [vmem:[%s11306_s27 + $0xe98] sm:$0xf0] }
 0x1de   : > { %4591 = vmatpush.bf16.msra.mxu1 %v8783_v30  ;;  %v8812_v30 = vld [vmem:[%s11306_s27 + $0xd08] sm:$0xf0]  ;;  %v4365_v57 = vpop.f32.mrf.mxu3  ;;  %v10880_v43 = vld [vmem:[%s11306_s27 + $0xe94] sm:$0xf] }
 0x1df   : > { %4604 = vmatpush.bf16.msra.mxu2 %v8847_v38  ;;  %v10846_v38 = vld [vmem:[%s11306_s27 + $0xd84] sm:$0xf]  ;;  %v8815_v44 = vor.u32 %v10830_v56, %v8812_v30  ;;  %v10884_v57 = vld [vmem:[%s11306_s27 + $0xeb4] sm:$0xf] }
 0x1e0   : > { %4617 = vmatpush.bf16.msra.mxu3 %v8911_v59  ;;  %v8687_v59 = vor.u32 %v10798_v35, %v8684_v46  ;;  %v9036_v35 = vld [vmem:[%s11306_s27 + $0xec8] sm:$0xf0]  ;;  %v10902_v46 = vld [vmem:[%s11306_s27 + $0xf44] sm:$0xf] }
 0x1e1   : > { %4579 = vmatpush.bf16.msra.mxu0 %v8711_v0  ;;  %v9188_v0 = vld [vmem:[%s11306_s27 + $0xff8] sm:$0xf0] }
 0x1e2   : > { %4592 = vmatpush.bf16.msra.mxu1 %v8775_v32  ;;  %v8879_v32 = vor.u32 %v10846_v38, %v8876_v20  ;;  %v9191_v24 = vor.u32 %v10924_v21, %v9188_v0  ;;  %v10868_v38 = vld [vmem:[%s11306_s27 + $0xe34] sm:$0xf]  ;;  %v8964_v20 = vld [vmem:[%s11306_s27 + $0xe38] sm:$0xf0]  ;;  %v10866_v21 = vld [vmem:[%s11306_s27 + $0xe24] sm:$0xf] }
 0x1e3   : > { %4605 = vmatpush.bf16.msra.mxu2 %v8839_v6  ;;  %v8999_v6 = vor.u32 %v10876_v36, %v8996_v33  ;;  %v8967_v22 = vor.u32 %v10868_v38, %v8964_v20  ;;  %v8956_v0 = vld [vmem:[%s11306_s27 + $0xe28] sm:$0xf0]  ;;  %v10957_v38 = vld [vmem:[%s11306_s27 + $0x10f4] sm:$0xf0]  ;;  %v9378_v20 = vld [vmem:[%s11306_s27 + $0x1170] sm:$0xf] }
 0x1e4   : > { %4618 = vmatpush.bf16.msra.mxu3 %v8903_v16  ;;  %v10890_v16 = vld [vmem:[%s11306_s27 + $0xee4] sm:$0xf]  ;;  %v8959_v34 = vor.u32 %v10866_v21, %v8956_v0  ;;  %v9306_v21 = vld [vmem:[%s11306_s27 + $0x10e0] sm:$0xf] }
 0x1e5   : > { %4580 = vmatpush.bf16.msra.mxu0 %v8703_v39  ;;  %v9055_v39 = vor.u32 %v10890_v16, %v9052_v26  ;;  %v10914_v26 = vld [vmem:[%s11306_s27 + $0xfa4] sm:$0xf] }
 0x1e6   : > { %4593 = vmatpush.bf16.msra.mxu1 %v8767_v63  ;;  %v10872_v63 = vld [vmem:[%s11306_s27 + $0xe54] sm:$0xf] }
 0x1e7   : > { %4606 = vmatpush.bf16.msra.mxu2 %v8831_v40  ;;  %v8980_v40 = vld [vmem:[%s11306_s27 + $0xe58] sm:$0xf0] }
 0x1e8   : > { %4619 = vmatpush.bf16.msra.mxu3 %v8895_v3  ;;  %v9108_v3 = vld [vmem:[%s11306_s27 + $0xf58] sm:$0xf0] }
 0x1e9   : > { %4581 = vmatpush.bf16.msra.mxu0 %v8695_v4  ;;  %v9111_v18 = vor.u32 %v10904_v2, %v9108_v3  ;;  %v8972_v4 = vld [vmem:[%s11306_s27 + $0xe48] sm:$0xf0]  ;;  %v10896_v2 = vld [vmem:[%s11306_s27 + $0xf14] sm:$0xf]  ;;  %v9076_v3 = vld [vmem:[%s11306_s27 + $0xf18] sm:$0xf0] }
 0x1ea   : > { %4594 = vmatpush.bf16.msra.mxu1 %v8759_v52  ;;  %v9100_v52 = vld [vmem:[%s11306_s27 + $0xf48] sm:$0xf0]  ;;  %v8975_v56 = vor.u32 %v10870_v50, %v8972_v4  ;;  %v9015_v50 = vor.u32 %v10880_v43, %v9012_v47  ;;  %v9079_v4 = vor.u32 %v10896_v2, %v9076_v3  ;;  %v9226_v47 = vld [vmem:[%s11306_s27 + $0x1040] sm:$0xf]  ;;  %v10935_v2 = vld [vmem:[%s11306_s27 + $0x1044] sm:$0xf0] }
 0x1eb   : > { %4607 = vmatpush.bf16.msra.mxu2 %v8823_v5  ;;  %v10918_v5 = vld [vmem:[%s11306_s27 + $0xfc4] sm:$0xf]  ;;  %v9103_v30 = vor.u32 %v10902_v46, %v9100_v52  ;;  %v9068_v52 = vld [vmem:[%s11306_s27 + $0xf08] sm:$0xf0]  ;;  %v10951_v3 = vld [vmem:[%s11306_s27 + $0x10c4] sm:$0xf0] }
 0x1ec   : > { %4620 = vmatpush.bf16.msra.mxu3 %v8887_v19  ;;  %v9167_v36 = vor.u32 %v10918_v5, %v9164_v53  ;;  %v9132_v5 = vld [vmem:[%s11306_s27 + $0xf88] sm:$0xf0] }
 0x1ed   : > { %4582 = vmatpush.bf16.msra.mxu0 %v8687_v59  ;;  %v10900_v59 = vld [vmem:[%s11306_s27 + $0xf34] sm:$0xf] }
 0x1ee   : > { %4595 = vmatpush.bf16.msra.mxu1 %v8751_v61  ;;  %v4389_v7 = vpop.f32.mrf.mxu1  ;;  %v9031_v61 = vor.u32 %v10884_v57, %v9028_v58  ;;  %v10973_v57 = vld [vmem:[%s11306_s27 + $0x1174] sm:$0xf0]  ;;  %v9442_v58 = vld [vmem:[%s11306_s27 + $0x11f0] sm:$0xf] }
 0x1ef   : > { %4608 = vmatpush.bf16.msra.mxu2 %v8815_v44 }
 0x1f0   : > { %4621 = vmatpush.bf16.msra.mxu3 %v8879_v32  ;;  %4583 = vmatmul.bf16.vlgmr.msra.gmra.mxu0 %v12160_v10  ;;  %v8983_v10 = vor.u32 %v10872_v63, %v8980_v40  ;;  %v10882_v32 = vld [vmem:[%s11306_s27 + $0xea4] sm:$0xf]  ;;  %v10864_v63 = vld [vmem:[%s11306_s27 + $0xe14] sm:$0xf]  ;;  %v8948_v40 = vld [vmem:[%s11306_s27 + $0xe18] sm:$0xf0] }
 0x1f1   : > { %4627 = vmatpush.bf16.msrb.mxu0 %v8999_v6  ;;  %4596 = vmatmul.bf16.vlgmr.msra.gmra.mxu1 %v12167_v15  ;;  %v9175_v15 = vor.u32 %v10920_v28, %v9172_v31  ;;  %v9159_v6 = vor.u32 %v10916_v29, %v9156_v41  ;;  %v10912_v28 = vld [vmem:[%s11306_s27 + $0xf94] sm:$0xf]  ;;  %v9140_v31 = vld [vmem:[%s11306_s27 + $0xf98] sm:$0xf0] }
 0x1f2   : > { %4640 = vmatpush.bf16.msrb.mxu1 %v9063_v11  ;;  %4609 = vmatmul.bf16.vlgmr.msra.gmra.mxu2 %v12165_v14  ;;  %v10886_v14 = vld [vmem:[%s11306_s27 + $0xec4] sm:$0xf]  ;;  %v9143_v46 = vor.u32 %v10912_v28, %v9140_v31  ;;  %v9354_v28 = vld [vmem:[%s11306_s27 + $0x1140] sm:$0xf]  ;;  %v10967_v31 = vld [vmem:[%s11306_s27 + $0x1144] sm:$0xf0] }
 0x1f3   : > { %4653 = vmatpush.bf16.msrb.mxu2 %v9127_v12  ;;  %4622 = vmatmul.bf16.vlgmr.msra.gmra.mxu3 %v12171_v17  ;;  %v4376_v17 = vpop.f32.mrf.mxu0  ;;  %v9039_v19 = vor.u32 %v10886_v14, %v9036_v35  ;;  %v9020_v12 = vld [vmem:[%s11306_s27 + $0xea8] sm:$0xf0]  ;;  %v10878_v14 = vld [vmem:[%s11306_s27 + $0xe84] sm:$0xf] }
 0x1f4   : > { %4666 = vmatpush.bf16.msrb.mxu3 %v9191_v24  ;;  %v4377_v55 = vadd.f32 %v4376_v17, %v12450_v23  ;;  %v9092_v23 = vld [vmem:[%s11306_s27 + $0xf38] sm:$0xf0]  ;;  %v10894_v35 = vld [vmem:[%s11306_s27 + $0xf04] sm:$0xf] }
 0x1f5   : > { %4628 = vmatpush.bf16.msrb.mxu0 %v8991_v37  ;;  %v9095_v44 = vor.u32 %v10900_v59, %v9092_v23  ;;  %v4402_v11 = vpop.f32.mrf.mxu2  ;;  %v10910_v17 = vld [vmem:[%s11306_s27 + $0xf84] sm:$0xf]  ;;  %v10989_v59 = vld [vmem:[%s11306_s27 + $0x11f4] sm:$0xf0] }
 0x1f6   : > { %4641 = vmatpush.bf16.msrb.mxu1 %v9055_v39  ;;  %v4390_v33 = vadd.f32 %v4389_v7, %v4377_v55  ;;  %v4415_v24 = vpop.f32.mrf.mxu3  ;;  %v4391_v42 = vpop.f32.mrf.mxu1  ;;  %v9023_v39 = vor.u32 %v10882_v32, %v9020_v12  ;;  %v9250_v55 = vld [vmem:[%s11306_s27 + $0x1070] sm:$0xf]  ;;  %v9135_v23 = vor.u32 %v10910_v17, %v9132_v5  ;;  %v9443_v0 = vor.u32 %v10989_v59, %v9442_v58  ;;  %v10955_v32 = vld [vmem:[%s11306_s27 + $0x10e4] sm:$0xf0]  ;;  %v9434_v12 = vld [vmem:[%s11306_s27 + $0x11e0] sm:$0xf] }
 0x1f7   : > { %4654 = vmatpush.bf16.msrb.mxu2 %v9119_v48  ;;  %v9087_v48 = vor.u32 %v10898_v13, %v9084_v8  ;;  %v9314_v7 = vld [vmem:[%s11306_s27 + $0x10f0] sm:$0xf]  ;;  %v10987_v13 = vld [vmem:[%s11306_s27 + $0x11e4] sm:$0xf0]  ;;  %v10953_v42 = vld [vmem:[%s11306_s27 + $0x10d4] sm:$0xf0] }
 0x1f8   : > { %4667 = vmatpush.bf16.msrb.mxu3 %v9183_v45  ;;  %v4403_v16 = vadd.f32 %v4402_v11, %v4390_v33  ;;  %v9151_v45 = vor.u32 %v10914_v26, %v9148_v1  ;;  %v9071_v33 = vor.u32 %v10894_v35, %v9068_v52  ;;  %v9315_v41 = vor.u32 %v10957_v38, %v9314_v7  ;;  %v10971_v11 = vld [vmem:[%s11306_s27 + $0x1164] sm:$0xf0]  ;;  %v9234_v26 = vld [vmem:[%s11306_s27 + $0x1050] sm:$0xf]  ;;  %v10937_v1 = vld [vmem:[%s11306_s27 + $0x1054] sm:$0xf0] }
 0x1f9   : > { %4629 = vmatpush.bf16.msrb.mxu0 %v8983_v10  ;;  %v8951_v10 = vor.u32 %v10864_v63, %v8948_v40  ;;  %v9426_v63 = vld [vmem:[%s11306_s27 + $0x11d0] sm:$0xf]  ;;  %v10985_v40 = vld [vmem:[%s11306_s27 + $0x11d4] sm:$0xf0]  ;;  %v10947_v59 = vld [vmem:[%s11306_s27 + $0x10a4] sm:$0xf0] }
 0x1fa   : > { %4642 = vmatpush.bf16.msrb.mxu1 %v9047_v62  ;;  %v12521_v37 = vadd.f32 %v4415_v24, %v4403_v16  ;;  %v10862_v62 = vld [vmem:[%s11306_s27 + $0xe04] sm:$0xf]  ;;  %v9307_v16 = vor.u32 %v10955_v32, %v9306_v21  ;;  %v9218_v35 = vld [vmem:[%s11306_s27 + $0x1030] sm:$0xf]  ;;  %v10981_v7 = vld [vmem:[%s11306_s27 + $0x11b4] sm:$0xf0] }
 0x1fb   : > { %4655 = vmatpush.bf16.msrb.mxu2 %v9111_v18  ;;  %v4378_v27 = vpop.f32.mrf.mxu0  ;;  %v8940_v18 = vld [vmem:[%s11306_s27 + $0xe08] sm:$0xf0]  ;;  %v9282_v52 = vld [vmem:[%s11306_s27 + $0x10b0] sm:$0xf] }
 0x1fc   : > { %4668 = vmatpush.bf16.msrb.mxu3 %v9175_v15  ;;  %v9004_v15 = vld [vmem:[%s11306_s27 + $0xe88] sm:$0xf0]  ;;  %v9298_v27 = vld [vmem:[%s11306_s27 + $0x10d0] sm:$0xf] }
 0x1fd   : > { %4630 = vmatpush.bf16.msrb.mxu0 %v8975_v56  ;;  %v4404_v53 = vpop.f32.mrf.mxu2  ;;  %v10941_v56 = vld [vmem:[%s11306_s27 + $0x1074] sm:$0xf0]  ;;  %v9299_v43 = vor.u32 %v10953_v42, %v9298_v27  ;;  %v9202_v32 = vld [vmem:[%s11306_s27 + $0x1010] sm:$0xf] }
 0x1fe   : > { %4643 = vmatpush.bf16.msrb.mxu1 %v9039_v19  ;;  %v4417_v19 = vpop.f32.mrf.mxu3  ;;  %v9251_v29 = vor.u32 %v10941_v56, %v9250_v55  ;;  %v10949_v53 = vld [vmem:[%s11306_s27 + $0x10b4] sm:$0xf0]  ;;  %v9346_v55 = vld [vmem:[%s11306_s27 + $0x1130] sm:$0xf] }
 0x1ff   : > { %4656 = vmatpush.bf16.msrb.mxu2 %v9103_v30  ;;  %v8943_v30 = vor.u32 %v10862_v62, %v8940_v18  ;;  %v10983_v62 = vld [vmem:[%s11306_s27 + $0x11c4] sm:$0xf0]  ;;  %v9410_v56 = vld [vmem:[%s11306_s27 + $0x11b0] sm:$0xf]  ;;  %v10961_v27 = vld [vmem:[%s11306_s27 + $0x1114] sm:$0xf0] }
 0x200   : > { %4669 = vmatpush.bf16.msrb.mxu3 %v9167_v36  ;;  %v9007_v36 = vor.u32 %v10878_v14, %v9004_v15  ;;  %v9355_v15 = vor.u32 %v10967_v31, %v9354_v28  ;;  %v9386_v31 = vld [vmem:[%s11306_s27 + $0x1180] sm:$0xf] }
 0x201   : > { %4631 = vmatpush.bf16.msrb.mxu0 %v8967_v22  ;;  %v9379_v22 = vor.u32 %v10973_v57, %v9378_v20  ;;  %v9210_v20 = vld [vmem:[%s11306_s27 + $0x1020] sm:$0xf]  ;;  %v10931_v57 = vld [vmem:[%s11306_s27 + $0x1024] sm:$0xf0] }
 0x202   : > { %4644 = vmatpush.bf16.msrb.mxu1 %v9031_v61  ;;  %v9242_v61 = vld [vmem:[%s11306_s27 + $0x1060] sm:$0xf] }
 0x203   : > { %4657 = vmatpush.bf16.msrb.mxu2 %v9095_v44  ;;  %v10939_v44 = vld [vmem:[%s11306_s27 + $0x1064] sm:$0xf0] }
 0x204   : > { %4670 = vmatpush.bf16.msrb.mxu3 %v9159_v6  ;;  %v9370_v6 = vld [vmem:[%s11306_s27 + $0x1160] sm:$0xf]  ;;  %v9243_v8 = vor.u32 %v10939_v44, %v9242_v61  ;;  %v10979_v44 = vld [vmem:[%s11306_s27 + $0x11a4] sm:$0xf0] }
 0x205   : > { %4632 = vmatpush.bf16.msrb.mxu0 %v8959_v34  ;;  %v9371_v24 = vor.u32 %v10971_v11, %v9370_v6  ;;  %v9435_v34 = vor.u32 %v10987_v13, %v9434_v12  ;;  %v9402_v61 = vld [vmem:[%s11306_s27 + $0x11a0] sm:$0xf] }
 0x206   : > { %4645 = vmatpush.bf16.msrb.mxu1 %v9023_v39  ;;  %v9362_v39 = vld [vmem:[%s11306_s27 + $0x1150] sm:$0xf] }
 0x207   : > { %4658 = vmatpush.bf16.msrb.mxu2 %v9087_v48  ;;  %v10969_v48 = vld [vmem:[%s11306_s27 + $0x1154] sm:$0xf0] }
 0x208   : > { %4671 = vmatpush.bf16.msrb.mxu3 %v9151_v45  ;;  %v9363_v45 = vor.u32 %v10969_v48, %v9362_v39  ;;  %v10977_v39 = vld [vmem:[%s11306_s27 + $0x1194] sm:$0xf0] }
 0x209   : > { %4633 = vmatpush.bf16.msrb.mxu0 %v8951_v10  ;;  %v9418_v10 = vld [vmem:[%s11306_s27 + $0x11c0] sm:$0xf] }
 0x20a   : > { %4646 = vmatpush.bf16.msrb.mxu1 %v9015_v50  ;;  %v9227_v50 = vor.u32 %v10935_v2, %v9226_v47  ;;  %v9419_v17 = vor.u32 %v10983_v62, %v9418_v10  ;;  %v381_v62 = vld [vmem:[%s11396_s7 + $0x80] sm:$0xff] }
 0x20b   : > { %4659 = vmatpush.bf16.msrb.mxu2 %v9079_v4 }
 0x20c   : > { %4672 = vmatpush.bf16.msrb.mxu3 %v9143_v46  ;;  %v10933_v46 = vld [vmem:[%s11306_s27 + $0x1034] sm:$0xf0] }
 0x20d   : > { %4634 = vmatpush.bf16.msrb.mxu0 %v8943_v30  ;;  %v9219_v19 = vor.u32 %v10933_v46, %v9218_v35  ;;  %v9283_v30 = vor.u32 %v10949_v53, %v9282_v52  ;;  %v11021_v35 = vld [vmem:[%s11306_s27 + $0x12f4] sm:$0xf0]  ;;  %v9634_v46 = vld [vmem:[%s11306_s27 + $0x1370] sm:$0xf] }
 0x20e   : > { %4647 = vmatpush.bf16.msrb.mxu1 %v9007_v36  ;;  %v4441_v4 = vpop.f32.mrf.mxu1  ;;  %v9274_v36 = vld [vmem:[%s11306_s27 + $0x10a0] sm:$0xf]  ;;  %v11037_v52 = vld [vmem:[%s11306_s27 + $0x1374] sm:$0xf0] }
 0x20f   : > { %4660 = vmatpush.bf16.msrb.mxu2 %v9071_v33  ;;  %v9411_v33 = vor.u32 %v10981_v7, %v9410_v56  ;;  %v9275_v12 = vor.u32 %v10947_v59, %v9274_v36  ;;  %v4687_v56 = vunpack.c.l.b16 %v381_v62  ;;  %v9635_v36 = vor.u32 %v11037_v52, %v9634_v46  ;;  %v9562_v59 = vld [vmem:[%s11306_s27 + $0x12e0] sm:$0xf] }
 0x210   : > { %4673 = vmatpush.bf16.msrb.mxu3 %v9135_v23  ;;  %4635 = vmatmul.bf16.vlgmr.msrb.gmra.mxu0 %v12252_v49  ;;  %v9235_v49 = vor.u32 %v10937_v1, %v9234_v26  ;;  %v9338_v23 = vld [vmem:[%s11306_s27 + $0x1120] sm:$0xf]  ;;  %v9403_v26 = vor.u32 %v10979_v44, %v9402_v61  ;;  %v9330_v1 = vld [vmem:[%s11306_s27 + $0x1110] sm:$0xf]  ;;  %v11035_v61 = vld [vmem:[%s11306_s27 + $0x1364] sm:$0xf0] }
 0x211   : > { %6015 = vmatpush.bf16.msra.mxu0 %v9251_v29  ;;  %4648 = vmatmul.bf16.vlgmr.msrb.gmra.mxu1 %v12259_v51  ;;  %v9427_v51 = vor.u32 %v10985_v40, %v9426_v63  ;;  %v10963_v29 = vld [vmem:[%s11306_s27 + $0x1124] sm:$0xf0]  ;;  %v9194_v63 = vld [vmem:[%s11306_s27 + $0x1000] sm:$0xf]  ;;  %v9331_v2 = vor.u32 %v10961_v27, %v9330_v1  ;;  %v9554_v27 = vld [vmem:[%s11306_s27 + $0x12d0] sm:$0xf] }
 0x212   : > { %6028 = vmatpush.bf16.msra.mxu1 %v9315_v41  ;;  %4661 = vmatmul.bf16.vlgmr.msrb.gmra.mxu2 %v12257_v54  ;;  %v9290_v54 = vld [vmem:[%s11306_s27 + $0x10c0] sm:$0xf]  ;;  %v9339_v13 = vor.u32 %v10963_v29, %v9338_v23 }
 0x213   : > { %6041 = vmatpush.bf16.msra.mxu2 %v9379_v22  ;;  %4674 = vmatmul.bf16.vlgmr.msrb.gmra.mxu3 %v12263_v25  ;;  %v4428_v25 = vpop.f32.mrf.mxu0  ;;  %v9291_v14 = vor.u32 %v10951_v3, %v9290_v54  ;;  %v6439_v42 = vpop.xlane.xlu0 %6438  ;;  %v9322_v54 = vld [vmem:[%s11306_s27 + $0x1100] sm:$0xf]  ;;  %v382_v3 = vld [vmem:[%s11396_s7 + $0x88] sm:$0xff] }
 0x214   : > { %6054 = vmatpush.bf16.msra.mxu3 %v9443_v0  ;;  %v4429_v18 = vadd.f32 %v4428_v25, %v12521_v37  ;;  %v10965_v37 = vld [vmem:[%s11306_s27 + $0x1134] sm:$0xf0]  ;;  %v9211_v0 = vor.u32 %v10931_v57, %v9210_v20  ;;  %v12602_v48 = vadd.f32 1e-16, %v6439_v42  ;;  %v10975_v25 = vld [vmem:[%s11306_s27 + $0x1184] sm:$0xf0]  ;;  %v4690_v7 = vunpack.c.h.b16 %v382_v3 }
 0x215   : > { %6016 = vmatpush.bf16.msra.mxu0 %v9243_v8  ;;  %v9347_v38 = vor.u32 %v10965_v37, %v9346_v55  ;;  %v4454_v58 = vpop.f32.mrf.mxu2  ;;  %v10929_v8 = vld [vmem:[%s11306_s27 + $0x1014] sm:$0xf0]  ;;  %v9698_v55 = vld [vmem:[%s11306_s27 + $0x13f0] sm:$0xf] }
 0x216   : > { %6029 = vmatpush.bf16.msra.mxu1 %v9307_v16  ;;  %v4442_v5 = vadd.f32 %v4441_v4, %v4429_v18  ;;  %v4467_v22 = vpop.f32.mrf.mxu3  ;;  %v4443_v6 = vpop.f32.mrf.mxu1  ;;  %v9266_v16 = vld [vmem:[%s11306_s27 + $0x1090] sm:$0xf]  ;;  %v9203_v40 = vor.u32 %v10929_v8, %v9202_v32  ;;  %11241 = vrsqrt.f32 %v12602_v48  ;;  %v11053_v37 = vld [vmem:[%s11306_s27 + $0x13f4] sm:$0xf0]  ;;  %v12637_v32 = vpack.c.b16 %v4687_v56, %v4687_v56 }
 0x217   : > { %6042 = vmatpush.bf16.msra.mxu2 %v9371_v24  ;;  %v10945_v24 = vld [vmem:[%s11306_s27 + $0x1094] sm:$0xf0]  ;;  %v9506_v18 = vld [vmem:[%s11306_s27 + $0x1270] sm:$0xf]  ;;  %v9699_v29 = vor.u32 %v11053_v37, %v9698_v55  ;;  %v12639_v6 = vpack.c.b16 %v4690_v7, %v4690_v7  ;;  %vm6455_vm1 = vweird.f32 %v12602_v48 }
 0x218   : > { %6055 = vmatpush.bf16.msra.mxu3 %v9435_v34  ;;  %v4455_v41 = vadd.f32 %v4454_v58, %v4442_v5  ;;  %v9394_v34 = vld [vmem:[%s11306_s27 + $0x1190] sm:$0xf]  ;;  %v9267_v47 = vor.u32 %v10945_v24, %v9266_v16  ;;  %v11003_v58 = vld [vmem:[%s11306_s27 + $0x1264] sm:$0xf0]  ;;  %v11001_v16 = vld [vmem:[%s11306_s27 + $0x1254] sm:$0xf0] }
 0x219   : > { %6017 = vmatpush.bf16.msra.mxu0 %v9235_v49  ;;  %v10927_v49 = vld [vmem:[%s11306_s27 + $0x1004] sm:$0xf0]  ;;  %v9395_v28 = vor.u32 %v10977_v39, %v9394_v34  ;;  %v9570_v4 = vld [vmem:[%s11306_s27 + $0x12f0] sm:$0xf]  ;;  %v11017_v34 = vld [vmem:[%s11306_s27 + $0x12d4] sm:$0xf0] }
 0x21a   : > { %6030 = vmatpush.bf16.msra.mxu1 %v9299_v43  ;;  %v12593_v11 = vadd.f32 %v4467_v22, %v4455_v41  ;;  %v9258_v43 = vld [vmem:[%s11306_s27 + $0x1080] sm:$0xf]  ;;  %v9571_v57 = vor.u32 %v11021_v35, %v9570_v4  ;;  %v11019_v41 = vld [vmem:[%s11306_s27 + $0x12e4] sm:$0xf0]  ;;  %v9490_v8 = vld [vmem:[%s11306_s27 + $0x1250] sm:$0xf] }
 0x21b   : > { %6043 = vmatpush.bf16.msra.mxu2 %v9363_v45  ;;  %v4430_v21 = vpop.f32.mrf.mxu0  ;;  %v10943_v45 = vld [vmem:[%s11306_s27 + $0x1084] sm:$0xf0]  ;;  %v9626_v22 = vld [vmem:[%s11306_s27 + $0x1360] sm:$0xf]  ;;  %v9618_v42 = vld [vmem:[%s11306_s27 + $0x1350] sm:$0xf] }
 0x21c   : > { %6056 = vmatpush.bf16.msra.mxu3 %v9427_v51  ;;  %v10959_v51 = vld [vmem:[%s11306_s27 + $0x1104] sm:$0xf0]  ;;  %v9259_v5 = vor.u32 %v10943_v45, %v9258_v43  ;;  %v12623_v20 = vpop.eup %11241  ;;  %v9690_v21 = vld [vmem:[%s11306_s27 + $0x13e0] sm:$0xf]  ;;  %v9627_v1 = vor.u32 %v11035_v61, %v9626_v22  ;;  %v11049_v43 = vld [vmem:[%s11306_s27 + $0x13d4] sm:$0xf0] }
 0x21d   : > { %6018 = vmatpush.bf16.msra.mxu0 %v9227_v50  ;;  %v4456_v10 = vpop.f32.mrf.mxu2  ;;  %v11005_v50 = vld [vmem:[%s11306_s27 + $0x1274] sm:$0xf0]  ;;  %v9323_v53 = vor.u32 %v10959_v51, %v9322_v54  ;;  %v6450_v23 = vmul.f32 %v12623_v20, %v12602_v48  ;;  %v9482_v45 = vld [vmem:[%s11306_s27 + $0x1240] sm:$0xf]  ;;  %vm6456_vm0 = vweird.f32 %v12623_v20  ;;  %v9491_v54 = vor.u32 %v11001_v16, %v9490_v8  ;;  %v9474_v55 = vld [vmem:[%s11306_s27 + $0x1230] sm:$0xf] }
 0x21e   : > { %6031 = vmatpush.bf16.msra.mxu1 %v9291_v14  ;;  %v4469_v14 = vpop.f32.mrf.mxu3  ;;  %v9546_v51 = vld [vmem:[%s11306_s27 + $0x12c0] sm:$0xf]  ;;  %v11031_v10 = vld [vmem:[%s11306_s27 + $0x1344] sm:$0xf0]  ;;  %vm6457_vm2 = vmor %vm6455_vm1, %vm6456_vm0 }
 0x21f   : > { %6044 = vmatpush.bf16.msra.mxu2 %v9355_v15  ;;  %v9195_v15 = vor.u32 %v10927_v49, %v9194_v63  ;;  %v9682_v49 = vld [vmem:[%s11306_s27 + $0x13d0] sm:$0xf]  ;;  %v9674_v14 = vld [vmem:[%s11306_s27 + $0x13c0] sm:$0xf]  ;;  %v10997_v37 = vld [vmem:[%s11306_s27 + $0x1234] sm:$0xf0] }
 0x220   : > { %6057 = vmatpush.bf16.msra.mxu3 %v9419_v17  ;;  %v4689_v17 = vunpack.c.l.b16 %v382_v3  ;;  %v11015_v3 = vld [vmem:[%s11306_s27 + $0x12c4] sm:$0xf0]  ;;  %v9683_v4 = vor.u32 %v11049_v43, %v9682_v49  ;;  %v9538_v56 = vld [vmem:[%s11306_s27 + $0x12b0] sm:$0xf]  ;;  %v9530_v61 = vld [vmem:[%s11306_s27 + $0x12a0] sm:$0xf] }
 0x221   : > { %6019 = vmatpush.bf16.msra.mxu0 %v9219_v19  ;;  %v9387_v19 = vor.u32 %v10975_v25, %v9386_v31  ;;  %v9610_v25 = vld [vmem:[%s11306_s27 + $0x1340] sm:$0xf]  ;;  %v9547_v46 = vor.u32 %v11015_v3, %v9546_v51  ;;  %v10995_v22 = vld [vmem:[%s11306_s27 + $0x1224] sm:$0xf0]  ;;  %v9458_v49 = vld [vmem:[%s11306_s27 + $0x1210] sm:$0xf] }
 0x222   : > { %6032 = vmatpush.bf16.msra.mxu1 %v9283_v30  ;;  %v9507_v30 = vor.u32 %v11005_v50, %v9506_v18  ;;  %v12633_v44 = vpack.c.b16 %v4689_v17, %v4689_v17  ;;  %v9611_v52 = vor.u32 %v11031_v10, %v9610_v25  ;;  %v11027_v8 = vld [vmem:[%s11306_s27 + $0x1324] sm:$0xf0]  ;;  %v10993_v43 = vld [vmem:[%s11306_s27 + $0x1214] sm:$0xf0]  ;;  %v9586_v51 = vld [vmem:[%s11306_s27 + $0x1310] sm:$0xf] }
 0x223   : > { %6045 = vmatpush.bf16.msra.mxu2 %v9347_v38  ;;  %v4688_v38 = vunpack.c.h.b16 %v381_v62  ;;  %v11248_v62 = vld [vmem:[%s11730_s11 + $0x2] sm:$0x3]  ;;  %v11025_v3 = vld [vmem:[%s11306_s27 + $0x1314] sm:$0xf0]  ;;  %v9459_v10 = vor.u32 %v10993_v43, %v9458_v49 }
 0x224   : > { %6058 = vmatpush.bf16.msra.mxu3 %v9411_v33  ;;  %v9498_v33 = vld [vmem:[%s11306_s27 + $0x1260] sm:$0xf]  ;;  %v1166_v18 = vperm.slane %v11248_v62, 1  ;;  %v10991_v62 = vld [vmem:[%s11306_s27 + $0x1204] sm:$0xf0] }
 0x225   : > { %6020 = vmatpush.bf16.msra.mxu0 %v9211_v0  ;;  %v11051_v0 = vld [vmem:[%s11306_s27 + $0x13e4] sm:$0xf0]  ;;  %v12644_v24 = vpack.c.b16 %v4688_v38, %v4688_v38  ;;  %v11013_v38 = vld [vmem:[%s11306_s27 + $0x12b4] sm:$0xf0]  ;;  %v9450_v25 = vld [vmem:[%s11306_s27 + $0x1200] sm:$0xf] }
 0x226   : > { %6033 = vmatpush.bf16.msra.mxu1 %v9275_v12  ;;  %v6451_v12 = vmul.f32 %v12623_v20, %v6450_v23  ;;  %v9691_v63 = vor.u32 %v11051_v0, %v9690_v21  ;;  %v9539_v23 = vor.u32 %v11013_v38, %v9538_v56  ;;  %v11069_v56 = vld [vmem:[%s11306_s27 + $0x1474] sm:$0xf0]  ;;  %v9890_v38 = vld [vmem:[%s11306_s27 + $0x1570] sm:$0xf] }
 0x227   : > { %6046 = vmatpush.bf16.msra.mxu2 %v9339_v13  ;;  %v9499_v13 = vor.u32 %v11003_v58, %v9498_v33  ;;  %v11045_v33 = vld [vmem:[%s11306_s27 + $0x13b4] sm:$0xf0] }
 0x228   : > { %6059 = vmatpush.bf16.msra.mxu3 %v9403_v26  ;;  %v9563_v26 = vor.u32 %v11019_v41, %v9562_v59  ;;  %v6452_v39 = vmul.f32 0.5, %v6451_v12  ;;  %v9475_v59 = vor.u32 %v10997_v37, %v9474_v55  ;;  %v9466_v41 = vld [vmem:[%s11306_s27 + $0x1220] sm:$0xf]  ;;  %v11011_v12 = vld [vmem:[%s11306_s27 + $0x12a4] sm:$0xf0] }
 0x229   : > { %6021 = vmatpush.bf16.msra.mxu0 %v9203_v40  ;;  %v11033_v40 = vld [vmem:[%s11306_s27 + $0x1354] sm:$0xf0]  ;;  %v9762_v37 = vld [vmem:[%s11306_s27 + $0x1470] sm:$0xf] }
 0x22a   : > { %6034 = vmatpush.bf16.msra.mxu1 %v9267_v47  ;;  %v10999_v47 = vld [vmem:[%s11306_s27 + $0x1244] sm:$0xf0]  ;;  %v9619_v31 = vor.u32 %v11033_v40, %v9618_v42 }
 0x22b   : > { %6047 = vmatpush.bf16.msra.mxu2 %v9331_v2  ;;  %v6453_v2 = vsub.f32 1.5, %v6452_v39  ;;  %v9483_v48 = vor.u32 %v10999_v47, %v9482_v45  ;;  %v9522_v45 = vld [vmem:[%s11306_s27 + $0x1290] sm:$0xf] }
 0x22c   : > { %6060 = vmatpush.bf16.msra.mxu3 %v9395_v28  ;;  %v9555_v28 = vor.u32 %v11017_v34, %v9554_v27  ;;  %v11043_v27 = vld [vmem:[%s11306_s27 + $0x13a4] sm:$0xf0]  ;;  %v9467_v34 = vor.u32 %v10995_v22, %v9466_v41  ;;  %v9763_v22 = vor.u32 %v11069_v56, %v9762_v37 }
 0x22d   : > { %6022 = vmatpush.bf16.msra.mxu0 %v9195_v15  ;;  %v6454_v50 = vmul.f32 %v12623_v20, %v6453_v2  ;;  %v11047_v15 = vld [vmem:[%s11306_s27 + $0x13c4] sm:$0xf0]  ;;  %v4480_v17 = vpop.f32.mrf.mxu0 }
 0x22e   : > { %6035 = vmatpush.bf16.msra.mxu1 %v9259_v5  ;;  %v4481_v7 = vadd.f32 %v4480_v17, %v1166_v18  ;;  %v9514_v18 = vld [vmem:[%s11306_s27 + $0x1280] sm:$0xf] }
 0x22f   : > { %6048 = vmatpush.bf16.msra.mxu2 %v9323_v53  ;;  %v6458_v35 = vsel %vm6457_vm2, %v12623_v20, %v6454_v50  ;;  %v9602_v20 = vld [vmem:[%s11306_s27 + $0x1330] sm:$0xf]  ;;  %v11007_v50 = vld [vmem:[%s11306_s27 + $0x1284] sm:$0xf0]  ;;  %v9642_v17 = vld [vmem:[%s11306_s27 + $0x1380] sm:$0xf] }
 0x230   : > { %6061 = vmatpush.bf16.msra.mxu3 %v9387_v19  ;;  %6023 = vmatmul.bf16.vlgmr.msra.gmra.mxu0 %v12637_v32  ;;  %v6479_v5 = vmul.f32 %v6458_v35, %v11962_v9  ;;  %v6480_v53 = vmul.f32 %v6458_v35, %v12304_v60  ;;  %v4493_v19 = vpop.f32.mrf.mxu1  ;;  %v11023_v35 = vld [vmem:[%s11306_s27 + $0x1304] sm:$0xf0] }
 0x231   : > { %6067 = vmatpush.bf16.msrb.mxu0 %v9507_v30  ;;  %6036 = vmatmul.bf16.vlgmr.msra.gmra.mxu1 %v12644_v24  ;;  %v9675_v30 = vor.u32 %v11047_v15, %v9674_v14  ;;  %v4494_v58 = vadd.f32 %v4493_v19, %v4481_v7  ;;  %v9587_v14 = vor.u32 %v11025_v3, %v9586_v51  ;;  %v9578_v15 = vld [vmem:[%s11306_s27 + $0x1300] sm:$0xf]  ;;  %v9826_v7 = vld [vmem:[%s11306_s27 + $0x14f0] sm:$0xf]  ;;  %v11065_v51 = vld [vmem:[%s11306_s27 + $0x1454] sm:$0xf0] }
 0x232   : > { %6080 = vmatpush.bf16.msrb.mxu1 %v9571_v57  ;;  %6049 = vmatmul.bf16.vlgmr.msra.gmra.mxu2 %v12633_v44  ;;  %v11029_v57 = vld [vmem:[%s11306_s27 + $0x1334] sm:$0xf0]  ;;  %6485 = vst [vmem:[%s12674_s15] sm:$0xff] %v6479_v5  ;;  %v11039_v5 = vld [vmem:[%s11306_s27 + $0x1384] sm:$0xf0]  ;;  %v9451_v19 = vor.u32 %v10991_v62, %v9450_v25  ;;  %v9810_v3 = vld [vmem:[%s11306_s27 + $0x14d0] sm:$0xf] }
 0x233   : > { %6093 = vmatpush.bf16.msrb.mxu2 %v9635_v36  ;;  %6062 = vmatmul.bf16.vlgmr.msra.gmra.mxu3 %v12639_v6  ;;  %v9666_v36 = vld [vmem:[%s11306_s27 + $0x13b0] sm:$0xf]  ;;  %6486 = vst [vmem:[%s12674_s15 + $0x8] sm:$0xff] %v6480_v53  ;;  %v9643_v41 = vor.u32 %v11039_v5, %v9642_v17  ;;  %v9866_v17 = vld [vmem:[%s11306_s27 + $0x1540] sm:$0xf] }
 0x234   : > { %6106 = vmatpush.bf16.msrb.mxu3 %v9699_v29  ;;  %v9603_v29 = vor.u32 %v11029_v57, %v9602_v20  ;;  %v9667_v0 = vor.u32 %v11045_v33, %v9666_v36  ;;  %v383_v53 = vld [vmem:[%s11396_s7 + $0x90] sm:$0xff]  ;;  %v11101_v20 = vld [vmem:[%s11306_s27 + $0x1574] sm:$0xf0]  ;;  %v9515_v36 = vor.u32 %v11007_v50, %v9514_v18  ;;  %v9579_v33 = vor.u32 %v11023_v35, %v9578_v15  ;;  %v9738_v15 = vld [vmem:[%s11306_s27 + $0x1440] sm:$0xf] }
 0x235   : > { %6068 = vmatpush.bf16.msrb.mxu0 %v9499_v13  ;;  %v4506_v21 = vpop.f32.mrf.mxu2  ;;  %v9594_v13 = vld [vmem:[%s11306_s27 + $0x1320] sm:$0xf]  ;;  %v4482_v39 = vpop.f32.mrf.mxu0  ;;  %v9874_v25 = vld [vmem:[%s11306_s27 + $0x1550] sm:$0xf]  ;;  %v11113_v18 = vld [vmem:[%s11306_s27 + $0x15d4] sm:$0xf0] }
 0x236   : > { %6081 = vmatpush.bf16.msrb.mxu1 %v9563_v26  ;;  %v4507_v16 = vadd.f32 %v4506_v21, %v4494_v58  ;;  %v4519_v26 = vpop.f32.mrf.mxu3  ;;  %v9595_v40 = vor.u32 %v11027_v8, %v9594_v13  ;;  %v9954_v58 = vld [vmem:[%s11306_s27 + $0x15f0] sm:$0xf]  ;;  %v11067_v13 = vld [vmem:[%s11306_s27 + $0x1464] sm:$0xf0]  ;;  %v9818_v8 = vld [vmem:[%s11306_s27 + $0x14e0] sm:$0xf] }
 0x237   : > { %6094 = vmatpush.bf16.msrb.mxu2 %v9627_v1  ;;  %v9658_v1 = vld [vmem:[%s11306_s27 + $0x13a0] sm:$0xf]  ;;  %v9938_v62 = vld [vmem:[%s11306_s27 + $0x15d0] sm:$0xf]  ;;  %v11063_v35 = vld [vmem:[%s11306_s27 + $0x1444] sm:$0xf0] }
 0x238   : > { %6107 = vmatpush.bf16.msrb.mxu3 %v9691_v63  ;;  %v12697_v42 = vadd.f32 %v4519_v26, %v4507_v16  ;;  %v9531_v63 = vor.u32 %v11011_v12, %v9530_v61  ;;  %v4495_v47 = vpop.f32.mrf.mxu1  ;;  %v9659_v2 = vor.u32 %v11043_v27, %v9658_v1  ;;  %v4692_v61 = vunpack.c.h.b16 %v383_v53  ;;  %v9754_v12 = vld [vmem:[%s11306_s27 + $0x1460] sm:$0xf]  ;;  %v11083_v26 = vld [vmem:[%s11306_s27 + $0x14e4] sm:$0xf0] }
 0x239   : > { %6069 = vmatpush.bf16.msrb.mxu0 %v9491_v54  ;;  %v11009_v54 = vld [vmem:[%s11306_s27 + $0x1294] sm:$0xf0]  ;;  %v9882_v1 = vld [vmem:[%s11306_s27 + $0x1560] sm:$0xf]  ;;  %v11099_v27 = vld [vmem:[%s11306_s27 + $0x1564] sm:$0xf0]  ;;  %v9755_v43 = vor.u32 %v11067_v13, %v9754_v12  ;;  %v9819_v47 = vor.u32 %v11083_v26, %v9818_v8  ;;  %v9739_v37 = vor.u32 %v11063_v35, %v9738_v15 }
 0x23a   : > { %6082 = vmatpush.bf16.msrb.mxu1 %v9555_v28  ;;  %v9650_v28 = vld [vmem:[%s11306_s27 + $0x1390] sm:$0xf]  ;;  %v9946_v39 = vld [vmem:[%s11306_s27 + $0x15e0] sm:$0xf]  ;;  %v11095_v5 = vld [vmem:[%s11306_s27 + $0x1544] sm:$0xf0] }
 0x23b   : > { %6095 = vmatpush.bf16.msrb.mxu2 %v9619_v31  ;;  %v11041_v31 = vld [vmem:[%s11306_s27 + $0x1394] sm:$0xf0]  ;;  %v9786_v12 = vld [vmem:[%s11306_s27 + $0x14a0] sm:$0xf]  ;;  %v11055_v35 = vld [vmem:[%s11306_s27 + $0x1404] sm:$0xf0] }
 0x23c   : > { %6108 = vmatpush.bf16.msrb.mxu3 %v9683_v4  ;;  %v9523_v4 = vor.u32 %v11009_v54, %v9522_v45  ;;  %v12739_v45 = vpack.c.b16 %v4692_v61, %v4692_v61  ;;  %v9746_v54 = vld [vmem:[%s11306_s27 + $0x1450] sm:$0xf]  ;;  %v9850_v26 = vld [vmem:[%s11306_s27 + $0x1520] sm:$0xf] }
 0x23d   : > { %6070 = vmatpush.bf16.msrb.mxu0 %v9483_v48  ;;  %v384_v48 = vld [vmem:[%s11396_s7 + $0x98] sm:$0xff]  ;;  %v9747_v50 = vor.u32 %v11065_v51, %v9746_v54  ;;  %v9714_v51 = vld [vmem:[%s11306_s27 + $0x1410] sm:$0xf] }
 0x23e   : > { %6083 = vmatpush.bf16.msrb.mxu1 %v9547_v46  ;;  %v4508_v46 = vpop.f32.mrf.mxu2  ;;  %v4521_v55 = vpop.f32.mrf.mxu3  ;;  %v4693_v57 = vunpack.c.l.b16 %v384_v48 }
 0x23f   : > { %6096 = vmatpush.bf16.msrb.mxu2 %v9611_v52  ;;  %v9651_v52 = vor.u32 %v11041_v31, %v9650_v28  ;;  %v11081_v31 = vld [vmem:[%s11306_s27 + $0x14d4] sm:$0xf0]  ;;  %v9939_v46 = vor.u32 %v11113_v18, %v9938_v62  ;;  %v11111_v55 = vld [vmem:[%s11306_s27 + $0x15c4] sm:$0xf0]  ;;  %v9842_v62 = vld [vmem:[%s11306_s27 + $0x1510] sm:$0xf] }
 0x240   : > { %6109 = vmatpush.bf16.msrb.mxu3 %v9675_v30  ;;  %v11085_v30 = vld [vmem:[%s11306_s27 + $0x14f4] sm:$0xf0] }
 0x241   : > { %6071 = vmatpush.bf16.msrb.mxu0 %v9475_v59  ;;  %v11117_v59 = vld [vmem:[%s11306_s27 + $0x15f4] sm:$0xf0]  ;;  %v9827_v21 = vor.u32 %v11085_v30, %v9826_v7  ;;  %v9730_v30 = vld [vmem:[%s11306_s27 + $0x1430] sm:$0xf] }
 0x242   : > { %6084 = vmatpush.bf16.msrb.mxu1 %v9539_v23  ;;  %v4691_v23 = vunpack.c.l.b16 %v383_v53  ;;  %v9955_v16 = vor.u32 %v11117_v59, %v9954_v58  ;;  %v9930_v53 = vld [vmem:[%s11306_s27 + $0x15c0] sm:$0xf]  ;;  %v9858_v58 = vld [vmem:[%s11306_s27 + $0x1530] sm:$0xf]  ;;  %v11093_v59 = vld [vmem:[%s11306_s27 + $0x1534] sm:$0xf0] }
 0x243   : > { %6097 = vmatpush.bf16.msrb.mxu2 %v9603_v29  ;;  %v4694_v29 = vunpack.c.h.b16 %v384_v48  ;;  %v9802_v48 = vld [vmem:[%s11306_s27 + $0x14c0] sm:$0xf]  ;;  %v9859_v61 = vor.u32 %v11093_v59, %v9858_v58  ;;  %v11089_v18 = vld [vmem:[%s11306_s27 + $0x1514] sm:$0xf0]  ;;  %v10082_v58 = vld [vmem:[%s11306_s27 + $0x16f0] sm:$0xf] }
 0x244   : > { %6110 = vmatpush.bf16.msrb.mxu3 %v9667_v0  ;;  %v9891_v0 = vor.u32 %v11101_v20, %v9890_v38  ;;  %v11061_v38 = vld [vmem:[%s11306_s27 + $0x1434] sm:$0xf0]  ;;  %v9794_v20 = vld [vmem:[%s11306_s27 + $0x14b0] sm:$0xf] }
 0x245   : > { %6072 = vmatpush.bf16.msrb.mxu0 %v9467_v34  ;;  %v12731_v34 = vpack.c.b16 %v4693_v57, %v4693_v57  ;;  %v12737_v49 = vpack.c.b16 %v4694_v29, %v4694_v29  ;;  %v11109_v29 = vld [vmem:[%s11306_s27 + $0x15b4] sm:$0xf0] }
 0x246   : > { %6085 = vmatpush.bf16.msrb.mxu1 %v9531_v63  ;;  %v11115_v63 = vld [vmem:[%s11306_s27 + $0x15e4] sm:$0xf0] }
 0x247   : > { %6098 = vmatpush.bf16.msrb.mxu2 %v9595_v40  ;;  %v12735_v40 = vpack.c.b16 %v4691_v23, %v4691_v23  ;;  %v9947_v28 = vor.u32 %v11115_v63, %v9946_v39  ;;  %v9922_v23 = vld [vmem:[%s11306_s27 + $0x15b0] sm:$0xf]  ;;  %v9914_v39 = vld [vmem:[%s11306_s27 + $0x15a0] sm:$0xf]  ;;  %v11107_v63 = vld [vmem:[%s11306_s27 + $0x15a4] sm:$0xf0] }
 0x248   : > { %6111 = vmatpush.bf16.msrb.mxu3 %v9659_v2  ;;  %v9883_v2 = vor.u32 %v11099_v27, %v9882_v1  ;;  %v9923_v8 = vor.u32 %v11109_v29, %v9922_v23  ;;  %v11091_v1 = vld [vmem:[%s11306_s27 + $0x1524] sm:$0xf0]  ;;  %v11149_v23 = vld [vmem:[%s11306_s27 + $0x16f4] sm:$0xf0]  ;;  %v10146_v29 = vld [vmem:[%s11306_s27 + $0x1770] sm:$0xf] }
 0x249   : > { %6073 = vmatpush.bf16.msrb.mxu0 %v9459_v10  ;;  %v11097_v10 = vld [vmem:[%s11306_s27 + $0x1554] sm:$0xf0]  ;;  %v9851_v54 = vor.u32 %v11091_v1, %v9850_v26 }
 0x24a   : > { %6086 = vmatpush.bf16.msrb.mxu1 %v9523_v4  ;;  %v9811_v4 = vor.u32 %v11081_v31, %v9810_v3  ;;  %v11057_v3 = vld [vmem:[%s11306_s27 + $0x1414] sm:$0xf0] }
 0x24b   : > { %6099 = vmatpush.bf16.msrb.mxu2 %v9587_v14  ;;  %v9875_v14 = vor.u32 %v11097_v10, %v9874_v25  ;;  %v9915_v25 = vor.u32 %v11107_v63, %v9914_v39  ;;  %v11073_v10 = vld [vmem:[%s11306_s27 + $0x1494] sm:$0xf0]  ;;  %v9715_v15 = vor.u32 %v11057_v3, %v9714_v51  ;;  %v10083_v63 = vor.u32 %v11149_v23, %v10082_v58  ;;  %v10122_v23 = vld [vmem:[%s11306_s27 + $0x1740] sm:$0xf] }
 0x24c   : > { %6112 = vmatpush.bf16.msrb.mxu3 %v9651_v52  ;;  %v11079_v52 = vld [vmem:[%s11306_s27 + $0x14c4] sm:$0xf0] }
 0x24d   : > { %6074 = vmatpush.bf16.msrb.mxu0 %v9451_v19  ;;  %v12761_v56 = vpop.f32.mrf.mxu0  ;;  %v9803_v7 = vor.u32 %v11079_v52, %v9802_v48  ;;  %v9867_v19 = vor.u32 %v11095_v5, %v9866_v17  ;;  %v9770_v48 = vld [vmem:[%s11306_s27 + $0x1480] sm:$0xf]  ;;  %v9843_v17 = vor.u32 %v11089_v18, %v9842_v62 }
 0x24e   : > { %6087 = vmatpush.bf16.msrb.mxu1 %v9515_v36  ;;  %v12766_v57 = vpop.f32.mrf.mxu1  ;;  %v9931_v36 = vor.u32 %v11111_v55, %v9930_v53  ;;  %v9834_v5 = vld [vmem:[%s11306_s27 + $0x1500] sm:$0xf]  ;;  %v11087_v53 = vld [vmem:[%s11306_s27 + $0x1504] sm:$0xf0] }
 0x24f   : > { %6100 = vmatpush.bf16.msrb.mxu2 %v9579_v33  ;;  %v11077_v33 = vld [vmem:[%s11306_s27 + $0x14b4] sm:$0xf0]  ;;  %v385_v55 = vld [vmem:[%s11396_s7 + $0xa0] sm:$0xff] }
 0x250   : > { %6113 = vmatpush.bf16.msrb.mxu3 %v9643_v41  ;;  %6075 = vmatmul.bf16.vlgmr.msrb.gmra.mxu0 %v12735_v40  ;;  %v9731_v41 = vor.u32 %v11061_v38, %v9730_v30  ;;  %v11103_v30 = vld [vmem:[%s11306_s27 + $0x1584] sm:$0xf0]  ;;  %v10202_v18 = vld [vmem:[%s11306_s27 + $0x17e0] sm:$0xf] }
 0x251   : > { %6119 = vmatpush.bf16.msra.mxu0 %v9763_v22  ;;  %6088 = vmatmul.bf16.vlgmr.msrb.gmra.mxu1 %v12739_v45  ;;  %v9795_v22 = vor.u32 %v11077_v33, %v9794_v20  ;;  %v386_v38 = vld [vmem:[%s11396_s7 + $0xa8] sm:$0xff]  ;;  %v11133_v33 = vld [vmem:[%s11306_s27 + $0x1674] sm:$0xf0] }
 0x252   : > { %6132 = vmatpush.bf16.msra.mxu1 %v9827_v21  ;;  %6101 = vmatmul.bf16.vlgmr.msrb.gmra.mxu2 %v12731_v34  ;;  %v9722_v21 = vld [vmem:[%s11306_s27 + $0x1420] sm:$0xf]  ;;  %v4698_v39 = vunpack.c.h.b16 %v386_v38 }
 0x253   : > { %6145 = vmatpush.bf16.msra.mxu2 %v9891_v0  ;;  %6114 = vmatmul.bf16.vlgmr.msrb.gmra.mxu3 %v12737_v49  ;;  %v11059_v0 = vld [vmem:[%s11306_s27 + $0x1424] sm:$0xf0] }
 0x254   : > { %6158 = vmatpush.bf16.msra.mxu3 %v9955_v16  ;;  %v11075_v16 = vld [vmem:[%s11306_s27 + $0x14a4] sm:$0xf0] }
 0x255   : > { %6120 = vmatpush.bf16.msra.mxu0 %v9755_v43  ;;  %v12776_v13 = vpop.f32.mrf.mxu2  ;;  %v9723_v43 = vor.u32 %v11059_v0, %v9722_v21  ;;  %v9835_v21 = vor.u32 %v11087_v53, %v9834_v5  ;;  %v10210_v0 = vld [vmem:[%s11306_s27 + $0x17f0] sm:$0xf]  ;;  %v11145_v5 = vld [vmem:[%s11306_s27 + $0x16d4] sm:$0xf0] }
 0x256   : > { %6133 = vmatpush.bf16.msra.mxu1 %v9819_v47  ;;  %v12781_v27 = vpop.f32.mrf.mxu3  ;;  %v4534_v47 = vpop.f32.mrf.mxu0  ;;  %v10130_v53 = vld [vmem:[%s11306_s27 + $0x1750] sm:$0xf] }
 0x257   : > { %6146 = vmatpush.bf16.msra.mxu2 %v9883_v2  ;;  %v9787_v2 = vor.u32 %v11075_v16, %v9786_v12  ;;  %v4547_v31 = vpop.f32.mrf.mxu1  ;;  %v11181_v12 = vld [vmem:[%s11306_s27 + $0x17f4] sm:$0xf0]  ;;  %v4696_v16 = vunpack.c.h.b16 %v385_v55  ;;  %v10010_v47 = vld [vmem:[%s11306_s27 + $0x1660] sm:$0xf] }
 0x258   : > { %6159 = vmatpush.bf16.msra.mxu3 %v9947_v28  ;;  %v9778_v28 = vld [vmem:[%s11306_s27 + $0x1490] sm:$0xf]  ;;  %v10211_v51 = vor.u32 %v11181_v12, %v10210_v0  ;;  %v10138_v31 = vld [vmem:[%s11306_s27 + $0x1760] sm:$0xf] }
 0x259   : > { %6121 = vmatpush.bf16.msra.mxu0 %v9747_v50  ;;  %v9906_v50 = vld [vmem:[%s11306_s27 + $0x1590] sm:$0xf]  ;;  %v9779_v52 = vor.u32 %v11073_v10, %v9778_v28  ;;  %v11147_v28 = vld [vmem:[%s11306_s27 + $0x16e4] sm:$0xf0]  ;;  %v12821_v62 = vpack.c.b16 %v4696_v16, %v4696_v16 }
 0x25a   : > { %6134 = vmatpush.bf16.msra.mxu1 %v9811_v4  ;;  %v11105_v4 = vld [vmem:[%s11306_s27 + $0x1594] sm:$0xf0]  ;;  %v9986_v16 = vld [vmem:[%s11306_s27 + $0x1630] sm:$0xf] }
 0x25b   : > { %6147 = vmatpush.bf16.msra.mxu2 %v9875_v14  ;;  %v9706_v14 = vld [vmem:[%s11306_s27 + $0x1400] sm:$0xf] }
 0x25c   : > { %6160 = vmatpush.bf16.msra.mxu3 %v9939_v46  ;;  %v11071_v46 = vld [vmem:[%s11306_s27 + $0x1484] sm:$0xf0]  ;;  %v9707_v59 = vor.u32 %v11055_v35, %v9706_v14 }
 0x25d   : > { %6122 = vmatpush.bf16.msra.mxu0 %v9739_v37  ;;  %v4560_v37 = vpop.f32.mrf.mxu2 }
 0x25e   : > { %6135 = vmatpush.bf16.msra.mxu1 %v9803_v7  ;;  %v9907_v7 = vor.u32 %v11105_v4, %v9906_v50  ;;  %v4573_v20 = vpop.f32.mrf.mxu3  ;;  %v11179_v50 = vld [vmem:[%s11306_s27 + $0x17e4] sm:$0xf0]  ;;  %v12825_v4 = vpack.c.b16 %v4698_v39, %v4698_v39  ;;  %v10194_v37 = vld [vmem:[%s11306_s27 + $0x17d0] sm:$0xf] }
 0x25f   : > { %6148 = vmatpush.bf16.msra.mxu2 %v9867_v19  ;;  %v9898_v19 = vld [vmem:[%s11306_s27 + $0x1580] sm:$0xf] }
 0x260   : > { %6161 = vmatpush.bf16.msra.mxu3 %v9931_v36  ;;  %v10018_v36 = vld [vmem:[%s11306_s27 + $0x1670] sm:$0xf]  ;;  %v9899_v26 = vor.u32 %v11103_v30, %v9898_v19  ;;  %v9994_v20 = vld [vmem:[%s11306_s27 + $0x1640] sm:$0xf] }
 0x261   : > { %6123 = vmatpush.bf16.msra.mxu0 %v9731_v41  ;;  %v11165_v41 = vld [vmem:[%s11306_s27 + $0x1774] sm:$0xf0]  ;;  %v10019_v1 = vor.u32 %v11133_v33, %v10018_v36  ;;  %v11127_v36 = vld [vmem:[%s11306_s27 + $0x1644] sm:$0xf0]  ;;  %v10058_v33 = vld [vmem:[%s11306_s27 + $0x16c0] sm:$0xf] }
 0x262   : > { %6136 = vmatpush.bf16.msra.mxu1 %v9795_v22  ;;  %v4695_v22 = vunpack.c.l.b16 %v385_v55  ;;  %v11161_v55 = vld [vmem:[%s11306_s27 + $0x1754] sm:$0xf0] }
 0x263   : > { %6149 = vmatpush.bf16.msra.mxu2 %v9859_v61  ;;  %v9771_v61 = vor.u32 %v11071_v46, %v9770_v48  ;;  %v10002_v48 = vld [vmem:[%s11306_s27 + $0x1650] sm:$0xf]  ;;  %v11129_v46 = vld [vmem:[%s11306_s27 + $0x1654] sm:$0xf0] }
 0x264   : > { %6162 = vmatpush.bf16.msra.mxu3 %v9923_v8  ;;  %v4697_v8 = vunpack.c.l.b16 %v386_v38  ;;  %v12814_v3 = vpack.c.b16 %v4695_v22, %v4695_v22  ;;  %v10003_v19 = vor.u32 %v11129_v46, %v10002_v48  ;;  %v10131_v38 = vor.u32 %v11161_v55, %v10130_v53  ;;  %v10186_v22 = vld [vmem:[%s11306_s27 + $0x17c0] sm:$0xf]  ;;  %v11139_v48 = vld [vmem:[%s11306_s27 + $0x16a4] sm:$0xf0] }
 0x265   : > { %6124 = vmatpush.bf16.msra.mxu0 %v9723_v43  ;;  %v10147_v43 = vor.u32 %v11165_v41, %v10146_v29  ;;  %v11159_v29 = vld [vmem:[%s11306_s27 + $0x1744] sm:$0xf0]  ;;  %v10106_v46 = vld [vmem:[%s11306_s27 + $0x1720] sm:$0xf] }
 0x266   : > { %6137 = vmatpush.bf16.msra.mxu1 %v9787_v2  ;;  %v11131_v2 = vld [vmem:[%s11306_s27 + $0x1664] sm:$0xf0]  ;;  %v12819_v10 = vpack.c.b16 %v4697_v8, %v4697_v8  ;;  %v10123_v8 = vor.u32 %v11159_v29, %v10122_v23  ;;  %v11169_v23 = vld [vmem:[%s11306_s27 + $0x1794] sm:$0xf0]  ;;  %v9962_v29 = vld [vmem:[%s11306_s27 + $0x1600] sm:$0xf] }
 0x267   : > { %6150 = vmatpush.bf16.msra.mxu2 %v9851_v54  ;;  %v10074_v54 = vld [vmem:[%s11306_s27 + $0x16e0] sm:$0xf]  ;;  %v10011_v14 = vor.u32 %v11131_v2, %v10010_v47  ;;  %v11157_v47 = vld [vmem:[%s11306_s27 + $0x1734] sm:$0xf0]  ;;  %v10178_v2 = vld [vmem:[%s11306_s27 + $0x17b0] sm:$0xf] }
 0x268   : > { %6163 = vmatpush.bf16.msra.mxu3 %v9915_v25  ;;  %v11163_v25 = vld [vmem:[%s11306_s27 + $0x1764] sm:$0xf0] }
 0x269   : > { %6125 = vmatpush.bf16.msra.mxu0 %v9715_v15  ;;  %v10075_v15 = vor.u32 %v11147_v28, %v10074_v54  ;;  %v10139_v35 = vor.u32 %v11163_v25, %v10138_v31  ;;  %v11173_v54 = vld [vmem:[%s11306_s27 + $0x17b4] sm:$0xf0] }
 0x26a   : > { %6138 = vmatpush.bf16.msra.mxu1 %v9779_v52  ;;  %v10066_v52 = vld [vmem:[%s11306_s27 + $0x16d0] sm:$0xf] }
 0x26b   : > { %6151 = vmatpush.bf16.msra.mxu2 %v9843_v17  ;;  %v10203_v17 = vor.u32 %v11179_v50, %v10202_v18  ;;  %v10067_v30 = vor.u32 %v11145_v5, %v10066_v52  ;;  %v9978_v18 = vld [vmem:[%s11306_s27 + $0x1620] sm:$0xf]  ;;  %v11123_v50 = vld [vmem:[%s11306_s27 + $0x1624] sm:$0xf0] }
 0x26c   : > { %6164 = vmatpush.bf16.msra.mxu3 %v9907_v7  ;;  %v11177_v7 = vld [vmem:[%s11306_s27 + $0x17d4] sm:$0xf0]  ;;  %v10170_v52 = vld [vmem:[%s11306_s27 + $0x17a0] sm:$0xf]  ;;  %v9979_v55 = vor.u32 %v11123_v50, %v9978_v18 }
 0x26d   : > { %6126 = vmatpush.bf16.msra.mxu0 %v9707_v59  ;;  %v10195_v58 = vor.u32 %v11177_v7, %v10194_v37  ;;  %v11143_v59 = vld [vmem:[%s11306_s27 + $0x16c4] sm:$0xf0]  ;;  %v12845_v41 = vpop.f32.mrf.mxu0 }
 0x26e   : > { %6139 = vmatpush.bf16.msra.mxu1 %v9771_v61  ;;  %v11175_v61 = vld [vmem:[%s11306_s27 + $0x17c4] sm:$0xf0]  ;;  %v12849_v0 = vpop.f32.mrf.mxu1  ;;  %v10059_v12 = vor.u32 %v11143_v59, %v10058_v33  ;;  %v11137_v33 = vld [vmem:[%s11306_s27 + $0x1694] sm:$0xf0]  ;;  %v10162_v59 = vld [vmem:[%s11306_s27 + $0x1790] sm:$0xf] }
 0x26f   : > { %6152 = vmatpush.bf16.msra.mxu2 %v9835_v21  ;;  %v9995_v21 = vor.u32 %v11127_v36, %v9994_v20  ;;  %v10187_v39 = vor.u32 %v11175_v61, %v10186_v22  ;;  %v10034_v20 = vld [vmem:[%s11306_s27 + $0x1690] sm:$0xf] }
 0x270   : > { %6165 = vmatpush.bf16.msra.mxu3 %v9899_v26  ;;  %6127 = vmatmul.bf16.vlgmr.msra.gmra.mxu0 %v12814_v3  ;;  %v11125_v26 = vld [vmem:[%s11306_s27 + $0x1634] sm:$0xf0] }
 0x271   : > { %6171 = vmatpush.bf16.msrb.mxu0 %v10019_v1  ;;  %6140 = vmatmul.bf16.vlgmr.msra.gmra.mxu1 %v12821_v62  ;;  %v10050_v1 = vld [vmem:[%s11306_s27 + $0x16b0] sm:$0xf]  ;;  %v9987_v28 = vor.u32 %v11125_v26, %v9986_v16  ;;  %v10035_v16 = vor.u32 %v11137_v33, %v10034_v20  ;;  %v10938_v20 = vld [vmem:[%s11306_s27 + $0x1064] sm:$0xf] }
 0x272   : > { %6184 = vmatpush.bf16.msrb.mxu1 %v10083_v63  ;;  %6153 = vmatmul.bf16.vlgmr.msra.gmra.mxu2 %v12819_v10  ;;  %v11141_v63 = vld [vmem:[%s11306_s27 + $0x16b4] sm:$0xf0]  ;;  %v10954_v33 = vld [vmem:[%s11306_s27 + $0x10e4] sm:$0xf] }
 0x273   : > { %6197 = vmatpush.bf16.msrb.mxu2 %v10147_v43  ;;  %6166 = vmatmul.bf16.vlgmr.msra.gmra.mxu3 %v12825_v4  ;;  %v10114_v43 = vld [vmem:[%s11306_s27 + $0x1730] sm:$0xf]  ;;  %v10051_v31 = vor.u32 %v11141_v63, %v10050_v1  ;;  %v10090_v1 = vld [vmem:[%s11306_s27 + $0x1700] sm:$0xf] }
 0x274   : > { %6210 = vmatpush.bf16.msrb.mxu3 %v10211_v51  ;;  %v4533_v51 = vadd.f32 %v12761_v56, %v12697_v42  ;;  %v10115_v25 = vor.u32 %v11157_v47, %v10114_v43  ;;  %v11155_v42 = vld [vmem:[%s11306_s27 + $0x1724] sm:$0xf0]  ;;  %v387_v63 = vld [vmem:[%s11396_s7 + $0xb0] sm:$0xff]  ;;  %v10154_v43 = vld [vmem:[%s11306_s27 + $0x1780] sm:$0xf] }
 0x275   : > { %6172 = vmatpush.bf16.msrb.mxu0 %v10011_v14  ;;  %v10042_v14 = vld [vmem:[%s11306_s27 + $0x16a0] sm:$0xf]  ;;  %v4586_v5 = vpop.f32.mrf.mxu0  ;;  %v11167_v47 = vld [vmem:[%s11306_s27 + $0x1784] sm:$0xf0] }
 0x276   : > { %6185 = vmatpush.bf16.msrb.mxu1 %v10075_v15  ;;  %v10179_v15 = vor.u32 %v11173_v54, %v10178_v2  ;;  %v12869_v56 = vpop.f32.mrf.mxu3  ;;  %v4546_v53 = vadd.f32 %v12766_v57, %v4533_v51  ;;  %v4599_v37 = vpop.f32.mrf.mxu1  ;;  %v10043_v7 = vor.u32 %v11139_v48, %v10042_v14  ;;  %v10098_v57 = vld [vmem:[%s11306_s27 + $0x1710] sm:$0xf]  ;;  %v388_v2 = vld [vmem:[%s11396_s7 + $0xb8] sm:$0xff]  ;;  %v10940_v51 = vld [vmem:[%s11306_s27 + $0x1074] sm:$0xf] }
 0x277   : > { %6198 = vmatpush.bf16.msrb.mxu2 %v10139_v35  ;;  %v12864_v35 = vpop.f32.mrf.mxu2  ;;  %v9316_v14 = vld [vmem:[%s11306_s27 + $0x10f8] sm:$0xf0] }
 0x278   : > { %6211 = vmatpush.bf16.msrb.mxu3 %v10203_v17  ;;  %v11171_v17 = vld [vmem:[%s11306_s27 + $0x17a4] sm:$0xf0]  ;;  %v4559_v22 = vadd.f32 %v12776_v13, %v4546_v53  ;;  %v10163_v13 = vor.u32 %v11169_v23, %v10162_v59  ;;  %v9380_v48 = vld [vmem:[%s11306_s27 + $0x1178] sm:$0xf0]  ;;  %v4701_v53 = vunpack.c.l.b16 %v388_v2  ;;  %v9308_v59 = vld [vmem:[%s11306_s27 + $0x10e8] sm:$0xf0] }
 0x279   : > { %6173 = vmatpush.bf16.msrb.mxu0 %v10003_v19  ;;  %v10107_v19 = vor.u32 %v11155_v42, %v10106_v46  ;;  %v10171_v36 = vor.u32 %v11171_v17, %v10170_v52  ;;  %v4699_v46 = vunpack.c.l.b16 %v387_v63  ;;  %v10988_v17 = vld [vmem:[%s11306_s27 + $0x11f4] sm:$0xf]  ;;  %v9444_v5 = vld [vmem:[%s11306_s27 + $0x11f8] sm:$0xf0]  ;;  %v10970_v23 = vld [vmem:[%s11306_s27 + $0x1164] sm:$0xf] }
 0x27a   : > { %6186 = vmatpush.bf16.msrb.mxu1 %v10067_v30  ;;  %v9970_v30 = vld [vmem:[%s11306_s27 + $0x1610] sm:$0xf]  ;;  %v4572_v18 = vadd.f32 %v12781_v27, %v4559_v22  ;;  %v10155_v27 = vor.u32 %v11167_v47, %v10154_v43  ;;  %v9300_v47 = vld [vmem:[%s11306_s27 + $0x10d8] sm:$0xf0] }
 0x27b   : > { %6199 = vmatpush.bf16.msrb.mxu2 %v10131_v38  ;;  %v11121_v38 = vld [vmem:[%s11306_s27 + $0x1614] sm:$0xf0] }
 0x27c   : > { %6212 = vmatpush.bf16.msrb.mxu3 %v10195_v58  ;;  %v11153_v58 = vld [vmem:[%s11306_s27 + $0x1714] sm:$0xf0]  ;;  %v9971_v61 = vor.u32 %v11121_v38, %v9970_v30 }
 0x27d   : > { %6174 = vmatpush.bf16.msrb.mxu0 %v9995_v21  ;;  %v11119_v21 = vld [vmem:[%s11306_s27 + $0x1604] sm:$0xf0]  ;;  %v10099_v26 = vor.u32 %v11153_v58, %v10098_v57  ;;  %v9447_v57 = vor.u32 %v10988_v17, %v9444_v5  ;;  %v12906_v58 = vpack.c.b16 %v4699_v46, %v4699_v46  ;;  %v10966_v46 = vld [vmem:[%s11306_s27 + $0x1144] sm:$0xf] }
 0x27e   : > { %6187 = vmatpush.bf16.msrb.mxu1 %v10059_v12  ;;  %v10026_v12 = vld [vmem:[%s11306_s27 + $0x1680] sm:$0xf]  ;;  %v9963_v50 = vor.u32 %v11119_v21, %v9962_v29  ;;  %v9372_v29 = vld [vmem:[%s11306_s27 + $0x1168] sm:$0xf0]  ;;  %v10982_v5 = vld [vmem:[%s11306_s27 + $0x11c4] sm:$0xf] }
 0x27f   : > { %6200 = vmatpush.bf16.msrb.mxu2 %v10123_v8  ;;  %v11135_v8 = vld [vmem:[%s11306_s27 + $0x1684] sm:$0xf0]  ;;  %v4612_v54 = vpop.f32.mrf.mxu2  ;;  %v9436_v21 = vld [vmem:[%s11306_s27 + $0x11e8] sm:$0xf0] }
 0x280   : > { %6213 = vmatpush.bf16.msrb.mxu3 %v10187_v39  ;;  %v11151_v39 = vld [vmem:[%s11306_s27 + $0x1704] sm:$0xf0]  ;;  %v10027_v42 = vor.u32 %v11135_v8, %v10026_v12  ;;  %v9364_v54 = vld [vmem:[%s11306_s27 + $0x1158] sm:$0xf0] }
 0x281   : > { %6175 = vmatpush.bf16.msrb.mxu0 %v9987_v28  ;;  %v9252_v28 = vld [vmem:[%s11306_s27 + $0x1078] sm:$0xf0]  ;;  %v10091_v52 = vor.u32 %v11151_v39, %v10090_v1  ;;  %v9375_v1 = vor.u32 %v10970_v23, %v9372_v29  ;;  %v10936_v39 = vld [vmem:[%s11306_s27 + $0x1054] sm:$0xf] }
 0x282   : > { %6188 = vmatpush.bf16.msrb.mxu1 %v10051_v31  ;;  %v10956_v31 = vld [vmem:[%s11306_s27 + $0x10f4] sm:$0xf]  ;;  %v9255_v37 = vor.u32 %v10940_v51, %v9252_v28  ;;  %v9428_v28 = vld [vmem:[%s11306_s27 + $0x11d8] sm:$0xf0] }
 0x283   : > { %6201 = vmatpush.bf16.msrb.mxu2 %v10115_v25  ;;  %v4625_v25 = vpop.f32.mrf.mxu3  ;;  %v9319_v30 = vor.u32 %v10956_v31, %v9316_v14  ;;  %v10984_v51 = vld [vmem:[%s11306_s27 + $0x11d4] sm:$0xf]  ;;  %v10950_v14 = vld [vmem:[%s11306_s27 + $0x10c4] sm:$0xf]  ;;  %v9412_v23 = vld [vmem:[%s11306_s27 + $0x11b8] sm:$0xf0] }
 0x284   : > { %6214 = vmatpush.bf16.msrb.mxu3 %v10179_v15  ;;  %v10972_v15 = vld [vmem:[%s11306_s27 + $0x1174] sm:$0xf] }
 0x285   : > { %6176 = vmatpush.bf16.msrb.mxu0 %v9979_v55  ;;  %v4700_v55 = vunpack.c.h.b16 %v387_v63  ;;  %v9383_v38 = vor.u32 %v10972_v15, %v9380_v48  ;;  %v9236_v63 = vld [vmem:[%s11306_s27 + $0x1058] sm:$0xf0]  ;;  %v9431_v15 = vor.u32 %v10984_v51, %v9428_v28  ;;  %v9292_v48 = vld [vmem:[%s11306_s27 + $0x10c8] sm:$0xf0] }
 0x286   : > { %6189 = vmatpush.bf16.msrb.mxu1 %v10043_v7  ;;  %v4702_v7 = vunpack.c.h.b16 %v388_v2  ;;  %v10968_v2 = vld [vmem:[%s11306_s27 + $0x1154] sm:$0xf]  ;;  %v9239_v31 = vor.u32 %v10936_v39, %v9236_v63  ;;  %v9404_v51 = vld [vmem:[%s11306_s27 + $0x11a8] sm:$0xf0] }
 0x287   : > { %6202 = vmatpush.bf16.msrb.mxu2 %v10107_v19  ;;  %v4585_v19 = vadd.f32 %v12845_v41, %v4572_v18  ;;  %v12911_v41 = vpack.c.b16 %v4701_v53, %v4701_v53  ;;  %v12913_v22 = vpack.c.b16 %v4700_v55, %v4700_v55  ;;  %v9367_v18 = vor.u32 %v10968_v2, %v9364_v54  ;;  %v9420_v53 = vld [vmem:[%s11306_s27 + $0x11c8] sm:$0xf0] }
 0x288   : > { %6215 = vmatpush.bf16.msrb.mxu3 %v10171_v36  ;;  %v9244_v36 = vld [vmem:[%s11306_s27 + $0x1068] sm:$0xf0]  ;;  %v12917_v12 = vpack.c.b16 %v4702_v7, %v4702_v7  ;;  %v9295_v7 = vor.u32 %v10950_v14, %v9292_v48  ;;  %v10928_v14 = vld [vmem:[%s11306_s27 + $0x1014] sm:$0xf] }
 0x289   : > { %6177 = vmatpush.bf16.msrb.mxu0 %v9971_v61  ;;  %v10986_v61 = vld [vmem:[%s11306_s27 + $0x11e4] sm:$0xf]  ;;  %v9247_v8 = vor.u32 %v10938_v20, %v9244_v36  ;;  %v9423_v20 = vor.u32 %v10982_v5, %v9420_v53  ;;  %v9284_v36 = vld [vmem:[%s11306_s27 + $0x10b8] sm:$0xf0]  ;;  %v10944_v48 = vld [vmem:[%s11306_s27 + $0x1094] sm:$0xf] }
 0x28a   : > { %6190 = vmatpush.bf16.msrb.mxu1 %v10035_v16  ;;  %v4598_v16 = vadd.f32 %v12849_v0, %v4585_v19  ;;  %v9439_v43 = vor.u32 %v10986_v61, %v9436_v21  ;;  %v10976_v5 = vld [vmem:[%s11306_s27 + $0x1194] sm:$0xf]  ;;  %v9396_v53 = vld [vmem:[%s11306_s27 + $0x1198] sm:$0xf0] }
 0x28b   : > { %6203 = vmatpush.bf16.msrb.mxu2 %v10099_v26  ;;  %v9311_v26 = vor.u32 %v10954_v33, %v9308_v59  ;;  %v10964_v33 = vld [vmem:[%s11306_s27 + $0x1134] sm:$0xf] }
 0x28c   : > { %6216 = vmatpush.bf16.msrb.mxu3 %v10163_v13  ;;  %v10952_v13 = vld [vmem:[%s11306_s27 + $0x10d4] sm:$0xf]  ;;  %v4611_v0 = vadd.f32 %v12864_v35, %v4598_v16  ;;  %v10934_v35 = vld [vmem:[%s11306_s27 + $0x1044] sm:$0xf] }
 0x28d   : > { %6178 = vmatpush.bf16.msrb.mxu0 %v9963_v50  ;;  %v9303_v25 = vor.u32 %v10952_v13, %v9300_v47  ;;  %v9228_v50 = vld [vmem:[%s11306_s27 + $0x1048] sm:$0xf0]  ;;  %v4636_v17 = vpop.f32.mrf.mxu0  ;;  %v10980_v59 = vld [vmem:[%s11306_s27 + $0x11b4] sm:$0xf]  ;;  %v10930_v16 = vld [vmem:[%s11306_s27 + $0x1024] sm:$0xf] }
 0x28e   : > { %6191 = vmatpush.bf16.msrb.mxu1 %v10027_v42  ;;  %v9356_v42 = vld [vmem:[%s11306_s27 + $0x1148] sm:$0xf0]  ;;  %v9231_v55 = vor.u32 %v10934_v35, %v9228_v50  ;;  %v9415_v39 = vor.u32 %v10980_v59, %v9412_v23  ;;  %v10974_v23 = vld [vmem:[%s11306_s27 + $0x1184] sm:$0xf] }
 0x28f   : > { %6204 = vmatpush.bf16.msrb.mxu2 %v10091_v52  ;;  %v4624_v52 = vadd.f32 %v12869_v56, %v4611_v0  ;;  %v9359_v19 = vor.u32 %v10966_v46, %v9356_v42  ;;  %v10948_v56 = vld [vmem:[%s11306_s27 + $0x10b4] sm:$0xf]  ;;  %v9276_v13 = vld [vmem:[%s11306_s27 + $0x10a8] sm:$0xf0]  ;;  %v10978_v0 = vld [vmem:[%s11306_s27 + $0x11a4] sm:$0xf] }
 0x290   : > { %6217 = vmatpush.bf16.msrb.mxu3 %v10155_v27  ;;  %6179 = vmatmul.bf16.vlgmr.msrb.gmra.mxu0 %v12906_v58  ;;  %v4649_v27 = vpop.f32.mrf.mxu1  ;;  %v9287_v21 = vor.u32 %v10948_v56, %v9284_v36  ;;  %v9340_v47 = vld [vmem:[%s11306_s27 + $0x1128] sm:$0xf0]  ;;  %v9407_v46 = vor.u32 %v10978_v0, %v9404_v51  ;;  %v9268_v42 = vld [vmem:[%s11306_s27 + $0x1098] sm:$0xf0] }
 0x291   : > { %6223 = vmatpush.bf16.msra.mxu0 %v9255_v37  ;;  %6192 = vmatmul.bf16.vlgmr.msrb.gmra.mxu1 %v12913_v22  ;;  %v4637_v37 = vadd.f32 %v4636_v17, %v4624_v52  ;;  %v10960_v52 = vld [vmem:[%s11306_s27 + $0x1114] sm:$0xf]  ;;  %v9332_v17 = vld [vmem:[%s11306_s27 + $0x1118] sm:$0xf0]  ;;  %v9260_v36 = vld [vmem:[%s11306_s27 + $0x1088] sm:$0xf0] }
 0x292   : > { %6236 = vmatpush.bf16.msra.mxu1 %v9319_v30  ;;  %6205 = vmatmul.bf16.vlgmr.msrb.gmra.mxu2 %v12911_v41  ;;  %v10932_v30 = vld [vmem:[%s11306_s27 + $0x1034] sm:$0xf]  ;;  %v9324_v59 = vld [vmem:[%s11306_s27 + $0x1108] sm:$0xf0] }
 0x293   : > { %6249 = vmatpush.bf16.msra.mxu2 %v9383_v38  ;;  %6218 = vmatmul.bf16.vlgmr.msrb.gmra.mxu3 %v12917_v12  ;;  %v9220_v38 = vld [vmem:[%s11306_s27 + $0x1038] sm:$0xf0]  ;;  %v4650_v61 = vadd.f32 %v4649_v27, %v4637_v37 }
 0x294   : > { %6262 = vmatpush.bf16.msra.mxu3 %v9447_v57  ;;  %v9348_v57 = vld [vmem:[%s11306_s27 + $0x1138] sm:$0xf0]  ;;  %v9223_v29 = vor.u32 %v10932_v30, %v9220_v38  ;;  %v9271_v30 = vor.u32 %v10944_v48, %v9268_v42  ;;  %v9335_v38 = vor.u32 %v10960_v52, %v9332_v17  ;;  %v11034_v48 = vld [vmem:[%s11306_s27 + $0x1364] sm:$0xf]  ;;  %v9692_v52 = vld [vmem:[%s11306_s27 + $0x13e8] sm:$0xf0] }
 0x295   : > { %6224 = vmatpush.bf16.msra.mxu0 %v9247_v8  ;;  %v9351_v8 = vor.u32 %v10964_v33, %v9348_v57  ;;  %v4662_v63 = vpop.f32.mrf.mxu2  ;;  %v4638_v28 = vpop.f32.mrf.mxu0  ;;  %v10958_v33 = vld [vmem:[%s11306_s27 + $0x1104] sm:$0xf]  ;;  %v9399_v57 = vor.u32 %v10976_v5, %v9396_v53  ;;  %v11000_v5 = vld [vmem:[%s11306_s27 + $0x1254] sm:$0xf] }
 0x296   : > { %6237 = vmatpush.bf16.msra.mxu1 %v9311_v26  ;;  %v9212_v26 = vld [vmem:[%s11306_s27 + $0x1028] sm:$0xf0]  ;;  %v4663_v2 = vadd.f32 %v4662_v63, %v4650_v61  ;;  %v4675_v54 = vpop.f32.mrf.mxu3  ;;  %v11036_v63 = vld [vmem:[%s11306_s27 + $0x1374] sm:$0xf]  ;;  %v11050_v42 = vld [vmem:[%s11306_s27 + $0x13e4] sm:$0xf] }
 0x297   : > { %6250 = vmatpush.bf16.msra.mxu2 %v9375_v1  ;;  %v10946_v1 = vld [vmem:[%s11306_s27 + $0x10a4] sm:$0xf] }
 0x298   : > { %6263 = vmatpush.bf16.msra.mxu3 %v9439_v43  ;;  %v10962_v43 = vld [vmem:[%s11306_s27 + $0x1124] sm:$0xf]  ;;  %v9279_v35 = vor.u32 %v10946_v1, %v9276_v13  ;;  %v9636_v13 = vld [vmem:[%s11306_s27 + $0x1378] sm:$0xf0] }
 0x299   : > { %6225 = vmatpush.bf16.msra.mxu0 %v9239_v31  ;;  %v9215_v31 = vor.u32 %v10930_v16, %v9212_v26  ;;  %v9343_v50 = vor.u32 %v10962_v43, %v9340_v47  ;;  %v11020_v16 = vld [vmem:[%s11306_s27 + $0x12f4] sm:$0xf]  ;;  %v9327_v47 = vor.u32 %v10958_v33, %v9324_v59 }
 0x29a   : > { %6238 = vmatpush.bf16.msra.mxu1 %v9303_v25  ;;  %v4651_v25 = vpop.f32.mrf.mxu1 }
 0x29b   : > { %6251 = vmatpush.bf16.msra.mxu2 %v9367_v18  ;;  %v12958_v18 = vadd.f32 %v4675_v54, %v4663_v2  ;;  %v11052_v2 = vld [vmem:[%s11306_s27 + $0x13f4] sm:$0xf]  ;;  %v9700_v54 = vld [vmem:[%s11306_s27 + $0x13f8] sm:$0xf0]  ;;  %v11002_v25 = vld [vmem:[%s11306_s27 + $0x1264] sm:$0xf] }
 0x29c   : > { %6264 = vmatpush.bf16.msra.mxu3 %v9431_v15  ;;  %v9204_v15 = vld [vmem:[%s11306_s27 + $0x1018] sm:$0xf0] }
 0x29d   : > { %6226 = vmatpush.bf16.msra.mxu0 %v9231_v55  ;;  %v6433_v55 = vmul.f32 %v12593_v11, %v12593_v11  ;;  %v6434_v27 = vmul.f32 %v12958_v18, %v12958_v18  ;;  %v9207_v37 = vor.u32 %v10928_v14, %v9204_v15  ;;  %v4664_v61 = vpop.f32.mrf.mxu2  ;;  %v9703_v14 = vor.u32 %v11052_v2, %v9700_v54  ;;  %v9564_v15 = vld [vmem:[%s11306_s27 + $0x12e8] sm:$0xf0] }
 0x29e   : > { %6239 = vmatpush.bf16.msra.mxu1 %v9295_v7  ;;  %v10926_v7 = vld [vmem:[%s11306_s27 + $0x1004] sm:$0xf]  ;;  %v4677_v26 = vpop.f32.mrf.mxu3  ;;  %v9548_v61 = vld [vmem:[%s11306_s27 + $0x12c8] sm:$0xf0] }
 0x29f   : > { %6252 = vmatpush.bf16.msra.mxu2 %v9359_v19  ;;  %v9196_v19 = vld [vmem:[%s11306_s27 + $0x1008] sm:$0xf0]  ;;  %v6440_v56 = vadd.f32 %v6434_v27, %v6433_v55  ;;  %v9492_v27 = vld [vmem:[%s11306_s27 + $0x1258] sm:$0xf0] }
 0x2a0   : > { %6265 = vmatpush.bf16.msra.mxu3 %v9423_v20  ;;  %v10942_v20 = vld [vmem:[%s11306_s27 + $0x1084] sm:$0xf]  ;;  %v9199_v1 = vor.u32 %v10926_v7, %v9196_v19  ;;  %v9556_v7 = vld [vmem:[%s11306_s27 + $0x12d8] sm:$0xf0]  ;;  %v9695_v19 = vor.u32 %v11050_v42, %v9692_v52  ;;  %v9495_v33 = vor.u32 %v11000_v5, %v9492_v27  ;;  %v9676_v26 = vld [vmem:[%s11306_s27 + $0x13c8] sm:$0xf0] }
 0x2a1   : > { %6227 = vmatpush.bf16.msra.mxu0 %v9223_v29  ;;  %v9388_v29 = vld [vmem:[%s11306_s27 + $0x1188] sm:$0xf0]  ;;  %6441 = vadd.xlane.f32.xlu0 %v6440_v56  ;;  %v9263_v43 = vor.u32 %v10942_v20, %v9260_v36  ;;  %v13004_v56 = vld [vmem:[%s11730_s11 + $0x4] sm:$0x3]  ;;  %v11048_v20 = vld [vmem:[%s11306_s27 + $0x13d4] sm:$0xf] }
 0x2a2   : > { %6240 = vmatpush.bf16.msra.mxu1 %v9287_v21  ;;  %v11004_v21 = vld [vmem:[%s11306_s27 + $0x1274] sm:$0xf]  ;;  %v9391_v0 = vor.u32 %v10974_v23, %v9388_v29  ;;  %v9684_v36 = vld [vmem:[%s11306_s27 + $0x13d8] sm:$0xf0]  ;;  %v9484_v23 = vld [vmem:[%s11306_s27 + $0x1248] sm:$0xf0] }
 0x2a3   : > { %6253 = vmatpush.bf16.msra.mxu2 %v9351_v8  ;;  %v9508_v8 = vld [vmem:[%s11306_s27 + $0x1278] sm:$0xf0]  ;;  %v11014_v29 = vld [vmem:[%s11306_s27 + $0x12c4] sm:$0xf]  ;;  %v9468_v42 = vld [vmem:[%s11306_s27 + $0x1228] sm:$0xf0] }
 0x2a4   : > { %6266 = vmatpush.bf16.msra.mxu3 %v9415_v39  ;;  %v9572_v39 = vld [vmem:[%s11306_s27 + $0x12f8] sm:$0xf0]  ;;  %v9511_v51 = vor.u32 %v11004_v21, %v9508_v8  ;;  %v11030_v21 = vld [vmem:[%s11306_s27 + $0x1344] sm:$0xf]  ;;  %v9612_v8 = vld [vmem:[%s11306_s27 + $0x1348] sm:$0xf0] }
 0x2a5   : > { %6228 = vmatpush.bf16.msra.mxu0 %v9215_v31  ;;  %v9575_v28 = vor.u32 %v11020_v16, %v9572_v39  ;;  %v9639_v31 = vor.u32 %v11036_v63, %v9636_v13  ;;  %v11046_v16 = vld [vmem:[%s11306_s27 + $0x13c4] sm:$0xf]  ;;  %v9551_v39 = vor.u32 %v11014_v29, %v9548_v61  ;;  %v9615_v63 = vor.u32 %v11030_v21, %v9612_v8  ;;  %v10996_v13 = vld [vmem:[%s11306_s27 + $0x1234] sm:$0xf]  ;;  %v9596_v27 = vld [vmem:[%s11306_s27 + $0x1328] sm:$0xf0] }
 0x2a6   : > { %6241 = vmatpush.bf16.msra.mxu1 %v9279_v35  ;;  %v9500_v35 = vld [vmem:[%s11306_s27 + $0x1268] sm:$0xf0]  ;;  %v11010_v52 = vld [vmem:[%s11306_s27 + $0x12a4] sm:$0xf]  ;;  %v11024_v61 = vld [vmem:[%s11306_s27 + $0x1314] sm:$0xf] }
 0x2a7   : > { %6254 = vmatpush.bf16.msra.mxu2 %v9343_v50  ;;  %v11018_v50 = vld [vmem:[%s11306_s27 + $0x12e4] sm:$0xf]  ;;  %v9503_v17 = vor.u32 %v11002_v25, %v9500_v35  ;;  %v11044_v25 = vld [vmem:[%s11306_s27 + $0x13b4] sm:$0xf]  ;;  %v9668_v35 = vld [vmem:[%s11306_s27 + $0x13b8] sm:$0xf0] }
 0x2a8   : > { %6267 = vmatpush.bf16.msra.mxu3 %v9407_v46  ;;  %v9628_v46 = vld [vmem:[%s11306_s27 + $0x1368] sm:$0xf0]  ;;  %v9567_v53 = vor.u32 %v11018_v50, %v9564_v15  ;;  %v9671_v5 = vor.u32 %v11044_v25, %v9668_v35  ;;  %v9588_v21 = vld [vmem:[%s11306_s27 + $0x1318] sm:$0xf0]  ;;  %v11040_v8 = vld [vmem:[%s11306_s27 + $0x1394] sm:$0xf] }
 0x2a9   : > { %6229 = vmatpush.bf16.msra.mxu0 %v9207_v37  ;;  %v9631_v55 = vor.u32 %v11034_v48, %v9628_v46  ;;  %v11016_v37 = vld [vmem:[%s11306_s27 + $0x12d4] sm:$0xf]  ;;  %v10994_v46 = vld [vmem:[%s11306_s27 + $0x1224] sm:$0xf]  ;;  %v9764_v35 = vld [vmem:[%s11306_s27 + $0x1478] sm:$0xf0] }
 0x2aa   : > { %6242 = vmatpush.bf16.msra.mxu1 %v9271_v30  ;;  %v11032_v30 = vld [vmem:[%s11306_s27 + $0x1354] sm:$0xf] }
 0x2ab   : > { %6255 = vmatpush.bf16.msra.mxu2 %v9335_v38  ;;  %v9620_v38 = vld [vmem:[%s11306_s27 + $0x1358] sm:$0xf0]  ;;  %v11068_v25 = vld [vmem:[%s11306_s27 + $0x1474] sm:$0xf] }
 0x2ac   : > { %6268 = vmatpush.bf16.msra.mxu3 %v9399_v57  ;;  %v10998_v57 = vld [vmem:[%s11306_s27 + $0x1244] sm:$0xf]  ;;  %v9623_v59 = vor.u32 %v11032_v30, %v9620_v38  ;;  %v9660_v30 = vld [vmem:[%s11306_s27 + $0x13a8] sm:$0xf0]  ;;  %v9471_v38 = vor.u32 %v10994_v46, %v9468_v42  ;;  %v9892_v46 = vld [vmem:[%s11306_s27 + $0x1578] sm:$0xf0] }
 0x2ad   : > { %6230 = vmatpush.bf16.msra.mxu0 %v9199_v1  ;;  %v6024_v1 = vpop.f32.mrf.mxu0 }
 0x2ae   : > { %6243 = vmatpush.bf16.msra.mxu1 %v9263_v43  ;;  %v9476_v43 = vld [vmem:[%s11306_s27 + $0x1238] sm:$0xf0]  ;;  %v6037_v54 = vpop.f32.mrf.mxu1 }
 0x2af   : > { %6256 = vmatpush.bf16.msra.mxu2 %v9327_v47  ;;  %v11012_v47 = vld [vmem:[%s11306_s27 + $0x12b4] sm:$0xf] }
 0x2b0   : > { %6269 = vmatpush.bf16.msra.mxu3 %v9391_v0  ;;  %6231 = vmatmul.bf16.vlgmr.msra.gmra.mxu0 %v12637_v32  ;;  %v1167_v32 = vperm.slane %v13004_v56, 0  ;;  %v9679_v0 = vor.u32 %v11046_v16, %v9676_v26  ;;  %v9652_v16 = vld [vmem:[%s11306_s27 + $0x1398] sm:$0xf0] }
 0x2b1   : > { %6275 = vmatpush.bf16.msrb.mxu0 %v9511_v51  ;;  %6244 = vmatmul.bf16.vlgmr.msra.gmra.mxu1 %v12644_v24  ;;  %v9487_v24 = vor.u32 %v10998_v57, %v9484_v23  ;;  %v9540_v51 = vld [vmem:[%s11306_s27 + $0x12b8] sm:$0xf0]  ;;  %v11008_v23 = vld [vmem:[%s11306_s27 + $0x1294] sm:$0xf] }
 0x2b2   : > { %6288 = vmatpush.bf16.msrb.mxu1 %v9575_v28  ;;  %6257 = vmatmul.bf16.vlgmr.msra.gmra.mxu2 %v12633_v44  ;;  %v9559_v44 = vor.u32 %v11016_v37, %v9556_v7  ;;  %v6025_v2 = vadd.f32 %v6024_v1, %v1167_v32  ;;  %v11028_v28 = vld [vmem:[%s11306_s27 + $0x1334] sm:$0xf]  ;;  %v9543_v15 = vor.u32 %v11012_v47, %v9540_v51  ;;  %v9452_v1 = vld [vmem:[%s11306_s27 + $0x1208] sm:$0xf0]  ;;  %v11022_v47 = vld [vmem:[%s11306_s27 + $0x1304] sm:$0xf] }
 0x2b3   : > { %6301 = vmatpush.bf16.msrb.mxu2 %v9639_v31  ;;  %6270 = vmatmul.bf16.vlgmr.msra.gmra.mxu3 %v12639_v6  ;;  %v9687_v6 = vor.u32 %v11048_v20, %v9684_v36  ;;  %v9604_v31 = vld [vmem:[%s11306_s27 + $0x1338] sm:$0xf0]  ;;  %v11038_v51 = vld [vmem:[%s11306_s27 + $0x1384] sm:$0xf] }
 0x2b4   : > { %6314 = vmatpush.bf16.msrb.mxu3 %v9703_v14  ;;  %v6038_v50 = vadd.f32 %v6037_v54, %v6025_v2  ;;  %v9479_v14 = vor.u32 %v10996_v13, %v9476_v43  ;;  %v9607_v48 = vor.u32 %v11028_v28, %v9604_v31  ;;  %v11006_v13 = vld [vmem:[%s11306_s27 + $0x1284] sm:$0xf]  ;;  %v9516_v43 = vld [vmem:[%s11306_s27 + $0x1288] sm:$0xf0]  ;;  %v9655_v54 = vor.u32 %v11040_v8, %v9652_v16  ;;  %v9812_v16 = vld [vmem:[%s11306_s27 + $0x14d8] sm:$0xf0] }
 0x2b5   : > { %6276 = vmatpush.bf16.msrb.mxu0 %v9503_v17  ;;  %v6050_v17 = vpop.f32.mrf.mxu2  ;;  %v6026_v36 = vpop.f32.mrf.mxu0  ;;  %v9644_v28 = vld [vmem:[%s11306_s27 + $0x1388] sm:$0xf0]  ;;  %v9519_v42 = vor.u32 %v11006_v13, %v9516_v43  ;;  %v11062_v43 = vld [vmem:[%s11306_s27 + $0x1444] sm:$0xf] }
 0x2b6   : > { %6289 = vmatpush.bf16.msrb.mxu1 %v9567_v53  ;;  %v9532_v53 = vld [vmem:[%s11306_s27 + $0x12a8] sm:$0xf0]  ;;  %v6051_v37 = vadd.f32 %v6050_v17, %v6038_v50  ;;  %v6063_v7 = vpop.f32.mrf.mxu3  ;;  %v6039_v29 = vpop.f32.mrf.mxu1  ;;  %v11084_v50 = vld [vmem:[%s11306_s27 + $0x14f4] sm:$0xf] }
 0x2b7   : > { %6302 = vmatpush.bf16.msrb.mxu2 %v9631_v55  ;;  %v11026_v55 = vld [vmem:[%s11306_s27 + $0x1324] sm:$0xf]  ;;  %v11116_v17 = vld [vmem:[%s11306_s27 + $0x15f4] sm:$0xf]  ;;  %v9820_v36 = vld [vmem:[%s11306_s27 + $0x14e8] sm:$0xf0] }
 0x2b8   : > { %6315 = vmatpush.bf16.msrb.mxu3 %v9695_v19  ;;  %v11042_v19 = vld [vmem:[%s11306_s27 + $0x13a4] sm:$0xf]  ;;  %v13036_v20 = vadd.f32 %v6063_v7, %v6051_v37  ;;  %v9599_v57 = vor.u32 %v11026_v55, %v9596_v27  ;;  %v9767_v55 = vor.u32 %v11068_v25, %v9764_v35 }
 0x2b9   : > { %6277 = vmatpush.bf16.msrb.mxu0 %v9495_v33  ;;  %v9535_v33 = vor.u32 %v11010_v52, %v9532_v53  ;;  %v9663_v32 = vor.u32 %v11042_v19, %v9660_v30  ;;  %v9647_v53 = vor.u32 %v11038_v51, %v9644_v28  ;;  %v11066_v7 = vld [vmem:[%s11306_s27 + $0x1464] sm:$0xf]  ;;  %v9756_v19 = vld [vmem:[%s11306_s27 + $0x1468] sm:$0xf0] }
 0x2ba   : > { %6290 = vmatpush.bf16.msrb.mxu1 %v9559_v44  ;;  %v10992_v44 = vld [vmem:[%s11306_s27 + $0x1214] sm:$0xf]  ;;  %v11082_v30 = vld [vmem:[%s11306_s27 + $0x14e4] sm:$0xf]  ;;  %v9932_v28 = vld [vmem:[%s11306_s27 + $0x15c8] sm:$0xf0] }
 0x2bb   : > { %6303 = vmatpush.bf16.msrb.mxu2 %v9623_v59  ;;  %v9460_v59 = vld [vmem:[%s11306_s27 + $0x1218] sm:$0xf0]  ;;  %v9823_v29 = vor.u32 %v11082_v30, %v9820_v36  ;;  %v11110_v51 = vld [vmem:[%s11306_s27 + $0x15c4] sm:$0xf]  ;;  %v9724_v30 = vld [vmem:[%s11306_s27 + $0x1428] sm:$0xf0] }
 0x2bc   : > { %6316 = vmatpush.bf16.msrb.mxu3 %v9687_v6  ;;  %v9524_v6 = vld [vmem:[%s11306_s27 + $0x1298] sm:$0xf0]  ;;  %v9463_v26 = vor.u32 %v10992_v44, %v9460_v59  ;;  %v11114_v44 = vld [vmem:[%s11306_s27 + $0x15e4] sm:$0xf]  ;;  %v9948_v59 = vld [vmem:[%s11306_s27 + $0x15e8] sm:$0xf0] }
 0x2bd   : > { %6278 = vmatpush.bf16.msrb.mxu0 %v9487_v24  ;;  %v10990_v24 = vld [vmem:[%s11306_s27 + $0x1204] sm:$0xf]  ;;  %v6052_v2 = vpop.f32.mrf.mxu2  ;;  %v9951_v8 = vor.u32 %v11114_v44, %v9948_v59  ;;  %v9852_v59 = vld [vmem:[%s11306_s27 + $0x1528] sm:$0xf0] }
 0x2be   : > { %6291 = vmatpush.bf16.msrb.mxu1 %v9551_v39  ;;  %v9527_v39 = vor.u32 %v11008_v23, %v9524_v6  ;;  %v6065_v31 = vpop.f32.mrf.mxu3  ;;  %v9759_v23 = vor.u32 %v11066_v7, %v9756_v19  ;;  %v11064_v6 = vld [vmem:[%s11306_s27 + $0x1454] sm:$0xf]  ;;  %v11078_v2 = vld [vmem:[%s11306_s27 + $0x14c4] sm:$0xf] }
 0x2bf   : > { %6304 = vmatpush.bf16.msrb.mxu2 %v9615_v63  ;;  %v9591_v63 = vor.u32 %v11024_v61, %v9588_v21  ;;  %v9748_v61 = vld [vmem:[%s11306_s27 + $0x1458] sm:$0xf0]  ;;  %v11080_v21 = vld [vmem:[%s11306_s27 + $0x14d4] sm:$0xf]  ;;  %v11058_v19 = vld [vmem:[%s11306_s27 + $0x1424] sm:$0xf] }
 0x2c0   : > { %6317 = vmatpush.bf16.msrb.mxu3 %v9679_v0  ;;  %v9580_v0 = vld [vmem:[%s11306_s27 + $0x1308] sm:$0xf0]  ;;  %v11090_v44 = vld [vmem:[%s11306_s27 + $0x1524] sm:$0xf] }
 0x2c1   : > { %6279 = vmatpush.bf16.msrb.mxu0 %v9479_v14  ;;  %v9455_v14 = vor.u32 %v10990_v24, %v9452_v1  ;;  %v9583_v52 = vor.u32 %v11022_v47, %v9580_v0  ;;  %v9876_v24 = vld [vmem:[%s11306_s27 + $0x1558] sm:$0xf0]  ;;  %v11112_v1 = vld [vmem:[%s11306_s27 + $0x15d4] sm:$0xf]  ;;  %v9740_v47 = vld [vmem:[%s11306_s27 + $0x1448] sm:$0xf0] }
 0x2c2   : > { %6292 = vmatpush.bf16.msrb.mxu1 %v9543_v15  ;;  %v9828_v15 = vld [vmem:[%s11306_s27 + $0x14f8] sm:$0xf0]  ;;  %v9868_v0 = vld [vmem:[%s11306_s27 + $0x1548] sm:$0xf0] }
 0x2c3   : > { %6305 = vmatpush.bf16.msrb.mxu2 %v9607_v48  ;;  %v11100_v48 = vld [vmem:[%s11306_s27 + $0x1574] sm:$0xf]  ;;  %v9831_v27 = vor.u32 %v11084_v50, %v9828_v15 }
 0x2c4   : > { %6318 = vmatpush.bf16.msrb.mxu3 %v9671_v5  ;;  %v9956_v5 = vld [vmem:[%s11306_s27 + $0x15f8] sm:$0xf0]  ;;  %v9895_v37 = vor.u32 %v11100_v48, %v9892_v46  ;;  %v11060_v50 = vld [vmem:[%s11306_s27 + $0x1434] sm:$0xf] }
 0x2c5   : > { %6280 = vmatpush.bf16.msrb.mxu0 %v9471_v38  ;;  %v9959_v38 = vor.u32 %v11116_v17, %v9956_v5  ;;  %v11076_v15 = vld [vmem:[%s11306_s27 + $0x14b4] sm:$0xf]  ;;  %v9860_v5 = vld [vmem:[%s11306_s27 + $0x1538] sm:$0xf0] }
 0x2c6   : > { %6293 = vmatpush.bf16.msrb.mxu1 %v9535_v33  ;;  %v11098_v33 = vld [vmem:[%s11306_s27 + $0x1564] sm:$0xf]  ;;  %v11092_v17 = vld [vmem:[%s11306_s27 + $0x1534] sm:$0xf] }
 0x2c7   : > { %6306 = vmatpush.bf16.msrb.mxu2 %v9599_v57  ;;  %v9884_v57 = vld [vmem:[%s11306_s27 + $0x1568] sm:$0xf0]  ;;  %v9863_v7 = vor.u32 %v11092_v17, %v9860_v5  ;;  %v11148_v17 = vld [vmem:[%s11306_s27 + $0x16f4] sm:$0xf] }
 0x2c8   : > { %6319 = vmatpush.bf16.msrb.mxu3 %v9663_v32  ;;  %v9887_v32 = vor.u32 %v11098_v33, %v9884_v57  ;;  %v9788_v57 = vld [vmem:[%s11306_s27 + $0x14a8] sm:$0xf0] }
 0x2c9   : > { %6281 = vmatpush.bf16.msrb.mxu0 %v9463_v26  ;;  %v11096_v26 = vld [vmem:[%s11306_s27 + $0x1554] sm:$0xf] }
 0x2ca   : > { %6294 = vmatpush.bf16.msrb.mxu1 %v9527_v39  ;;  %v9940_v39 = vld [vmem:[%s11306_s27 + $0x15d8] sm:$0xf0]  ;;  %v9879_v13 = vor.u32 %v11096_v26, %v9876_v24  ;;  %v9855_v26 = vor.u32 %v11090_v44, %v9852_v59  ;;  %v11056_v24 = vld [vmem:[%s11306_s27 + $0x1414] sm:$0xf]  ;;  %v10012_v44 = vld [vmem:[%s11306_s27 + $0x1668] sm:$0xf0] }
 0x2cb   : > { %6307 = vmatpush.bf16.msrb.mxu2 %v9591_v63  ;;  %v9751_v63 = vor.u32 %v11064_v6, %v9748_v61  ;;  %v9916_v6 = vld [vmem:[%s11306_s27 + $0x15a8] sm:$0xf0]  ;;  %v9727_v61 = vor.u32 %v11058_v19, %v9724_v30  ;;  %v10212_v19 = vld [vmem:[%s11306_s27 + $0x17f8] sm:$0xf0]  ;;  %v11146_v59 = vld [vmem:[%s11306_s27 + $0x16e4] sm:$0xf] }
 0x2cc   : > { %6320 = vmatpush.bf16.msrb.mxu3 %v9655_v54  ;;  %v9804_v54 = vld [vmem:[%s11306_s27 + $0x14c8] sm:$0xf0] }
 0x2cd   : > { %6282 = vmatpush.bf16.msrb.mxu0 %v9455_v14  ;;  %v6076_v31 = vpop.f32.mrf.mxu0  ;;  %v9807_v25 = vor.u32 %v11078_v2, %v9804_v54  ;;  %v9732_v14 = vld [vmem:[%s11306_s27 + $0x1438] sm:$0xf0]  ;;  %v11104_v2 = vld [vmem:[%s11306_s27 + $0x1594] sm:$0xf] }
 0x2ce   : > { %6295 = vmatpush.bf16.msrb.mxu1 %v9519_v42  ;;  %v6077_v48 = vadd.f32 %v6076_v31, %v13036_v20  ;;  %v6089_v46 = vpop.f32.mrf.mxu1  ;;  %v9935_v42 = vor.u32 %v11110_v51, %v9932_v28  ;;  %v9772_v31 = vld [vmem:[%s11306_s27 + $0x1488] sm:$0xf0] }
 0x2cf   : > { %6308 = vmatpush.bf16.msrb.mxu2 %v9583_v52  ;;  %v9796_v52 = vld [vmem:[%s11306_s27 + $0x14b8] sm:$0xf0] }
 0x2d0   : > { %6321 = vmatpush.bf16.msrb.mxu3 %v9647_v53  ;;  %6283 = vmatmul.bf16.vlgmr.msrb.gmra.mxu0 %v12735_v40  ;;  %v9943_v40 = vor.u32 %v11112_v1, %v9940_v39  ;;  %v11108_v53 = vld [vmem:[%s11306_s27 + $0x15b4] sm:$0xf]  ;;  %v9799_v20 = vor.u32 %v11076_v15, %v9796_v52  ;;  %v9716_v1 = vld [vmem:[%s11306_s27 + $0x1418] sm:$0xf0]  ;;  %v11102_v15 = vld [vmem:[%s11306_s27 + $0x1584] sm:$0xf] }
 0x2d1   : > { %6327 = vmatpush.bf16.msra.mxu0 %v9767_v55  ;;  %6296 = vmatmul.bf16.vlgmr.msrb.gmra.mxu1 %v12739_v45  ;;  %v9743_v45 = vor.u32 %v11062_v43, %v9740_v47  ;;  %v9924_v55 = vld [vmem:[%s11306_s27 + $0x15b8] sm:$0xf0]  ;;  %v11072_v39 = vld [vmem:[%s11306_s27 + $0x1494] sm:$0xf]  ;;  %v9719_v54 = vor.u32 %v11056_v24, %v9716_v1 }
 0x2d2   : > { %6340 = vmatpush.bf16.msra.mxu1 %v9831_v27  ;;  %6309 = vmatmul.bf16.vlgmr.msrb.gmra.mxu2 %v12731_v34  ;;  %v9815_v34 = vor.u32 %v11080_v21, %v9812_v16  ;;  %v6090_v27 = vadd.f32 %v6089_v46, %v6077_v48  ;;  %v9927_v33 = vor.u32 %v11108_v53, %v9924_v55  ;;  %v11088_v43 = vld [vmem:[%s11306_s27 + $0x1514] sm:$0xf]  ;;  %v9844_v47 = vld [vmem:[%s11306_s27 + $0x1518] sm:$0xf0]  ;;  %v9900_v48 = vld [vmem:[%s11306_s27 + $0x1588] sm:$0xf0] }
 0x2d3   : > { %6353 = vmatpush.bf16.msra.mxu2 %v9895_v37  ;;  %6322 = vmatmul.bf16.vlgmr.msrb.gmra.mxu3 %v12737_v49  ;;  %v11094_v49 = vld [vmem:[%s11306_s27 + $0x1544] sm:$0xf]  ;;  %v9735_v37 = vor.u32 %v11060_v50, %v9732_v14  ;;  %v9847_v28 = vor.u32 %v11088_v43, %v9844_v47  ;;  %v9836_v14 = vld [vmem:[%s11306_s27 + $0x1508] sm:$0xf0]  ;;  %v10020_v52 = vld [vmem:[%s11306_s27 + $0x1678] sm:$0xf0]  ;;  %v9903_v30 = vor.u32 %v11102_v15, %v9900_v48 }
 0x2d4   : > { %6366 = vmatpush.bf16.msra.mxu3 %v9959_v38  ;;  %v9871_v35 = vor.u32 %v11094_v49, %v9868_v0  ;;  %v11074_v38 = vld [vmem:[%s11306_s27 + $0x14a4] sm:$0xf]  ;;  %v9708_v0 = vld [vmem:[%s11306_s27 + $0x1408] sm:$0xf0]  ;;  %v10084_v53 = vld [vmem:[%s11306_s27 + $0x16f8] sm:$0xf0] }
 0x2d5   : > { %6328 = vmatpush.bf16.msra.mxu0 %v9759_v23  ;;  %v6102_v36 = vpop.f32.mrf.mxu2  ;;  %v9791_v16 = vor.u32 %v11074_v38, %v9788_v57  ;;  %v11054_v49 = vld [vmem:[%s11306_s27 + $0x1404] sm:$0xf]  ;;  %v11164_v55 = vld [vmem:[%s11306_s27 + $0x1774] sm:$0xf]  ;;  %v10132_v47 = vld [vmem:[%s11306_s27 + $0x1758] sm:$0xf0] }
 0x2d6   : > { %6341 = vmatpush.bf16.msra.mxu1 %v9823_v29  ;;  %v6103_v23 = vadd.f32 %v6102_v36, %v6090_v27  ;;  %v6115_v29 = vpop.f32.mrf.mxu3  ;;  %v9711_v5 = vor.u32 %v11054_v49, %v9708_v0  ;;  %v10148_v27 = vld [vmem:[%s11306_s27 + $0x1778] sm:$0xf0]  ;;  %v10087_v36 = vor.u32 %v11148_v17, %v10084_v53  ;;  %v11130_v57 = vld [vmem:[%s11306_s27 + $0x1664] sm:$0xf]  ;;  %v11128_v1 = vld [vmem:[%s11306_s27 + $0x1654] sm:$0xf] }
 0x2d7   : > { %6354 = vmatpush.bf16.msra.mxu2 %v9887_v32  ;;  %v11106_v32 = vld [vmem:[%s11306_s27 + $0x15a4] sm:$0xf]  ;;  %v11160_v43 = vld [vmem:[%s11306_s27 + $0x1754] sm:$0xf] }
 0x2d8   : > { %6367 = vmatpush.bf16.msra.mxu3 %v9951_v8  ;;  %v13107_v21 = vadd.f32 %v6115_v29, %v6103_v23  ;;  %v6078_v8 = vpop.f32.mrf.mxu0  ;;  %v10076_v29 = vld [vmem:[%s11306_s27 + $0x16e8] sm:$0xf0]  ;;  %v10135_v49 = vor.u32 %v11160_v43, %v10132_v47  ;;  %v11126_v0 = vld [vmem:[%s11306_s27 + $0x1644] sm:$0xf]  ;;  %v11140_v17 = vld [vmem:[%s11306_s27 + $0x16b4] sm:$0xf] }
 0x2d9   : > { %6329 = vmatpush.bf16.msra.mxu0 %v9751_v63  ;;  %v6091_v63 = vpop.f32.mrf.mxu1  ;;  %v10204_v8 = vld [vmem:[%s11306_s27 + $0x17e8] sm:$0xf0]  ;;  %v11136_v43 = vld [vmem:[%s11306_s27 + $0x1694] sm:$0xf] }
 0x2da   : > { %6342 = vmatpush.bf16.msra.mxu1 %v9815_v34  ;;  %v9919_v34 = vor.u32 %v11106_v32, %v9916_v6  ;;  %v11162_v32 = vld [vmem:[%s11306_s27 + $0x1764] sm:$0xf]  ;;  %v10140_v6 = vld [vmem:[%s11306_s27 + $0x1768] sm:$0xf0]  ;;  %v11144_v63 = vld [vmem:[%s11306_s27 + $0x16d4] sm:$0xf] }
 0x2db   : > { %6355 = vmatpush.bf16.msra.mxu2 %v9879_v13  ;;  %v9780_v13 = vld [vmem:[%s11306_s27 + $0x1498] sm:$0xf0]  ;;  %v10143_v24 = vor.u32 %v11162_v32, %v10140_v6 }
 0x2dc   : > { %6368 = vmatpush.bf16.msra.mxu3 %v9943_v40  ;;  %v9908_v40 = vld [vmem:[%s11306_s27 + $0x1598] sm:$0xf0]  ;;  %v9783_v51 = vor.u32 %v11072_v39, %v9780_v13 }
 0x2dd   : > { %6330 = vmatpush.bf16.msra.mxu0 %v9743_v45  ;;  %v11070_v45 = vld [vmem:[%s11306_s27 + $0x1484] sm:$0xf]  ;;  %v9911_v50 = vor.u32 %v11104_v2, %v9908_v40  ;;  %v10004_v39 = vld [vmem:[%s11306_s27 + $0x1658] sm:$0xf0]  ;;  %v11176_v2 = vld [vmem:[%s11306_s27 + $0x17d4] sm:$0xf] }
 0x2de   : > { %6343 = vmatpush.bf16.msra.mxu1 %v9807_v25  ;;  %v11086_v25 = vld [vmem:[%s11306_s27 + $0x1504] sm:$0xf]  ;;  %v6117_v46 = vpop.f32.mrf.mxu3  ;;  %v10068_v13 = vld [vmem:[%s11306_s27 + $0x16d8] sm:$0xf0] }
 0x2df   : > { %6356 = vmatpush.bf16.msra.mxu2 %v9871_v35  ;;  %v6104_v35 = vpop.f32.mrf.mxu2  ;;  %v10196_v40 = vld [vmem:[%s11306_s27 + $0x17d8] sm:$0xf0] }
 0x2e0   : > { %6369 = vmatpush.bf16.msra.mxu3 %v9935_v42  ;;  %v11132_v42 = vld [vmem:[%s11306_s27 + $0x1674] sm:$0xf]  ;;  %v10188_v35 = vld [vmem:[%s11306_s27 + $0x17c8] sm:$0xf0] }
 0x2e1   : > { %6331 = vmatpush.bf16.msra.mxu0 %v9735_v37  ;;  %v9775_v37 = vor.u32 %v11070_v45, %v9772_v31  ;;  %v10023_v38 = vor.u32 %v11132_v42, %v10020_v52  ;;  %v11158_v45 = vld [vmem:[%s11306_s27 + $0x1744] sm:$0xf]  ;;  %v10124_v31 = vld [vmem:[%s11306_s27 + $0x1748] sm:$0xf0]  ;;  %v11124_v42 = vld [vmem:[%s11306_s27 + $0x1634] sm:$0xf] }
 0x2e2   : > { %6344 = vmatpush.bf16.msra.mxu1 %v9799_v20  ;;  %v9839_v20 = vor.u32 %v11086_v25, %v9836_v14  ;;  %v11174_v25 = vld [vmem:[%s11306_s27 + $0x17c4] sm:$0xf]  ;;  %v10127_v46 = vor.u32 %v11158_v45, %v10124_v31  ;;  %v9988_v52 = vld [vmem:[%s11306_s27 + $0x1638] sm:$0xf0] }
 0x2e3   : > { %6357 = vmatpush.bf16.msra.mxu2 %v9863_v7  ;;  %v11180_v7 = vld [vmem:[%s11306_s27 + $0x17f4] sm:$0xf]  ;;  %v11134_v45 = vld [vmem:[%s11306_s27 + $0x1684] sm:$0xf] }
 0x2e4   : > { %6370 = vmatpush.bf16.msra.mxu3 %v9927_v33  ;;  %v10151_v33 = vor.u32 %v11164_v55, %v10148_v27  ;;  %v10215_v23 = vor.u32 %v11180_v7, %v10212_v19  ;;  %v10052_v55 = vld [vmem:[%s11306_s27 + $0x16b8] sm:$0xf0]  ;;  %v11156_v27 = vld [vmem:[%s11306_s27 + $0x1734] sm:$0xf]  ;;  %v9991_v7 = vor.u32 %v11124_v42, %v9988_v52 }
 0x2e5   : > { %6332 = vmatpush.bf16.msra.mxu0 %v9727_v61  ;;  %v11178_v61 = vld [vmem:[%s11306_s27 + $0x17e4] sm:$0xf]  ;;  %v10055_v19 = vor.u32 %v11140_v17, %v10052_v55  ;;  %v11205_v55 = vld [vmem:[%s13200_s19 + $0xb8] sm:$0xff] }
 0x2e6   : > { %6345 = vmatpush.bf16.msra.mxu1 %v9791_v16  ;;  %v10015_v16 = vor.u32 %v11130_v57, %v10012_v44 }
 0x2e7   : > { %6358 = vmatpush.bf16.msra.mxu2 %v9855_v26  ;;  %v10079_v26 = vor.u32 %v11146_v59, %v10076_v29  ;;  %v10044_v59 = vld [vmem:[%s11306_s27 + $0x16a8] sm:$0xf0] }
 0x2e8   : > { %6371 = vmatpush.bf16.msra.mxu3 %v9919_v34  ;;  %v10207_v34 = vor.u32 %v11178_v61, %v10204_v8  ;;  %v10108_v29 = vld [vmem:[%s11306_s27 + $0x1728] sm:$0xf0]  ;;  %v11170_v61 = vld [vmem:[%s11306_s27 + $0x17a4] sm:$0xf] }
 0x2e9   : > { %6333 = vmatpush.bf16.msra.mxu0 %v9719_v54  ;;  %v10071_v54 = vor.u32 %v11144_v63, %v10068_v13  ;;  %v10172_v8 = vld [vmem:[%s11306_s27 + $0x17a8] sm:$0xf0]  ;;  %v9972_v13 = vld [vmem:[%s11306_s27 + $0x1618] sm:$0xf0] }
 0x2ea   : > { %6346 = vmatpush.bf16.msra.mxu1 %v9783_v51  ;;  %v9996_v51 = vld [vmem:[%s11306_s27 + $0x1648] sm:$0xf0]  ;;  %v10175_v47 = vor.u32 %v11170_v61, %v10172_v8 }
 0x2eb   : > { %6359 = vmatpush.bf16.msra.mxu2 %v9847_v28  ;;  %v10060_v28 = vld [vmem:[%s11306_s27 + $0x16c8] sm:$0xf0]  ;;  %v9999_v14 = vor.u32 %v11126_v0, %v9996_v51 }
 0x2ec   : > { %6372 = vmatpush.bf16.msra.mxu3 %v9911_v50 }
 0x2ed   : > { %6334 = vmatpush.bf16.msra.mxu0 %v9711_v5  ;;  %v10191_v5 = vor.u32 %v11174_v25, %v10188_v35  ;;  %v11150_v25 = vld [vmem:[%s11306_s27 + $0x1704] sm:$0xf]  ;;  %v10092_v35 = vld [vmem:[%s11306_s27 + $0x1708] sm:$0xf0] }
 0x2ee   : > { %6347 = vmatpush.bf16.msra.mxu1 %v9775_v37  ;;  %v6141_v15 = vpop.f32.mrf.mxu1  ;;  %v11172_v37 = vld [vmem:[%s11306_s27 + $0x17b4] sm:$0xf]  ;;  %v10095_v52 = vor.u32 %v11150_v25, %v10092_v35 }
 0x2ef   : > { %6360 = vmatpush.bf16.msra.mxu2 %v9839_v20  ;;  %v10180_v20 = vld [vmem:[%s11306_s27 + $0x17b8] sm:$0xf0] }
 0x2f0   : > { %6373 = vmatpush.bf16.msra.mxu3 %v9903_v30  ;;  %6335 = vmatmul.bf16.vlgmr.msra.gmra.mxu0 %v12814_v3  ;;  %v10007_v3 = vor.u32 %v11128_v1, %v10004_v39  ;;  %v10183_v57 = vor.u32 %v11172_v37, %v10180_v20  ;;  %v11196_v37 = vld [vmem:[%s13200_s19 + $0x70] sm:$0xff] }
 0x2f1   : > { %6379 = vmatpush.bf16.msrb.mxu0 %v10023_v38  ;;  %6348 = vmatmul.bf16.vlgmr.msra.gmra.mxu1 %v12821_v62  ;;  %v10199_v62 = vor.u32 %v11176_v2, %v10196_v40  ;;  %v11122_v38 = vld [vmem:[%s11306_s27 + $0x1624] sm:$0xf]  ;;  %v10036_v2 = vld [vmem:[%s11306_s27 + $0x1698] sm:$0xf0]  ;;  %v11152_v40 = vld [vmem:[%s11306_s27 + $0x1714] sm:$0xf] }
 0x2f2   : > { %6392 = vmatpush.bf16.msrb.mxu1 %v10087_v36  ;;  %6361 = vmatmul.bf16.vlgmr.msra.gmra.mxu2 %v12819_v10  ;;  %v11142_v10 = vld [vmem:[%s11306_s27 + $0x16c4] sm:$0xf]  ;;  %v9980_v36 = vld [vmem:[%s11306_s27 + $0x1628] sm:$0xf0]  ;;  %v10039_v51 = vor.u32 %v11136_v43, %v10036_v2  ;;  %v11204_v20 = vld [vmem:[%s13200_s19 + $0xb0] sm:$0xff] }
 0x2f3   : > { %6405 = vmatpush.bf16.msrb.mxu2 %v10151_v33  ;;  %6374 = vmatmul.bf16.vlgmr.msra.gmra.mxu3 %v12825_v4  ;;  %v6128_v4 = vpop.f32.mrf.mxu0  ;;  %v10063_v48 = vor.u32 %v11142_v10, %v10060_v28  ;;  %v11138_v33 = vld [vmem:[%s11306_s27 + $0x16a4] sm:$0xf]  ;;  %v9964_v28 = vld [vmem:[%s11306_s27 + $0x1608] sm:$0xf0] }
 0x2f4   : > { %6418 = vmatpush.bf16.msrb.mxu3 %v10215_v23  ;;  %v6129_v50 = vadd.f32 %v6128_v4, %v13107_v21  ;;  %v10116_v21 = vld [vmem:[%s11306_s27 + $0x1738] sm:$0xf0]  ;;  %v11154_v23 = vld [vmem:[%s11306_s27 + $0x1724] sm:$0xf]  ;;  %v10047_v39 = vor.u32 %v11138_v33, %v10044_v59  ;;  %v10028_v4 = vld [vmem:[%s11306_s27 + $0x1688] sm:$0xf0] }
 0x2f5   : > { %6380 = vmatpush.bf16.msrb.mxu0 %v10015_v16  ;;  %v10119_v30 = vor.u32 %v11156_v27, %v10116_v21  ;;  %v6154_v44 = vpop.f32.mrf.mxu2  ;;  %v10111_v63 = vor.u32 %v11154_v23, %v10108_v29  ;;  %v10031_v42 = vor.u32 %v11134_v45, %v10028_v4  ;;  %v11213_v27 = vld [vmem:[%s13200_s19 + $0xf8] sm:$0xff]  ;;  %v11188_v21 = vld [vmem:[%s13200_s19 + $0x30] sm:$0xff]  ;;  %v11194_v33 = vld [vmem:[%s13200_s19 + $0x60] sm:$0xff] }
 0x2f6   : > { %6393 = vmatpush.bf16.msrb.mxu1 %v10079_v26  ;;  %v6142_v53 = vadd.f32 %v6141_v15, %v6129_v50  ;;  %v6167_v6 = vpop.f32.mrf.mxu3  ;;  %v9983_v26 = vor.u32 %v11122_v38, %v9980_v36  ;;  %v10156_v15 = vld [vmem:[%s11306_s27 + $0x1788] sm:$0xf0]  ;;  %v11185_v23 = vld [vmem:[%s13200_s19 + $0x18] sm:$0xff]  ;;  %v11206_v4 = vld [vmem:[%s13200_s19 + $0xc0] sm:$0xff] }
 0x2f7   : > { %6406 = vmatpush.bf16.msrb.mxu2 %v10143_v24  ;;  %v6143_v24 = vpop.f32.mrf.mxu1  ;;  %v11203_v38 = vld [vmem:[%s13200_s19 + $0xa8] sm:$0xff]  ;;  %v11193_v29 = vld [vmem:[%s13200_s19 + $0x58] sm:$0xff] }
 0x2f8   : > { %6419 = vmatpush.bf16.msrb.mxu3 %v10207_v34  ;;  %v6155_v32 = vadd.f32 %v6154_v44, %v6142_v53  ;;  %v11120_v34 = vld [vmem:[%s11306_s27 + $0x1614] sm:$0xf]  ;;  %v11197_v53 = vld [vmem:[%s13200_s19 + $0x78] sm:$0xff]  ;;  %v11210_v44 = vld [vmem:[%s13200_s19 + $0xe0] sm:$0xff] }
 0x2f9   : > { %6381 = vmatpush.bf16.msrb.mxu0 %v10007_v3  ;;  %v10100_v3 = vld [vmem:[%s11306_s27 + $0x1718] sm:$0xf0]  ;;  %v9975_v0 = vor.u32 %v11120_v34, %v9972_v13  ;;  %v11184_v24 = vld [vmem:[%s13200_s19 + $0x10] sm:$0xff]  ;;  %v11183_v2 = vld [vmem:[%s13200_s19 + $0x8] sm:$0xff] }
 0x2fa   : > { %6394 = vmatpush.bf16.msrb.mxu1 %v10071_v54  ;;  %v13178_v1 = vadd.f32 %v6167_v6, %v6155_v32  ;;  %v11168_v54 = vld [vmem:[%s11306_s27 + $0x1794] sm:$0xf]  ;;  %v10103_v10 = vor.u32 %v11152_v40, %v10100_v3  ;;  %v11201_v32 = vld [vmem:[%s13200_s19 + $0x98] sm:$0xff]  ;;  %v6491_v40 = vpack.c.bf16 %v12304_v60, %v11962_v9  ;;  %v11191_v3 = vld [vmem:[%s13200_s19 + $0x48] sm:$0xff] }
 0x2fb   : > { %6407 = vmatpush.bf16.msrb.mxu2 %v10135_v49  ;;  %v6130_v16 = vpop.f32.mrf.mxu0  ;;  %v10164_v49 = vld [vmem:[%s11306_s27 + $0x1798] sm:$0xf0]  ;;  %v11200_v34 = vld [vmem:[%s13200_s19 + $0x90] sm:$0xff]  ;;  %v11190_v9 = vld [vmem:[%s13200_s19 + $0x40] sm:$0xff] }
 0x2fc   : > { %6420 = vmatpush.bf16.msrb.mxu3 %v10199_v62  ;;  %v11118_v62 = vld [vmem:[%s11306_s27 + $0x1604] sm:$0xf]  ;;  %v10167_v31 = vor.u32 %v11168_v54, %v10164_v49  ;;  %v11209_v6 = vld [vmem:[%s13200_s19 + $0xd8] sm:$0xff]  ;;  %v11208_v13 = vld [vmem:[%s13200_s19 + $0xd0] sm:$0xff]  ;;  %v6492_v49 = vpack.c.bf16 %v12958_v18, %v12593_v11  ;;  %v6604_v45 = vunpack.c.h.b16 %v6491_v40 }
 0x2fd   : > { %6382 = vmatpush.bf16.msrb.mxu0 %v9999_v14  ;;  %v6156_v50 = vpop.f32.mrf.mxu2  ;;  %v11166_v14 = vld [vmem:[%s11306_s27 + $0x1784] sm:$0xf]  ;;  %v11199_v54 = vld [vmem:[%s13200_s19 + $0x88] sm:$0xff] }
 0x2fe   : > { %6395 = vmatpush.bf16.msrb.mxu1 %v10063_v48  ;;  %v6169_v48 = vpop.f32.mrf.mxu3  ;;  %v10159_v17 = vor.u32 %v11166_v14, %v10156_v15  ;;  %v11198_v60 = vld [vmem:[%s13200_s19 + $0x80] sm:$0xff]  ;;  %v6733_v35 = vunpack.c.h.b16 %v6492_v49  ;;  %v6606_v15 = vpack.c.b16 %v6604_v45, %v6604_v45 }
 0x2ff   : > { %6408 = vmatpush.bf16.msrb.mxu2 %v10127_v46  ;;  %v9967_v46 = vor.u32 %v11118_v62, %v9964_v28  ;;  %v11182_v62 = vld [vmem:[%s13200_s19] sm:$0xff]  ;;  %v6603_v28 = vunpack.c.l.b16 %v6491_v40 }
 0x300   : > { %6421 = vmatpush.bf16.msrb.mxu3 %v10191_v5  ;;  %v11189_v5 = vld [vmem:[%s13200_s19 + $0x38] sm:$0xff] }
 0x301   : > { %6383 = vmatpush.bf16.msrb.mxu0 %v9991_v7  ;;  %v11212_v7 = vld [vmem:[%s13200_s19 + $0xf0] sm:$0xff]  ;;  %v6605_v14 = vpack.c.b16 %v6603_v28, %v6603_v28  ;;  %v11214_v28 = vld [vmem:[%s13200_s19 + $0x100] sm:$0xff] }
 0x302   : > { %6396 = vmatpush.bf16.msrb.mxu1 %v10055_v19  ;;  %v11187_v19 = vld [vmem:[%s13200_s19 + $0x28] sm:$0xff] }
 0x303   : > { %6409 = vmatpush.bf16.msrb.mxu2 %v10119_v30  ;;  %v11195_v30 = vld [vmem:[%s13200_s19 + $0x68] sm:$0xff] }
 0x304   : > { %6422 = vmatpush.bf16.msrb.mxu3 %v10183_v57  ;;  %v11202_v57 = vld [vmem:[%s13200_s19 + $0xa0] sm:$0xff] }
 0x305   : > { %6384 = vmatpush.bf16.msrb.mxu0 %v9983_v26 }
 0x306   : > { %6397 = vmatpush.bf16.msrb.mxu1 %v10047_v39 }
 0x307   : > { %6410 = vmatpush.bf16.msrb.mxu2 %v10111_v63  ;;  %v11192_v63 = vld [vmem:[%s13200_s19 + $0x50] sm:$0xff] }
 0x308   : > { %6423 = vmatpush.bf16.msrb.mxu3 %v10175_v47 }
 0x309   : > { %6385 = vmatpush.bf16.msrb.mxu0 %v9975_v0  ;;  %v11207_v0 = vld [vmem:[%s13200_s19 + $0xc8] sm:$0xff] }
 0x30a   : > { %6398 = vmatpush.bf16.msrb.mxu1 %v10039_v51 }
 0x30b   : > { %6411 = vmatpush.bf16.msrb.mxu2 %v10103_v10 }
 0x30c   : > { %6424 = vmatpush.bf16.msrb.mxu3 %v10167_v31  ;;  %v6732_v31 = vunpack.c.l.b16 %v6492_v49 }
 0x30d   : > { %6386 = vmatpush.bf16.msrb.mxu0 %v9967_v46  ;;  %v6180_v36 = vpop.f32.mrf.mxu0 }
 0x30e   : > { %6399 = vmatpush.bf16.msrb.mxu1 %v10031_v42  ;;  %v6734_v48 = vpack.c.b16 %v6732_v31, %v6732_v31  ;;  %v6735_v42 = vpack.c.b16 %v6733_v35, %v6733_v35 }
 0x30f   : > { %6412 = vmatpush.bf16.msrb.mxu2 %v10095_v52 }
 0x310   : > { %6425 = vmatpush.bf16.msrb.mxu3 %v10159_v17  ;;  %6387 = vmatmul.bf16.vlgmr.msrb.gmra.mxu0 %v12906_v58  ;;  %v11211_v58 = vld [vmem:[%s13200_s19 + $0xe8] sm:$0xff] }
 0x311   : > { %6705 = vmatpush.bf16.msra.mxu0 %v11189_v5  ;;  %6400 = vmatmul.bf16.vlgmr.msrb.gmra.mxu1 %v12913_v22  ;;  %v11186_v22 = vld [vmem:[%s13200_s19 + $0x20] sm:$0xff]  ;;  %v1168_v5 = vperm.slane %v13004_v56, 1 }
 0x312   : > { %6718 = vmatpush.bf16.msra.mxu1 %v11197_v53  ;;  %6413 = vmatmul.bf16.vlgmr.msrb.gmra.mxu2 %v12911_v41  ;;  %v6181_v41 = vadd.f32 %v6180_v36, %v13178_v1 }
 0x313   : > { %6834 = vmatpush.bf16.msra.mxu2 %v11205_v55  ;;  %6426 = vmatmul.bf16.vlgmr.msrb.gmra.mxu3 %v12917_v12  ;;  %v6193_v12 = vpop.f32.mrf.mxu1 }
 0x314   : > { %6847 = vmatpush.bf16.msra.mxu3 %v11213_v27  ;;  %v6194_v59 = vadd.f32 %v6193_v12, %v6181_v41  ;;  %v6442_v43 = vpop.xlane.xlu0 %6441 }
 0x315   : > { %6706 = vmatpush.bf16.msra.mxu0 %v11188_v21  ;;  %v6206_v61 = vpop.f32.mrf.mxu2  ;;  %v6182_v26 = vpop.f32.mrf.mxu0  ;;  %v6447_v47 = vadd.f32 1e-16, %v6442_v43 }
 0x316   : > { %6719 = vmatpush.bf16.msra.mxu1 %v11196_v37  ;;  %v6207_v8 = vadd.f32 %v6206_v61, %v6194_v59  ;;  %v6219_v16 = vpop.f32.mrf.mxu3  ;;  %v11229_v59 = vld [vmem:[%s13200_s19 + $0x178] sm:$0xff]  ;;  %v11227_v26 = vld [vmem:[%s13200_s19 + $0x168] sm:$0xff] }
 0x317   : > { %6835 = vmatpush.bf16.msra.mxu2 %v11204_v20  ;;  %11243 = vrsqrt.f32 %v6447_v47  ;;  %vm6465_vm4 = vweird.f32 %v6447_v47 }
 0x318   : > { %6848 = vmatpush.bf16.msra.mxu3 %v11212_v7  ;;  %v13228_v39 = vadd.f32 %v6219_v16, %v6207_v8  ;;  %v11219_v16 = vld [vmem:[%s13200_s19 + $0x128] sm:$0xff] }
 0x319   : > { %6707 = vmatpush.bf16.msra.mxu0 %v11187_v19 }
 0x31a   : > { %6720 = vmatpush.bf16.msra.mxu1 %v11195_v30 }
 0x31b   : > { %6836 = vmatpush.bf16.msra.mxu2 %v11203_v38  ;;  %v6195_v1 = vpop.f32.mrf.mxu1 }
 0x31c   : > { %6849 = vmatpush.bf16.msra.mxu3 %v11211_v58  ;;  %v11226_v1 = vld [vmem:[%s13200_s19 + $0x160] sm:$0xff] }
 0x31d   : > { %6708 = vmatpush.bf16.msra.mxu0 %v11186_v22  ;;  %v6208_v51 = vpop.f32.mrf.mxu2  ;;  %v11244_v25 = vpop.eup %11243 }
 0x31e   : > { %6721 = vmatpush.bf16.msra.mxu1 %v11194_v33  ;;  %v6221_v10 = vpop.f32.mrf.mxu3  ;;  %v6460_v50 = vmul.f32 %v11244_v25, %v6447_v47  ;;  %vm6466_vm3 = vweird.f32 %v11244_v25  ;;  %v11216_v47 = vld [vmem:[%s13200_s19 + $0x110] sm:$0xff]  ;;  %v11223_v51 = vld [vmem:[%s13200_s19 + $0x148] sm:$0xff] }
 0x31f   : > { %6837 = vmatpush.bf16.msra.mxu2 %v11202_v57  ;;  %vm6467_vm5 = vmor %vm6465_vm4, %vm6466_vm3 }
 0x320   : > { %6850 = vmatpush.bf16.msra.mxu3 %v11210_v44  ;;  %v6461_v46 = vmul.f32 %v11244_v25, %v6460_v50  ;;  %v11221_v44 = vld [vmem:[%s13200_s19 + $0x138] sm:$0xff] }
 0x321   : > { %6709 = vmatpush.bf16.msra.mxu0 %v11185_v23 }
 0x322   : > { %6722 = vmatpush.bf16.msra.mxu1 %v11193_v29  ;;  %v6462_v52 = vmul.f32 0.5, %v6461_v46 }
 0x323   : > { %6838 = vmatpush.bf16.msra.mxu2 %v11201_v32  ;;  %v11220_v32 = vld [vmem:[%s13200_s19 + $0x130] sm:$0xff] }
 0x324   : > { %6851 = vmatpush.bf16.msra.mxu3 %v11209_v6  ;;  %v6463_v17 = vsub.f32 1.5, %v6462_v52  ;;  %v11228_v6 = vld [vmem:[%s13200_s19 + $0x170] sm:$0xff] }
 0x325   : > { %6710 = vmatpush.bf16.msra.mxu0 %v11184_v24  ;;  %v11218_v24 = vld [vmem:[%s13200_s19 + $0x120] sm:$0xff] }
 0x326   : > { %6723 = vmatpush.bf16.msra.mxu1 %v11192_v63  ;;  %v6464_v53 = vmul.f32 %v11244_v25, %v6463_v17 }
 0x327   : > { %6839 = vmatpush.bf16.msra.mxu2 %v11200_v34  ;;  %v11217_v34 = vld [vmem:[%s13200_s19 + $0x118] sm:$0xff] }
 0x328   : > { %6852 = vmatpush.bf16.msra.mxu3 %v11208_v13  ;;  %v6468_v55 = vsel %vm6467_vm5, %v11244_v25, %v6464_v53  ;;  %v11225_v13 = vld [vmem:[%s13200_s19 + $0x158] sm:$0xff] }
 0x329   : > { %6711 = vmatpush.bf16.msra.mxu0 %v11183_v2  ;;  %v6481_v21 = vmul.f32 %v6468_v55, %v12593_v11  ;;  %v6482_v37 = vmul.f32 %v6468_v55, %v12958_v18  ;;  %v11224_v2 = vld [vmem:[%s13200_s19 + $0x150] sm:$0xff] }
 0x32a   : > { %6724 = vmatpush.bf16.msra.mxu1 %v11191_v3 }
 0x32b   : > { %6840 = vmatpush.bf16.msra.mxu2 %v11199_v54  ;;  %6487 = vst [vmem:[%s12674_s15 + $0x10] sm:$0xff] %v6481_v21 }
 0x32c   : > { %6853 = vmatpush.bf16.msra.mxu3 %v11207_v0  ;;  %6488 = vst [vmem:[%s12674_s15 + $0x18] sm:$0xff] %v6482_v37  ;;  %v11215_v0 = vld [vmem:[%s13200_s19 + $0x108] sm:$0xff]  ;;  %v6435_v37 = vmul.f32 %v13228_v39, %v13228_v39 }
 0x32d   : > { %6712 = vmatpush.bf16.msra.mxu0 %v11182_v62  ;;  %v6232_v27 = vpop.f32.mrf.mxu0 }
 0x32e   : > { %6725 = vmatpush.bf16.msra.mxu1 %v11190_v9  ;;  %v6233_v20 = vadd.f32 %v6232_v27, %v1168_v5  ;;  %v6245_v7 = vpop.f32.mrf.mxu1  ;;  %v11222_v9 = vld [vmem:[%s13200_s19 + $0x140] sm:$0xff] }
 0x32f   : > { %6841 = vmatpush.bf16.msra.mxu2 %v11198_v60 }
 0x330   : > { %6854 = vmatpush.bf16.msra.mxu3 %v11206_v4  ;;  %6713 = vmatmul.bf16.vlgmr.msra.gmra.mxu0 %v6605_v14  ;;  %v6246_v19 = vadd.f32 %v6245_v7, %v6233_v20 }
 0x331   : > { %6726 = vmatmul.bf16.vlgmr.msra.gmra.mxu1 %v6606_v15  ;;  %6963 = vmatpush.bf16.msrb.mxu0 %v11221_v44 }
 0x332   : > { %6842 = vmatmul.bf16.vlgmr.msra.gmra.mxu2 %v6734_v48  ;;  %6976 = vmatpush.bf16.msrb.mxu1 %v11229_v59 }
 0x333   : > { %6855 = vmatmul.bf16.vlgmr.msra.gmra.mxu3 %v6735_v42 }
 0x335   : > { %v6258_v30 = vpop.f32.mrf.mxu2  ;;  %v6234_v36 = vpop.f32.mrf.mxu0  ;;  %6964 = vmatpush.bf16.msrb.mxu0 %v11220_v32 }
 0x336   : > { %v6259_v38 = vadd.f32 %v6258_v30, %v6246_v19  ;;  %v6271_v58 = vpop.f32.mrf.mxu3  ;;  %v6247_v41 = vpop.f32.mrf.mxu1  ;;  %6977 = vmatpush.bf16.msrb.mxu1 %v11228_v6 }
 0x337   : > { %v11238_v41 = vld [vmem:[%s13237_s24] ss:$0 sm:$0xff] }
 0x338   : > { %v6272_v56 = vadd.f32 %v6271_v58, %v6259_v38 }
 0x339   : > { %6965 = vmatpush.bf16.msrb.mxu0 %v11219_v16 }
 0x33a   : > { %6978 = vmatpush.bf16.msrb.mxu1 %v11227_v26 }
 0x33d   : > { %v6260_v22 = vpop.f32.mrf.mxu2  ;;  %6966 = vmatpush.bf16.msrb.mxu0 %v11218_v24  ;;  %v11240_v24 = vld [vmem:[%s13237_s24 + $0x2] ss:$0 sm:$0xff] }
 0x33e   : > { %v6273_v12 = vpop.f32.mrf.mxu3  ;;  %6979 = vmatpush.bf16.msrb.mxu1 %v11226_v1 }
 0x341   : > { %6967 = vmatpush.bf16.msrb.mxu0 %v11217_v34 }
 0x342   : > { %6980 = vmatpush.bf16.msrb.mxu1 %v11225_v13 }
 0x345   : > { %6968 = vmatpush.bf16.msrb.mxu0 %v11216_v47 }
 0x346   : > { %6981 = vmatpush.bf16.msrb.mxu1 %v11224_v2 }
 0x349   : > { %6969 = vmatpush.bf16.msrb.mxu0 %v11215_v0 }
 0x34a   : > { %6982 = vmatpush.bf16.msrb.mxu1 %v11223_v51 }
 0x34d   : > { %v6284_v11 = vpop.f32.mrf.mxu0  ;;  %6970 = vmatpush.bf16.msrb.mxu0 %v11214_v28 }
 0x34e   : > { %v6297_v18 = vpop.f32.mrf.mxu1  ;;  %v6285_v40 = vadd.f32 %v6284_v11, %v6272_v56  ;;  %6983 = vmatpush.bf16.msrb.mxu1 %v11222_v9 }
 0x350   : > { %v6298_v62 = vadd.f32 %v6297_v18, %v6285_v40 }
 0x355   : > { %v6310_v33 = vpop.f32.mrf.mxu2  ;;  %v6286_v23 = vpop.f32.mrf.mxu0 }
 0x356   : > { %v6323_v57 = vpop.f32.mrf.mxu3  ;;  %v6299_v29 = vpop.f32.mrf.mxu1  ;;  %v6311_v60 = vadd.f32 %v6310_v33, %v6298_v62  ;;  %v11239_v33 = vld [vmem:[%s13237_s24 + $0x1] ss:$0 sm:$0xff] }
 0x358   : > { %v6324_v4 = vadd.f32 %v6323_v57, %v6311_v60 }
 0x35d   : > { %v6312_v61 = vpop.f32.mrf.mxu2 }
 0x35e   : > { %v6325_v8 = vpop.f32.mrf.mxu3 }
 0x36d   : > { %v6336_v63 = vpop.f32.mrf.mxu0 }
 0x36e   : > { %v6349_v43 = vpop.f32.mrf.mxu1  ;;  %v6337_v25 = vadd.f32 %v6336_v63, %v6324_v4 }
 0x370   : > { %v6350_v35 = vadd.f32 %v6349_v43, %v6337_v25 }
 0x375   : > { %v6362_v3 = vpop.f32.mrf.mxu2  ;;  %v6338_v49 = vpop.f32.mrf.mxu0 }
 0x376   : > { %v6375_v54 = vpop.f32.mrf.mxu3  ;;  %v6351_v10 = vpop.f32.mrf.mxu1  ;;  %v6363_v50 = vadd.f32 %v6362_v3, %v6350_v35 }
 0x378   : > { %v6376_v14 = vadd.f32 %v6375_v54, %v6363_v50 }
 0x37d   : > { %v6364_v45 = vpop.f32.mrf.mxu2 }
 0x37e   : > { %v6377_v31 = vpop.f32.mrf.mxu3 }
 0x38d   : > { %v6388_v15 = vpop.f32.mrf.mxu0 }
 0x38e   : > { %v6401_v48 = vpop.f32.mrf.mxu1  ;;  %v6389_v46 = vadd.f32 %v6388_v15, %v6376_v14 }
 0x390   : > { %v6402_v42 = vadd.f32 %v6401_v48, %v6389_v46 }
 0x395   : > { %v6414_v52 = vpop.f32.mrf.mxu2  ;;  %v6390_v53 = vpop.f32.mrf.mxu0 }
 0x396   : > { %v6415_v17 = vadd.f32 %v6414_v52, %v6402_v42  ;;  %v6427_v5 = vpop.f32.mrf.mxu3  ;;  %v6403_v55 = vpop.f32.mrf.mxu1 }
 0x398   : > { %v6428_v27 = vadd.f32 %v6427_v5, %v6415_v17 }
 0x39a   : > { %v6493_v21 = vpack.c.bf16 %v6428_v27, %v13228_v39  ;;  %v6436_v20 = vmul.f32 %v6428_v27, %v6428_v27 }
 0x39c   : > { %v6861_v7 = vunpack.c.l.b16 %v6493_v21  ;;  %v6862_v19 = vunpack.c.h.b16 %v6493_v21  ;;  %v6443_v30 = vadd.f32 %v6436_v20, %v6435_v37 }
 0x39d   : > { %v6416_v38 = vpop.f32.mrf.mxu2 }
 0x39e   : > { %v6863_v58 = vpack.c.b16 %v6861_v7, %v6861_v7  ;;  %v6864_v56 = vpack.c.b16 %v6862_v19, %v6862_v19  ;;  %v6429_v36 = vpop.f32.mrf.mxu3  ;;  %6444 = vadd.xlane.f32.xlu1 %v6443_v30 }
 0x3a0   : > { %6971 = vmatmul.bf16.vlgmr.msrb.gmra.mxu0 %v6863_v58  ;;  %6984 = vmatmul.bf16.vlgmr.msrb.gmra.mxu1 %v6864_v56 }
 0x3ad   : > { %v6714_v22 = vpop.f32.mrf.mxu0 }
 0x3ae   : > { %v6715_v12 = vadd.f32 %v11238_v41, %v6714_v22  ;;  %v6727_v11 = vpop.f32.mrf.mxu1 }
 0x3b0   : > { %v6728_v18 = vadd.f32 %v6727_v11, %v6715_v12 }
 0x3b2   : > { %6989 = vst [vmem:[%s356_s28] sm:$0xff] %v6728_v18 }
 0x3b5   : > { %v6843_v57 = vpop.f32.mrf.mxu2  ;;  %v6716_v23 = vpop.f32.mrf.mxu0 }
 0x3b6   : > { %v6844_v44 = vadd.f32 %v11239_v33, %v6843_v57  ;;  %v6856_v59 = vpop.f32.mrf.mxu3  ;;  %v6729_v29 = vpop.f32.mrf.mxu1 }
 0x3b8   : > { %v6857_v32 = vadd.f32 %v6856_v59, %v6844_v44 }
 0x3ba   : > { %6990 = vst [vmem:[%s356_s28 + $0x8] sm:$0xff] %v6857_v32 }
 0x3bd   : > { %v6845_v6 = vpop.f32.mrf.mxu2 }
 0x3be   : > { %v6858_v61 = vpop.f32.mrf.mxu3 }
 0x411   : > { %v6445_v8 = vpop.xlane.xlu1 %6444 }
 0x412   : > { %v6448_v16 = vadd.f32 1e-16, %v6445_v8 }
 0x414   : > { %11245 = vrsqrt.f32 %v6448_v16  ;;  %vm6475_vm7 = vweird.f32 %v6448_v16 }
 0x41a   : > { %v11246_v26 = vpop.eup %11245 }
 0x41b   : > { %v6470_v1 = vmul.f32 %v11246_v26, %v6448_v16  ;;  %vm6476_vm6 = vweird.f32 %v11246_v26 }
 0x41c   : > { %vm6477_vm8 = vmor %vm6475_vm7, %vm6476_vm6 }
 0x41d   : > { %v6471_v63 = vmul.f32 %v11246_v26, %v6470_v1  ;;  %v6972_v34 = vpop.f32.mrf.mxu0  ;;  %v6985_v13 = vpop.f32.mrf.mxu1 }
 0x41e   : > { %v6973_v43 = vadd.f32 %v11240_v24, %v6972_v34 }
 0x41f   : > { %v6472_v47 = vmul.f32 0.5, %v6471_v63 }
 0x420   : > { %v6986_v2 = vadd.f32 %v6985_v13, %v6973_v43 }
 0x421   : > { %v6473_v40 = vsub.f32 1.5, %v6472_v47 }
 0x422   : > { %6991 = vst [vmem:[%s356_s28 + $0x10] sm:$0xff] %v6986_v2 }
 0x423   : > { %v6474_v3 = vmul.f32 %v11246_v26, %v6473_v40 }
 0x425   : > { %v6478_v54 = vsel %vm6477_vm8, %v11246_v26, %v6474_v3  ;;  %v6974_v49 = vpop.f32.mrf.mxu0  ;;  %v6987_v0 = vpop.f32.mrf.mxu1 }
 0x426   : > { %v6483_v51 = vmul.f32 %v6478_v54, %v13228_v39  ;;  %v6484_v10 = vmul.f32 %v6478_v54, %v6428_v27 }
 0x428   : > { %6489 = vst [vmem:[%s12674_s15 + $0x20] sm:$0xff] %v6483_v51 }
 0x429   : > { %6490 = vst [vmem:[%s12674_s15 + $0x28] sm:$0xff] %v6484_v10 }
 0x42a PF: > { %s17_s21 = sadd.s32 1, %s11255_s21  }
 0x42b   : > { %p14_p4 = scmp.ge.s32.totalorder %s17_s21, 4  }
 0x42d   :  { %16 = sbr.rel (!%p14_p4) target bundleno = 1 (0x1), region = 94 }

</bundles_post_ra>
